<compile_context>
chip_gen: v6e
topology: v6e:2x2x1
jax: 0.10.0
libtpu: 0.0.40
codegen_flags: <defaults>
</compile_context>

<pallas_src>
import functools
import math

import numpy as np
import jax
import jax.numpy as jnp
from jax import lax
from jax.experimental import pallas as pl
from jax.experimental.pallas import tpu as pltpu

PARAM_KERNEL_SIZE = 24
_GN_EPS = 1e-5


# ----------------------------- in-kernel helpers -----------------------------

def _group_norm(y, gsel, gselt, gamma, beta, eps):
    """GroupNorm over a per-sample (S, C) slab (PyTorch semantics, biased var).

    gsel:  (C, G) one-hot channel->group selector, gselt: (G, C) its transpose.
    gamma/beta: (1, C) affine parameters.
    """
    S, C = y.shape
    G = gsel.shape[1]
    cnt = float(S * (C // G))
    colsum = jnp.sum(y, axis=0, keepdims=True)                              # (1, C)
    mean_c = jnp.dot(jnp.dot(colsum, gsel, preferred_element_type=jnp.float32) / cnt,
                     gselt, preferred_element_type=jnp.float32)             # (1, C)
    d = y - mean_c
    colsq = jnp.sum(d * d, axis=0, keepdims=True)                           # (1, C)
    var_g = jnp.dot(colsq, gsel, preferred_element_type=jnp.float32) / cnt  # (1, G)
    rstd_c = jnp.dot(lax.rsqrt(var_g + eps), gselt,
                     preferred_element_type=jnp.float32)                    # (1, C)
    return d * rstd_c * gamma + beta


# ----------------------------- Pallas kernels -----------------------------

def _conv_gn_kernel(col_ref, w_ref, b_ref, gsel_ref, gselt_ref, gam_ref, bet_ref,
                    o_ref, *, relu_conv, apply_gn, relu_gn, eps):
    """Per-sample GEMM (+bias) [+ReLU] [+GroupNorm [+ReLU]]."""
    y = jnp.dot(col_ref[...], w_ref[...], preferred_element_type=jnp.float32)
    y = y + b_ref[...]
    if relu_conv:
        y = jnp.maximum(y, 0.0)
    if apply_gn:
        y = _group_norm(y, gsel_ref[...], gselt_ref[...], gam_ref[...],
                        bet_ref[...], eps)
        if relu_gn:
            y = jnp.maximum(y, 0.0)
    o_ref[...] = y


def _conv_eca_kernel(col_ref, w_ref, b_ref, gsel_ref, gselt_ref, gam_ref, bet_ref,
                     band_ref, id_ref, o_ref, *, gn_start, gn_end, eps):
    """Per-sample conv2 GEMM [+GN] + ECA(scale) + residual add [+GN+ReLU]."""
    y = jnp.dot(col_ref[...], w_ref[...], preferred_element_type=jnp.float32)
    y = y + b_ref[...]
    if gn_start:
        y = _group_norm(y, gsel_ref[...], gselt_ref[...], gam_ref[...],
                        bet_ref[...], eps)
    # eca_layer: AdaptiveAvgPool3d(1) -> 3-tap 1-D conv over channels (banded
    # matrix, only the middle row of the 3x3 kernel sees real data) -> sigmoid
    pooled = jnp.mean(y, axis=0, keepdims=True)                             # (1, C)
    scale = jax.nn.sigmoid(jnp.dot(pooled, band_ref[...],
                                   preferred_element_type=jnp.float32))     # (1, C)
    y = y * scale + id_ref[...]
    if gn_end:
        y = _group_norm(y, gsel_ref[...], gselt_ref[...], gam_ref[...],
                        bet_ref[...], eps)
        y = jnp.maximum(y, 0.0)
    o_ref[...] = y


def _gn_relu_kernel(x_ref, gsel_ref, gselt_ref, gam_ref, bet_ref, o_ref, *, eps):
    y = _group_norm(x_ref[...], gsel_ref[...], gselt_ref[...], gam_ref[...],
                    bet_ref[...], eps)
    o_ref[...] = jnp.maximum(y, 0.0)


def _se_kernel(a_ref, b_ref, wse_ref, bse_ref, wex_ref, bex_ref, o_ref):
    """U = a + b, global pool, conv_se(1x1)+ReLU, conv_ex(1x1)."""
    u = a_ref[...] + b_ref[...]                                             # (S, C)
    pooled = jnp.mean(u, axis=0, keepdims=True)                             # (1, C)
    z = jnp.dot(pooled, wse_ref[...], preferred_element_type=jnp.float32) + bse_ref[...]
    z = jnp.maximum(z, 0.0)                                                 # (1, r)
    a = jnp.dot(z, wex_ref[...], preferred_element_type=jnp.float32) + bex_ref[...]
    o_ref[...] = a                                                          # (1, C)


# ----------------------------- wrappers -----------------------------

def _group_selectors(C, groups):
    gsel = (jnp.arange(C)[:, None] // (C // groups)
            == jnp.arange(groups)[None, :]).astype(jnp.float32)             # (C, G)
    return gsel, gsel.T


def _im2col(x, ksize, stride, padding):
    """x: (N, D, H, W, C) channels-last -> col (N, Do*Ho*Wo, kd*kh*kw*C)."""
    N, D, H, W, C = x.shape
    kd, kh, kw = ksize
    sd, sh, sw = stride
    pd, ph, pw = padding
    xp = jnp.pad(x, ((0, 0), (pd, pd), (ph, ph), (pw, pw), (0, 0)))
    Do = (D + 2 * pd - kd) // sd + 1
    Ho = (H + 2 * ph - kh) // sh + 1
    Wo = (W + 2 * pw - kw) // sw + 1
    w_idx = jnp.arange(Wo)[:, None] * sw + jnp.arange(kw)[None, :]          # (Wo, kw)
    taps = []
    for i in range(kd):
        for j in range(kh):
            sl = xp[:, i:i + sd * Do:sd, j:j + sh * Ho:sh, :, :]            # (N,Do,Ho,Wp,C)
            taps.append(sl[:, :, :, w_idx, :])                              # (N,Do,Ho,Wo,kw,C)
    col = jnp.stack(taps, axis=4)                       # (N, Do, Ho, Wo, kd*kh, kw, C)
    col = col.reshape(N, Do * Ho * Wo, kd * kh * kw * C)
    return col, (Do, Ho, Wo)


def _conv_weight_matrix(w):
    """PyTorch Conv3d weight (Cout, Cin, kd, kh, kw) -> GEMM matrix (kd*kh*kw*Cin, Cout)."""
    Cout = w.shape[0]
    return jnp.transpose(w, (2, 3, 4, 1, 0)).reshape(-1, Cout)


def conv_gn_relu(col, w_mat, bias, gamma=None, beta=None, groups=None,
                 relu_conv=False, apply_gn=False, relu_gn=False):
    """Batched (grid over N) GEMM + bias with optional fused ReLU / GroupNorm / ReLU.

    col: (N, S, K)   w_mat: (K, C)   bias: (C,)  -> (N, S, C)
    """
    N, S, K = col.shape
    C = w_mat.shape[1]
    if not apply_gn:
        groups = 1
        gamma = jnp.ones((C,), jnp.float32)
        beta = jnp.zeros((C,), jnp.float32)
    gsel, gselt = _group_selectors(C, groups)
    return pl.pallas_call(
        functools.partial(_conv_gn_kernel, relu_conv=relu_conv,
                          apply_gn=apply_gn, relu_gn=relu_gn, eps=_GN_EPS),
        out_shape=jax.ShapeDtypeStruct((N, S, C), jnp.float32),
        grid=(N,),
        in_specs=[pl.BlockSpec((None, S, K), lambda n: (n, 0, 0)),
                  pl.BlockSpec((K, C), lambda n: (0, 0)),
                  pl.BlockSpec((1, C), lambda n: (0, 0)),
                  pl.BlockSpec((C, groups), lambda n: (0, 0)),
                  pl.BlockSpec((groups, C), lambda n: (0, 0)),
                  pl.BlockSpec((1, C), lambda n: (0, 0)),
                  pl.BlockSpec((1, C), lambda n: (0, 0))],
        out_specs=pl.BlockSpec((None, S, C), lambda n: (n, 0, 0)),
        compiler_params=pltpu.CompilerParams(dimension_semantics=("parallel",)),
    )(col.astype(jnp.float32), w_mat.astype(jnp.float32),
      bias.reshape(1, C).astype(jnp.float32), gsel, gselt,
      gamma.reshape(1, C).astype(jnp.float32),
      beta.reshape(1, C).astype(jnp.float32))


def conv3d_gn_relu(x, w, b, stride, padding, gamma=None, beta=None, groups=None,
                   relu_conv=False, apply_gn=False, relu_gn=False):
    """Channels-last Conv3d fused with optional ReLU / GroupNorm / ReLU."""
    col, (Do, Ho, Wo) = _im2col(x, w.shape[2:], stride, padding)
    out = conv_gn_relu(col, _conv_weight_matrix(w), b, gamma, beta, groups,
                       relu_conv=relu_conv, apply_gn=apply_gn, relu_gn=relu_gn)
    return out.reshape(x.shape[0], Do, Ho, Wo, w.shape[0])


def conv3d_eca_add(x, w, b, stride, padding, identity, eca_w, gamma, beta, groups,
                   gn_start=False, gn_end=False):
    """Fused conv2 [+GN] + eca_layer scale + residual add [+GN+ReLU]."""
    N = x.shape[0]
    col, (Do, Ho, Wo) = _im2col(x, w.shape[2:], stride, padding)
    C = w.shape[0]
    S = Do * Ho * Wo
    K = col.shape[2]
    w_mat = _conv_weight_matrix(w)
    # The 3x3 Conv2d of eca_layer acts on a (1, C) pooled "image": only the
    # middle kernel row touches real data, so it is a 3-tap 1-D conv over the
    # channel axis -> banded (C, C) matrix (zero padding at both channel ends).
    k = eca_w.reshape(3, 3).astype(jnp.float32)
    band = (k[1, 0] * jnp.eye(C, k=1, dtype=jnp.float32)
            + k[1, 1] * jnp.eye(C, k=0, dtype=jnp.float32)
            + k[1, 2] * jnp.eye(C, k=-1, dtype=jnp.float32))
    gsel, gselt = _group_selectors(C, groups)
    out = pl.pallas_call(
        functools.partial(_conv_eca_kernel, gn_start=gn_start, gn_end=gn_end,
                          eps=_GN_EPS),
        out_shape=jax.ShapeDtypeStruct((N, S, C), jnp.float32),
        grid=(N,),
        in_specs=[pl.BlockSpec((None, S, K), lambda n: (n, 0, 0)),
                  pl.BlockSpec((K, C), lambda n: (0, 0)),
                  pl.BlockSpec((1, C), lambda n: (0, 0)),
                  pl.BlockSpec((C, groups), lambda n: (0, 0)),
                  pl.BlockSpec((groups, C), lambda n: (0, 0)),
                  pl.BlockSpec((1, C), lambda n: (0, 0)),
                  pl.BlockSpec((1, C), lambda n: (0, 0)),
                  pl.BlockSpec((C, C), lambda n: (0, 0)),
                  pl.BlockSpec((None, S, C), lambda n: (n, 0, 0))],
        out_specs=pl.BlockSpec((None, S, C), lambda n: (n, 0, 0)),
        compiler_params=pltpu.CompilerParams(dimension_semantics=("parallel",)),
    )(col.astype(jnp.float32), w_mat.astype(jnp.float32),
      b.reshape(1, C).astype(jnp.float32), gsel, gselt,
      gamma.reshape(1, C).astype(jnp.float32),
      beta.reshape(1, C).astype(jnp.float32),
      band, identity.reshape(N, S, C).astype(jnp.float32))
    return out.reshape(N, Do, Ho, Wo, C)


def gn_relu(x, gamma, beta, groups):
    """relu(GroupNorm(x)) on a channels-last (N, D, H, W, C) tensor."""
    N, C = x.shape[0], x.shape[-1]
    S = int(np.prod(x.shape[1:-1]))
    gsel, gselt = _group_selectors(C, groups)
    out = pl.pallas_call(
        functools.partial(_gn_relu_kernel, eps=_GN_EPS),
        out_shape=jax.ShapeDtypeStruct((N, S, C), jnp.float32),
        grid=(N,),
        in_specs=[pl.BlockSpec((None, S, C), lambda n: (n, 0, 0)),
                  pl.BlockSpec((C, groups), lambda n: (0, 0)),
                  pl.BlockSpec((groups, C), lambda n: (0, 0)),
                  pl.BlockSpec((1, C), lambda n: (0, 0)),
                  pl.BlockSpec((1, C), lambda n: (0, 0))],
        out_specs=pl.BlockSpec((None, S, C), lambda n: (n, 0, 0)),
        compiler_params=pltpu.CompilerParams(dimension_semantics=("parallel",)),
    )(x.reshape(N, S, C).astype(jnp.float32), gsel, gselt,
      gamma.reshape(1, C).astype(jnp.float32),
      beta.reshape(1, C).astype(jnp.float32))
    return out.reshape(x.shape)


def se_attention_logits(x_3x3, x_1x1, w_se, b_se, w_ex, b_ex):
    """pool(x_3x3 + x_1x1) -> conv_se(1x1)+ReLU -> conv_ex(1x1).  Returns (N, C)."""
    N, C = x_3x3.shape[0], x_3x3.shape[-1]
    S = int(np.prod(x_3x3.shape[1:-1]))
    r = w_se.shape[0]
    wse = w_se.reshape(r, C).T.astype(jnp.float32)       # (C, r)
    wex = w_ex.reshape(C, r).T.astype(jnp.float32)       # (r, C)
    out = pl.pallas_call(
        _se_kernel,
        out_shape=jax.ShapeDtypeStruct((N, 1, C), jnp.float32),
        grid=(N,),
        in_specs=[pl.BlockSpec((None, S, C), lambda n: (n, 0, 0)),
                  pl.BlockSpec((None, S, C), lambda n: (n, 0, 0)),
                  pl.BlockSpec((C, r), lambda n: (0, 0)),
                  pl.BlockSpec((1, r), lambda n: (0, 0)),
                  pl.BlockSpec((r, C), lambda n: (0, 0)),
                  pl.BlockSpec((1, C), lambda n: (0, 0))],
        out_specs=pl.BlockSpec((None, 1, C), lambda n: (n, 0, 0)),
        compiler_params=pltpu.CompilerParams(dimension_semantics=("parallel",)),
    )(x_3x3.reshape(N, S, C).astype(jnp.float32),
      x_1x1.reshape(N, S, C).astype(jnp.float32),
      wse, b_se.reshape(1, r).astype(jnp.float32),
      wex, b_ex.reshape(1, C).astype(jnp.float32))
    return out.reshape(N, C)


# ----------------------------- model glue -----------------------------

def residual_forward(x, p, pad, groups, start_block=False, end_block=False):
    """One Residual block on a channels-last tensor."""
    identity = x
    out = x if start_block else gn_relu(x, p['gn0_g'], p['gn0_b'], groups)
    # conv1 + ReLU fused with gn1 + ReLU
    out = conv3d_gn_relu(out, p['conv1_w'], p['conv1_b'], (1, 1, 1), pad,
                         gamma=p['gn1_g'], beta=p['gn1_b'], groups=groups,
                         relu_conv=True, apply_gn=True, relu_gn=True)
    # conv2 (+gn2 if start) + eca scale + residual add (+gn2/ReLU if end)
    out = conv3d_eca_add(out, p['conv2_w'], p['conv2_b'], (1, 1, 1), pad,
                         identity, p['eca_w'], p['gn2_g'], p['gn2_b'], groups,
                         gn_start=start_block, gn_end=end_block)
    return out


def a2s2k_forward(X, params, reduction, classes):
    K = PARAM_KERNEL_SIZE
    # NCDHW (N, 1, D, H, W) -> channels-last NDHWC (N, D, H, W, 1)
    x = jnp.transpose(X, (0, 2, 3, 4, 1)).astype(jnp.float32)

    # spectral feature extraction (two branches), each conv fused with GN + ReLU
    x_1x1 = conv3d_gn_relu(x, params['conv1x1_w'], params['conv1x1_b'],
                           (1, 1, 2), (0, 0, 0), params['gn1x1_g'],
                           params['gn1x1_b'], reduction,
                           apply_gn=True, relu_gn=True)
    x_3x3 = conv3d_gn_relu(x, params['conv3x3_w'], params['conv3x3_b'],
                           (1, 1, 2), (1, 1, 0), params['gn3x3_g'],
                           params['gn3x3_b'], reduction,
                           apply_gn=True, relu_gn=True)

    # squeeze-and-excite attention over the two branches (both logits identical
    # in the reference module -> attention is exactly 0.5/0.5; kept for fidelity)
    A = se_attention_logits(x_3x3, x_1x1, params['conv_se_w'], params['conv_se_b'],
                            params['conv_ex_w'], params['conv_ex_b'])        # (N, K)
    att = jax.nn.softmax(jnp.stack([A, A], axis=1), axis=1)                  # (N, 2, K)
    a0 = att[:, 0, :][:, None, None, None, :]
    a1 = att[:, 1, :][:, None, None, None, :]
    V = x_3x3 * a0 + x_1x1 * a1

    # spectral residual blocks
    x2 = residual_forward(V, params['res1'], (0, 0, 3), reduction, start_block=True)
    x2 = residual_forward(x2, params['res2'], (0, 0, 3), reduction)

    # spectral collapse -> 128 channels, fused GN + ReLU
    x2 = conv3d_gn_relu(x2, params['conv2_w'], params['conv2_b'], (1, 1, 1),
                        (0, 0, 0), params['gn2_g'], params['gn2_b'], reduction,
                        apply_gn=True, relu_gn=True)                          # (N,P,P,1,128)
    # permute(0,4,2,3,1) in NCDHW == swap of the trailing size-1 / channel axes
    N_, D_, H_ = x2.shape[0], x2.shape[1], x2.shape[2]
    x2 = x2.reshape(N_, D_, H_, 128, 1)
    # spatial feature extraction, fused GN + ReLU
    x2 = conv3d_gn_relu(x2, params['conv3_w'], params['conv3_b'], (1, 1, 1),
                        (1, 1, 0), params['gn3_g'], params['gn3_b'], reduction,
                        apply_gn=True, relu_gn=True)                          # (N,P,P,1,24)

    # spatial residual blocks
    x3 = residual_forward(x2, params['res3'], (1, 1, 0), reduction)
    x3 = residual_forward(x3, params['res4'], (1, 1, 0), reduction, end_block=True)

    # squeeze the (size-1) spectral dim and run the 1x1 Conv2d classifier as a
    # batched GEMM (same fused kernel with GN/ReLU disabled)
    N2, Hh, Ww = x3.shape[0], x3.shape[1], x3.shape[2]
    xr = x3.reshape(N2, Hh * Ww, K)
    wf = params['final_w'].reshape(classes, K).T
    x4 = conv_gn_relu(xr, wf, params['final_b'])
    return jnp.transpose(x4.reshape(N2, Hh, Ww, classes), (0, 3, 1, 2))


# ----------------------------- parameter init -----------------------------

def init_params(band, classes, reduction, key):
    keys = iter(jax.random.split(key, 64))
    K = PARAM_KERNEL_SIZE
    kernel_3d = math.ceil((band - 6) / 2)

    def conv_w(shape):
        fan_in = int(np.prod(shape[1:]))
        return (jax.random.normal(next(keys), shape, jnp.float32)
                / np.sqrt(fan_in)).astype(jnp.float32)

    def conv_b(n):
        return (0.01 * jax.random.normal(next(keys), (n,), jnp.float32)).astype(jnp.float32)

    def gn_params(c):  # PyTorch GroupNorm default init
        return jnp.ones((c,), jnp.float32), jnp.zeros((c,), jnp.float32)

    p = {}
    p['conv1x1_w'] = conv_w((K, 1, 1, 1, 7)); p['conv1x1_b'] = conv_b(K)
    p['conv3x3_w'] = conv_w((K, 1, 3, 3, 7)); p['conv3x3_b'] = conv_b(K)
    p['gn1x1_g'], p['gn1x1_b'] = gn_params(K)
    p['gn3x3_g'], p['gn3x3_b'] = gn_params(K)
    p['conv_se_w'] = conv_w((K // reduction, K, 1, 1, 1)); p['conv_se_b'] = conv_b(K // reduction)
    p['conv_ex_w'] = conv_w((K, K // reduction, 1, 1, 1)); p['conv_ex_b'] = conv_b(K)

    def res_params(ks, start):
        rp = {}
        rp['conv1_w'] = conv_w((K, K) + ks); rp['conv1_b'] = conv_b(K)
        rp['conv2_w'] = conv_w((K, K) + ks); rp['conv2_b'] = conv_b(K)
        if not start:
            rp['gn0_g'], rp['gn0_b'] = gn_params(K)
        rp['gn1_g'], rp['gn1_b'] = gn_params(K)
        rp['gn2_g'], rp['gn2_b'] = gn_params(K)
        rp['eca_w'] = conv_w((1, 1, 3, 3))
        return rp

    p['res1'] = res_params((1, 1, 7), True)
    p['res2'] = res_params((1, 1, 7), False)
    p['res3'] = res_params((3, 3, 1), False)
    p['res4'] = res_params((3, 3, 1), False)
    p['conv2_w'] = conv_w((128, K, 1, 1, kernel_3d)); p['conv2_b'] = conv_b(128)
    p['gn2_g'], p['gn2_b'] = gn_params(128)
    p['conv3_w'] = conv_w((K, 1, 3, 3, 128)); p['conv3_b'] = conv_b(K)
    p['gn3_g'], p['gn3_b'] = gn_params(K)
    p['final_w'] = conv_w((classes, K, 1, 1)); p['final_b'] = conv_b(classes)
    return p


# ----------------------------- main -----------------------------

if __name__ == "__main__":
    band, classes, reduction = 15, 4, 2    # reduction divides both 24 and 128
    N, P = 2, 5                            # batch=2, 5x5 spatial patch

    key = jax.random.PRNGKey(0)
    kx, kp = jax.random.split(key)
    # PyTorch Conv3d input layout (N, C=1, D=P, H=P, W=band)
    X = jax.random.normal(kx, (N, 1, P, P, band), jnp.float32)
    params = init_params(band, classes, reduction, kp)

    fwd = jax.jit(functools.partial(a2s2k_forward, reduction=reduction, classes=classes))
    out = fwd(X, params)
    out = jax.block_until_ready(out)

    assert out.shape == (N, classes, P, P), out.shape
    assert bool(jnp.all(jnp.isfinite(out)))
    print("KERNEL_OK")
</pallas_src>

<mosaic_0001>
module attributes {stable_mosaic.version = 11 : i64} {
  func.func @_conv_gn_kernel(%arg0: i32, %arg1: memref<1x125x63xf32, #tpu.memory_space<vmem>>, %arg2: memref<63x24xf32, #tpu.memory_space<vmem>>, %arg3: memref<1x24xf32, #tpu.memory_space<vmem>>, %arg4: memref<24x2xf32, #tpu.memory_space<vmem>>, %arg5: memref<2x24xf32, #tpu.memory_space<vmem>>, %arg6: memref<1x24xf32, #tpu.memory_space<vmem>>, %arg7: memref<1x24xf32, #tpu.memory_space<vmem>>, %arg8: memref<1x125x24xf32, #tpu.memory_space<vmem>>) attributes {dimension_semantics = [#tpu.dimension_semantics<parallel>], iteration_bounds = array<i64: 2>, scalar_prefetch = 0 : i64, scratch_operands = 0 : i64, tpu.core_type = #tpu.core_type<tc>, window_params = [{transform_indices = @transform_0, window_bounds = array<i64: 1, 125, 63>}, {pipeline_mode = #tpu.pipeline_mode<synchronous>, transform_indices = @transform_1, window_bounds = array<i64: 63, 24>}, {pipeline_mode = #tpu.pipeline_mode<synchronous>, transform_indices = @transform_2, window_bounds = array<i64: 1, 24>}, {pipeline_mode = #tpu.pipeline_mode<synchronous>, transform_indices = @transform_3, window_bounds = array<i64: 24, 2>}, {pipeline_mode = #tpu.pipeline_mode<synchronous>, transform_indices = @transform_4, window_bounds = array<i64: 2, 24>}, {pipeline_mode = #tpu.pipeline_mode<synchronous>, transform_indices = @transform_5, window_bounds = array<i64: 1, 24>}, {pipeline_mode = #tpu.pipeline_mode<synchronous>, transform_indices = @transform_6, window_bounds = array<i64: 1, 24>}, {transform_indices = @transform_7, window_bounds = array<i64: 1, 125, 24>}]} {
    %c0 = arith.constant 0 : index
    %c0_0 = arith.constant 0 : index
    %c0_1 = arith.constant 0 : index
    %0 = vector.load %arg1[%c0, %c0_0, %c0_1] : memref<1x125x63xf32, #tpu.memory_space<vmem>>, vector<1x125x63xf32>
    %1 = vector.shape_cast %0 : vector<1x125x63xf32> to vector<125x63xf32>
    %c0_2 = arith.constant 0 : index
    %c0_3 = arith.constant 0 : index
    %2 = vector.load %arg2[%c0_2, %c0_3] : memref<63x24xf32, #tpu.memory_space<vmem>>, vector<63x24xf32>
    %cst = arith.constant dense<0.000000e+00> : vector<125x24xf32>
    %3 = tpu.matmul %1, %2, %cst {dimension_numbers = #tpu.dot_dimension_numbers<[1], [0], [0], [1], [0, 0, 1, 1], [], []>} : vector<125x63xf32>, vector<63x24xf32>, vector<125x24xf32> -> vector<125x24xf32>
    %c0_4 = arith.constant 0 : index
    %c0_5 = arith.constant 0 : index
    %4 = vector.load %arg3[%c0_4, %c0_5] : memref<1x24xf32, #tpu.memory_space<vmem>>, vector<1x24xf32>
    %5 = vector.broadcast %4 : vector<1x24xf32> to vector<125x24xf32>
    %6 = arith.addf %3, %5 : vector<125x24xf32>
    %c0_6 = arith.constant 0 : index
    %c0_7 = arith.constant 0 : index
    %7 = vector.load %arg4[%c0_6, %c0_7] : memref<24x2xf32, #tpu.memory_space<vmem>>, vector<24x2xf32>
    %c0_8 = arith.constant 0 : index
    %c0_9 = arith.constant 0 : index
    %8 = vector.load %arg5[%c0_8, %c0_9] : memref<2x24xf32, #tpu.memory_space<vmem>>, vector<2x24xf32>
    %c0_10 = arith.constant 0 : index
    %c0_11 = arith.constant 0 : index
    %9 = vector.load %arg6[%c0_10, %c0_11] : memref<1x24xf32, #tpu.memory_space<vmem>>, vector<1x24xf32>
    %c0_12 = arith.constant 0 : index
    %c0_13 = arith.constant 0 : index
    %10 = vector.load %arg7[%c0_12, %c0_13] : memref<1x24xf32, #tpu.memory_space<vmem>>, vector<1x24xf32>
    %cst_14 = arith.constant dense<0.000000e+00> : vector<24xf32>
    %11 = vector.multi_reduction <add>, %6, %cst_14 [0] : vector<125x24xf32> to vector<24xf32>
    %12 = vector.shape_cast %11 : vector<24xf32> to vector<1x24xf32>
    %cst_15 = arith.constant dense<0.000000e+00> : vector<1x2xf32>
    %13 = tpu.matmul %12, %7, %cst_15 {dimension_numbers = #tpu.dot_dimension_numbers<[1], [0], [0], [1], [0, 0, 1, 1], [], []>} : vector<1x24xf32>, vector<24x2xf32>, vector<1x2xf32> -> vector<1x2xf32>
    %cst_16 = arith.constant 1.500000e+03 : f32
    %14 = vector.broadcast %cst_16 : f32 to vector<1x2xf32>
    %15 = arith.divf %13, %14 : vector<1x2xf32>
    %cst_17 = arith.constant dense<0.000000e+00> : vector<1x24xf32>
    %16 = tpu.matmul %15, %8, %cst_17 {dimension_numbers = #tpu.dot_dimension_numbers<[1], [0], [0], [1], [0, 0, 1, 1], [], []>} : vector<1x2xf32>, vector<2x24xf32>, vector<1x24xf32> -> vector<1x24xf32>
    %17 = vector.broadcast %16 : vector<1x24xf32> to vector<125x24xf32>
    %18 = arith.subf %6, %17 : vector<125x24xf32>
    %19 = arith.mulf %18, %18 : vector<125x24xf32>
    %cst_18 = arith.constant dense<0.000000e+00> : vector<24xf32>
    %20 = vector.multi_reduction <add>, %19, %cst_18 [0] : vector<125x24xf32> to vector<24xf32>
    %21 = vector.shape_cast %20 : vector<24xf32> to vector<1x24xf32>
    %cst_19 = arith.constant dense<0.000000e+00> : vector<1x2xf32>
    %22 = tpu.matmul %21, %7, %cst_19 {dimension_numbers = #tpu.dot_dimension_numbers<[1], [0], [0], [1], [0, 0, 1, 1], [], []>} : vector<1x24xf32>, vector<24x2xf32>, vector<1x2xf32> -> vector<1x2xf32>
    %cst_20 = arith.constant 1.500000e+03 : f32
    %23 = vector.broadcast %cst_20 : f32 to vector<1x2xf32>
    %24 = arith.divf %22, %23 : vector<1x2xf32>
    %cst_21 = arith.constant 9.99999974E-6 : f32
    %25 = vector.broadcast %cst_21 : f32 to vector<1x2xf32>
    %26 = arith.addf %24, %25 : vector<1x2xf32>
    %27 = math.rsqrt %26 : vector<1x2xf32>
    %cst_22 = arith.constant dense<0.000000e+00> : vector<1x24xf32>
    %28 = tpu.matmul %27, %8, %cst_22 {dimension_numbers = #tpu.dot_dimension_numbers<[1], [0], [0], [1], [0, 0, 1, 1], [], []>} : vector<1x2xf32>, vector<2x24xf32>, vector<1x24xf32> -> vector<1x24xf32>
    %29 = vector.broadcast %28 : vector<1x24xf32> to vector<125x24xf32>
    %30 = arith.mulf %18, %29 : vector<125x24xf32>
    %31 = vector.broadcast %9 : vector<1x24xf32> to vector<125x24xf32>
    %32 = arith.mulf %30, %31 : vector<125x24xf32>
    %33 = vector.broadcast %10 : vector<1x24xf32> to vector<125x24xf32>
    %34 = arith.addf %32, %33 : vector<125x24xf32>
    %cst_23 = arith.constant 0.000000e+00 : f32
    %35 = vector.broadcast %cst_23 : f32 to vector<125x24xf32>
    %36 = arith.maximumf %34, %35 : vector<125x24xf32>
    %c0_24 = arith.constant 0 : index
    %c0_25 = arith.constant 0 : index
    %c0_26 = arith.constant 0 : index
    %37 = vector.load %arg8[%c0_24, %c0_25, %c0_26] : memref<1x125x24xf32, #tpu.memory_space<vmem>>, vector<1x125x24xf32>
    %38 = vector.shape_cast %37 : vector<1x125x24xf32> to vector<125x24xf32>
    %39 = vector.shape_cast %36 : vector<125x24xf32> to vector<1x125x24xf32>
    tpu.vector_store %arg8[%c0_24, %c0_25, %c0_26], %39 {strides = array<i32>} : memref<1x125x24xf32, #tpu.memory_space<vmem>>, vector<1x125x24xf32>,
    return
  }
  func.func @transform_0(%arg0: i32) -> (i32, i32, i32) {
    %c0_i32 = arith.constant 0 : i32
    %c0_i32_0 = arith.constant 0 : i32
    %c0_i32_1 = arith.constant 0 : i32
    return %arg0, %c0_i32, %c0_i32_0 : i32, i32, i32
  }
  func.func @transform_1(%arg0: i32) -> (i32, i32) {
    %c0_i32 = arith.constant 0 : i32
    %c0_i32_0 = arith.constant 0 : i32
    %c0_i32_1 = arith.constant 0 : i32
    return %c0_i32, %c0_i32_0 : i32, i32
  }
  func.func @transform_2(%arg0: i32) -> (i32, i32) {
    %c0_i32 = arith.constant 0 : i32
    %c0_i32_0 = arith.constant 0 : i32
    %c0_i32_1 = arith.constant 0 : i32
    return %c0_i32, %c0_i32_0 : i32, i32
  }
  func.func @transform_3(%arg0: i32) -> (i32, i32) {
    %c0_i32 = arith.constant 0 : i32
    %c0_i32_0 = arith.constant 0 : i32
    %c0_i32_1 = arith.constant 0 : i32
    return %c0_i32, %c0_i32_0 : i32, i32
  }
  func.func @transform_4(%arg0: i32) -> (i32, i32) {
    %c0_i32 = arith.constant 0 : i32
    %c0_i32_0 = arith.constant 0 : i32
    %c0_i32_1 = arith.constant 0 : i32
    return %c0_i32, %c0_i32_0 : i32, i32
  }
  func.func @transform_5(%arg0: i32) -> (i32, i32) {
    %c0_i32 = arith.constant 0 : i32
    %c0_i32_0 = arith.constant 0 : i32
    %c0_i32_1 = arith.constant 0 : i32
    return %c0_i32, %c0_i32_0 : i32, i32
  }
  func.func @transform_6(%arg0: i32) -> (i32, i32) {
    %c0_i32 = arith.constant 0 : i32
    %c0_i32_0 = arith.constant 0 : i32
    %c0_i32_1 = arith.constant 0 : i32
    return %c0_i32, %c0_i32_0 : i32, i32
  }
  func.func @transform_7(%arg0: i32) -> (i32, i32, i32) {
    %c0_i32 = arith.constant 0 : i32
    %c0_i32_0 = arith.constant 0 : i32
    %c0_i32_1 = arith.constant 0 : i32
    return %arg0, %c0_i32, %c0_i32_0 : i32, i32, i32
  }
}

module attributes {stable_mosaic.version = 11 : i64} {
  func.func @_conv_gn_kernel(%arg0: i32, %arg1: memref<1x125x7xf32, #tpu.memory_space<vmem>>, %arg2: memref<7x24xf32, #tpu.memory_space<vmem>>, %arg3: memref<1x24xf32, #tpu.memory_space<vmem>>, %arg4: memref<24x2xf32, #tpu.memory_space<vmem>>, %arg5: memref<2x24xf32, #tpu.memory_space<vmem>>, %arg6: memref<1x24xf32, #tpu.memory_space<vmem>>, %arg7: memref<1x24xf32, #tpu.memory_space<vmem>>, %arg8: memref<1x125x24xf32, #tpu.memory_space<vmem>>) attributes {dimension_semantics = [#tpu.dimension_semantics<parallel>], iteration_bounds = array<i64: 2>, scalar_prefetch = 0 : i64, scratch_operands = 0 : i64, tpu.core_type = #tpu.core_type<tc>, window_params = [{transform_indices = @transform_0, window_bounds = array<i64: 1, 125, 7>}, {pipeline_mode = #tpu.pipeline_mode<synchronous>, transform_indices = @transform_1, window_bounds = array<i64: 7, 24>}, {pipeline_mode = #tpu.pipeline_mode<synchronous>, transform_indices = @transform_2, window_bounds = array<i64: 1, 24>}, {pipeline_mode = #tpu.pipeline_mode<synchronous>, transform_indices = @transform_3, window_bounds = array<i64: 24, 2>}, {pipeline_mode = #tpu.pipeline_mode<synchronous>, transform_indices = @transform_4, window_bounds = array<i64: 2, 24>}, {pipeline_mode = #tpu.pipeline_mode<synchronous>, transform_indices = @transform_5, window_bounds = array<i64: 1, 24>}, {pipeline_mode = #tpu.pipeline_mode<synchronous>, transform_indices = @transform_6, window_bounds = array<i64: 1, 24>}, {transform_indices = @transform_7, window_bounds = array<i64: 1, 125, 24>}]} {
    %c0 = arith.constant 0 : index
    %c0_0 = arith.constant 0 : index
    %c0_1 = arith.constant 0 : index
    %0 = vector.load %arg1[%c0, %c0_0, %c0_1] : memref<1x125x7xf32, #tpu.memory_space<vmem>>, vector<1x125x7xf32>
    %1 = vector.shape_cast %0 : vector<1x125x7xf32> to vector<125x7xf32>
    %c0_2 = arith.constant 0 : index
    %c0_3 = arith.constant 0 : index
    %2 = vector.load %arg2[%c0_2, %c0_3] : memref<7x24xf32, #tpu.memory_space<vmem>>, vector<7x24xf32>
    %cst = arith.constant dense<0.000000e+00> : vector<125x24xf32>
    %3 = tpu.matmul %1, %2, %cst {dimension_numbers = #tpu.dot_dimension_numbers<[1], [0], [0], [1], [0, 0, 1, 1], [], []>} : vector<125x7xf32>, vector<7x24xf32>, vector<125x24xf32> -> vector<125x24xf32>
    %c0_4 = arith.constant 0 : index
    %c0_5 = arith.constant 0 : index
    %4 = vector.load %arg3[%c0_4, %c0_5] : memref<1x24xf32, #tpu.memory_space<vmem>>, vector<1x24xf32>
    %5 = vector.broadcast %4 : vector<1x24xf32> to vector<125x24xf32>
    %6 = arith.addf %3, %5 : vector<125x24xf32>
    %c0_6 = arith.constant 0 : index
    %c0_7 = arith.constant 0 : index
    %7 = vector.load %arg4[%c0_6, %c0_7] : memref<24x2xf32, #tpu.memory_space<vmem>>, vector<24x2xf32>
    %c0_8 = arith.constant 0 : index
    %c0_9 = arith.constant 0 : index
    %8 = vector.load %arg5[%c0_8, %c0_9] : memref<2x24xf32, #tpu.memory_space<vmem>>, vector<2x24xf32>
    %c0_10 = arith.constant 0 : index
    %c0_11 = arith.constant 0 : index
    %9 = vector.load %arg6[%c0_10, %c0_11] : memref<1x24xf32, #tpu.memory_space<vmem>>, vector<1x24xf32>
    %c0_12 = arith.constant 0 : index
    %c0_13 = arith.constant 0 : index
    %10 = vector.load %arg7[%c0_12, %c0_13] : memref<1x24xf32, #tpu.memory_space<vmem>>, vector<1x24xf32>
    %cst_14 = arith.constant dense<0.000000e+00> : vector<24xf32>
    %11 = vector.multi_reduction <add>, %6, %cst_14 [0] : vector<125x24xf32> to vector<24xf32>
    %12 = vector.shape_cast %11 : vector<24xf32> to vector<1x24xf32>
    %cst_15 = arith.constant dense<0.000000e+00> : vector<1x2xf32>
    %13 = tpu.matmul %12, %7, %cst_15 {dimension_numbers = #tpu.dot_dimension_numbers<[1], [0], [0], [1], [0, 0, 1, 1], [], []>} : vector<1x24xf32>, vector<24x2xf32>, vector<1x2xf32> -> vector<1x2xf32>
    %cst_16 = arith.constant 1.500000e+03 : f32
    %14 = vector.broadcast %cst_16 : f32 to vector<1x2xf32>
    %15 = arith.divf %13, %14 : vector<1x2xf32>
    %cst_17 = arith.constant dense<0.000000e+00> : vector<1x24xf32>
    %16 = tpu.matmul %15, %8, %cst_17 {dimension_numbers = #tpu.dot_dimension_numbers<[1], [0], [0], [1], [0, 0, 1, 1], [], []>} : vector<1x2xf32>, vector<2x24xf32>, vector<1x24xf32> -> vector<1x24xf32>
    %17 = vector.broadcast %16 : vector<1x24xf32> to vector<125x24xf32>
    %18 = arith.subf %6, %17 : vector<125x24xf32>
    %19 = arith.mulf %18, %18 : vector<125x24xf32>
    %cst_18 = arith.constant dense<0.000000e+00> : vector<24xf32>
    %20 = vector.multi_reduction <add>, %19, %cst_18 [0] : vector<125x24xf32> to vector<24xf32>
    %21 = vector.shape_cast %20 : vector<24xf32> to vector<1x24xf32>
    %cst_19 = arith.constant dense<0.000000e+00> : vector<1x2xf32>
    %22 = tpu.matmul %21, %7, %cst_19 {dimension_numbers = #tpu.dot_dimension_numbers<[1], [0], [0], [1], [0, 0, 1, 1], [], []>} : vector<1x24xf32>, vector<24x2xf32>, vector<1x2xf32> -> vector<1x2xf32>
    %cst_20 = arith.constant 1.500000e+03 : f32
    %23 = vector.broadcast %cst_20 : f32 to vector<1x2xf32>
    %24 = arith.divf %22, %23 : vector<1x2xf32>
    %cst_21 = arith.constant 9.99999974E-6 : f32
    %25 = vector.broadcast %cst_21 : f32 to vector<1x2xf32>
    %26 = arith.addf %24, %25 : vector<1x2xf32>
    %27 = math.rsqrt %26 : vector<1x2xf32>
    %cst_22 = arith.constant dense<0.000000e+00> : vector<1x24xf32>
    %28 = tpu.matmul %27, %8, %cst_22 {dimension_numbers = #tpu.dot_dimension_numbers<[1], [0], [0], [1], [0, 0, 1, 1], [], []>} : vector<1x2xf32>, vector<2x24xf32>, vector<1x24xf32> -> vector<1x24xf32>
    %29 = vector.broadcast %28 : vector<1x24xf32> to vector<125x24xf32>
    %30 = arith.mulf %18, %29 : vector<125x24xf32>
    %31 = vector.broadcast %9 : vector<1x24xf32> to vector<125x24xf32>
    %32 = arith.mulf %30, %31 : vector<125x24xf32>
    %33 = vector.broadcast %10 : vector<1x24xf32> to vector<125x24xf32>
    %34 = arith.addf %32, %33 : vector<125x24xf32>
    %cst_23 = arith.constant 0.000000e+00 : f32
    %35 = vector.broadcast %cst_23 : f32 to vector<125x24xf32>
    %36 = arith.maximumf %34, %35 : vector<125x24xf32>
    %c0_24 = arith.constant 0 : index
    %c0_25 = arith.constant 0 : index
    %c0_26 = arith.constant 0 : index
    %37 = vector.load %arg8[%c0_24, %c0_25, %c0_26] : memref<1x125x24xf32, #tpu.memory_space<vmem>>, vector<1x125x24xf32>
    %38 = vector.shape_cast %37 : vector<1x125x24xf32> to vector<125x24xf32>
    %39 = vector.shape_cast %36 : vector<125x24xf32> to vector<1x125x24xf32>
    tpu.vector_store %arg8[%c0_24, %c0_25, %c0_26], %39 {strides = array<i32>} : memref<1x125x24xf32, #tpu.memory_space<vmem>>, vector<1x125x24xf32>,
    return
  }
  func.func @transform_0(%arg0: i32) -> (i32, i32, i32) {
    %c0_i32 = arith.constant 0 : i32
    %c0_i32_0 = arith.constant 0 : i32
    %c0_i32_1 = arith.constant 0 : i32
    return %arg0, %c0_i32, %c0_i32_0 : i32, i32, i32
  }
  func.func @transform_1(%arg0: i32) -> (i32, i32) {
    %c0_i32 = arith.constant 0 : i32
    %c0_i32_0 = arith.constant 0 : i32
    %c0_i32_1 = arith.constant 0 : i32
    return %c0_i32, %c0_i32_0 : i32, i32
  }
  func.func @transform_2(%arg0: i32) -> (i32, i32) {
    %c0_i32 = arith.constant 0 : i32
    %c0_i32_0 = arith.constant 0 : i32
    %c0_i32_1 = arith.constant 0 : i32
    return %c0_i32, %c0_i32_0 : i32, i32
  }
  func.func @transform_3(%arg0: i32) -> (i32, i32) {
    %c0_i32 = arith.constant 0 : i32
    %c0_i32_0 = arith.constant 0 : i32
    %c0_i32_1 = arith.constant 0 : i32
    return %c0_i32, %c0_i32_0 : i32, i32
  }
  func.func @transform_4(%arg0: i32) -> (i32, i32) {
    %c0_i32 = arith.constant 0 : i32
    %c0_i32_0 = arith.constant 0 : i32
    %c0_i32_1 = arith.constant 0 : i32
    return %c0_i32, %c0_i32_0 : i32, i32
  }
  func.func @transform_5(%arg0: i32) -> (i32, i32) {
    %c0_i32 = arith.constant 0 : i32
    %c0_i32_0 = arith.constant 0 : i32
    %c0_i32_1 = arith.constant 0 : i32
    return %c0_i32, %c0_i32_0 : i32, i32
  }
  func.func @transform_6(%arg0: i32) -> (i32, i32) {
    %c0_i32 = arith.constant 0 : i32
    %c0_i32_0 = arith.constant 0 : i32
    %c0_i32_1 = arith.constant 0 : i32
    return %c0_i32, %c0_i32_0 : i32, i32
  }
  func.func @transform_7(%arg0: i32) -> (i32, i32, i32) {
    %c0_i32 = arith.constant 0 : i32
    %c0_i32_0 = arith.constant 0 : i32
    %c0_i32_1 = arith.constant 0 : i32
    return %arg0, %c0_i32, %c0_i32_0 : i32, i32, i32
  }
}

module attributes {stable_mosaic.version = 11 : i64} {
  func.func @_se_kernel(%arg0: i32, %arg1: memref<1x125x24xf32, #tpu.memory_space<vmem>>, %arg2: memref<1x125x24xf32, #tpu.memory_space<vmem>>, %arg3: memref<24x12xf32, #tpu.memory_space<vmem>>, %arg4: memref<1x12xf32, #tpu.memory_space<vmem>>, %arg5: memref<12x24xf32, #tpu.memory_space<vmem>>, %arg6: memref<1x24xf32, #tpu.memory_space<vmem>>, %arg7: memref<1x1x24xf32, #tpu.memory_space<vmem>>) attributes {dimension_semantics = [#tpu.dimension_semantics<parallel>], iteration_bounds = array<i64: 2>, scalar_prefetch = 0 : i64, scratch_operands = 0 : i64, tpu.core_type = #tpu.core_type<tc>, window_params = [{transform_indices = @transform_0, window_bounds = array<i64: 1, 125, 24>}, {transform_indices = @transform_1, window_bounds = array<i64: 1, 125, 24>}, {pipeline_mode = #tpu.pipeline_mode<synchronous>, transform_indices = @transform_2, window_bounds = array<i64: 24, 12>}, {pipeline_mode = #tpu.pipeline_mode<synchronous>, transform_indices = @transform_3, window_bounds = array<i64: 1, 12>}, {pipeline_mode = #tpu.pipeline_mode<synchronous>, transform_indices = @transform_4, window_bounds = array<i64: 12, 24>}, {pipeline_mode = #tpu.pipeline_mode<synchronous>, transform_indices = @transform_5, window_bounds = array<i64: 1, 24>}, {transform_indices = @transform_6, window_bounds = array<i64: 1, 1, 24>}]} {
    %c0 = arith.constant 0 : index
    %c0_0 = arith.constant 0 : index
    %c0_1 = arith.constant 0 : index
    %0 = vector.load %arg1[%c0, %c0_0, %c0_1] : memref<1x125x24xf32, #tpu.memory_space<vmem>>, vector<1x125x24xf32>
    %1 = vector.shape_cast %0 : vector<1x125x24xf32> to vector<125x24xf32>
    %c0_2 = arith.constant 0 : index
    %c0_3 = arith.constant 0 : index
    %c0_4 = arith.constant 0 : index
    %2 = vector.load %arg2[%c0_2, %c0_3, %c0_4] : memref<1x125x24xf32, #tpu.memory_space<vmem>>, vector<1x125x24xf32>
    %3 = vector.shape_cast %2 : vector<1x125x24xf32> to vector<125x24xf32>
    %4 = arith.addf %1, %3 : vector<125x24xf32>
    %cst = arith.constant dense<0.000000e+00> : vector<24xf32>
    %5 = vector.multi_reduction <add>, %4, %cst [0] : vector<125x24xf32> to vector<24xf32>
    %6 = vector.shape_cast %5 : vector<24xf32> to vector<1x24xf32>
    %cst_5 = arith.constant 1.250000e+02 : f32
    %7 = vector.broadcast %cst_5 : f32 to vector<1x24xf32>
    %8 = arith.divf %6, %7 : vector<1x24xf32>
    %c0_6 = arith.constant 0 : index
    %c0_7 = arith.constant 0 : index
    %9 = vector.load %arg3[%c0_6, %c0_7] : memref<24x12xf32, #tpu.memory_space<vmem>>, vector<24x12xf32>
    %cst_8 = arith.constant dense<0.000000e+00> : vector<1x12xf32>
    %10 = tpu.matmul %8, %9, %cst_8 {dimension_numbers = #tpu.dot_dimension_numbers<[1], [0], [0], [1], [0, 0, 1, 1], [], []>} : vector<1x24xf32>, vector<24x12xf32>, vector<1x12xf32> -> vector<1x12xf32>
    %c0_9 = arith.constant 0 : index
    %c0_10 = arith.constant 0 : index
    %11 = vector.load %arg4[%c0_9, %c0_10] : memref<1x12xf32, #tpu.memory_space<vmem>>, vector<1x12xf32>
    %12 = arith.addf %10, %11 : vector<1x12xf32>
    %cst_11 = arith.constant 0.000000e+00 : f32
    %13 = vector.broadcast %cst_11 : f32 to vector<1x12xf32>
    %14 = arith.maximumf %12, %13 : vector<1x12xf32>
    %c0_12 = arith.constant 0 : index
    %c0_13 = arith.constant 0 : index
    %15 = vector.load %arg5[%c0_12, %c0_13] : memref<12x24xf32, #tpu.memory_space<vmem>>, vector<12x24xf32>
    %cst_14 = arith.constant dense<0.000000e+00> : vector<1x24xf32>
    %16 = tpu.matmul %14, %15, %cst_14 {dimension_numbers = #tpu.dot_dimension_numbers<[1], [0], [0], [1], [0, 0, 1, 1], [], []>} : vector<1x12xf32>, vector<12x24xf32>, vector<1x24xf32> -> vector<1x24xf32>
    %c0_15 = arith.constant 0 : index
    %c0_16 = arith.constant 0 : index
    %17 = vector.load %arg6[%c0_15, %c0_16] : memref<1x24xf32, #tpu.memory_space<vmem>>, vector<1x24xf32>
    %18 = arith.addf %16, %17 : vector<1x24xf32>
    %c0_17 = arith.constant 0 : index
    %c0_18 = arith.constant 0 : index
    %c0_19 = arith.constant 0 : index
    %19 = vector.load %arg7[%c0_17, %c0_18, %c0_19] : memref<1x1x24xf32, #tpu.memory_space<vmem>>, vector<1x1x24xf32>
    %20 = vector.shape_cast %19 : vector<1x1x24xf32> to vector<1x24xf32>
    %21 = vector.shape_cast %18 : vector<1x24xf32> to vector<1x1x24xf32>
    tpu.vector_store %arg7[%c0_17, %c0_18, %c0_19], %21 {strides = array<i32>} : memref<1x1x24xf32, #tpu.memory_space<vmem>>, vector<1x1x24xf32>,
    return
  }
  func.func @transform_0(%arg0: i32) -> (i32, i32, i32) {
    %c0_i32 = arith.constant 0 : i32
    %c0_i32_0 = arith.constant 0 : i32
    %c0_i32_1 = arith.constant 0 : i32
    return %arg0, %c0_i32, %c0_i32_0 : i32, i32, i32
  }
  func.func @transform_1(%arg0: i32) -> (i32, i32, i32) {
    %c0_i32 = arith.constant 0 : i32
    %c0_i32_0 = arith.constant 0 : i32
    %c0_i32_1 = arith.constant 0 : i32
    return %arg0, %c0_i32, %c0_i32_0 : i32, i32, i32
  }
  func.func @transform_2(%arg0: i32) -> (i32, i32) {
    %c0_i32 = arith.constant 0 : i32
    %c0_i32_0 = arith.constant 0 : i32
    %c0_i32_1 = arith.constant 0 : i32
    return %c0_i32, %c0_i32_0 : i32, i32
  }
  func.func @transform_3(%arg0: i32) -> (i32, i32) {
    %c0_i32 = arith.constant 0 : i32
    %c0_i32_0 = arith.constant 0 : i32
    %c0_i32_1 = arith.constant 0 : i32
    return %c0_i32, %c0_i32_0 : i32, i32
  }
  func.func @transform_4(%arg0: i32) -> (i32, i32) {
    %c0_i32 = arith.constant 0 : i32
    %c0_i32_0 = arith.constant 0 : i32
    %c0_i32_1 = arith.constant 0 : i32
    return %c0_i32, %c0_i32_0 : i32, i32
  }
  func.func @transform_5(%arg0: i32) -> (i32, i32) {
    %c0_i32 = arith.constant 0 : i32
    %c0_i32_0 = arith.constant 0 : i32
    %c0_i32_1 = arith.constant 0 : i32
    return %c0_i32, %c0_i32_0 : i32, i32
  }
  func.func @transform_6(%arg0: i32) -> (i32, i32, i32) {
    %c0_i32 = arith.constant 0 : i32
    %c0_i32_0 = arith.constant 0 : i32
    %c0_i32_1 = arith.constant 0 : i32
    return %arg0, %c0_i32, %c0_i32_0 : i32, i32, i32
  }
}

module attributes {stable_mosaic.version = 11 : i64} {
  func.func @_conv_gn_kernel(%arg0: i32, %arg1: memref<1x125x168xf32, #tpu.memory_space<vmem>>, %arg2: memref<168x24xf32, #tpu.memory_space<vmem>>, %arg3: memref<1x24xf32, #tpu.memory_space<vmem>>, %arg4: memref<24x2xf32, #tpu.memory_space<vmem>>, %arg5: memref<2x24xf32, #tpu.memory_space<vmem>>, %arg6: memref<1x24xf32, #tpu.memory_space<vmem>>, %arg7: memref<1x24xf32, #tpu.memory_space<vmem>>, %arg8: memref<1x125x24xf32, #tpu.memory_space<vmem>>) attributes {dimension_semantics = [#tpu.dimension_semantics<parallel>], iteration_bounds = array<i64: 2>, scalar_prefetch = 0 : i64, scratch_operands = 0 : i64, tpu.core_type = #tpu.core_type<tc>, window_params = [{transform_indices = @transform_0, window_bounds = array<i64: 1, 125, 168>}, {pipeline_mode = #tpu.pipeline_mode<synchronous>, transform_indices = @transform_1, window_bounds = array<i64: 168, 24>}, {pipeline_mode = #tpu.pipeline_mode<synchronous>, transform_indices = @transform_2, window_bounds = array<i64: 1, 24>}, {pipeline_mode = #tpu.pipeline_mode<synchronous>, transform_indices = @transform_3, window_bounds = array<i64: 24, 2>}, {pipeline_mode = #tpu.pipeline_mode<synchronous>, transform_indices = @transform_4, window_bounds = array<i64: 2, 24>}, {pipeline_mode = #tpu.pipeline_mode<synchronous>, transform_indices = @transform_5, window_bounds = array<i64: 1, 24>}, {pipeline_mode = #tpu.pipeline_mode<synchronous>, transform_indices = @transform_6, window_bounds = array<i64: 1, 24>}, {transform_indices = @transform_7, window_bounds = array<i64: 1, 125, 24>}]} {
    %c0 = arith.constant 0 : index
    %c0_0 = arith.constant 0 : index
    %c0_1 = arith.constant 0 : index
    %0 = vector.load %arg1[%c0, %c0_0, %c0_1] : memref<1x125x168xf32, #tpu.memory_space<vmem>>, vector<1x125x168xf32>
    %1 = vector.shape_cast %0 : vector<1x125x168xf32> to vector<125x168xf32>
    %c0_2 = arith.constant 0 : index
    %c0_3 = arith.constant 0 : index
    %2 = vector.load %arg2[%c0_2, %c0_3] : memref<168x24xf32, #tpu.memory_space<vmem>>, vector<168x24xf32>
    %cst = arith.constant dense<0.000000e+00> : vector<125x24xf32>
    %3 = tpu.matmul %1, %2, %cst {dimension_numbers = #tpu.dot_dimension_numbers<[1], [0], [0], [1], [0, 0, 1, 1], [], []>} : vector<125x168xf32>, vector<168x24xf32>, vector<125x24xf32> -> vector<125x24xf32>
    %c0_4 = arith.constant 0 : index
    %c0_5 = arith.constant 0 : index
    %4 = vector.load %arg3[%c0_4, %c0_5] : memref<1x24xf32, #tpu.memory_space<vmem>>, vector<1x24xf32>
    %5 = vector.broadcast %4 : vector<1x24xf32> to vector<125x24xf32>
    %6 = arith.addf %3, %5 : vector<125x24xf32>
    %cst_6 = arith.constant 0.000000e+00 : f32
    %7 = vector.broadcast %cst_6 : f32 to vector<125x24xf32>
    %8 = arith.maximumf %6, %7 : vector<125x24xf32>
    %c0_7 = arith.constant 0 : index
    %c0_8 = arith.constant 0 : index
    %9 = vector.load %arg4[%c0_7, %c0_8] : memref<24x2xf32, #tpu.memory_space<vmem>>, vector<24x2xf32>
    %c0_9 = arith.constant 0 : index
    %c0_10 = arith.constant 0 : index
    %10 = vector.load %arg5[%c0_9, %c0_10] : memref<2x24xf32, #tpu.memory_space<vmem>>, vector<2x24xf32>
    %c0_11 = arith.constant 0 : index
    %c0_12 = arith.constant 0 : index
    %11 = vector.load %arg6[%c0_11, %c0_12] : memref<1x24xf32, #tpu.memory_space<vmem>>, vector<1x24xf32>
    %c0_13 = arith.constant 0 : index
    %c0_14 = arith.constant 0 : index
    %12 = vector.load %arg7[%c0_13, %c0_14] : memref<1x24xf32, #tpu.memory_space<vmem>>, vector<1x24xf32>
    %cst_15 = arith.constant dense<0.000000e+00> : vector<24xf32>
    %13 = vector.multi_reduction <add>, %8, %cst_15 [0] : vector<125x24xf32> to vector<24xf32>
    %14 = vector.shape_cast %13 : vector<24xf32> to vector<1x24xf32>
    %cst_16 = arith.constant dense<0.000000e+00> : vector<1x2xf32>
    %15 = tpu.matmul %14, %9, %cst_16 {dimension_numbers = #tpu.dot_dimension_numbers<[1], [0], [0], [1], [0, 0, 1, 1], [], []>} : vector<1x24xf32>, vector<24x2xf32>, vector<1x2xf32> -> vector<1x2xf32>
    %cst_17 = arith.constant 1.500000e+03 : f32
    %16 = vector.broadcast %cst_17 : f32 to vector<1x2xf32>
    %17 = arith.divf %15, %16 : vector<1x2xf32>
    %cst_18 = arith.constant dense<0.000000e+00> : vector<1x24xf32>
    %18 = tpu.matmul %17, %10, %cst_18 {dimension_numbers = #tpu.dot_dimension_numbers<[1], [0], [0], [1], [0, 0, 1, 1], [], []>} : vector<1x2xf32>, vector<2x24xf32>, vector<1x24xf32> -> vector<1x24xf32>
    %19 = vector.broadcast %18 : vector<1x24xf32> to vector<125x24xf32>
    %20 = arith.subf %8, %19 : vector<125x24xf32>
    %21 = arith.mulf %20, %20 : vector<125x24xf32>
    %cst_19 = arith.constant dense<0.000000e+00> : vector<24xf32>
    %22 = vector.multi_reduction <add>, %21, %cst_19 [0] : vector<125x24xf32> to vector<24xf32>
    %23 = vector.shape_cast %22 : vector<24xf32> to vector<1x24xf32>
    %cst_20 = arith.constant dense<0.000000e+00> : vector<1x2xf32>
    %24 = tpu.matmul %23, %9, %cst_20 {dimension_numbers = #tpu.dot_dimension_numbers<[1], [0], [0], [1], [0, 0, 1, 1], [], []>} : vector<1x24xf32>, vector<24x2xf32>, vector<1x2xf32> -> vector<1x2xf32>
    %cst_21 = arith.constant 1.500000e+03 : f32
    %25 = vector.broadcast %cst_21 : f32 to vector<1x2xf32>
    %26 = arith.divf %24, %25 : vector<1x2xf32>
    %cst_22 = arith.constant 9.99999974E-6 : f32
    %27 = vector.broadcast %cst_22 : f32 to vector<1x2xf32>
    %28 = arith.addf %26, %27 : vector<1x2xf32>
    %29 = math.rsqrt %28 : vector<1x2xf32>
    %cst_23 = arith.constant dense<0.000000e+00> : vector<1x24xf32>
    %30 = tpu.matmul %29, %10, %cst_23 {dimension_numbers = #tpu.dot_dimension_numbers<[1], [0], [0], [1], [0, 0, 1, 1], [], []>} : vector<1x2xf32>, vector<2x24xf32>, vector<1x24xf32> -> vector<1x24xf32>
    %31 = vector.broadcast %30 : vector<1x24xf32> to vector<125x24xf32>
    %32 = arith.mulf %20, %31 : vector<125x24xf32>
    %33 = vector.broadcast %11 : vector<1x24xf32> to vector<125x24xf32>
    %34 = arith.mulf %32, %33 : vector<125x24xf32>
    %35 = vector.broadcast %12 : vector<1x24xf32> to vector<125x24xf32>
    %36 = arith.addf %34, %35 : vector<125x24xf32>
    %cst_24 = arith.constant 0.000000e+00 : f32
    %37 = vector.broadcast %cst_24 : f32 to vector<125x24xf32>
    %38 = arith.maximumf %36, %37 : vector<125x24xf32>
    %c0_25 = arith.constant 0 : index
    %c0_26 = arith.constant 0 : index
    %c0_27 = arith.constant 0 : index
    %39 = vector.load %arg8[%c0_25, %c0_26, %c0_27] : memref<1x125x24xf32, #tpu.memory_space<vmem>>, vector<1x125x24xf32>
    %40 = vector.shape_cast %39 : vector<1x125x24xf32> to vector<125x24xf32>
    %41 = vector.shape_cast %38 : vector<125x24xf32> to vector<1x125x24xf32>
    tpu.vector_store %arg8[%c0_25, %c0_26, %c0_27], %41 {strides = array<i32>} : memref<1x125x24xf32, #tpu.memory_space<vmem>>, vector<1x125x24xf32>,
    return
  }
  func.func @transform_0(%arg0: i32) -> (i32, i32, i32) {
    %c0_i32 = arith.constant 0 : i32
    %c0_i32_0 = arith.constant 0 : i32
    %c0_i32_1 = arith.constant 0 : i32
    return %arg0, %c0_i32, %c0_i32_0 : i32, i32, i32
  }
  func.func @transform_1(%arg0: i32) -> (i32, i32) {
    %c0_i32 = arith.constant 0 : i32
    %c0_i32_0 = arith.constant 0 : i32
    %c0_i32_1 = arith.constant 0 : i32
    return %c0_i32, %c0_i32_0 : i32, i32
  }
  func.func @transform_2(%arg0: i32) -> (i32, i32) {
    %c0_i32 = arith.constant 0 : i32
    %c0_i32_0 = arith.constant 0 : i32
    %c0_i32_1 = arith.constant 0 : i32
    return %c0_i32, %c0_i32_0 : i32, i32
  }
  func.func @transform_3(%arg0: i32) -> (i32, i32) {
    %c0_i32 = arith.constant 0 : i32
    %c0_i32_0 = arith.constant 0 : i32
    %c0_i32_1 = arith.constant 0 : i32
    return %c0_i32, %c0_i32_0 : i32, i32
  }
  func.func @transform_4(%arg0: i32) -> (i32, i32) {
    %c0_i32 = arith.constant 0 : i32
    %c0_i32_0 = arith.constant 0 : i32
    %c0_i32_1 = arith.constant 0 : i32
    return %c0_i32, %c0_i32_0 : i32, i32
  }
  func.func @transform_5(%arg0: i32) -> (i32, i32) {
    %c0_i32 = arith.constant 0 : i32
    %c0_i32_0 = arith.constant 0 : i32
    %c0_i32_1 = arith.constant 0 : i32
    return %c0_i32, %c0_i32_0 : i32, i32
  }
  func.func @transform_6(%arg0: i32) -> (i32, i32) {
    %c0_i32 = arith.constant 0 : i32
    %c0_i32_0 = arith.constant 0 : i32
    %c0_i32_1 = arith.constant 0 : i32
    return %c0_i32, %c0_i32_0 : i32, i32
  }
  func.func @transform_7(%arg0: i32) -> (i32, i32, i32) {
    %c0_i32 = arith.constant 0 : i32
    %c0_i32_0 = arith.constant 0 : i32
    %c0_i32_1 = arith.constant 0 : i32
    return %arg0, %c0_i32, %c0_i32_0 : i32, i32, i32
  }
}

module attributes {stable_mosaic.version = 11 : i64} {
  func.func @_conv_eca_kernel(%arg0: i32, %arg1: memref<1x125x168xf32, #tpu.memory_space<vmem>>, %arg2: memref<168x24xf32, #tpu.memory_space<vmem>>, %arg3: memref<1x24xf32, #tpu.memory_space<vmem>>, %arg4: memref<24x2xf32, #tpu.memory_space<vmem>>, %arg5: memref<2x24xf32, #tpu.memory_space<vmem>>, %arg6: memref<1x24xf32, #tpu.memory_space<vmem>>, %arg7: memref<1x24xf32, #tpu.memory_space<vmem>>, %arg8: memref<24x24xf32, #tpu.memory_space<vmem>>, %arg9: memref<1x125x24xf32, #tpu.memory_space<vmem>>, %arg10: memref<1x125x24xf32, #tpu.memory_space<vmem>>) attributes {dimension_semantics = [#tpu.dimension_semantics<parallel>], iteration_bounds = array<i64: 2>, scalar_prefetch = 0 : i64, scratch_operands = 0 : i64, tpu.core_type = #tpu.core_type<tc>, window_params = [{transform_indices = @transform_0, window_bounds = array<i64: 1, 125, 168>}, {pipeline_mode = #tpu.pipeline_mode<synchronous>, transform_indices = @transform_1, window_bounds = array<i64: 168, 24>}, {pipeline_mode = #tpu.pipeline_mode<synchronous>, transform_indices = @transform_2, window_bounds = array<i64: 1, 24>}, {pipeline_mode = #tpu.pipeline_mode<synchronous>, transform_indices = @transform_3, window_bounds = array<i64: 24, 2>}, {pipeline_mode = #tpu.pipeline_mode<synchronous>, transform_indices = @transform_4, window_bounds = array<i64: 2, 24>}, {pipeline_mode = #tpu.pipeline_mode<synchronous>, transform_indices = @transform_5, window_bounds = array<i64: 1, 24>}, {pipeline_mode = #tpu.pipeline_mode<synchronous>, transform_indices = @transform_6, window_bounds = array<i64: 1, 24>}, {pipeline_mode = #tpu.pipeline_mode<synchronous>, transform_indices = @transform_7, window_bounds = array<i64: 24, 24>}, {transform_indices = @transform_8, window_bounds = array<i64: 1, 125, 24>}, {transform_indices = @transform_9, window_bounds = array<i64: 1, 125, 24>}]} {
    %c0 = arith.constant 0 : index
    %c0_0 = arith.constant 0 : index
    %c0_1 = arith.constant 0 : index
    %0 = vector.load %arg1[%c0, %c0_0, %c0_1] : memref<1x125x168xf32, #tpu.memory_space<vmem>>, vector<1x125x168xf32>
    %1 = vector.shape_cast %0 : vector<1x125x168xf32> to vector<125x168xf32>
    %c0_2 = arith.constant 0 : index
    %c0_3 = arith.constant 0 : index
    %2 = vector.load %arg2[%c0_2, %c0_3] : memref<168x24xf32, #tpu.memory_space<vmem>>, vector<168x24xf32>
    %cst = arith.constant dense<0.000000e+00> : vector<125x24xf32>
    %3 = tpu.matmul %1, %2, %cst {dimension_numbers = #tpu.dot_dimension_numbers<[1], [0], [0], [1], [0, 0, 1, 1], [], []>} : vector<125x168xf32>, vector<168x24xf32>, vector<125x24xf32> -> vector<125x24xf32>
    %c0_4 = arith.constant 0 : index
    %c0_5 = arith.constant 0 : index
    %4 = vector.load %arg3[%c0_4, %c0_5] : memref<1x24xf32, #tpu.memory_space<vmem>>, vector<1x24xf32>
    %5 = vector.broadcast %4 : vector<1x24xf32> to vector<125x24xf32>
    %6 = arith.addf %3, %5 : vector<125x24xf32>
    %c0_6 = arith.constant 0 : index
    %c0_7 = arith.constant 0 : index
    %7 = vector.load %arg4[%c0_6, %c0_7] : memref<24x2xf32, #tpu.memory_space<vmem>>, vector<24x2xf32>
    %c0_8 = arith.constant 0 : index
    %c0_9 = arith.constant 0 : index
    %8 = vector.load %arg5[%c0_8, %c0_9] : memref<2x24xf32, #tpu.memory_space<vmem>>, vector<2x24xf32>
    %c0_10 = arith.constant 0 : index
    %c0_11 = arith.constant 0 : index
    %9 = vector.load %arg6[%c0_10, %c0_11] : memref<1x24xf32, #tpu.memory_space<vmem>>, vector<1x24xf32>
    %c0_12 = arith.constant 0 : index
    %c0_13 = arith.constant 0 : index
    %10 = vector.load %arg7[%c0_12, %c0_13] : memref<1x24xf32, #tpu.memory_space<vmem>>, vector<1x24xf32>
    %cst_14 = arith.constant dense<0.000000e+00> : vector<24xf32>
    %11 = vector.multi_reduction <add>, %6, %cst_14 [0] : vector<125x24xf32> to vector<24xf32>
    %12 = vector.shape_cast %11 : vector<24xf32> to vector<1x24xf32>
    %cst_15 = arith.constant dense<0.000000e+00> : vector<1x2xf32>
    %13 = tpu.matmul %12, %7, %cst_15 {dimension_numbers = #tpu.dot_dimension_numbers<[1], [0], [0], [1], [0, 0, 1, 1], [], []>} : vector<1x24xf32>, vector<24x2xf32>, vector<1x2xf32> -> vector<1x2xf32>
    %cst_16 = arith.constant 1.500000e+03 : f32
    %14 = vector.broadcast %cst_16 : f32 to vector<1x2xf32>
    %15 = arith.divf %13, %14 : vector<1x2xf32>
    %cst_17 = arith.constant dense<0.000000e+00> : vector<1x24xf32>
    %16 = tpu.matmul %15, %8, %cst_17 {dimension_numbers = #tpu.dot_dimension_numbers<[1], [0], [0], [1], [0, 0, 1, 1], [], []>} : vector<1x2xf32>, vector<2x24xf32>, vector<1x24xf32> -> vector<1x24xf32>
    %17 = vector.broadcast %16 : vector<1x24xf32> to vector<125x24xf32>
    %18 = arith.subf %6, %17 : vector<125x24xf32>
    %19 = arith.mulf %18, %18 : vector<125x24xf32>
    %cst_18 = arith.constant dense<0.000000e+00> : vector<24xf32>
    %20 = vector.multi_reduction <add>, %19, %cst_18 [0] : vector<125x24xf32> to vector<24xf32>
    %21 = vector.shape_cast %20 : vector<24xf32> to vector<1x24xf32>
    %cst_19 = arith.constant dense<0.000000e+00> : vector<1x2xf32>
    %22 = tpu.matmul %21, %7, %cst_19 {dimension_numbers = #tpu.dot_dimension_numbers<[1], [0], [0], [1], [0, 0, 1, 1], [], []>} : vector<1x24xf32>, vector<24x2xf32>, vector<1x2xf32> -> vector<1x2xf32>
    %cst_20 = arith.constant 1.500000e+03 : f32
    %23 = vector.broadcast %cst_20 : f32 to vector<1x2xf32>
    %24 = arith.divf %22, %23 : vector<1x2xf32>
    %cst_21 = arith.constant 9.99999974E-6 : f32
    %25 = vector.broadcast %cst_21 : f32 to vector<1x2xf32>
    %26 = arith.addf %24, %25 : vector<1x2xf32>
    %27 = math.rsqrt %26 : vector<1x2xf32>
    %cst_22 = arith.constant dense<0.000000e+00> : vector<1x24xf32>
    %28 = tpu.matmul %27, %8, %cst_22 {dimension_numbers = #tpu.dot_dimension_numbers<[1], [0], [0], [1], [0, 0, 1, 1], [], []>} : vector<1x2xf32>, vector<2x24xf32>, vector<1x24xf32> -> vector<1x24xf32>
    %29 = vector.broadcast %28 : vector<1x24xf32> to vector<125x24xf32>
    %30 = arith.mulf %18, %29 : vector<125x24xf32>
    %31 = vector.broadcast %9 : vector<1x24xf32> to vector<125x24xf32>
    %32 = arith.mulf %30, %31 : vector<125x24xf32>
    %33 = vector.broadcast %10 : vector<1x24xf32> to vector<125x24xf32>
    %34 = arith.addf %32, %33 : vector<125x24xf32>
    %cst_23 = arith.constant dense<0.000000e+00> : vector<24xf32>
    %35 = vector.multi_reduction <add>, %34, %cst_23 [0] : vector<125x24xf32> to vector<24xf32>
    %36 = vector.shape_cast %35 : vector<24xf32> to vector<1x24xf32>
    %cst_24 = arith.constant 1.250000e+02 : f32
    %37 = vector.broadcast %cst_24 : f32 to vector<1x24xf32>
    %38 = arith.divf %36, %37 : vector<1x24xf32>
    %c0_25 = arith.constant 0 : index
    %c0_26 = arith.constant 0 : index
    %39 = vector.load %arg8[%c0_25, %c0_26] : memref<24x24xf32, #tpu.memory_space<vmem>>, vector<24x24xf32>
    %cst_27 = arith.constant dense<0.000000e+00> : vector<1x24xf32>
    %40 = tpu.matmul %38, %39, %cst_27 {dimension_numbers = #tpu.dot_dimension_numbers<[1], [0], [0], [1], [0, 0, 1, 1], [], []>} : vector<1x24xf32>, vector<24x24xf32>, vector<1x24xf32> -> vector<1x24xf32>
    %41 = arith.negf %40 : vector<1x24xf32>
    %42 = math.exp %41 : vector<1x24xf32>
    %cst_28 = arith.constant 1.000000e+00 : f32
    %43 = vector.broadcast %cst_28 : f32 to vector<1x24xf32>
    %44 = arith.addf %43, %42 : vector<1x24xf32>
    %45 = arith.divf %43, %44 : vector<1x24xf32>
    %46 = vector.broadcast %45 : vector<1x24xf32> to vector<125x24xf32>
    %47 = arith.mulf %34, %46 : vector<125x24xf32>
    %c0_29 = arith.constant 0 : index
    %c0_30 = arith.constant 0 : index
    %c0_31 = arith.constant 0 : index
    %48 = vector.load %arg9[%c0_29, %c0_30, %c0_31] : memref<1x125x24xf32, #tpu.memory_space<vmem>>, vector<1x125x24xf32>
    %49 = vector.shape_cast %48 : vector<1x125x24xf32> to vector<125x24xf32>
    %50 = arith.addf %47, %49 : vector<125x24xf32>
    %c0_32 = arith.constant 0 : index
    %c0_33 = arith.constant 0 : index
    %c0_34 = arith.constant 0 : index
    %51 = vector.load %arg10[%c0_32, %c0_33, %c0_34] : memref<1x125x24xf32, #tpu.memory_space<vmem>>, vector<1x125x24xf32>
    %52 = vector.shape_cast %51 : vector<1x125x24xf32> to vector<125x24xf32>
    %53 = vector.shape_cast %50 : vector<125x24xf32> to vector<1x125x24xf32>
    tpu.vector_store %arg10[%c0_32, %c0_33, %c0_34], %53 {strides = array<i32>} : memref<1x125x24xf32, #tpu.memory_space<vmem>>, vector<1x125x24xf32>,
    return
  }
  func.func @transform_0(%arg0: i32) -> (i32, i32, i32) {
    %c0_i32 = arith.constant 0 : i32
    %c0_i32_0 = arith.constant 0 : i32
    %c0_i32_1 = arith.constant 0 : i32
    return %arg0, %c0_i32, %c0_i32_0 : i32, i32, i32
  }
  func.func @transform_1(%arg0: i32) -> (i32, i32) {
    %c0_i32 = arith.constant 0 : i32
    %c0_i32_0 = arith.constant 0 : i32
    %c0_i32_1 = arith.constant 0 : i32
    return %c0_i32, %c0_i32_0 : i32, i32
  }
  func.func @transform_2(%arg0: i32) -> (i32, i32) {
    %c0_i32 = arith.constant 0 : i32
    %c0_i32_0 = arith.constant 0 : i32
    %c0_i32_1 = arith.constant 0 : i32
    return %c0_i32, %c0_i32_0 : i32, i32
  }
  func.func @transform_3(%arg0: i32) -> (i32, i32) {
    %c0_i32 = arith.constant 0 : i32
    %c0_i32_0 = arith.constant 0 : i32
    %c0_i32_1 = arith.constant 0 : i32
    return %c0_i32, %c0_i32_0 : i32, i32
  }
  func.func @transform_4(%arg0: i32) -> (i32, i32) {
    %c0_i32 = arith.constant 0 : i32
    %c0_i32_0 = arith.constant 0 : i32
    %c0_i32_1 = arith.constant 0 : i32
    return %c0_i32, %c0_i32_0 : i32, i32
  }
  func.func @transform_5(%arg0: i32) -> (i32, i32) {
    %c0_i32 = arith.constant 0 : i32
    %c0_i32_0 = arith.constant 0 : i32
    %c0_i32_1 = arith.constant 0 : i32
    return %c0_i32, %c0_i32_0 : i32, i32
  }
  func.func @transform_6(%arg0: i32) -> (i32, i32) {
    %c0_i32 = arith.constant 0 : i32
    %c0_i32_0 = arith.constant 0 : i32
    %c0_i32_1 = arith.constant 0 : i32
    return %c0_i32, %c0_i32_0 : i32, i32
  }
  func.func @transform_7(%arg0: i32) -> (i32, i32) {
    %c0_i32 = arith.constant 0 : i32
    %c0_i32_0 = arith.constant 0 : i32
    %c0_i32_1 = arith.constant 0 : i32
    return %c0_i32, %c0_i32_0 : i32, i32
  }
  func.func @transform_8(%arg0: i32) -> (i32, i32, i32) {
    %c0_i32 = arith.constant 0 : i32
    %c0_i32_0 = arith.constant 0 : i32
    %c0_i32_1 = arith.constant 0 : i32
    return %arg0, %c0_i32, %c0_i32_0 : i32, i32, i32
  }
  func.func @transform_9(%arg0: i32) -> (i32, i32, i32) {
    %c0_i32 = arith.constant 0 : i32
    %c0_i32_0 = arith.constant 0 : i32
    %c0_i32_1 = arith.constant 0 : i32
    return %arg0, %c0_i32, %c0_i32_0 : i32, i32, i32
  }
}

module attributes {stable_mosaic.version = 11 : i64} {
  func.func @_gn_relu_kernel(%arg0: i32, %arg1: memref<1x125x24xf32, #tpu.memory_space<vmem>>, %arg2: memref<24x2xf32, #tpu.memory_space<vmem>>, %arg3: memref<2x24xf32, #tpu.memory_space<vmem>>, %arg4: memref<1x24xf32, #tpu.memory_space<vmem>>, %arg5: memref<1x24xf32, #tpu.memory_space<vmem>>, %arg6: memref<1x125x24xf32, #tpu.memory_space<vmem>>) attributes {dimension_semantics = [#tpu.dimension_semantics<parallel>], iteration_bounds = array<i64: 2>, scalar_prefetch = 0 : i64, scratch_operands = 0 : i64, tpu.core_type = #tpu.core_type<tc>, window_params = [{transform_indices = @transform_0, window_bounds = array<i64: 1, 125, 24>}, {pipeline_mode = #tpu.pipeline_mode<synchronous>, transform_indices = @transform_1, window_bounds = array<i64: 24, 2>}, {pipeline_mode = #tpu.pipeline_mode<synchronous>, transform_indices = @transform_2, window_bounds = array<i64: 2, 24>}, {pipeline_mode = #tpu.pipeline_mode<synchronous>, transform_indices = @transform_3, window_bounds = array<i64: 1, 24>}, {pipeline_mode = #tpu.pipeline_mode<synchronous>, transform_indices = @transform_4, window_bounds = array<i64: 1, 24>}, {transform_indices = @transform_5, window_bounds = array<i64: 1, 125, 24>}]} {
    %c0 = arith.constant 0 : index
    %c0_0 = arith.constant 0 : index
    %c0_1 = arith.constant 0 : index
    %0 = vector.load %arg1[%c0, %c0_0, %c0_1] : memref<1x125x24xf32, #tpu.memory_space<vmem>>, vector<1x125x24xf32>
    %1 = vector.shape_cast %0 : vector<1x125x24xf32> to vector<125x24xf32>
    %c0_2 = arith.constant 0 : index
    %c0_3 = arith.constant 0 : index
    %2 = vector.load %arg2[%c0_2, %c0_3] : memref<24x2xf32, #tpu.memory_space<vmem>>, vector<24x2xf32>
    %c0_4 = arith.constant 0 : index
    %c0_5 = arith.constant 0 : index
    %3 = vector.load %arg3[%c0_4, %c0_5] : memref<2x24xf32, #tpu.memory_space<vmem>>, vector<2x24xf32>
    %c0_6 = arith.constant 0 : index
    %c0_7 = arith.constant 0 : index
    %4 = vector.load %arg4[%c0_6, %c0_7] : memref<1x24xf32, #tpu.memory_space<vmem>>, vector<1x24xf32>
    %c0_8 = arith.constant 0 : index
    %c0_9 = arith.constant 0 : index
    %5 = vector.load %arg5[%c0_8, %c0_9] : memref<1x24xf32, #tpu.memory_space<vmem>>, vector<1x24xf32>
    %cst = arith.constant dense<0.000000e+00> : vector<24xf32>
    %6 = vector.multi_reduction <add>, %1, %cst [0] : vector<125x24xf32> to vector<24xf32>
    %7 = vector.shape_cast %6 : vector<24xf32> to vector<1x24xf32>
    %cst_10 = arith.constant dense<0.000000e+00> : vector<1x2xf32>
    %8 = tpu.matmul %7, %2, %cst_10 {dimension_numbers = #tpu.dot_dimension_numbers<[1], [0], [0], [1], [0, 0, 1, 1], [], []>} : vector<1x24xf32>, vector<24x2xf32>, vector<1x2xf32> -> vector<1x2xf32>
    %cst_11 = arith.constant 1.500000e+03 : f32
    %9 = vector.broadcast %cst_11 : f32 to vector<1x2xf32>
    %10 = arith.divf %8, %9 : vector<1x2xf32>
    %cst_12 = arith.constant dense<0.000000e+00> : vector<1x24xf32>
    %11 = tpu.matmul %10, %3, %cst_12 {dimension_numbers = #tpu.dot_dimension_numbers<[1], [0], [0], [1], [0, 0, 1, 1], [], []>} : vector<1x2xf32>, vector<2x24xf32>, vector<1x24xf32> -> vector<1x24xf32>
    %12 = vector.broadcast %11 : vector<1x24xf32> to vector<125x24xf32>
    %13 = arith.subf %1, %12 : vector<125x24xf32>
    %14 = arith.mulf %13, %13 : vector<125x24xf32>
    %cst_13 = arith.constant dense<0.000000e+00> : vector<24xf32>
    %15 = vector.multi_reduction <add>, %14, %cst_13 [0] : vector<125x24xf32> to vector<24xf32>
    %16 = vector.shape_cast %15 : vector<24xf32> to vector<1x24xf32>
    %cst_14 = arith.constant dense<0.000000e+00> : vector<1x2xf32>
    %17 = tpu.matmul %16, %2, %cst_14 {dimension_numbers = #tpu.dot_dimension_numbers<[1], [0], [0], [1], [0, 0, 1, 1], [], []>} : vector<1x24xf32>, vector<24x2xf32>, vector<1x2xf32> -> vector<1x2xf32>
    %cst_15 = arith.constant 1.500000e+03 : f32
    %18 = vector.broadcast %cst_15 : f32 to vector<1x2xf32>
    %19 = arith.divf %17, %18 : vector<1x2xf32>
    %cst_16 = arith.constant 9.99999974E-6 : f32
    %20 = vector.broadcast %cst_16 : f32 to vector<1x2xf32>
    %21 = arith.addf %19, %20 : vector<1x2xf32>
    %22 = math.rsqrt %21 : vector<1x2xf32>
    %cst_17 = arith.constant dense<0.000000e+00> : vector<1x24xf32>
    %23 = tpu.matmul %22, %3, %cst_17 {dimension_numbers = #tpu.dot_dimension_numbers<[1], [0], [0], [1], [0, 0, 1, 1], [], []>} : vector<1x2xf32>, vector<2x24xf32>, vector<1x24xf32> -> vector<1x24xf32>
    %24 = vector.broadcast %23 : vector<1x24xf32> to vector<125x24xf32>
    %25 = arith.mulf %13, %24 : vector<125x24xf32>
    %26 = vector.broadcast %4 : vector<1x24xf32> to vector<125x24xf32>
    %27 = arith.mulf %25, %26 : vector<125x24xf32>
    %28 = vector.broadcast %5 : vector<1x24xf32> to vector<125x24xf32>
    %29 = arith.addf %27, %28 : vector<125x24xf32>
    %cst_18 = arith.constant 0.000000e+00 : f32
    %30 = vector.broadcast %cst_18 : f32 to vector<125x24xf32>
    %31 = arith.maximumf %29, %30 : vector<125x24xf32>
    %c0_19 = arith.constant 0 : index
    %c0_20 = arith.constant 0 : index
    %c0_21 = arith.constant 0 : index
    %32 = vector.load %arg6[%c0_19, %c0_20, %c0_21] : memref<1x125x24xf32, #tpu.memory_space<vmem>>, vector<1x125x24xf32>
    %33 = vector.shape_cast %32 : vector<1x125x24xf32> to vector<125x24xf32>
    %34 = vector.shape_cast %31 : vector<125x24xf32> to vector<1x125x24xf32>
    tpu.vector_store %arg6[%c0_19, %c0_20, %c0_21], %34 {strides = array<i32>} : memref<1x125x24xf32, #tpu.memory_space<vmem>>, vector<1x125x24xf32>,
    return
  }
  func.func @transform_0(%arg0: i32) -> (i32, i32, i32) {
    %c0_i32 = arith.constant 0 : i32
    %c0_i32_0 = arith.constant 0 : i32
    %c0_i32_1 = arith.constant 0 : i32
    return %arg0, %c0_i32, %c0_i32_0 : i32, i32, i32
  }
  func.func @transform_1(%arg0: i32) -> (i32, i32) {
    %c0_i32 = arith.constant 0 : i32
    %c0_i32_0 = arith.constant 0 : i32
    %c0_i32_1 = arith.constant 0 : i32
    return %c0_i32, %c0_i32_0 : i32, i32
  }
  func.func @transform_2(%arg0: i32) -> (i32, i32) {
    %c0_i32 = arith.constant 0 : i32
    %c0_i32_0 = arith.constant 0 : i32
    %c0_i32_1 = arith.constant 0 : i32
    return %c0_i32, %c0_i32_0 : i32, i32
  }
  func.func @transform_3(%arg0: i32) -> (i32, i32) {
    %c0_i32 = arith.constant 0 : i32
    %c0_i32_0 = arith.constant 0 : i32
    %c0_i32_1 = arith.constant 0 : i32
    return %c0_i32, %c0_i32_0 : i32, i32
  }
  func.func @transform_4(%arg0: i32) -> (i32, i32) {
    %c0_i32 = arith.constant 0 : i32
    %c0_i32_0 = arith.constant 0 : i32
    %c0_i32_1 = arith.constant 0 : i32
    return %c0_i32, %c0_i32_0 : i32, i32
  }
  func.func @transform_5(%arg0: i32) -> (i32, i32, i32) {
    %c0_i32 = arith.constant 0 : i32
    %c0_i32_0 = arith.constant 0 : i32
    %c0_i32_1 = arith.constant 0 : i32
    return %arg0, %c0_i32, %c0_i32_0 : i32, i32, i32
  }
}

module attributes {stable_mosaic.version = 11 : i64} {
  func.func @_conv_eca_kernel(%arg0: i32, %arg1: memref<1x125x168xf32, #tpu.memory_space<vmem>>, %arg2: memref<168x24xf32, #tpu.memory_space<vmem>>, %arg3: memref<1x24xf32, #tpu.memory_space<vmem>>, %arg4: memref<24x2xf32, #tpu.memory_space<vmem>>, %arg5: memref<2x24xf32, #tpu.memory_space<vmem>>, %arg6: memref<1x24xf32, #tpu.memory_space<vmem>>, %arg7: memref<1x24xf32, #tpu.memory_space<vmem>>, %arg8: memref<24x24xf32, #tpu.memory_space<vmem>>, %arg9: memref<1x125x24xf32, #tpu.memory_space<vmem>>, %arg10: memref<1x125x24xf32, #tpu.memory_space<vmem>>) attributes {dimension_semantics = [#tpu.dimension_semantics<parallel>], iteration_bounds = array<i64: 2>, scalar_prefetch = 0 : i64, scratch_operands = 0 : i64, tpu.core_type = #tpu.core_type<tc>, window_params = [{transform_indices = @transform_0, window_bounds = array<i64: 1, 125, 168>}, {pipeline_mode = #tpu.pipeline_mode<synchronous>, transform_indices = @transform_1, window_bounds = array<i64: 168, 24>}, {pipeline_mode = #tpu.pipeline_mode<synchronous>, transform_indices = @transform_2, window_bounds = array<i64: 1, 24>}, {pipeline_mode = #tpu.pipeline_mode<synchronous>, transform_indices = @transform_3, window_bounds = array<i64: 24, 2>}, {pipeline_mode = #tpu.pipeline_mode<synchronous>, transform_indices = @transform_4, window_bounds = array<i64: 2, 24>}, {pipeline_mode = #tpu.pipeline_mode<synchronous>, transform_indices = @transform_5, window_bounds = array<i64: 1, 24>}, {pipeline_mode = #tpu.pipeline_mode<synchronous>, transform_indices = @transform_6, window_bounds = array<i64: 1, 24>}, {pipeline_mode = #tpu.pipeline_mode<synchronous>, transform_indices = @transform_7, window_bounds = array<i64: 24, 24>}, {transform_indices = @transform_8, window_bounds = array<i64: 1, 125, 24>}, {transform_indices = @transform_9, window_bounds = array<i64: 1, 125, 24>}]} {
    %c0 = arith.constant 0 : index
    %c0_0 = arith.constant 0 : index
    %c0_1 = arith.constant 0 : index
    %0 = vector.load %arg1[%c0, %c0_0, %c0_1] : memref<1x125x168xf32, #tpu.memory_space<vmem>>, vector<1x125x168xf32>
    %1 = vector.shape_cast %0 : vector<1x125x168xf32> to vector<125x168xf32>
    %c0_2 = arith.constant 0 : index
    %c0_3 = arith.constant 0 : index
    %2 = vector.load %arg2[%c0_2, %c0_3] : memref<168x24xf32, #tpu.memory_space<vmem>>, vector<168x24xf32>
    %cst = arith.constant dense<0.000000e+00> : vector<125x24xf32>
    %3 = tpu.matmul %1, %2, %cst {dimension_numbers = #tpu.dot_dimension_numbers<[1], [0], [0], [1], [0, 0, 1, 1], [], []>} : vector<125x168xf32>, vector<168x24xf32>, vector<125x24xf32> -> vector<125x24xf32>
    %c0_4 = arith.constant 0 : index
    %c0_5 = arith.constant 0 : index
    %4 = vector.load %arg3[%c0_4, %c0_5] : memref<1x24xf32, #tpu.memory_space<vmem>>, vector<1x24xf32>
    %5 = vector.broadcast %4 : vector<1x24xf32> to vector<125x24xf32>
    %6 = arith.addf %3, %5 : vector<125x24xf32>
    %cst_6 = arith.constant dense<0.000000e+00> : vector<24xf32>
    %7 = vector.multi_reduction <add>, %6, %cst_6 [0] : vector<125x24xf32> to vector<24xf32>
    %8 = vector.shape_cast %7 : vector<24xf32> to vector<1x24xf32>
    %cst_7 = arith.constant 1.250000e+02 : f32
    %9 = vector.broadcast %cst_7 : f32 to vector<1x24xf32>
    %10 = arith.divf %8, %9 : vector<1x24xf32>
    %c0_8 = arith.constant 0 : index
    %c0_9 = arith.constant 0 : index
    %11 = vector.load %arg8[%c0_8, %c0_9] : memref<24x24xf32, #tpu.memory_space<vmem>>, vector<24x24xf32>
    %cst_10 = arith.constant dense<0.000000e+00> : vector<1x24xf32>
    %12 = tpu.matmul %10, %11, %cst_10 {dimension_numbers = #tpu.dot_dimension_numbers<[1], [0], [0], [1], [0, 0, 1, 1], [], []>} : vector<1x24xf32>, vector<24x24xf32>, vector<1x24xf32> -> vector<1x24xf32>
    %13 = arith.negf %12 : vector<1x24xf32>
    %14 = math.exp %13 : vector<1x24xf32>
    %cst_11 = arith.constant 1.000000e+00 : f32
    %15 = vector.broadcast %cst_11 : f32 to vector<1x24xf32>
    %16 = arith.addf %15, %14 : vector<1x24xf32>
    %17 = arith.divf %15, %16 : vector<1x24xf32>
    %18 = vector.broadcast %17 : vector<1x24xf32> to vector<125x24xf32>
    %19 = arith.mulf %6, %18 : vector<125x24xf32>
    %c0_12 = arith.constant 0 : index
    %c0_13 = arith.constant 0 : index
    %c0_14 = arith.constant 0 : index
    %20 = vector.load %arg9[%c0_12, %c0_13, %c0_14] : memref<1x125x24xf32, #tpu.memory_space<vmem>>, vector<1x125x24xf32>
    %21 = vector.shape_cast %20 : vector<1x125x24xf32> to vector<125x24xf32>
    %22 = arith.addf %19, %21 : vector<125x24xf32>
    %c0_15 = arith.constant 0 : index
    %c0_16 = arith.constant 0 : index
    %c0_17 = arith.constant 0 : index
    %23 = vector.load %arg10[%c0_15, %c0_16, %c0_17] : memref<1x125x24xf32, #tpu.memory_space<vmem>>, vector<1x125x24xf32>
    %24 = vector.shape_cast %23 : vector<1x125x24xf32> to vector<125x24xf32>
    %25 = vector.shape_cast %22 : vector<125x24xf32> to vector<1x125x24xf32>
    tpu.vector_store %arg10[%c0_15, %c0_16, %c0_17], %25 {strides = array<i32>} : memref<1x125x24xf32, #tpu.memory_space<vmem>>, vector<1x125x24xf32>,
    return
  }
  func.func @transform_0(%arg0: i32) -> (i32, i32, i32) {
    %c0_i32 = arith.constant 0 : i32
    %c0_i32_0 = arith.constant 0 : i32
    %c0_i32_1 = arith.constant 0 : i32
    return %arg0, %c0_i32, %c0_i32_0 : i32, i32, i32
  }
  func.func @transform_1(%arg0: i32) -> (i32, i32) {
    %c0_i32 = arith.constant 0 : i32
    %c0_i32_0 = arith.constant 0 : i32
    %c0_i32_1 = arith.constant 0 : i32
    return %c0_i32, %c0_i32_0 : i32, i32
  }
  func.func @transform_2(%arg0: i32) -> (i32, i32) {
    %c0_i32 = arith.constant 0 : i32
    %c0_i32_0 = arith.constant 0 : i32
    %c0_i32_1 = arith.constant 0 : i32
    return %c0_i32, %c0_i32_0 : i32, i32
  }
  func.func @transform_3(%arg0: i32) -> (i32, i32) {
    %c0_i32 = arith.constant 0 : i32
    %c0_i32_0 = arith.constant 0 : i32
    %c0_i32_1 = arith.constant 0 : i32
    return %c0_i32, %c0_i32_0 : i32, i32
  }
  func.func @transform_4(%arg0: i32) -> (i32, i32) {
    %c0_i32 = arith.constant 0 : i32
    %c0_i32_0 = arith.constant 0 : i32
    %c0_i32_1 = arith.constant 0 : i32
    return %c0_i32, %c0_i32_0 : i32, i32
  }
  func.func @transform_5(%arg0: i32) -> (i32, i32) {
    %c0_i32 = arith.constant 0 : i32
    %c0_i32_0 = arith.constant 0 : i32
    %c0_i32_1 = arith.constant 0 : i32
    return %c0_i32, %c0_i32_0 : i32, i32
  }
  func.func @transform_6(%arg0: i32) -> (i32, i32) {
    %c0_i32 = arith.constant 0 : i32
    %c0_i32_0 = arith.constant 0 : i32
    %c0_i32_1 = arith.constant 0 : i32
    return %c0_i32, %c0_i32_0 : i32, i32
  }
  func.func @transform_7(%arg0: i32) -> (i32, i32) {
    %c0_i32 = arith.constant 0 : i32
    %c0_i32_0 = arith.constant 0 : i32
    %c0_i32_1 = arith.constant 0 : i32
    return %c0_i32, %c0_i32_0 : i32, i32
  }
  func.func @transform_8(%arg0: i32) -> (i32, i32, i32) {
    %c0_i32 = arith.constant 0 : i32
    %c0_i32_0 = arith.constant 0 : i32
    %c0_i32_1 = arith.constant 0 : i32
    return %arg0, %c0_i32, %c0_i32_0 : i32, i32, i32
  }
  func.func @transform_9(%arg0: i32) -> (i32, i32, i32) {
    %c0_i32 = arith.constant 0 : i32
    %c0_i32_0 = arith.constant 0 : i32
    %c0_i32_1 = arith.constant 0 : i32
    return %arg0, %c0_i32, %c0_i32_0 : i32, i32, i32
  }
}

module attributes {stable_mosaic.version = 11 : i64} {
  func.func @_conv_gn_kernel(%arg0: i32, %arg1: memref<1x25x120xf32, #tpu.memory_space<vmem>>, %arg2: memref<120x128xf32, #tpu.memory_space<vmem>>, %arg3: memref<1x128xf32, #tpu.memory_space<vmem>>, %arg4: memref<128x2xf32, #tpu.memory_space<vmem>>, %arg5: memref<2x128xf32, #tpu.memory_space<vmem>>, %arg6: memref<1x128xf32, #tpu.memory_space<vmem>>, %arg7: memref<1x128xf32, #tpu.memory_space<vmem>>, %arg8: memref<1x25x128xf32, #tpu.memory_space<vmem>>) attributes {dimension_semantics = [#tpu.dimension_semantics<parallel>], iteration_bounds = array<i64: 2>, scalar_prefetch = 0 : i64, scratch_operands = 0 : i64, tpu.core_type = #tpu.core_type<tc>, window_params = [{transform_indices = @transform_0, window_bounds = array<i64: 1, 25, 120>}, {pipeline_mode = #tpu.pipeline_mode<synchronous>, transform_indices = @transform_1, window_bounds = array<i64: 120, 128>}, {pipeline_mode = #tpu.pipeline_mode<synchronous>, transform_indices = @transform_2, window_bounds = array<i64: 1, 128>}, {pipeline_mode = #tpu.pipeline_mode<synchronous>, transform_indices = @transform_3, window_bounds = array<i64: 128, 2>}, {pipeline_mode = #tpu.pipeline_mode<synchronous>, transform_indices = @transform_4, window_bounds = array<i64: 2, 128>}, {pipeline_mode = #tpu.pipeline_mode<synchronous>, transform_indices = @transform_5, window_bounds = array<i64: 1, 128>}, {pipeline_mode = #tpu.pipeline_mode<synchronous>, transform_indices = @transform_6, window_bounds = array<i64: 1, 128>}, {transform_indices = @transform_7, window_bounds = array<i64: 1, 25, 128>}]} {
    %c0 = arith.constant 0 : index
    %c0_0 = arith.constant 0 : index
    %c0_1 = arith.constant 0 : index
    %0 = vector.load %arg1[%c0, %c0_0, %c0_1] : memref<1x25x120xf32, #tpu.memory_space<vmem>>, vector<1x25x120xf32>
    %1 = vector.shape_cast %0 : vector<1x25x120xf32> to vector<25x120xf32>
    %c0_2 = arith.constant 0 : index
    %c0_3 = arith.constant 0 : index
    %2 = vector.load %arg2[%c0_2, %c0_3] : memref<120x128xf32, #tpu.memory_space<vmem>>, vector<120x128xf32>
    %cst = arith.constant dense<0.000000e+00> : vector<25x128xf32>
    %3 = tpu.matmul %1, %2, %cst {dimension_numbers = #tpu.dot_dimension_numbers<[1], [0], [0], [1], [0, 0, 1, 1], [], []>} : vector<25x120xf32>, vector<120x128xf32>, vector<25x128xf32> -> vector<25x128xf32>
    %c0_4 = arith.constant 0 : index
    %c0_5 = arith.constant 0 : index
    %4 = vector.load %arg3[%c0_4, %c0_5] : memref<1x128xf32, #tpu.memory_space<vmem>>, vector<1x128xf32>
    %5 = vector.broadcast %4 : vector<1x128xf32> to vector<25x128xf32>
    %6 = arith.addf %3, %5 : vector<25x128xf32>
    %c0_6 = arith.constant 0 : index
    %c0_7 = arith.constant 0 : index
    %7 = vector.load %arg4[%c0_6, %c0_7] : memref<128x2xf32, #tpu.memory_space<vmem>>, vector<128x2xf32>
    %c0_8 = arith.constant 0 : index
    %c0_9 = arith.constant 0 : index
    %8 = vector.load %arg5[%c0_8, %c0_9] : memref<2x128xf32, #tpu.memory_space<vmem>>, vector<2x128xf32>
    %c0_10 = arith.constant 0 : index
    %c0_11 = arith.constant 0 : index
    %9 = vector.load %arg6[%c0_10, %c0_11] : memref<1x128xf32, #tpu.memory_space<vmem>>, vector<1x128xf32>
    %c0_12 = arith.constant 0 : index
    %c0_13 = arith.constant 0 : index
    %10 = vector.load %arg7[%c0_12, %c0_13] : memref<1x128xf32, #tpu.memory_space<vmem>>, vector<1x128xf32>
    %cst_14 = arith.constant dense<0.000000e+00> : vector<128xf32>
    %11 = vector.multi_reduction <add>, %6, %cst_14 [0] : vector<25x128xf32> to vector<128xf32>
    %12 = vector.shape_cast %11 : vector<128xf32> to vector<1x128xf32>
    %cst_15 = arith.constant dense<0.000000e+00> : vector<1x2xf32>
    %13 = tpu.matmul %12, %7, %cst_15 {dimension_numbers = #tpu.dot_dimension_numbers<[1], [0], [0], [1], [0, 0, 1, 1], [], []>} : vector<1x128xf32>, vector<128x2xf32>, vector<1x2xf32> -> vector<1x2xf32>
    %cst_16 = arith.constant 1.600000e+03 : f32
    %14 = vector.broadcast %cst_16 : f32 to vector<1x2xf32>
    %15 = arith.divf %13, %14 : vector<1x2xf32>
    %cst_17 = arith.constant dense<0.000000e+00> : vector<1x128xf32>
    %16 = tpu.matmul %15, %8, %cst_17 {dimension_numbers = #tpu.dot_dimension_numbers<[1], [0], [0], [1], [0, 0, 1, 1], [], []>} : vector<1x2xf32>, vector<2x128xf32>, vector<1x128xf32> -> vector<1x128xf32>
    %17 = vector.broadcast %16 : vector<1x128xf32> to vector<25x128xf32>
    %18 = arith.subf %6, %17 : vector<25x128xf32>
    %19 = arith.mulf %18, %18 : vector<25x128xf32>
    %cst_18 = arith.constant dense<0.000000e+00> : vector<128xf32>
    %20 = vector.multi_reduction <add>, %19, %cst_18 [0] : vector<25x128xf32> to vector<128xf32>
    %21 = vector.shape_cast %20 : vector<128xf32> to vector<1x128xf32>
    %cst_19 = arith.constant dense<0.000000e+00> : vector<1x2xf32>
    %22 = tpu.matmul %21, %7, %cst_19 {dimension_numbers = #tpu.dot_dimension_numbers<[1], [0], [0], [1], [0, 0, 1, 1], [], []>} : vector<1x128xf32>, vector<128x2xf32>, vector<1x2xf32> -> vector<1x2xf32>
    %cst_20 = arith.constant 1.600000e+03 : f32
    %23 = vector.broadcast %cst_20 : f32 to vector<1x2xf32>
    %24 = arith.divf %22, %23 : vector<1x2xf32>
    %cst_21 = arith.constant 9.99999974E-6 : f32
    %25 = vector.broadcast %cst_21 : f32 to vector<1x2xf32>
    %26 = arith.addf %24, %25 : vector<1x2xf32>
    %27 = math.rsqrt %26 : vector<1x2xf32>
    %cst_22 = arith.constant dense<0.000000e+00> : vector<1x128xf32>
    %28 = tpu.matmul %27, %8, %cst_22 {dimension_numbers = #tpu.dot_dimension_numbers<[1], [0], [0], [1], [0, 0, 1, 1], [], []>} : vector<1x2xf32>, vector<2x128xf32>, vector<1x128xf32> -> vector<1x128xf32>
    %29 = vector.broadcast %28 : vector<1x128xf32> to vector<25x128xf32>
    %30 = arith.mulf %18, %29 : vector<25x128xf32>
    %31 = vector.broadcast %9 : vector<1x128xf32> to vector<25x128xf32>
    %32 = arith.mulf %30, %31 : vector<25x128xf32>
    %33 = vector.broadcast %10 : vector<1x128xf32> to vector<25x128xf32>
    %34 = arith.addf %32, %33 : vector<25x128xf32>
    %cst_23 = arith.constant 0.000000e+00 : f32
    %35 = vector.broadcast %cst_23 : f32 to vector<25x128xf32>
    %36 = arith.maximumf %34, %35 : vector<25x128xf32>
    %c0_24 = arith.constant 0 : index
    %c0_25 = arith.constant 0 : index
    %c0_26 = arith.constant 0 : index
    %37 = vector.load %arg8[%c0_24, %c0_25, %c0_26] : memref<1x25x128xf32, #tpu.memory_space<vmem>>, vector<1x25x128xf32>
    %38 = vector.shape_cast %37 : vector<1x25x128xf32> to vector<25x128xf32>
    %39 = vector.shape_cast %36 : vector<25x128xf32> to vector<1x25x128xf32>
    tpu.vector_store %arg8[%c0_24, %c0_25, %c0_26], %39 {strides = array<i32>} : memref<1x25x128xf32, #tpu.memory_space<vmem>>, vector<1x25x128xf32>,
    return
  }
  func.func @transform_0(%arg0: i32) -> (i32, i32, i32) {
    %c0_i32 = arith.constant 0 : i32
    %c0_i32_0 = arith.constant 0 : i32
    %c0_i32_1 = arith.constant 0 : i32
    return %arg0, %c0_i32, %c0_i32_0 : i32, i32, i32
  }
  func.func @transform_1(%arg0: i32) -> (i32, i32) {
    %c0_i32 = arith.constant 0 : i32
    %c0_i32_0 = arith.constant 0 : i32
    %c0_i32_1 = arith.constant 0 : i32
    return %c0_i32, %c0_i32_0 : i32, i32
  }
  func.func @transform_2(%arg0: i32) -> (i32, i32) {
    %c0_i32 = arith.constant 0 : i32
    %c0_i32_0 = arith.constant 0 : i32
    %c0_i32_1 = arith.constant 0 : i32
    return %c0_i32, %c0_i32_0 : i32, i32
  }
  func.func @transform_3(%arg0: i32) -> (i32, i32) {
    %c0_i32 = arith.constant 0 : i32
    %c0_i32_0 = arith.constant 0 : i32
    %c0_i32_1 = arith.constant 0 : i32
    return %c0_i32, %c0_i32_0 : i32, i32
  }
  func.func @transform_4(%arg0: i32) -> (i32, i32) {
    %c0_i32 = arith.constant 0 : i32
    %c0_i32_0 = arith.constant 0 : i32
    %c0_i32_1 = arith.constant 0 : i32
    return %c0_i32, %c0_i32_0 : i32, i32
  }
  func.func @transform_5(%arg0: i32) -> (i32, i32) {
    %c0_i32 = arith.constant 0 : i32
    %c0_i32_0 = arith.constant 0 : i32
    %c0_i32_1 = arith.constant 0 : i32
    return %c0_i32, %c0_i32_0 : i32, i32
  }
  func.func @transform_6(%arg0: i32) -> (i32, i32) {
    %c0_i32 = arith.constant 0 : i32
    %c0_i32_0 = arith.constant 0 : i32
    %c0_i32_1 = arith.constant 0 : i32
    return %c0_i32, %c0_i32_0 : i32, i32
  }
  func.func @transform_7(%arg0: i32) -> (i32, i32, i32) {
    %c0_i32 = arith.constant 0 : i32
    %c0_i32_0 = arith.constant 0 : i32
    %c0_i32_1 = arith.constant 0 : i32
    return %arg0, %c0_i32, %c0_i32_0 : i32, i32, i32
  }
}

module attributes {stable_mosaic.version = 11 : i64} {
  func.func @_conv_gn_kernel(%arg0: i32, %arg1: memref<1x25x1152xf32, #tpu.memory_space<vmem>>, %arg2: memref<1152x24xf32, #tpu.memory_space<vmem>>, %arg3: memref<1x24xf32, #tpu.memory_space<vmem>>, %arg4: memref<24x2xf32, #tpu.memory_space<vmem>>, %arg5: memref<2x24xf32, #tpu.memory_space<vmem>>, %arg6: memref<1x24xf32, #tpu.memory_space<vmem>>, %arg7: memref<1x24xf32, #tpu.memory_space<vmem>>, %arg8: memref<1x25x24xf32, #tpu.memory_space<vmem>>) attributes {dimension_semantics = [#tpu.dimension_semantics<parallel>], iteration_bounds = array<i64: 2>, scalar_prefetch = 0 : i64, scratch_operands = 0 : i64, tpu.core_type = #tpu.core_type<tc>, window_params = [{transform_indices = @transform_0, window_bounds = array<i64: 1, 25, 1152>}, {pipeline_mode = #tpu.pipeline_mode<synchronous>, transform_indices = @transform_1, window_bounds = array<i64: 1152, 24>}, {pipeline_mode = #tpu.pipeline_mode<synchronous>, transform_indices = @transform_2, window_bounds = array<i64: 1, 24>}, {pipeline_mode = #tpu.pipeline_mode<synchronous>, transform_indices = @transform_3, window_bounds = array<i64: 24, 2>}, {pipeline_mode = #tpu.pipeline_mode<synchronous>, transform_indices = @transform_4, window_bounds = array<i64: 2, 24>}, {pipeline_mode = #tpu.pipeline_mode<synchronous>, transform_indices = @transform_5, window_bounds = array<i64: 1, 24>}, {pipeline_mode = #tpu.pipeline_mode<synchronous>, transform_indices = @transform_6, window_bounds = array<i64: 1, 24>}, {transform_indices = @transform_7, window_bounds = array<i64: 1, 25, 24>}]} {
    %c0 = arith.constant 0 : index
    %c0_0 = arith.constant 0 : index
    %c0_1 = arith.constant 0 : index
    %0 = vector.load %arg1[%c0, %c0_0, %c0_1] : memref<1x25x1152xf32, #tpu.memory_space<vmem>>, vector<1x25x1152xf32>
    %1 = vector.shape_cast %0 : vector<1x25x1152xf32> to vector<25x1152xf32>
    %c0_2 = arith.constant 0 : index
    %c0_3 = arith.constant 0 : index
    %2 = vector.load %arg2[%c0_2, %c0_3] : memref<1152x24xf32, #tpu.memory_space<vmem>>, vector<1152x24xf32>
    %cst = arith.constant dense<0.000000e+00> : vector<25x24xf32>
    %3 = tpu.matmul %1, %2, %cst {dimension_numbers = #tpu.dot_dimension_numbers<[1], [0], [0], [1], [0, 0, 1, 1], [], []>} : vector<25x1152xf32>, vector<1152x24xf32>, vector<25x24xf32> -> vector<25x24xf32>
    %c0_4 = arith.constant 0 : index
    %c0_5 = arith.constant 0 : index
    %4 = vector.load %arg3[%c0_4, %c0_5] : memref<1x24xf32, #tpu.memory_space<vmem>>, vector<1x24xf32>
    %5 = vector.broadcast %4 : vector<1x24xf32> to vector<25x24xf32>
    %6 = arith.addf %3, %5 : vector<25x24xf32>
    %c0_6 = arith.constant 0 : index
    %c0_7 = arith.constant 0 : index
    %7 = vector.load %arg4[%c0_6, %c0_7] : memref<24x2xf32, #tpu.memory_space<vmem>>, vector<24x2xf32>
    %c0_8 = arith.constant 0 : index
    %c0_9 = arith.constant 0 : index
    %8 = vector.load %arg5[%c0_8, %c0_9] : memref<2x24xf32, #tpu.memory_space<vmem>>, vector<2x24xf32>
    %c0_10 = arith.constant 0 : index
    %c0_11 = arith.constant 0 : index
    %9 = vector.load %arg6[%c0_10, %c0_11] : memref<1x24xf32, #tpu.memory_space<vmem>>, vector<1x24xf32>
    %c0_12 = arith.constant 0 : index
    %c0_13 = arith.constant 0 : index
    %10 = vector.load %arg7[%c0_12, %c0_13] : memref<1x24xf32, #tpu.memory_space<vmem>>, vector<1x24xf32>
    %cst_14 = arith.constant dense<0.000000e+00> : vector<24xf32>
    %11 = vector.multi_reduction <add>, %6, %cst_14 [0] : vector<25x24xf32> to vector<24xf32>
    %12 = vector.shape_cast %11 : vector<24xf32> to vector<1x24xf32>
    %cst_15 = arith.constant dense<0.000000e+00> : vector<1x2xf32>
    %13 = tpu.matmul %12, %7, %cst_15 {dimension_numbers = #tpu.dot_dimension_numbers<[1], [0], [0], [1], [0, 0, 1, 1], [], []>} : vector<1x24xf32>, vector<24x2xf32>, vector<1x2xf32> -> vector<1x2xf32>
    %cst_16 = arith.constant 3.000000e+02 : f32
    %14 = vector.broadcast %cst_16 : f32 to vector<1x2xf32>
    %15 = arith.divf %13, %14 : vector<1x2xf32>
    %cst_17 = arith.constant dense<0.000000e+00> : vector<1x24xf32>
    %16 = tpu.matmul %15, %8, %cst_17 {dimension_numbers = #tpu.dot_dimension_numbers<[1], [0], [0], [1], [0, 0, 1, 1], [], []>} : vector<1x2xf32>, vector<2x24xf32>, vector<1x24xf32> -> vector<1x24xf32>
    %17 = vector.broadcast %16 : vector<1x24xf32> to vector<25x24xf32>
    %18 = arith.subf %6, %17 : vector<25x24xf32>
    %19 = arith.mulf %18, %18 : vector<25x24xf32>
    %cst_18 = arith.constant dense<0.000000e+00> : vector<24xf32>
    %20 = vector.multi_reduction <add>, %19, %cst_18 [0] : vector<25x24xf32> to vector<24xf32>
    %21 = vector.shape_cast %20 : vector<24xf32> to vector<1x24xf32>
    %cst_19 = arith.constant dense<0.000000e+00> : vector<1x2xf32>
    %22 = tpu.matmul %21, %7, %cst_19 {dimension_numbers = #tpu.dot_dimension_numbers<[1], [0], [0], [1], [0, 0, 1, 1], [], []>} : vector<1x24xf32>, vector<24x2xf32>, vector<1x2xf32> -> vector<1x2xf32>
    %cst_20 = arith.constant 3.000000e+02 : f32
    %23 = vector.broadcast %cst_20 : f32 to vector<1x2xf32>
    %24 = arith.divf %22, %23 : vector<1x2xf32>
    %cst_21 = arith.constant 9.99999974E-6 : f32
    %25 = vector.broadcast %cst_21 : f32 to vector<1x2xf32>
    %26 = arith.addf %24, %25 : vector<1x2xf32>
    %27 = math.rsqrt %26 : vector<1x2xf32>
    %cst_22 = arith.constant dense<0.000000e+00> : vector<1x24xf32>
    %28 = tpu.matmul %27, %8, %cst_22 {dimension_numbers = #tpu.dot_dimension_numbers<[1], [0], [0], [1], [0, 0, 1, 1], [], []>} : vector<1x2xf32>, vector<2x24xf32>, vector<1x24xf32> -> vector<1x24xf32>
    %29 = vector.broadcast %28 : vector<1x24xf32> to vector<25x24xf32>
    %30 = arith.mulf %18, %29 : vector<25x24xf32>
    %31 = vector.broadcast %9 : vector<1x24xf32> to vector<25x24xf32>
    %32 = arith.mulf %30, %31 : vector<25x24xf32>
    %33 = vector.broadcast %10 : vector<1x24xf32> to vector<25x24xf32>
    %34 = arith.addf %32, %33 : vector<25x24xf32>
    %cst_23 = arith.constant 0.000000e+00 : f32
    %35 = vector.broadcast %cst_23 : f32 to vector<25x24xf32>
    %36 = arith.maximumf %34, %35 : vector<25x24xf32>
    %c0_24 = arith.constant 0 : index
    %c0_25 = arith.constant 0 : index
    %c0_26 = arith.constant 0 : index
    %37 = vector.load %arg8[%c0_24, %c0_25, %c0_26] : memref<1x25x24xf32, #tpu.memory_space<vmem>>, vector<1x25x24xf32>
    %38 = vector.shape_cast %37 : vector<1x25x24xf32> to vector<25x24xf32>
    %39 = vector.shape_cast %36 : vector<25x24xf32> to vector<1x25x24xf32>
    tpu.vector_store %arg8[%c0_24, %c0_25, %c0_26], %39 {strides = array<i32>} : memref<1x25x24xf32, #tpu.memory_space<vmem>>, vector<1x25x24xf32>,
    return
  }
  func.func @transform_0(%arg0: i32) -> (i32, i32, i32) {
    %c0_i32 = arith.constant 0 : i32
    %c0_i32_0 = arith.constant 0 : i32
    %c0_i32_1 = arith.constant 0 : i32
    return %arg0, %c0_i32, %c0_i32_0 : i32, i32, i32
  }
  func.func @transform_1(%arg0: i32) -> (i32, i32) {
    %c0_i32 = arith.constant 0 : i32
    %c0_i32_0 = arith.constant 0 : i32
    %c0_i32_1 = arith.constant 0 : i32
    return %c0_i32, %c0_i32_0 : i32, i32
  }
  func.func @transform_2(%arg0: i32) -> (i32, i32) {
    %c0_i32 = arith.constant 0 : i32
    %c0_i32_0 = arith.constant 0 : i32
    %c0_i32_1 = arith.constant 0 : i32
    return %c0_i32, %c0_i32_0 : i32, i32
  }
  func.func @transform_3(%arg0: i32) -> (i32, i32) {
    %c0_i32 = arith.constant 0 : i32
    %c0_i32_0 = arith.constant 0 : i32
    %c0_i32_1 = arith.constant 0 : i32
    return %c0_i32, %c0_i32_0 : i32, i32
  }
  func.func @transform_4(%arg0: i32) -> (i32, i32) {
    %c0_i32 = arith.constant 0 : i32
    %c0_i32_0 = arith.constant 0 : i32
    %c0_i32_1 = arith.constant 0 : i32
    return %c0_i32, %c0_i32_0 : i32, i32
  }
  func.func @transform_5(%arg0: i32) -> (i32, i32) {
    %c0_i32 = arith.constant 0 : i32
    %c0_i32_0 = arith.constant 0 : i32
    %c0_i32_1 = arith.constant 0 : i32
    return %c0_i32, %c0_i32_0 : i32, i32
  }
  func.func @transform_6(%arg0: i32) -> (i32, i32) {
    %c0_i32 = arith.constant 0 : i32
    %c0_i32_0 = arith.constant 0 : i32
    %c0_i32_1 = arith.constant 0 : i32
    return %c0_i32, %c0_i32_0 : i32, i32
  }
  func.func @transform_7(%arg0: i32) -> (i32, i32, i32) {
    %c0_i32 = arith.constant 0 : i32
    %c0_i32_0 = arith.constant 0 : i32
    %c0_i32_1 = arith.constant 0 : i32
    return %arg0, %c0_i32, %c0_i32_0 : i32, i32, i32
  }
}

module attributes {stable_mosaic.version = 11 : i64} {
  func.func @_gn_relu_kernel(%arg0: i32, %arg1: memref<1x25x24xf32, #tpu.memory_space<vmem>>, %arg2: memref<24x2xf32, #tpu.memory_space<vmem>>, %arg3: memref<2x24xf32, #tpu.memory_space<vmem>>, %arg4: memref<1x24xf32, #tpu.memory_space<vmem>>, %arg5: memref<1x24xf32, #tpu.memory_space<vmem>>, %arg6: memref<1x25x24xf32, #tpu.memory_space<vmem>>) attributes {dimension_semantics = [#tpu.dimension_semantics<parallel>], iteration_bounds = array<i64: 2>, scalar_prefetch = 0 : i64, scratch_operands = 0 : i64, tpu.core_type = #tpu.core_type<tc>, window_params = [{transform_indices = @transform_0, window_bounds = array<i64: 1, 25, 24>}, {pipeline_mode = #tpu.pipeline_mode<synchronous>, transform_indices = @transform_1, window_bounds = array<i64: 24, 2>}, {pipeline_mode = #tpu.pipeline_mode<synchronous>, transform_indices = @transform_2, window_bounds = array<i64: 2, 24>}, {pipeline_mode = #tpu.pipeline_mode<synchronous>, transform_indices = @transform_3, window_bounds = array<i64: 1, 24>}, {pipeline_mode = #tpu.pipeline_mode<synchronous>, transform_indices = @transform_4, window_bounds = array<i64: 1, 24>}, {transform_indices = @transform_5, window_bounds = array<i64: 1, 25, 24>}]} {
    %c0 = arith.constant 0 : index
    %c0_0 = arith.constant 0 : index
    %c0_1 = arith.constant 0 : index
    %0 = vector.load %arg1[%c0, %c0_0, %c0_1] : memref<1x25x24xf32, #tpu.memory_space<vmem>>, vector<1x25x24xf32>
    %1 = vector.shape_cast %0 : vector<1x25x24xf32> to vector<25x24xf32>
    %c0_2 = arith.constant 0 : index
    %c0_3 = arith.constant 0 : index
    %2 = vector.load %arg2[%c0_2, %c0_3] : memref<24x2xf32, #tpu.memory_space<vmem>>, vector<24x2xf32>
    %c0_4 = arith.constant 0 : index
    %c0_5 = arith.constant 0 : index
    %3 = vector.load %arg3[%c0_4, %c0_5] : memref<2x24xf32, #tpu.memory_space<vmem>>, vector<2x24xf32>
    %c0_6 = arith.constant 0 : index
    %c0_7 = arith.constant 0 : index
    %4 = vector.load %arg4[%c0_6, %c0_7] : memref<1x24xf32, #tpu.memory_space<vmem>>, vector<1x24xf32>
    %c0_8 = arith.constant 0 : index
    %c0_9 = arith.constant 0 : index
    %5 = vector.load %arg5[%c0_8, %c0_9] : memref<1x24xf32, #tpu.memory_space<vmem>>, vector<1x24xf32>
    %cst = arith.constant dense<0.000000e+00> : vector<24xf32>
    %6 = vector.multi_reduction <add>, %1, %cst [0] : vector<25x24xf32> to vector<24xf32>
    %7 = vector.shape_cast %6 : vector<24xf32> to vector<1x24xf32>
    %cst_10 = arith.constant dense<0.000000e+00> : vector<1x2xf32>
    %8 = tpu.matmul %7, %2, %cst_10 {dimension_numbers = #tpu.dot_dimension_numbers<[1], [0], [0], [1], [0, 0, 1, 1], [], []>} : vector<1x24xf32>, vector<24x2xf32>, vector<1x2xf32> -> vector<1x2xf32>
    %cst_11 = arith.constant 3.000000e+02 : f32
    %9 = vector.broadcast %cst_11 : f32 to vector<1x2xf32>
    %10 = arith.divf %8, %9 : vector<1x2xf32>
    %cst_12 = arith.constant dense<0.000000e+00> : vector<1x24xf32>
    %11 = tpu.matmul %10, %3, %cst_12 {dimension_numbers = #tpu.dot_dimension_numbers<[1], [0], [0], [1], [0, 0, 1, 1], [], []>} : vector<1x2xf32>, vector<2x24xf32>, vector<1x24xf32> -> vector<1x24xf32>
    %12 = vector.broadcast %11 : vector<1x24xf32> to vector<25x24xf32>
    %13 = arith.subf %1, %12 : vector<25x24xf32>
    %14 = arith.mulf %13, %13 : vector<25x24xf32>
    %cst_13 = arith.constant dense<0.000000e+00> : vector<24xf32>
    %15 = vector.multi_reduction <add>, %14, %cst_13 [0] : vector<25x24xf32> to vector<24xf32>
    %16 = vector.shape_cast %15 : vector<24xf32> to vector<1x24xf32>
    %cst_14 = arith.constant dense<0.000000e+00> : vector<1x2xf32>
    %17 = tpu.matmul %16, %2, %cst_14 {dimension_numbers = #tpu.dot_dimension_numbers<[1], [0], [0], [1], [0, 0, 1, 1], [], []>} : vector<1x24xf32>, vector<24x2xf32>, vector<1x2xf32> -> vector<1x2xf32>
    %cst_15 = arith.constant 3.000000e+02 : f32
    %18 = vector.broadcast %cst_15 : f32 to vector<1x2xf32>
    %19 = arith.divf %17, %18 : vector<1x2xf32>
    %cst_16 = arith.constant 9.99999974E-6 : f32
    %20 = vector.broadcast %cst_16 : f32 to vector<1x2xf32>
    %21 = arith.addf %19, %20 : vector<1x2xf32>
    %22 = math.rsqrt %21 : vector<1x2xf32>
    %cst_17 = arith.constant dense<0.000000e+00> : vector<1x24xf32>
    %23 = tpu.matmul %22, %3, %cst_17 {dimension_numbers = #tpu.dot_dimension_numbers<[1], [0], [0], [1], [0, 0, 1, 1], [], []>} : vector<1x2xf32>, vector<2x24xf32>, vector<1x24xf32> -> vector<1x24xf32>
    %24 = vector.broadcast %23 : vector<1x24xf32> to vector<25x24xf32>
    %25 = arith.mulf %13, %24 : vector<25x24xf32>
    %26 = vector.broadcast %4 : vector<1x24xf32> to vector<25x24xf32>
    %27 = arith.mulf %25, %26 : vector<25x24xf32>
    %28 = vector.broadcast %5 : vector<1x24xf32> to vector<25x24xf32>
    %29 = arith.addf %27, %28 : vector<25x24xf32>
    %cst_18 = arith.constant 0.000000e+00 : f32
    %30 = vector.broadcast %cst_18 : f32 to vector<25x24xf32>
    %31 = arith.maximumf %29, %30 : vector<25x24xf32>
    %c0_19 = arith.constant 0 : index
    %c0_20 = arith.constant 0 : index
    %c0_21 = arith.constant 0 : index
    %32 = vector.load %arg6[%c0_19, %c0_20, %c0_21] : memref<1x25x24xf32, #tpu.memory_space<vmem>>, vector<1x25x24xf32>
    %33 = vector.shape_cast %32 : vector<1x25x24xf32> to vector<25x24xf32>
    %34 = vector.shape_cast %31 : vector<25x24xf32> to vector<1x25x24xf32>
    tpu.vector_store %arg6[%c0_19, %c0_20, %c0_21], %34 {strides = array<i32>} : memref<1x25x24xf32, #tpu.memory_space<vmem>>, vector<1x25x24xf32>,
    return
  }
  func.func @transform_0(%arg0: i32) -> (i32, i32, i32) {
    %c0_i32 = arith.constant 0 : i32
    %c0_i32_0 = arith.constant 0 : i32
    %c0_i32_1 = arith.constant 0 : i32
    return %arg0, %c0_i32, %c0_i32_0 : i32, i32, i32
  }
  func.func @transform_1(%arg0: i32) -> (i32, i32) {
    %c0_i32 = arith.constant 0 : i32
    %c0_i32_0 = arith.constant 0 : i32
    %c0_i32_1 = arith.constant 0 : i32
    return %c0_i32, %c0_i32_0 : i32, i32
  }
  func.func @transform_2(%arg0: i32) -> (i32, i32) {
    %c0_i32 = arith.constant 0 : i32
    %c0_i32_0 = arith.constant 0 : i32
    %c0_i32_1 = arith.constant 0 : i32
    return %c0_i32, %c0_i32_0 : i32, i32
  }
  func.func @transform_3(%arg0: i32) -> (i32, i32) {
    %c0_i32 = arith.constant 0 : i32
    %c0_i32_0 = arith.constant 0 : i32
    %c0_i32_1 = arith.constant 0 : i32
    return %c0_i32, %c0_i32_0 : i32, i32
  }
  func.func @transform_4(%arg0: i32) -> (i32, i32) {
    %c0_i32 = arith.constant 0 : i32
    %c0_i32_0 = arith.constant 0 : i32
    %c0_i32_1 = arith.constant 0 : i32
    return %c0_i32, %c0_i32_0 : i32, i32
  }
  func.func @transform_5(%arg0: i32) -> (i32, i32, i32) {
    %c0_i32 = arith.constant 0 : i32
    %c0_i32_0 = arith.constant 0 : i32
    %c0_i32_1 = arith.constant 0 : i32
    return %arg0, %c0_i32, %c0_i32_0 : i32, i32, i32
  }
}

module attributes {stable_mosaic.version = 11 : i64} {
  func.func @_conv_gn_kernel(%arg0: i32, %arg1: memref<1x25x216xf32, #tpu.memory_space<vmem>>, %arg2: memref<216x24xf32, #tpu.memory_space<vmem>>, %arg3: memref<1x24xf32, #tpu.memory_space<vmem>>, %arg4: memref<24x2xf32, #tpu.memory_space<vmem>>, %arg5: memref<2x24xf32, #tpu.memory_space<vmem>>, %arg6: memref<1x24xf32, #tpu.memory_space<vmem>>, %arg7: memref<1x24xf32, #tpu.memory_space<vmem>>, %arg8: memref<1x25x24xf32, #tpu.memory_space<vmem>>) attributes {dimension_semantics = [#tpu.dimension_semantics<parallel>], iteration_bounds = array<i64: 2>, scalar_prefetch = 0 : i64, scratch_operands = 0 : i64, tpu.core_type = #tpu.core_type<tc>, window_params = [{transform_indices = @transform_0, window_bounds = array<i64: 1, 25, 216>}, {pipeline_mode = #tpu.pipeline_mode<synchronous>, transform_indices = @transform_1, window_bounds = array<i64: 216, 24>}, {pipeline_mode = #tpu.pipeline_mode<synchronous>, transform_indices = @transform_2, window_bounds = array<i64: 1, 24>}, {pipeline_mode = #tpu.pipeline_mode<synchronous>, transform_indices = @transform_3, window_bounds = array<i64: 24, 2>}, {pipeline_mode = #tpu.pipeline_mode<synchronous>, transform_indices = @transform_4, window_bounds = array<i64: 2, 24>}, {pipeline_mode = #tpu.pipeline_mode<synchronous>, transform_indices = @transform_5, window_bounds = array<i64: 1, 24>}, {pipeline_mode = #tpu.pipeline_mode<synchronous>, transform_indices = @transform_6, window_bounds = array<i64: 1, 24>}, {transform_indices = @transform_7, window_bounds = array<i64: 1, 25, 24>}]} {
    %c0 = arith.constant 0 : index
    %c0_0 = arith.constant 0 : index
    %c0_1 = arith.constant 0 : index
    %0 = vector.load %arg1[%c0, %c0_0, %c0_1] : memref<1x25x216xf32, #tpu.memory_space<vmem>>, vector<1x25x216xf32>
    %1 = vector.shape_cast %0 : vector<1x25x216xf32> to vector<25x216xf32>
    %c0_2 = arith.constant 0 : index
    %c0_3 = arith.constant 0 : index
    %2 = vector.load %arg2[%c0_2, %c0_3] : memref<216x24xf32, #tpu.memory_space<vmem>>, vector<216x24xf32>
    %cst = arith.constant dense<0.000000e+00> : vector<25x24xf32>
    %3 = tpu.matmul %1, %2, %cst {dimension_numbers = #tpu.dot_dimension_numbers<[1], [0], [0], [1], [0, 0, 1, 1], [], []>} : vector<25x216xf32>, vector<216x24xf32>, vector<25x24xf32> -> vector<25x24xf32>
    %c0_4 = arith.constant 0 : index
    %c0_5 = arith.constant 0 : index
    %4 = vector.load %arg3[%c0_4, %c0_5] : memref<1x24xf32, #tpu.memory_space<vmem>>, vector<1x24xf32>
    %5 = vector.broadcast %4 : vector<1x24xf32> to vector<25x24xf32>
    %6 = arith.addf %3, %5 : vector<25x24xf32>
    %cst_6 = arith.constant 0.000000e+00 : f32
    %7 = vector.broadcast %cst_6 : f32 to vector<25x24xf32>
    %8 = arith.maximumf %6, %7 : vector<25x24xf32>
    %c0_7 = arith.constant 0 : index
    %c0_8 = arith.constant 0 : index
    %9 = vector.load %arg4[%c0_7, %c0_8] : memref<24x2xf32, #tpu.memory_space<vmem>>, vector<24x2xf32>
    %c0_9 = arith.constant 0 : index
    %c0_10 = arith.constant 0 : index
    %10 = vector.load %arg5[%c0_9, %c0_10] : memref<2x24xf32, #tpu.memory_space<vmem>>, vector<2x24xf32>
    %c0_11 = arith.constant 0 : index
    %c0_12 = arith.constant 0 : index
    %11 = vector.load %arg6[%c0_11, %c0_12] : memref<1x24xf32, #tpu.memory_space<vmem>>, vector<1x24xf32>
    %c0_13 = arith.constant 0 : index
    %c0_14 = arith.constant 0 : index
    %12 = vector.load %arg7[%c0_13, %c0_14] : memref<1x24xf32, #tpu.memory_space<vmem>>, vector<1x24xf32>
    %cst_15 = arith.constant dense<0.000000e+00> : vector<24xf32>
    %13 = vector.multi_reduction <add>, %8, %cst_15 [0] : vector<25x24xf32> to vector<24xf32>
    %14 = vector.shape_cast %13 : vector<24xf32> to vector<1x24xf32>
    %cst_16 = arith.constant dense<0.000000e+00> : vector<1x2xf32>
    %15 = tpu.matmul %14, %9, %cst_16 {dimension_numbers = #tpu.dot_dimension_numbers<[1], [0], [0], [1], [0, 0, 1, 1], [], []>} : vector<1x24xf32>, vector<24x2xf32>, vector<1x2xf32> -> vector<1x2xf32>
    %cst_17 = arith.constant 3.000000e+02 : f32
    %16 = vector.broadcast %cst_17 : f32 to vector<1x2xf32>
    %17 = arith.divf %15, %16 : vector<1x2xf32>
    %cst_18 = arith.constant dense<0.000000e+00> : vector<1x24xf32>
    %18 = tpu.matmul %17, %10, %cst_18 {dimension_numbers = #tpu.dot_dimension_numbers<[1], [0], [0], [1], [0, 0, 1, 1], [], []>} : vector<1x2xf32>, vector<2x24xf32>, vector<1x24xf32> -> vector<1x24xf32>
    %19 = vector.broadcast %18 : vector<1x24xf32> to vector<25x24xf32>
    %20 = arith.subf %8, %19 : vector<25x24xf32>
    %21 = arith.mulf %20, %20 : vector<25x24xf32>
    %cst_19 = arith.constant dense<0.000000e+00> : vector<24xf32>
    %22 = vector.multi_reduction <add>, %21, %cst_19 [0] : vector<25x24xf32> to vector<24xf32>
    %23 = vector.shape_cast %22 : vector<24xf32> to vector<1x24xf32>
    %cst_20 = arith.constant dense<0.000000e+00> : vector<1x2xf32>
    %24 = tpu.matmul %23, %9, %cst_20 {dimension_numbers = #tpu.dot_dimension_numbers<[1], [0], [0], [1], [0, 0, 1, 1], [], []>} : vector<1x24xf32>, vector<24x2xf32>, vector<1x2xf32> -> vector<1x2xf32>
    %cst_21 = arith.constant 3.000000e+02 : f32
    %25 = vector.broadcast %cst_21 : f32 to vector<1x2xf32>
    %26 = arith.divf %24, %25 : vector<1x2xf32>
    %cst_22 = arith.constant 9.99999974E-6 : f32
    %27 = vector.broadcast %cst_22 : f32 to vector<1x2xf32>
    %28 = arith.addf %26, %27 : vector<1x2xf32>
    %29 = math.rsqrt %28 : vector<1x2xf32>
    %cst_23 = arith.constant dense<0.000000e+00> : vector<1x24xf32>
    %30 = tpu.matmul %29, %10, %cst_23 {dimension_numbers = #tpu.dot_dimension_numbers<[1], [0], [0], [1], [0, 0, 1, 1], [], []>} : vector<1x2xf32>, vector<2x24xf32>, vector<1x24xf32> -> vector<1x24xf32>
    %31 = vector.broadcast %30 : vector<1x24xf32> to vector<25x24xf32>
    %32 = arith.mulf %20, %31 : vector<25x24xf32>
    %33 = vector.broadcast %11 : vector<1x24xf32> to vector<25x24xf32>
    %34 = arith.mulf %32, %33 : vector<25x24xf32>
    %35 = vector.broadcast %12 : vector<1x24xf32> to vector<25x24xf32>
    %36 = arith.addf %34, %35 : vector<25x24xf32>
    %cst_24 = arith.constant 0.000000e+00 : f32
    %37 = vector.broadcast %cst_24 : f32 to vector<25x24xf32>
    %38 = arith.maximumf %36, %37 : vector<25x24xf32>
    %c0_25 = arith.constant 0 : index
    %c0_26 = arith.constant 0 : index
    %c0_27 = arith.constant 0 : index
    %39 = vector.load %arg8[%c0_25, %c0_26, %c0_27] : memref<1x25x24xf32, #tpu.memory_space<vmem>>, vector<1x25x24xf32>
    %40 = vector.shape_cast %39 : vector<1x25x24xf32> to vector<25x24xf32>
    %41 = vector.shape_cast %38 : vector<25x24xf32> to vector<1x25x24xf32>
    tpu.vector_store %arg8[%c0_25, %c0_26, %c0_27], %41 {strides = array<i32>} : memref<1x25x24xf32, #tpu.memory_space<vmem>>, vector<1x25x24xf32>,
    return
  }
  func.func @transform_0(%arg0: i32) -> (i32, i32, i32) {
    %c0_i32 = arith.constant 0 : i32
    %c0_i32_0 = arith.constant 0 : i32
    %c0_i32_1 = arith.constant 0 : i32
    return %arg0, %c0_i32, %c0_i32_0 : i32, i32, i32
  }
  func.func @transform_1(%arg0: i32) -> (i32, i32) {
    %c0_i32 = arith.constant 0 : i32
    %c0_i32_0 = arith.constant 0 : i32
    %c0_i32_1 = arith.constant 0 : i32
    return %c0_i32, %c0_i32_0 : i32, i32
  }
  func.func @transform_2(%arg0: i32) -> (i32, i32) {
    %c0_i32 = arith.constant 0 : i32
    %c0_i32_0 = arith.constant 0 : i32
    %c0_i32_1 = arith.constant 0 : i32
    return %c0_i32, %c0_i32_0 : i32, i32
  }
  func.func @transform_3(%arg0: i32) -> (i32, i32) {
    %c0_i32 = arith.constant 0 : i32
    %c0_i32_0 = arith.constant 0 : i32
    %c0_i32_1 = arith.constant 0 : i32
    return %c0_i32, %c0_i32_0 : i32, i32
  }
  func.func @transform_4(%arg0: i32) -> (i32, i32) {
    %c0_i32 = arith.constant 0 : i32
    %c0_i32_0 = arith.constant 0 : i32
    %c0_i32_1 = arith.constant 0 : i32
    return %c0_i32, %c0_i32_0 : i32, i32
  }
  func.func @transform_5(%arg0: i32) -> (i32, i32) {
    %c0_i32 = arith.constant 0 : i32
    %c0_i32_0 = arith.constant 0 : i32
    %c0_i32_1 = arith.constant 0 : i32
    return %c0_i32, %c0_i32_0 : i32, i32
  }
  func.func @transform_6(%arg0: i32) -> (i32, i32) {
    %c0_i32 = arith.constant 0 : i32
    %c0_i32_0 = arith.constant 0 : i32
    %c0_i32_1 = arith.constant 0 : i32
    return %c0_i32, %c0_i32_0 : i32, i32
  }
  func.func @transform_7(%arg0: i32) -> (i32, i32, i32) {
    %c0_i32 = arith.constant 0 : i32
    %c0_i32_0 = arith.constant 0 : i32
    %c0_i32_1 = arith.constant 0 : i32
    return %arg0, %c0_i32, %c0_i32_0 : i32, i32, i32
  }
}

module attributes {stable_mosaic.version = 11 : i64} {
  func.func @_conv_eca_kernel(%arg0: i32, %arg1: memref<1x25x216xf32, #tpu.memory_space<vmem>>, %arg2: memref<216x24xf32, #tpu.memory_space<vmem>>, %arg3: memref<1x24xf32, #tpu.memory_space<vmem>>, %arg4: memref<24x2xf32, #tpu.memory_space<vmem>>, %arg5: memref<2x24xf32, #tpu.memory_space<vmem>>, %arg6: memref<1x24xf32, #tpu.memory_space<vmem>>, %arg7: memref<1x24xf32, #tpu.memory_space<vmem>>, %arg8: memref<24x24xf32, #tpu.memory_space<vmem>>, %arg9: memref<1x25x24xf32, #tpu.memory_space<vmem>>, %arg10: memref<1x25x24xf32, #tpu.memory_space<vmem>>) attributes {dimension_semantics = [#tpu.dimension_semantics<parallel>], iteration_bounds = array<i64: 2>, scalar_prefetch = 0 : i64, scratch_operands = 0 : i64, tpu.core_type = #tpu.core_type<tc>, window_params = [{transform_indices = @transform_0, window_bounds = array<i64: 1, 25, 216>}, {pipeline_mode = #tpu.pipeline_mode<synchronous>, transform_indices = @transform_1, window_bounds = array<i64: 216, 24>}, {pipeline_mode = #tpu.pipeline_mode<synchronous>, transform_indices = @transform_2, window_bounds = array<i64: 1, 24>}, {pipeline_mode = #tpu.pipeline_mode<synchronous>, transform_indices = @transform_3, window_bounds = array<i64: 24, 2>}, {pipeline_mode = #tpu.pipeline_mode<synchronous>, transform_indices = @transform_4, window_bounds = array<i64: 2, 24>}, {pipeline_mode = #tpu.pipeline_mode<synchronous>, transform_indices = @transform_5, window_bounds = array<i64: 1, 24>}, {pipeline_mode = #tpu.pipeline_mode<synchronous>, transform_indices = @transform_6, window_bounds = array<i64: 1, 24>}, {pipeline_mode = #tpu.pipeline_mode<synchronous>, transform_indices = @transform_7, window_bounds = array<i64: 24, 24>}, {transform_indices = @transform_8, window_bounds = array<i64: 1, 25, 24>}, {transform_indices = @transform_9, window_bounds = array<i64: 1, 25, 24>}]} {
    %c0 = arith.constant 0 : index
    %c0_0 = arith.constant 0 : index
    %c0_1 = arith.constant 0 : index
    %0 = vector.load %arg1[%c0, %c0_0, %c0_1] : memref<1x25x216xf32, #tpu.memory_space<vmem>>, vector<1x25x216xf32>
    %1 = vector.shape_cast %0 : vector<1x25x216xf32> to vector<25x216xf32>
    %c0_2 = arith.constant 0 : index
    %c0_3 = arith.constant 0 : index
    %2 = vector.load %arg2[%c0_2, %c0_3] : memref<216x24xf32, #tpu.memory_space<vmem>>, vector<216x24xf32>
    %cst = arith.constant dense<0.000000e+00> : vector<25x24xf32>
    %3 = tpu.matmul %1, %2, %cst {dimension_numbers = #tpu.dot_dimension_numbers<[1], [0], [0], [1], [0, 0, 1, 1], [], []>} : vector<25x216xf32>, vector<216x24xf32>, vector<25x24xf32> -> vector<25x24xf32>
    %c0_4 = arith.constant 0 : index
    %c0_5 = arith.constant 0 : index
    %4 = vector.load %arg3[%c0_4, %c0_5] : memref<1x24xf32, #tpu.memory_space<vmem>>, vector<1x24xf32>
    %5 = vector.broadcast %4 : vector<1x24xf32> to vector<25x24xf32>
    %6 = arith.addf %3, %5 : vector<25x24xf32>
    %cst_6 = arith.constant dense<0.000000e+00> : vector<24xf32>
    %7 = vector.multi_reduction <add>, %6, %cst_6 [0] : vector<25x24xf32> to vector<24xf32>
    %8 = vector.shape_cast %7 : vector<24xf32> to vector<1x24xf32>
    %cst_7 = arith.constant 2.500000e+01 : f32
    %9 = vector.broadcast %cst_7 : f32 to vector<1x24xf32>
    %10 = arith.divf %8, %9 : vector<1x24xf32>
    %c0_8 = arith.constant 0 : index
    %c0_9 = arith.constant 0 : index
    %11 = vector.load %arg8[%c0_8, %c0_9] : memref<24x24xf32, #tpu.memory_space<vmem>>, vector<24x24xf32>
    %cst_10 = arith.constant dense<0.000000e+00> : vector<1x24xf32>
    %12 = tpu.matmul %10, %11, %cst_10 {dimension_numbers = #tpu.dot_dimension_numbers<[1], [0], [0], [1], [0, 0, 1, 1], [], []>} : vector<1x24xf32>, vector<24x24xf32>, vector<1x24xf32> -> vector<1x24xf32>
    %13 = arith.negf %12 : vector<1x24xf32>
    %14 = math.exp %13 : vector<1x24xf32>
    %cst_11 = arith.constant 1.000000e+00 : f32
    %15 = vector.broadcast %cst_11 : f32 to vector<1x24xf32>
    %16 = arith.addf %15, %14 : vector<1x24xf32>
    %17 = arith.divf %15, %16 : vector<1x24xf32>
    %18 = vector.broadcast %17 : vector<1x24xf32> to vector<25x24xf32>
    %19 = arith.mulf %6, %18 : vector<25x24xf32>
    %c0_12 = arith.constant 0 : index
    %c0_13 = arith.constant 0 : index
    %c0_14 = arith.constant 0 : index
    %20 = vector.load %arg9[%c0_12, %c0_13, %c0_14] : memref<1x25x24xf32, #tpu.memory_space<vmem>>, vector<1x25x24xf32>
    %21 = vector.shape_cast %20 : vector<1x25x24xf32> to vector<25x24xf32>
    %22 = arith.addf %19, %21 : vector<25x24xf32>
    %c0_15 = arith.constant 0 : index
    %c0_16 = arith.constant 0 : index
    %c0_17 = arith.constant 0 : index
    %23 = vector.load %arg10[%c0_15, %c0_16, %c0_17] : memref<1x25x24xf32, #tpu.memory_space<vmem>>, vector<1x25x24xf32>
    %24 = vector.shape_cast %23 : vector<1x25x24xf32> to vector<25x24xf32>
    %25 = vector.shape_cast %22 : vector<25x24xf32> to vector<1x25x24xf32>
    tpu.vector_store %arg10[%c0_15, %c0_16, %c0_17], %25 {strides = array<i32>} : memref<1x25x24xf32, #tpu.memory_space<vmem>>, vector<1x25x24xf32>,
    return
  }
  func.func @transform_0(%arg0: i32) -> (i32, i32, i32) {
    %c0_i32 = arith.constant 0 : i32
    %c0_i32_0 = arith.constant 0 : i32
    %c0_i32_1 = arith.constant 0 : i32
    return %arg0, %c0_i32, %c0_i32_0 : i32, i32, i32
  }
  func.func @transform_1(%arg0: i32) -> (i32, i32) {
    %c0_i32 = arith.constant 0 : i32
    %c0_i32_0 = arith.constant 0 : i32
    %c0_i32_1 = arith.constant 0 : i32
    return %c0_i32, %c0_i32_0 : i32, i32
  }
  func.func @transform_2(%arg0: i32) -> (i32, i32) {
    %c0_i32 = arith.constant 0 : i32
    %c0_i32_0 = arith.constant 0 : i32
    %c0_i32_1 = arith.constant 0 : i32
    return %c0_i32, %c0_i32_0 : i32, i32
  }
  func.func @transform_3(%arg0: i32) -> (i32, i32) {
    %c0_i32 = arith.constant 0 : i32
    %c0_i32_0 = arith.constant 0 : i32
    %c0_i32_1 = arith.constant 0 : i32
    return %c0_i32, %c0_i32_0 : i32, i32
  }
  func.func @transform_4(%arg0: i32) -> (i32, i32) {
    %c0_i32 = arith.constant 0 : i32
    %c0_i32_0 = arith.constant 0 : i32
    %c0_i32_1 = arith.constant 0 : i32
    return %c0_i32, %c0_i32_0 : i32, i32
  }
  func.func @transform_5(%arg0: i32) -> (i32, i32) {
    %c0_i32 = arith.constant 0 : i32
    %c0_i32_0 = arith.constant 0 : i32
    %c0_i32_1 = arith.constant 0 : i32
    return %c0_i32, %c0_i32_0 : i32, i32
  }
  func.func @transform_6(%arg0: i32) -> (i32, i32) {
    %c0_i32 = arith.constant 0 : i32
    %c0_i32_0 = arith.constant 0 : i32
    %c0_i32_1 = arith.constant 0 : i32
    return %c0_i32, %c0_i32_0 : i32, i32
  }
  func.func @transform_7(%arg0: i32) -> (i32, i32) {
    %c0_i32 = arith.constant 0 : i32
    %c0_i32_0 = arith.constant 0 : i32
    %c0_i32_1 = arith.constant 0 : i32
    return %c0_i32, %c0_i32_0 : i32, i32
  }
  func.func @transform_8(%arg0: i32) -> (i32, i32, i32) {
    %c0_i32 = arith.constant 0 : i32
    %c0_i32_0 = arith.constant 0 : i32
    %c0_i32_1 = arith.constant 0 : i32
    return %arg0, %c0_i32, %c0_i32_0 : i32, i32, i32
  }
  func.func @transform_9(%arg0: i32) -> (i32, i32, i32) {
    %c0_i32 = arith.constant 0 : i32
    %c0_i32_0 = arith.constant 0 : i32
    %c0_i32_1 = arith.constant 0 : i32
    return %arg0, %c0_i32, %c0_i32_0 : i32, i32, i32
  }
}

module attributes {stable_mosaic.version = 11 : i64} {
  func.func @_conv_eca_kernel(%arg0: i32, %arg1: memref<1x25x216xf32, #tpu.memory_space<vmem>>, %arg2: memref<216x24xf32, #tpu.memory_space<vmem>>, %arg3: memref<1x24xf32, #tpu.memory_space<vmem>>, %arg4: memref<24x2xf32, #tpu.memory_space<vmem>>, %arg5: memref<2x24xf32, #tpu.memory_space<vmem>>, %arg6: memref<1x24xf32, #tpu.memory_space<vmem>>, %arg7: memref<1x24xf32, #tpu.memory_space<vmem>>, %arg8: memref<24x24xf32, #tpu.memory_space<vmem>>, %arg9: memref<1x25x24xf32, #tpu.memory_space<vmem>>, %arg10: memref<1x25x24xf32, #tpu.memory_space<vmem>>) attributes {dimension_semantics = [#tpu.dimension_semantics<parallel>], iteration_bounds = array<i64: 2>, scalar_prefetch = 0 : i64, scratch_operands = 0 : i64, tpu.core_type = #tpu.core_type<tc>, window_params = [{transform_indices = @transform_0, window_bounds = array<i64: 1, 25, 216>}, {pipeline_mode = #tpu.pipeline_mode<synchronous>, transform_indices = @transform_1, window_bounds = array<i64: 216, 24>}, {pipeline_mode = #tpu.pipeline_mode<synchronous>, transform_indices = @transform_2, window_bounds = array<i64: 1, 24>}, {pipeline_mode = #tpu.pipeline_mode<synchronous>, transform_indices = @transform_3, window_bounds = array<i64: 24, 2>}, {pipeline_mode = #tpu.pipeline_mode<synchronous>, transform_indices = @transform_4, window_bounds = array<i64: 2, 24>}, {pipeline_mode = #tpu.pipeline_mode<synchronous>, transform_indices = @transform_5, window_bounds = array<i64: 1, 24>}, {pipeline_mode = #tpu.pipeline_mode<synchronous>, transform_indices = @transform_6, window_bounds = array<i64: 1, 24>}, {pipeline_mode = #tpu.pipeline_mode<synchronous>, transform_indices = @transform_7, window_bounds = array<i64: 24, 24>}, {transform_indices = @transform_8, window_bounds = array<i64: 1, 25, 24>}, {transform_indices = @transform_9, window_bounds = array<i64: 1, 25, 24>}]} {
    %c0 = arith.constant 0 : index
    %c0_0 = arith.constant 0 : index
    %c0_1 = arith.constant 0 : index
    %0 = vector.load %arg1[%c0, %c0_0, %c0_1] : memref<1x25x216xf32, #tpu.memory_space<vmem>>, vector<1x25x216xf32>
    %1 = vector.shape_cast %0 : vector<1x25x216xf32> to vector<25x216xf32>
    %c0_2 = arith.constant 0 : index
    %c0_3 = arith.constant 0 : index
    %2 = vector.load %arg2[%c0_2, %c0_3] : memref<216x24xf32, #tpu.memory_space<vmem>>, vector<216x24xf32>
    %cst = arith.constant dense<0.000000e+00> : vector<25x24xf32>
    %3 = tpu.matmul %1, %2, %cst {dimension_numbers = #tpu.dot_dimension_numbers<[1], [0], [0], [1], [0, 0, 1, 1], [], []>} : vector<25x216xf32>, vector<216x24xf32>, vector<25x24xf32> -> vector<25x24xf32>
    %c0_4 = arith.constant 0 : index
    %c0_5 = arith.constant 0 : index
    %4 = vector.load %arg3[%c0_4, %c0_5] : memref<1x24xf32, #tpu.memory_space<vmem>>, vector<1x24xf32>
    %5 = vector.broadcast %4 : vector<1x24xf32> to vector<25x24xf32>
    %6 = arith.addf %3, %5 : vector<25x24xf32>
    %cst_6 = arith.constant dense<0.000000e+00> : vector<24xf32>
    %7 = vector.multi_reduction <add>, %6, %cst_6 [0] : vector<25x24xf32> to vector<24xf32>
    %8 = vector.shape_cast %7 : vector<24xf32> to vector<1x24xf32>
    %cst_7 = arith.constant 2.500000e+01 : f32
    %9 = vector.broadcast %cst_7 : f32 to vector<1x24xf32>
    %10 = arith.divf %8, %9 : vector<1x24xf32>
    %c0_8 = arith.constant 0 : index
    %c0_9 = arith.constant 0 : index
    %11 = vector.load %arg8[%c0_8, %c0_9] : memref<24x24xf32, #tpu.memory_space<vmem>>, vector<24x24xf32>
    %cst_10 = arith.constant dense<0.000000e+00> : vector<1x24xf32>
    %12 = tpu.matmul %10, %11, %cst_10 {dimension_numbers = #tpu.dot_dimension_numbers<[1], [0], [0], [1], [0, 0, 1, 1], [], []>} : vector<1x24xf32>, vector<24x24xf32>, vector<1x24xf32> -> vector<1x24xf32>
    %13 = arith.negf %12 : vector<1x24xf32>
    %14 = math.exp %13 : vector<1x24xf32>
    %cst_11 = arith.constant 1.000000e+00 : f32
    %15 = vector.broadcast %cst_11 : f32 to vector<1x24xf32>
    %16 = arith.addf %15, %14 : vector<1x24xf32>
    %17 = arith.divf %15, %16 : vector<1x24xf32>
    %18 = vector.broadcast %17 : vector<1x24xf32> to vector<25x24xf32>
    %19 = arith.mulf %6, %18 : vector<25x24xf32>
    %c0_12 = arith.constant 0 : index
    %c0_13 = arith.constant 0 : index
    %c0_14 = arith.constant 0 : index
    %20 = vector.load %arg9[%c0_12, %c0_13, %c0_14] : memref<1x25x24xf32, #tpu.memory_space<vmem>>, vector<1x25x24xf32>
    %21 = vector.shape_cast %20 : vector<1x25x24xf32> to vector<25x24xf32>
    %22 = arith.addf %19, %21 : vector<25x24xf32>
    %c0_15 = arith.constant 0 : index
    %c0_16 = arith.constant 0 : index
    %23 = vector.load %arg4[%c0_15, %c0_16] : memref<24x2xf32, #tpu.memory_space<vmem>>, vector<24x2xf32>
    %c0_17 = arith.constant 0 : index
    %c0_18 = arith.constant 0 : index
    %24 = vector.load %arg5[%c0_17, %c0_18] : memref<2x24xf32, #tpu.memory_space<vmem>>, vector<2x24xf32>
    %c0_19 = arith.constant 0 : index
    %c0_20 = arith.constant 0 : index
    %25 = vector.load %arg6[%c0_19, %c0_20] : memref<1x24xf32, #tpu.memory_space<vmem>>, vector<1x24xf32>
    %c0_21 = arith.constant 0 : index
    %c0_22 = arith.constant 0 : index
    %26 = vector.load %arg7[%c0_21, %c0_22] : memref<1x24xf32, #tpu.memory_space<vmem>>, vector<1x24xf32>
    %cst_23 = arith.constant dense<0.000000e+00> : vector<24xf32>
    %27 = vector.multi_reduction <add>, %22, %cst_23 [0] : vector<25x24xf32> to vector<24xf32>
    %28 = vector.shape_cast %27 : vector<24xf32> to vector<1x24xf32>
    %cst_24 = arith.constant dense<0.000000e+00> : vector<1x2xf32>
    %29 = tpu.matmul %28, %23, %cst_24 {dimension_numbers = #tpu.dot_dimension_numbers<[1], [0], [0], [1], [0, 0, 1, 1], [], []>} : vector<1x24xf32>, vector<24x2xf32>, vector<1x2xf32> -> vector<1x2xf32>
    %cst_25 = arith.constant 3.000000e+02 : f32
    %30 = vector.broadcast %cst_25 : f32 to vector<1x2xf32>
    %31 = arith.divf %29, %30 : vector<1x2xf32>
    %cst_26 = arith.constant dense<0.000000e+00> : vector<1x24xf32>
    %32 = tpu.matmul %31, %24, %cst_26 {dimension_numbers = #tpu.dot_dimension_numbers<[1], [0], [0], [1], [0, 0, 1, 1], [], []>} : vector<1x2xf32>, vector<2x24xf32>, vector<1x24xf32> -> vector<1x24xf32>
    %33 = vector.broadcast %32 : vector<1x24xf32> to vector<25x24xf32>
    %34 = arith.subf %22, %33 : vector<25x24xf32>
    %35 = arith.mulf %34, %34 : vector<25x24xf32>
    %cst_27 = arith.constant dense<0.000000e+00> : vector<24xf32>
    %36 = vector.multi_reduction <add>, %35, %cst_27 [0] : vector<25x24xf32> to vector<24xf32>
    %37 = vector.shape_cast %36 : vector<24xf32> to vector<1x24xf32>
    %cst_28 = arith.constant dense<0.000000e+00> : vector<1x2xf32>
    %38 = tpu.matmul %37, %23, %cst_28 {dimension_numbers = #tpu.dot_dimension_numbers<[1], [0], [0], [1], [0, 0, 1, 1], [], []>} : vector<1x24xf32>, vector<24x2xf32>, vector<1x2xf32> -> vector<1x2xf32>
    %cst_29 = arith.constant 3.000000e+02 : f32
    %39 = vector.broadcast %cst_29 : f32 to vector<1x2xf32>
    %40 = arith.divf %38, %39 : vector<1x2xf32>
    %cst_30 = arith.constant 9.99999974E-6 : f32
    %41 = vector.broadcast %cst_30 : f32 to vector<1x2xf32>
    %42 = arith.addf %40, %41 : vector<1x2xf32>
    %43 = math.rsqrt %42 : vector<1x2xf32>
    %cst_31 = arith.constant dense<0.000000e+00> : vector<1x24xf32>
    %44 = tpu.matmul %43, %24, %cst_31 {dimension_numbers = #tpu.dot_dimension_numbers<[1], [0], [0], [1], [0, 0, 1, 1], [], []>} : vector<1x2xf32>, vector<2x24xf32>, vector<1x24xf32> -> vector<1x24xf32>
    %45 = vector.broadcast %44 : vector<1x24xf32> to vector<25x24xf32>
    %46 = arith.mulf %34, %45 : vector<25x24xf32>
    %47 = vector.broadcast %25 : vector<1x24xf32> to vector<25x24xf32>
    %48 = arith.mulf %46, %47 : vector<25x24xf32>
    %49 = vector.broadcast %26 : vector<1x24xf32> to vector<25x24xf32>
    %50 = arith.addf %48, %49 : vector<25x24xf32>
    %cst_32 = arith.constant 0.000000e+00 : f32
    %51 = vector.broadcast %cst_32 : f32 to vector<25x24xf32>
    %52 = arith.maximumf %50, %51 : vector<25x24xf32>
    %c0_33 = arith.constant 0 : index
    %c0_34 = arith.constant 0 : index
    %c0_35 = arith.constant 0 : index
    %53 = vector.load %arg10[%c0_33, %c0_34, %c0_35] : memref<1x25x24xf32, #tpu.memory_space<vmem>>, vector<1x25x24xf32>
    %54 = vector.shape_cast %53 : vector<1x25x24xf32> to vector<25x24xf32>
    %55 = vector.shape_cast %52 : vector<25x24xf32> to vector<1x25x24xf32>
    tpu.vector_store %arg10[%c0_33, %c0_34, %c0_35], %55 {strides = array<i32>} : memref<1x25x24xf32, #tpu.memory_space<vmem>>, vector<1x25x24xf32>,
    return
  }
  func.func @transform_0(%arg0: i32) -> (i32, i32, i32) {
    %c0_i32 = arith.constant 0 : i32
    %c0_i32_0 = arith.constant 0 : i32
    %c0_i32_1 = arith.constant 0 : i32
    return %arg0, %c0_i32, %c0_i32_0 : i32, i32, i32
  }
  func.func @transform_1(%arg0: i32) -> (i32, i32) {
    %c0_i32 = arith.constant 0 : i32
    %c0_i32_0 = arith.constant 0 : i32
    %c0_i32_1 = arith.constant 0 : i32
    return %c0_i32, %c0_i32_0 : i32, i32
  }
  func.func @transform_2(%arg0: i32) -> (i32, i32) {
    %c0_i32 = arith.constant 0 : i32
    %c0_i32_0 = arith.constant 0 : i32
    %c0_i32_1 = arith.constant 0 : i32
    return %c0_i32, %c0_i32_0 : i32, i32
  }
  func.func @transform_3(%arg0: i32) -> (i32, i32) {
    %c0_i32 = arith.constant 0 : i32
    %c0_i32_0 = arith.constant 0 : i32
    %c0_i32_1 = arith.constant 0 : i32
    return %c0_i32, %c0_i32_0 : i32, i32
  }
  func.func @transform_4(%arg0: i32) -> (i32, i32) {
    %c0_i32 = arith.constant 0 : i32
    %c0_i32_0 = arith.constant 0 : i32
    %c0_i32_1 = arith.constant 0 : i32
    return %c0_i32, %c0_i32_0 : i32, i32
  }
  func.func @transform_5(%arg0: i32) -> (i32, i32) {
    %c0_i32 = arith.constant 0 : i32
    %c0_i32_0 = arith.constant 0 : i32
    %c0_i32_1 = arith.constant 0 : i32
    return %c0_i32, %c0_i32_0 : i32, i32
  }
  func.func @transform_6(%arg0: i32) -> (i32, i32) {
    %c0_i32 = arith.constant 0 : i32
    %c0_i32_0 = arith.constant 0 : i32
    %c0_i32_1 = arith.constant 0 : i32
    return %c0_i32, %c0_i32_0 : i32, i32
  }
  func.func @transform_7(%arg0: i32) -> (i32, i32) {
    %c0_i32 = arith.constant 0 : i32
    %c0_i32_0 = arith.constant 0 : i32
    %c0_i32_1 = arith.constant 0 : i32
    return %c0_i32, %c0_i32_0 : i32, i32
  }
  func.func @transform_8(%arg0: i32) -> (i32, i32, i32) {
    %c0_i32 = arith.constant 0 : i32
    %c0_i32_0 = arith.constant 0 : i32
    %c0_i32_1 = arith.constant 0 : i32
    return %arg0, %c0_i32, %c0_i32_0 : i32, i32, i32
  }
  func.func @transform_9(%arg0: i32) -> (i32, i32, i32) {
    %c0_i32 = arith.constant 0 : i32
    %c0_i32_0 = arith.constant 0 : i32
    %c0_i32_1 = arith.constant 0 : i32
    return %arg0, %c0_i32, %c0_i32_0 : i32, i32, i32
  }
}

module attributes {stable_mosaic.version = 11 : i64} {
  func.func @_conv_gn_kernel(%arg0: i32, %arg1: memref<1x25x24xf32, #tpu.memory_space<vmem>>, %arg2: memref<24x4xf32, #tpu.memory_space<vmem>>, %arg3: memref<1x4xf32, #tpu.memory_space<vmem>>, %arg4: memref<4x1xf32, #tpu.memory_space<vmem>>, %arg5: memref<1x4xf32, #tpu.memory_space<vmem>>, %arg6: memref<1x4xf32, #tpu.memory_space<vmem>>, %arg7: memref<1x4xf32, #tpu.memory_space<vmem>>, %arg8: memref<1x25x4xf32, #tpu.memory_space<vmem>>) attributes {dimension_semantics = [#tpu.dimension_semantics<parallel>], iteration_bounds = array<i64: 2>, scalar_prefetch = 0 : i64, scratch_operands = 0 : i64, tpu.core_type = #tpu.core_type<tc>, window_params = [{transform_indices = @transform_0, window_bounds = array<i64: 1, 25, 24>}, {pipeline_mode = #tpu.pipeline_mode<synchronous>, transform_indices = @transform_1, window_bounds = array<i64: 24, 4>}, {pipeline_mode = #tpu.pipeline_mode<synchronous>, transform_indices = @transform_2, window_bounds = array<i64: 1, 4>}, {pipeline_mode = #tpu.pipeline_mode<synchronous>, transform_indices = @transform_3, window_bounds = array<i64: 4, 1>}, {pipeline_mode = #tpu.pipeline_mode<synchronous>, transform_indices = @transform_4, window_bounds = array<i64: 1, 4>}, {pipeline_mode = #tpu.pipeline_mode<synchronous>, transform_indices = @transform_5, window_bounds = array<i64: 1, 4>}, {pipeline_mode = #tpu.pipeline_mode<synchronous>, transform_indices = @transform_6, window_bounds = array<i64: 1, 4>}, {transform_indices = @transform_7, window_bounds = array<i64: 1, 25, 4>}]} {
    %c0 = arith.constant 0 : index
    %c0_0 = arith.constant 0 : index
    %c0_1 = arith.constant 0 : index
    %0 = vector.load %arg1[%c0, %c0_0, %c0_1] : memref<1x25x24xf32, #tpu.memory_space<vmem>>, vector<1x25x24xf32>
    %1 = vector.shape_cast %0 : vector<1x25x24xf32> to vector<25x24xf32>
    %c0_2 = arith.constant 0 : index
    %c0_3 = arith.constant 0 : index
    %2 = vector.load %arg2[%c0_2, %c0_3] : memref<24x4xf32, #tpu.memory_space<vmem>>, vector<24x4xf32>
    %cst = arith.constant dense<0.000000e+00> : vector<25x4xf32>
    %3 = tpu.matmul %1, %2, %cst {dimension_numbers = #tpu.dot_dimension_numbers<[1], [0], [0], [1], [0, 0, 1, 1], [], []>} : vector<25x24xf32>, vector<24x4xf32>, vector<25x4xf32> -> vector<25x4xf32>
    %c0_4 = arith.constant 0 : index
    %c0_5 = arith.constant 0 : index
    %4 = vector.load %arg3[%c0_4, %c0_5] : memref<1x4xf32, #tpu.memory_space<vmem>>, vector<1x4xf32>
    %5 = vector.broadcast %4 : vector<1x4xf32> to vector<25x4xf32>
    %6 = arith.addf %3, %5 : vector<25x4xf32>
    %c0_6 = arith.constant 0 : index
    %c0_7 = arith.constant 0 : index
    %c0_8 = arith.constant 0 : index
    %7 = vector.load %arg8[%c0_6, %c0_7, %c0_8] : memref<1x25x4xf32, #tpu.memory_space<vmem>>, vector<1x25x4xf32>
    %8 = vector.shape_cast %7 : vector<1x25x4xf32> to vector<25x4xf32>
    %9 = vector.shape_cast %6 : vector<25x4xf32> to vector<1x25x4xf32>
    tpu.vector_store %arg8[%c0_6, %c0_7, %c0_8], %9 {strides = array<i32>} : memref<1x25x4xf32, #tpu.memory_space<vmem>>, vector<1x25x4xf32>,
    return
  }
  func.func @transform_0(%arg0: i32) -> (i32, i32, i32) {
    %c0_i32 = arith.constant 0 : i32
    %c0_i32_0 = arith.constant 0 : i32
    %c0_i32_1 = arith.constant 0 : i32
    return %arg0, %c0_i32, %c0_i32_0 : i32, i32, i32
  }
  func.func @transform_1(%arg0: i32) -> (i32, i32) {
    %c0_i32 = arith.constant 0 : i32
    %c0_i32_0 = arith.constant 0 : i32
    %c0_i32_1 = arith.constant 0 : i32
    return %c0_i32, %c0_i32_0 : i32, i32
  }
  func.func @transform_2(%arg0: i32) -> (i32, i32) {
    %c0_i32 = arith.constant 0 : i32
    %c0_i32_0 = arith.constant 0 : i32
    %c0_i32_1 = arith.constant 0 : i32
    return %c0_i32, %c0_i32_0 : i32, i32
  }
  func.func @transform_3(%arg0: i32) -> (i32, i32) {
    %c0_i32 = arith.constant 0 : i32
    %c0_i32_0 = arith.constant 0 : i32
    %c0_i32_1 = arith.constant 0 : i32
    return %c0_i32, %c0_i32_0 : i32, i32
  }
  func.func @transform_4(%arg0: i32) -> (i32, i32) {
    %c0_i32 = arith.constant 0 : i32
    %c0_i32_0 = arith.constant 0 : i32
    %c0_i32_1 = arith.constant 0 : i32
    return %c0_i32, %c0_i32_0 : i32, i32
  }
  func.func @transform_5(%arg0: i32) -> (i32, i32) {
    %c0_i32 = arith.constant 0 : i32
    %c0_i32_0 = arith.constant 0 : i32
    %c0_i32_1 = arith.constant 0 : i32
    return %c0_i32, %c0_i32_0 : i32, i32
  }
  func.func @transform_6(%arg0: i32) -> (i32, i32) {
    %c0_i32 = arith.constant 0 : i32
    %c0_i32_0 = arith.constant 0 : i32
    %c0_i32_1 = arith.constant 0 : i32
    return %c0_i32, %c0_i32_0 : i32, i32
  }
  func.func @transform_7(%arg0: i32) -> (i32, i32, i32) {
    %c0_i32 = arith.constant 0 : i32
    %c0_i32_0 = arith.constant 0 : i32
    %c0_i32_1 = arith.constant 0 : i32
    return %arg0, %c0_i32, %c0_i32_0 : i32, i32, i32
  }
}

</mosaic_0001>

<bundles_post_ra>
// kernel: a2s2k_forward.18
= control target key start
LH: loop header
LB: loop body
LE: loop exit
PB: predicated region body
PF: predicated region fallthrough
CT: control target
= control target key end

     0   :  { %s1300_s24 = smov 0   ;;  %s1633_s0 = inlined_call_operand.vmem [shape: f32[2,125,63], index: 0, kind: input, shape index: {}]   ;;  %s1634_s1 = inlined_call_operand.vmem [shape: f32[63,24], index: 1, kind: input, shape index: {}]   ;;  %s1635_s2 = inlined_call_operand.vmem [shape: f32[1,24], index: 2, kind: input, shape index: {}]   ;;  %s1636_s3 = inlined_call_operand.vmem [shape: f32[24,2], index: 3, kind: input, shape index: {}]   ;;  %s1637_s4 = inlined_call_operand.vmem [shape: f32[2,24], index: 4, kind: input, shape index: {}]   ;;  %s1638_s5 = inlined_call_operand.vmem [shape: f32[1,24], index: 5, kind: input, shape index: {}]   ;;  %s1639_s6 = inlined_call_operand.vmem [shape: f32[1,24], index: 6, kind: input, shape index: {}]   ;;  %s1640_s7 = inlined_call_operand.vmem [shape: f32[2,125,24], index: 7, kind: output, shape index: {}]  }
   0x1 LB: > { %s1079_s25 = sadd.s32 4294967295, %s1256_s24   ;;  %p1083_p0 = scmp.ge.s32.totalorder %s1256_s24, 1  ;;  %s1256_s24 = sphi %s1300_s24, %s17_s24  }
   0x2   : > { %p237_p1 = scmp.lt.s32.totalorder %s1256_s24, 3 }
   0x4   : > { %p238_p2 = pnand %p1083_p0, %p237_p1 }
   0x5   : > { %p269_p3 = scmp.lt.s32.totalorder (!%p238_p2), %s1079_s25, 1 }
   0x6   : > { %241 = sbr.rel (%p238_p2) target bundleno = 1136 (0x470), region = 48 }
   0xb   : > { %v302_v0 = vld [vmem:[%s1634_s1 + $0x38] sm:$0x7f]  ;;  %vm359_vm0 = vcmask 1046528   ;;  %v301_v1 = vld [vmem:[%s1634_s1 + $0x30] sm:$0xff]  ;;  %v300_v2 = vld [vmem:[%s1634_s1 + $0x28] sm:$0xff]  ;;  %s1642_s25 = smov (!%p269_p3, %s1079_s25), 1 }
   0xc   : > { %1154 = vmatprep.subr.msk.mxu0 %vm359_vm0, %v302_v0  ;;  %1222 = vmatprep.subr.msk.mxu1 %vm359_vm0, %v302_v0  ;;  %v299_v3 = vld [vmem:[%s1634_s1 + $0x20] sm:$0xff]  ;;  %s1116_s11 = sshll.u32 %s1642_s25, 7  ;;  %vm310_vm1 = vcmask 515072   ;;  %v298_v4 = vld [vmem:[%s1634_s1 + $0x18] sm:$0xff]  ;;  %v297_v6 = vld [vmem:[%s1634_s1 + $0x10] sm:$0xff]  ;;  %v1258_v24 = vmov 0.0  }
   0xd   : > { %1155 = vmatpush3.msk.msra.mxu0 %vm359_vm0, %v302_v0  ;;  %1230 = vmatpush3.msk.msra.mxu1 %vm359_vm0, %v302_v0  ;;  %s1328_s14 = scalar_lea.vmem %s1633_s0, %s1116_s11  ;;  %v296_v7 = vld [vmem:[%s1634_s1 + $0x8] sm:$0xff]  ;;  %v295_v8 = vld [vmem:[%s1634_s1] sm:$0xff]  ;;  %v1378_v25 = vld [vmem:[%s1636_s3 + $0x10] sm:$0xff]  ;;  %vm1259_vm2 = vmmov 0   ;;  %vm514_vm3 = vcmask 195584   ;;  %vm544_vm4 = vcmask 192512   ;;  %s1596_s19 = scalar_lea.vmem %s1640_s7, %s1116_s11 }
   0xe   : > { %1156 = vmatprep.subr.mxu0 %v301_v1  ;;  %1223 = vmatprep.subr.mxu1 %v301_v1  ;;  %v279_v5 = vld [vmem:[%s1328_s14] sm:$0xff]  ;;  %v280_v9 = vld [vmem:[%s1328_s14 + $0x8] sm:$0xff]  ;;  %v281_v10 = vld [vmem:[%s1328_s14 + $0x10] sm:$0xff]  ;;  %vm632_vm5 = vcmask 1041408   ;;  %vm628_vm6 = vcmask 15360  }
   0xf   : > { %1157 = vmatpush3.msra.mxu0 %v301_v1  ;;  %1231 = vmatpush3.msra.mxu1 %v301_v1  ;;  %v293_v11 = vld [vmem:[%s1328_s14 + $0x70] sm:$0xff]  ;;  %v294_v12 = vld [vmem:[%s1328_s14 + $0x78] sm:$0x1f]  ;;  %v283_v14 = vld [vmem:[%s1328_s14 + $0x20] sm:$0xff] }
  0x10   : > { %1158 = vmatprep.subr.mxu0 %v300_v2  ;;  %1224 = vmatprep.subr.mxu1 %v300_v2  ;;  %v282_v13 = vld [vmem:[%s1328_s14 + $0x18] sm:$0xff]  ;;  %v284_v15 = vld [vmem:[%s1328_s14 + $0x28] sm:$0xff]  ;;  %v285_v16 = vld [vmem:[%s1328_s14 + $0x30] sm:$0xff] }
  0x11   : > { %1159 = vmatpush3.msra.mxu0 %v300_v2  ;;  %1232 = vmatpush3.msra.mxu1 %v300_v2  ;;  %v286_v17 = vld [vmem:[%s1328_s14 + $0x38] sm:$0xff]  ;;  %v287_v18 = vld [vmem:[%s1328_s14 + $0x40] sm:$0xff]  ;;  %v288_v19 = vld [vmem:[%s1328_s14 + $0x48] sm:$0xff] }
  0x12   : > { %1160 = vmatprep.subr.mxu0 %v299_v3  ;;  %1170 = vmatprep.mubr.msk.f32.mxu0 %vm310_vm1, %v279_v5  ;;  %v289_v20 = vld [vmem:[%s1328_s14 + $0x50] sm:$0xff]  ;;  %v290_v21 = vld [vmem:[%s1328_s14 + $0x58] sm:$0xff]  ;;  %v291_v22 = vld [vmem:[%s1328_s14 + $0x60] sm:$0xff] }
  0x13   : > { %1161 = vmatpush3.msra.mxu0 %v299_v3  ;;  %1225 = vmatprep.subr.mxu1 %v299_v3  ;;  %v292_v23 = vld [vmem:[%s1328_s14 + $0x68] sm:$0xff]  ;;  %v1392_v27 = vld [vmem:[%s1636_s3] sm:$0xff] }
  0x14   : > { %1162 = vmatprep.subr.mxu0 %v298_v4  ;;  %1233 = vmatpush3.msra.mxu1 %v299_v3  ;;  %v1385_v26 = vld [vmem:[%s1636_s3 + $0x8] sm:$0xff]  ;;  %v1088_v29 = vld [vmem:[%s1635_s2] ss:$0 sm:$0xff] }
  0x15   : > { %1163 = vmatpush3.msra.mxu0 %v298_v4  ;;  %1226 = vmatprep.subr.mxu1 %v298_v4 }
  0x16   : > { %1164 = vmatprep.subr.mxu0 %v297_v6  ;;  %1234 = vmatpush3.msra.mxu1 %v298_v4 }
  0x17   : > { %1165 = vmatpush3.msra.mxu0 %v297_v6  ;;  %1227 = vmatprep.subr.mxu1 %v297_v6 }
  0x18   : > { %1166 = vmatprep.subr.mxu0 %v296_v7  ;;  %1235 = vmatpush3.msra.mxu1 %v297_v6 }
  0x19   : > { %1167 = vmatpush3.msra.mxu0 %v296_v7  ;;  %1228 = vmatprep.subr.mxu1 %v296_v7 }
  0x1a   : > { %1168 = vmatprep.subr.mxu0 %v295_v8  ;;  %1236 = vmatpush3.msra.mxu1 %v296_v7 }
  0x1b   : > { %1169 = vmatpush3.msra.mxu0 %v295_v8  ;;  %1229 = vmatprep.subr.mxu1 %v295_v8 }
  0x1c   : > { %1171 = vmatmul.mubr.msk.f32.vlgmr.msra.gmra.mxu0 %vm310_vm1, %v280_v9  ;;  %1237 = vmatpush3.msra.mxu1 %v295_v8 }
  0x1d   : > { %1173 = vmatprep.mubr.msk.f32.mxu0 %vm310_vm1, %v281_v10  ;;  %1191 = vmatprep.mubr.msk.f32.mxu1 %vm310_vm1, %v293_v11 }
  0x1e   : > { %1192 = vmatmul.mubr.msk.f32.vlgmr.msra.gmra.mxu1 %vm310_vm1, %v294_v12  ;;  %1194 = vmatprep.subr.mxu1 %v1258_v24 }
  0x1f   : > { %1195 = vmatpush3.msra.mxu1 %v1378_v25  ;;  %1200 = vmatprep.mubr.msk.f32.mxu1 %vm1259_vm2, %v1258_v24 }
  0x20   : > { %1174 = vmatmul.mubr.msk.f32.gmra.mxu0 %vm310_vm1, %v282_v13  ;;  %1196 = vmatprep.subr.mxu1 %v1258_v24 }
  0x21   : > { %1176 = vmatprep.mubr.msk.f32.mxu0 %vm310_vm1, %v283_v14  ;;  %1197 = vmatpush3.msra.mxu1 %v1385_v26 }
  0x22   : > { %1198 = vmatprep.subr.mxu1 %v1258_v24 }
  0x23   : > { %1199 = vmatpush3.msra.mxu1 %v1392_v27 }
  0x24   : > { %1177 = vmatmul.mubr.msk.f32.gmra.mxu0 %vm310_vm1, %v284_v15  ;;  %1203 = vmatprep.subr.mxu1 %v1258_v24 }
  0x25   : > { %1179 = vmatprep.mubr.msk.f32.mxu0 %vm310_vm1, %v285_v16 }
  0x28   : > { %1180 = vmatmul.mubr.msk.f32.gmra.mxu0 %vm310_vm1, %v286_v17 }
  0x29   : > { %1182 = vmatprep.mubr.msk.f32.mxu0 %vm310_vm1, %v287_v18 }
  0x2c   : > { %1183 = vmatmul.mubr.msk.f32.gmra.mxu0 %vm310_vm1, %v288_v19 }
  0x2d   : > { %1185 = vmatprep.mubr.msk.f32.mxu0 %vm310_vm1, %v289_v20 }
  0x30   : > { %1186 = vmatmul.mubr.msk.f32.gmra.mxu0 %vm310_vm1, %v290_v21 }
  0x31   : > { %1188 = vmatprep.mubr.msk.f32.mxu0 %vm310_vm1, %v291_v22 }
  0x34   : > { %1189 = vmatmul.mubr.msk.f32.gmra.mxu0 %vm310_vm1, %v292_v23 }
  0xdc   : > { %v1172_v28 = vpop.f32.mrf.mxu0 }
  0xdd   : > { %v1401_v31 = vadd.f32 %v1172_v28, %v1088_v29 }
  0xde   : > { %v429_v30 = vpop.f32.mrf.mxu0  ;;  %v1193_v4 = vpop.f32.mrf.mxu1 }
  0xdf   : > { %v1403_v32 = vadd.f32 %v1088_v29, %v429_v30  ;;  %v516_v36 = vsel %vm514_vm3, %v1401_v31, 0.0  ;;  %v1459_v22 = vadd.f32 %v1193_v4, %v1088_v29 }
  0xe0   : > { %v1175_v33 = vpop.f32.mrf.mxu0  ;;  %v499_v13 = vpop.f32.mrf.mxu1 }
  0xe1   : > { %v515_v34 = vsel %vm514_vm3, %v1403_v32, 0.0  ;;  %v1409_v37 = vadd.f32 %v1175_v33, %v1088_v29  ;;  %v1455_v19 = vadd.f32 %v1088_v29, %v499_v13  ;;  %v545_v33 = vsel %vm544_vm4, %v1459_v22, 0.0 }
  0xe2   : > { %v439_v35 = vpop.f32.mrf.mxu0  ;;  %v517_v39 = vadd.f32 %v516_v36, %v515_v34 }
  0xe3   : > { %v1411_v38 = vadd.f32 %v1088_v29, %v439_v35  ;;  %v520_v44 = vsel %vm514_vm3, %v1409_v37, 0.0  ;;  %v542_v28 = vsel %vm514_vm3, %v1455_v19, 0.0 }
  0xe4   : > { %v1178_v40 = vpop.f32.mrf.mxu0 }
  0xe5   : > { %v518_v41 = vsel %vm514_vm3, %v1411_v38, 0.0  ;;  %v1417_v45 = vadd.f32 %v1178_v40, %v1088_v29 }
  0xe6   : > { %v519_v42 = vadd.f32 %v518_v41, %v517_v39  ;;  %v449_v43 = vpop.f32.mrf.mxu0 }
  0xe7   : > { %v1419_v46 = vadd.f32 %v1088_v29, %v449_v43  ;;  %v524_v52 = vsel %vm514_vm3, %v1417_v45, 0.0 }
  0xe8   : > { %v521_v47 = vadd.f32 %v520_v44, %v519_v42  ;;  %v1181_v48 = vpop.f32.mrf.mxu0 }
  0xe9   : > { %v522_v49 = vsel %vm514_vm3, %v1419_v46, 0.0  ;;  %v1425_v53 = vadd.f32 %v1181_v48, %v1088_v29  ;;  %v706_v48 = vlaneseq }
  0xea   : > { %v523_v50 = vadd.f32 %v522_v49, %v521_v47  ;;  %v459_v51 = vpop.f32.mrf.mxu0 }
  0xeb   : > { %v1427_v54 = vadd.f32 %v1088_v29, %v459_v51  ;;  %v528_v60 = vsel %vm514_vm3, %v1425_v53, 0.0  ;;  %v1485_v49 = vshrl.u32 %v706_v48, 7 }
  0xec   : > { %v525_v55 = vadd.f32 %v524_v52, %v523_v50  ;;  %v1184_v56 = vpop.f32.mrf.mxu0 }
  0xed   : > { %v526_v57 = vsel %vm514_vm3, %v1427_v54, 0.0  ;;  %v1433_v61 = vadd.f32 %v1184_v56, %v1088_v29  ;;  %v708_v50 = vsub.s32 0, %v1485_v49 }
  0xee   : > { %v527_v58 = vadd.f32 %v526_v57, %v525_v55  ;;  %v469_v59 = vpop.f32.mrf.mxu0 }
  0xef   : > { %v1435_v62 = vadd.f32 %v1088_v29, %v469_v59  ;;  %v532_v5 = vsel %vm514_vm3, %v1433_v61, 0.0 }
  0xf0   : > { %v529_v63 = vadd.f32 %v528_v60, %v527_v58  ;;  %v1187_v0 = vpop.f32.mrf.mxu0 }
  0xf1   : > { %v530_v1 = vsel %vm514_vm3, %v1435_v62, 0.0  ;;  %v1441_v6 = vadd.f32 %v1187_v0, %v1088_v29 }
  0xf2   : > { %v531_v2 = vadd.f32 %v530_v1, %v529_v63  ;;  %v479_v3 = vpop.f32.mrf.mxu0 }
  0xf3   : > { %v1443_v7 = vadd.f32 %v1088_v29, %v479_v3  ;;  %v536_v14 = vsel %vm514_vm3, %v1441_v6, 0.0 }
  0xf4   : > { %v533_v8 = vadd.f32 %v532_v5, %v531_v2  ;;  %v1190_v9 = vpop.f32.mrf.mxu0 }
  0xf5   : > { %v534_v10 = vsel %vm514_vm3, %v1443_v7, 0.0  ;;  %v1449_v15 = vadd.f32 %v1190_v9, %v1088_v29 }
  0xf6   : > { %v535_v11 = vadd.f32 %v534_v10, %v533_v8  ;;  %v489_v12 = vpop.f32.mrf.mxu0 }
  0xf7   : > { %v1451_v16 = vadd.f32 %v1088_v29, %v489_v12  ;;  %v540_v21 = vsel %vm514_vm3, %v1449_v15, 0.0  ;;  %v1468_v29 = vld [vmem:[%s1637_s4] sm:$0x3] }
  0xf8   : > { %v537_v17 = vadd.f32 %v536_v14, %v535_v11 }
  0xf9   : > { %v538_v18 = vsel %vm514_vm3, %v1451_v16, 0.0 }
  0xfa   : > { %v539_v20 = vadd.f32 %v538_v18, %v537_v17 }
  0xfc   : > { %v541_v23 = vadd.f32 %v540_v21, %v539_v20 }
  0xfe   : > { %v543_v30 = vadd.f32 %v542_v28, %v541_v23 }
 0x100   : > { %v546_v34 = vadd.f32 %v545_v33, %v543_v30 }
 0x102   : > { %v547_v35 = vrot.slane %v546_v34, 4 }
 0x104   : > { %v548_v36 = vadd.f32 %v547_v35, %v546_v34 }
 0x106   : > { %v549_v39 = vrot.slane %v548_v36, 2 }
 0x108   : > { %v550_v40 = vadd.f32 %v549_v39, %v548_v36 }
 0x10a   : > { %v551_v41 = vrot.slane %v550_v40, 1 }
 0x10c   : > { %v552_v42 = vadd.f32 %v551_v41, %v550_v40 }
 0x10e   : > { %1201 = vmatmul.mubr.msk.f32.vlgmr.msra.gmra.mxu1 %vm514_vm3, %v552_v42 }
 0x10f   : > { %1204 = vmatpush3.msk.msra.mxu1 %vm632_vm5, %v1468_v29  ;;  %1205 = vmatprep.mubr.msk.f32.mxu1 %vm1259_vm2, %v1258_v24 }
 0x110   : > { %1208 = vmatprep.subr.mxu1 %v1258_v24 }
 0x1ce   : > { %v622_v43 = vpop.f32.mrf.mxu1 }
 0x1cf   : > { %v627_v44 = vmul.f32 0.00066666666, %v622_v43 }
 0x1d0   : > { %v1202_v47 = vpop.f32.mrf.mxu1 }
 0x1d1   : > { %1206 = vmatmul.mubr.msk.f32.vlgmr.msra.gmra.mxu1 %vm628_vm6, %v627_v44 }
 0x1d2   : > { %1209 = vmatpush3.msra.mxu1 %v1378_v25  ;;  %1214 = vmatprep.mubr.msk.f32.mxu1 %vm1259_vm2, %v1258_v24 }
 0x1d3   : > { %1210 = vmatprep.subr.mxu1 %v1258_v24 }
 0x1d4   : > { %1211 = vmatpush3.msra.mxu1 %v1385_v26 }
 0x1d5   : > { %1212 = vmatprep.subr.mxu1 %v1258_v24 }
 0x1d6   : > { %1213 = vmatpush3.msra.mxu1 %v1392_v27 }
 0x1d7   : > { %1217 = vmatprep.subr.mxu1 %v1258_v24 }
 0x291   : > { %v702_v51 = vpop.f32.mrf.mxu1 }
 0x292   : > { %v709_v25 = vrot.slane %v702_v51, %v708_v50 }
 0x293   : > { %v1207_v52 = vpop.f32.mrf.mxu1 }
 0x294   : > { %v1491_v55 = vsub.f32 %v1403_v32, %v709_v25  ;;  %v1494_v26 = vsub.f32 %v1401_v31, %v709_v25  ;;  %v1497_v27 = vsub.f32 %v1411_v38, %v709_v25  ;;  %v1500_v56 = vsub.f32 %v1409_v37, %v709_v25 }
 0x295   : > { %v1507_v59 = vsub.f32 %v1419_v46, %v709_v25  ;;  %v1512_v31 = vsub.f32 %v1417_v45, %v709_v25  ;;  %v1519_v0 = vsub.f32 %v1427_v54, %v709_v25  ;;  %v1525_v45 = vsub.f32 %v1425_v53, %v709_v25 }
 0x296   : > { %v726_v57 = vmul.f32 %v1491_v55, %v1491_v55  ;;  %v727_v58 = vmul.f32 %v1494_v26, %v1494_v26  ;;  %v728_v32 = vmul.f32 %v1497_v27, %v1497_v27  ;;  %v729_v38 = vmul.f32 %v1500_v56, %v1500_v56 }
 0x297   : > { %v730_v46 = vmul.f32 %v1507_v59, %v1507_v59  ;;  %v731_v3 = vmul.f32 %v1512_v31, %v1512_v31  ;;  %v1531_v8 = vsub.f32 %v1435_v62, %v709_v25  ;;  %v732_v54 = vmul.f32 %v1519_v0, %v1519_v0 }
 0x298   : > { %v742_v37 = vsel %vm514_vm3, %v726_v57, 0.0  ;;  %v743_v60 = vsel %vm514_vm3, %v727_v58, 0.0  ;;  %v745_v1 = vsel %vm514_vm3, %v728_v32, 0.0  ;;  %v747_v4 = vsel %vm514_vm3, %v729_v38, 0.0 }
 0x299   : > { %v744_v63 = vadd.f32 %v743_v60, %v742_v37  ;;  %v749_v9 = vsel %vm514_vm3, %v730_v46, 0.0  ;;  %v1537_v11 = vsub.f32 %v1433_v61, %v709_v25  ;;  %v733_v53 = vmul.f32 %v1525_v45, %v1525_v45 }
 0x29a   : > { %v751_v12 = vsel %vm514_vm3, %v731_v3, 0.0  ;;  %v1543_v14 = vsub.f32 %v1443_v7, %v709_v25  ;;  %v734_v62 = vmul.f32 %v1531_v8, %v1531_v8  ;;  %v753_v17 = vsel %vm514_vm3, %v732_v54, 0.0 }
 0x29b   : > { %v746_v2 = vadd.f32 %v745_v1, %v744_v63  ;;  %v721_v20 = vsub.f32 %v1441_v6, %v709_v25  ;;  %v735_v61 = vmul.f32 %v1537_v11, %v1537_v11  ;;  %v755_v21 = vsel %vm514_vm3, %v733_v53, 0.0 }
 0x29c   : > { %v722_v28 = vsub.f32 %v1451_v16, %v709_v25  ;;  %v736_v7 = vmul.f32 %v1543_v14, %v1543_v14  ;;  %v757_v30 = vsel %vm514_vm3, %v734_v62, 0.0  ;;  %v723_v34 = vsub.f32 %v1449_v15, %v709_v25  ;;  %v1112_v62 = vld [vmem:[%s1638_s5] ss:$0 sm:$0xff] }
 0x29d   : > { %v748_v5 = vadd.f32 %v747_v4, %v746_v2  ;;  %v737_v35 = vmul.f32 %v721_v20, %v721_v20  ;;  %v759_v36 = vsel %vm514_vm3, %v735_v61, 0.0  ;;  %v724_v39 = vsub.f32 %v1455_v19, %v709_v25 }
 0x29e   : > { %v738_v40 = vmul.f32 %v722_v28, %v722_v28  ;;  %v761_v41 = vsel %vm514_vm3, %v736_v7, 0.0  ;;  %v725_v16 = vsub.f32 %v1459_v22, %v709_v25  ;;  %v739_v43 = vmul.f32 %v723_v34, %v723_v34 }
 0x29f   : > { %v750_v10 = vadd.f32 %v749_v9, %v748_v5  ;;  %v763_v44 = vsel %vm514_vm3, %v737_v35, 0.0  ;;  %v740_v48 = vmul.f32 %v724_v39, %v724_v39 }
 0x2a0   : > { %v765_v51 = vsel %vm514_vm3, %v738_v40, 0.0  ;;  %v741_v52 = vmul.f32 %v725_v16, %v725_v16  ;;  %v767_v57 = vsel %vm514_vm3, %v739_v43, 0.0 }
 0x2a1   : > { %v752_v13 = vadd.f32 %v751_v12, %v750_v10  ;;  %v769_v19 = vsel %vm514_vm3, %v740_v48, 0.0 }
 0x2a2   : > { %v771_v38 = vsel %vm544_vm4, %v741_v52, 0.0 }
 0x2a3   : > { %v754_v18 = vadd.f32 %v753_v17, %v752_v13 }
 0x2a5   : > { %v756_v23 = vadd.f32 %v755_v21, %v754_v18 }
 0x2a7   : > { %v758_v33 = vadd.f32 %v757_v30, %v756_v23 }
 0x2a9   : > { %v760_v6 = vadd.f32 %v759_v36, %v758_v33 }
 0x2ab   : > { %v762_v42 = vadd.f32 %v761_v41, %v760_v6 }
 0x2ad   : > { %v764_v47 = vadd.f32 %v763_v44, %v762_v42 }
 0x2af   : > { %v766_v15 = vadd.f32 %v765_v51, %v764_v47 }
 0x2b1   : > { %v768_v58 = vadd.f32 %v767_v57, %v766_v15 }
 0x2b3   : > { %v770_v32 = vadd.f32 %v769_v19, %v768_v58 }
 0x2b5   : > { %v772_v37 = vadd.f32 %v771_v38, %v770_v32 }
 0x2b7   : > { %v773_v60 = vrot.slane %v772_v37, 4 }
 0x2b9   : > { %v774_v22 = vadd.f32 %v773_v60, %v772_v37 }
 0x2bb   : > { %v775_v25 = vrot.slane %v774_v22, 2 }
 0x2bd   : > { %v776_v63 = vadd.f32 %v775_v25, %v774_v22 }
 0x2bf   : > { %v777_v46 = vrot.slane %v776_v63, 1 }
 0x2c1   : > { %v778_v1 = vadd.f32 %v777_v46, %v776_v63 }
 0x2c3   : > { %1215 = vmatmul.mubr.msk.f32.vlgmr.msra.gmra.mxu1 %vm514_vm3, %v778_v1 }
 0x2c4   : > { %1218 = vmatpush3.msk.msra.mxu1 %vm632_vm5, %v1468_v29  ;;  %1219 = vmatprep.mubr.msk.f32.mxu1 %vm1259_vm2, %v1258_v24 }
 0x383   : > { %v848_v2 = vpop.f32.mrf.mxu1 }
 0x384   : > { %v852_v3 = vmul.f32 0.00066666666, %v848_v2 }
 0x385   : > { %v1216_v4 = vpop.f32.mrf.mxu1 }
 0x386   : > { %v853_v5 = vadd.f32 1e-05, %v852_v3 }
 0x388   : > { %1248 = vrsqrt.f32 %v853_v5 }
 0x395   : > { %v1249_v54 = vpop.eup %1248 }
 0x396   : > { %1220 = vmatmul.mubr.msk.f32.vlgmr.msra.gmra.mxu1 %vm628_vm6, %v1249_v54 }
 0x456   : > { %v924_v9 = vpop.f32.mrf.mxu1 }
 0x457   : > { %v931_v10 = vrot.slane %v924_v9, %v708_v50 }
 0x458   : > { %v1221_v53 = vpop.f32.mrf.mxu1 }
 0x459   : > { %v932_v12 = vmul.f32 %v931_v10, %v1491_v55  ;;  %v933_v29 = vmul.f32 %v931_v10, %v1494_v26  ;;  %v934_v13 = vmul.f32 %v931_v10, %v1497_v27  ;;  %v935_v24 = vmul.f32 %v931_v10, %v1500_v56 }
 0x45a   : > { %v936_v17 = vmul.f32 %v931_v10, %v1507_v59  ;;  %v937_v18 = vmul.f32 %v931_v10, %v1512_v31  ;;  %v938_v49 = vmul.f32 %v931_v10, %v1519_v0  ;;  %v939_v50 = vmul.f32 %v931_v10, %v1525_v45  ;;  %v1113_v31 = vld [vmem:[%s1639_s6] ss:$0 sm:$0xff] }
 0x45b   : > { %v940_v55 = vmul.f32 %v931_v10, %v1531_v8  ;;  %v941_v26 = vmul.f32 %v931_v10, %v1537_v11  ;;  %v942_v27 = vmul.f32 %v931_v10, %v1543_v14  ;;  %v943_v61 = vmul.f32 %v931_v10, %v721_v20 }
 0x45c   : > { %v944_v56 = vmul.f32 %v931_v10, %v722_v28  ;;  %v945_v21 = vmul.f32 %v931_v10, %v723_v34  ;;  %v946_v23 = vmul.f32 %v931_v10, %v724_v39  ;;  %v947_v7 = vmul.f32 %v931_v10, %v725_v16 }
 0x45d   : > { %v954_v30 = vmul.f32 %v1112_v62, %v932_v12  ;;  %v955_v33 = vmul.f32 %v1112_v62, %v933_v29  ;;  %v956_v59 = vmul.f32 %v1112_v62, %v934_v13  ;;  %v957_v35 = vmul.f32 %v1112_v62, %v935_v24 }
 0x45e   : > { %v958_v0 = vmul.f32 %v1112_v62, %v936_v17  ;;  %v959_v45 = vmul.f32 %v1112_v62, %v937_v18  ;;  %v960_v8 = vmul.f32 %v1112_v62, %v938_v49  ;;  %v961_v36 = vmul.f32 %v1112_v62, %v939_v50 }
 0x45f   : > { %v962_v11 = vmul.f32 %v1112_v62, %v940_v55  ;;  %v963_v6 = vmul.f32 %v1112_v62, %v941_v26  ;;  %v964_v14 = vmul.f32 %v1112_v62, %v942_v27  ;;  %v965_v20 = vmul.f32 %v1112_v62, %v943_v61 }
 0x460   : > { %v966_v28 = vmul.f32 %v1112_v62, %v944_v56  ;;  %v967_v34 = vmul.f32 %v1112_v62, %v945_v21  ;;  %v968_v39 = vmul.f32 %v1112_v62, %v946_v23  ;;  %v969_v40 = vmul.f32 %v1112_v62, %v947_v7 }
 0x461   : > { %v976_v41 = vadd.f32 %v1113_v31, %v954_v30  ;;  %v977_v42 = vadd.f32 %v1113_v31, %v955_v33  ;;  %v978_v16 = vadd.f32 %v1113_v31, %v956_v59  ;;  %v979_v43 = vadd.f32 %v1113_v31, %v957_v35 }
 0x462   : > { %v980_v44 = vadd.f32 %v1113_v31, %v958_v0  ;;  %v981_v47 = vadd.f32 %v1113_v31, %v959_v45  ;;  %v982_v48 = vadd.f32 %v1113_v31, %v960_v8  ;;  %v983_v51 = vadd.f32 %v1113_v31, %v961_v36 }
 0x463   : > { %v984_v15 = vadd.f32 %v1113_v31, %v962_v11  ;;  %v985_v52 = vadd.f32 %v1113_v31, %v963_v6  ;;  %v986_v57 = vadd.f32 %v1113_v31, %v964_v14  ;;  %v987_v58 = vadd.f32 %v1113_v31, %v965_v20 }
 0x464   : > { %v988_v19 = vadd.f32 %v1113_v31, %v966_v28  ;;  %v989_v32 = vadd.f32 %v1113_v31, %v967_v34  ;;  %v990_v38 = vadd.f32 %v1113_v31, %v968_v39  ;;  %v991_v37 = vadd.f32 %v1113_v31, %v969_v40 }
 0x465   : > { %v992_v60 = vmax.f32 %v976_v41, 0.0  ;;  %v993_v22 = vmax.f32 %v977_v42, 0.0  ;;  %v994_v25 = vmax.f32 %v978_v16, 0.0  ;;  %v995_v63 = vmax.f32 %v979_v43, 0.0 }
 0x466   : > { %v996_v46 = vmax.f32 %v980_v44, 0.0  ;;  %v997_v1 = vmax.f32 %v981_v47, 0.0  ;;  %v998_v2 = vmax.f32 %v982_v48, 0.0  ;;  %v999_v3 = vmax.f32 %v983_v51, 0.0 }
 0x467   : > { %v1000_v4 = vmax.f32 %v984_v15, 0.0  ;;  %v1001_v5 = vmax.f32 %v985_v52, 0.0  ;;  %v1002_v54 = vmax.f32 %v986_v57, 0.0  ;;  %v1003_v9 = vmax.f32 %v987_v58, 0.0  ;;  %1008 = vst.msk [vmem:[%s1596_s19] sm:$0xff] %vm514_vm3, %v992_v60  ;;  %1009 = vst.msk [vmem:[%s1596_s19 + $0x8] sm:$0xff] %vm514_vm3, %v993_v22 }
 0x468   : > { %1010 = vst.msk [vmem:[%s1596_s19 + $0x10] sm:$0xff] %vm514_vm3, %v994_v25  ;;  %1011 = vst.msk [vmem:[%s1596_s19 + $0x18] sm:$0xff] %vm514_vm3, %v995_v63  ;;  %v1004_v10 = vmax.f32 %v988_v19, 0.0  ;;  %v1005_v53 = vmax.f32 %v989_v32, 0.0  ;;  %v1006_v12 = vmax.f32 %v990_v38, 0.0  ;;  %v1007_v29 = vmax.f32 %v991_v37, 0.0 }
 0x469   : > { %1012 = vst.msk [vmem:[%s1596_s19 + $0x20] sm:$0xff] %vm514_vm3, %v996_v46  ;;  %1013 = vst.msk [vmem:[%s1596_s19 + $0x28] sm:$0xff] %vm514_vm3, %v997_v1 }
 0x46a   : > { %1014 = vst.msk [vmem:[%s1596_s19 + $0x30] sm:$0xff] %vm514_vm3, %v998_v2  ;;  %1015 = vst.msk [vmem:[%s1596_s19 + $0x38] sm:$0xff] %vm514_vm3, %v999_v3 }
 0x46b   : > { %1016 = vst.msk [vmem:[%s1596_s19 + $0x40] sm:$0xff] %vm514_vm3, %v1000_v4  ;;  %1017 = vst.msk [vmem:[%s1596_s19 + $0x48] sm:$0xff] %vm514_vm3, %v1001_v5 }
 0x46c   : > { %1018 = vst.msk [vmem:[%s1596_s19 + $0x50] sm:$0xff] %vm514_vm3, %v1002_v54  ;;  %1019 = vst.msk [vmem:[%s1596_s19 + $0x58] sm:$0xff] %vm514_vm3, %v1003_v9 }
 0x46d   : > { %1020 = vst.msk [vmem:[%s1596_s19 + $0x60] sm:$0xff] %vm514_vm3, %v1004_v10  ;;  %1021 = vst.msk [vmem:[%s1596_s19 + $0x68] sm:$0xff] %vm514_vm3, %v1005_v53 }
 0x46e   : > { %1022 = vst.msk [vmem:[%s1596_s19 + $0x70] sm:$0xff] %vm514_vm3, %v1006_v12 }
 0x46f   : > { %1023 = vst.msk [vmem:[%s1596_s19 + $0x78] sm:$0x1f] %vm544_vm4, %v1007_v29 }
 0x470 PF: > { %s17_s24 = sadd.s32 1, %s1256_s24  }
 0x471   : > { %p14_p4 = scmp.ge.s32.totalorder %s17_s24, 4  }
 0x473   :  { %16 = sbr.rel (!%p14_p4) target bundleno = 1 (0x1), region = 78 }

// kernel: a2s2k_forward.17
= control target key start
LH: loop header
LB: loop body
LE: loop exit
PB: predicated region body
PF: predicated region fallthrough
CT: control target
= control target key end

     0   :  { %s1258_s24 = smov 0   ;;  %s1570_s0 = inlined_call_operand.vmem [shape: f32[2,125,7], index: 0, kind: input, shape index: {}]   ;;  %s1571_s1 = inlined_call_operand.vmem [shape: f32[7,24], index: 1, kind: input, shape index: {}]   ;;  %s1572_s2 = inlined_call_operand.vmem [shape: f32[1,24], index: 2, kind: input, shape index: {}]   ;;  %s1573_s3 = inlined_call_operand.vmem [shape: f32[24,2], index: 3, kind: input, shape index: {}]   ;;  %s1574_s4 = inlined_call_operand.vmem [shape: f32[2,24], index: 4, kind: input, shape index: {}]   ;;  %s1575_s5 = inlined_call_operand.vmem [shape: f32[1,24], index: 5, kind: input, shape index: {}]   ;;  %s1576_s6 = inlined_call_operand.vmem [shape: f32[1,24], index: 6, kind: input, shape index: {}]   ;;  %s1577_s7 = inlined_call_operand.vmem [shape: f32[2,125,24], index: 7, kind: output, shape index: {}]  }
   0x1 LB: > { %s1072_s25 = sadd.s32 4294967295, %s1214_s24   ;;  %p1076_p0 = scmp.ge.s32.totalorder %s1214_s24, 1  ;;  %s1214_s24 = sphi %s1258_s24, %s17_s24  }
   0x2   : > { %p237_p1 = scmp.lt.s32.totalorder %s1214_s24, 3 }
   0x4   : > { %p238_p2 = pnand %p1076_p0, %p237_p1 }
   0x5   : > { %p269_p3 = scmp.lt.s32.totalorder (!%p238_p2), %s1072_s25, 1 }
   0x6   : > { %241 = sbr.rel (%p238_p2) target bundleno = 1124 (0x464), region = 48 }
   0xb   : > { %v295_v0 = vld [vmem:[%s1571_s1] sm:$0x7f]  ;;  %vm352_vm0 = vcmask 1046528   ;;  %s1579_s25 = smov (!%p269_p3, %s1072_s25), 1  ;;  %vm303_vm1 = vcmask 56320   ;;  %v1216_v17 = vmov 0.0  }
   0xc   : > { %1140 = vmatprep.subr.msk.mxu0 %vm352_vm0, %v295_v0  ;;  %1194 = vmatprep.subr.msk.mxu1 %vm352_vm0, %v295_v0  ;;  %s1109_s28 = sshll.u32 %s1579_s25, 7  ;;  %v1315_v18 = vld [vmem:[%s1573_s3 + $0x10] sm:$0xff]  ;;  %v1322_v19 = vld [vmem:[%s1573_s3 + $0x8] sm:$0xff]  ;;  %v1329_v20 = vld [vmem:[%s1573_s3] sm:$0xff]  ;;  %vm1217_vm2 = vmmov 0   ;;  %vm507_vm3 = vcmask 195584  }
   0xd   : > { %1141 = vmatpush3.msk.msra.mxu0 %vm352_vm0, %v295_v0  ;;  %1195 = vmatpush3.msk.msra.mxu1 %vm352_vm0, %v295_v0  ;;  %s1277_s8 = scalar_lea.vmem %s1570_s0, %s1109_s28  ;;  %v1081_v22 = vld [vmem:[%s1572_s2] ss:$0 sm:$0xff]  ;;  %vm537_vm4 = vcmask 192512   ;;  %vm625_vm5 = vcmask 1041408   ;;  %vm621_vm6 = vcmask 15360   ;;  %s1533_s27 = scalar_lea.vmem %s1577_s7, %s1109_s28 }
   0xe   : > { %v279_v1 = vld [vmem:[%s1277_s8] sm:$0xff]  ;;  %v280_v2 = vld [vmem:[%s1277_s8 + $0x8] sm:$0xff]  ;;  %v281_v3 = vld [vmem:[%s1277_s8 + $0x10] sm:$0xff]  ;;  %1166 = vmatprep.subr.mxu1 %v1216_v17 }
   0xf   : > { %1142 = vmatprep.mubr.msk.f32.mxu0 %vm303_vm1, %v279_v1  ;;  %v282_v4 = vld [vmem:[%s1277_s8 + $0x18] sm:$0xff]  ;;  %v283_v5 = vld [vmem:[%s1277_s8 + $0x20] sm:$0xff]  ;;  %v293_v6 = vld [vmem:[%s1277_s8 + $0x70] sm:$0xff] }
  0x10   : > { %1143 = vmatmul.mubr.msk.f32.vlgmr.msra.gmra.mxu0 %vm303_vm1, %v280_v2  ;;  %1163 = vmatprep.mubr.msk.f32.mxu1 %vm303_vm1, %v293_v6  ;;  %v294_v7 = vld [vmem:[%s1277_s8 + $0x78] sm:$0x1f]  ;;  %v284_v8 = vld [vmem:[%s1277_s8 + $0x28] sm:$0xff]  ;;  %v285_v9 = vld [vmem:[%s1277_s8 + $0x30] sm:$0xff] }
  0x11   : > { %1145 = vmatprep.mubr.msk.f32.mxu0 %vm303_vm1, %v281_v3  ;;  %1164 = vmatmul.mubr.msk.f32.vlgmr.msra.gmra.mxu1 %vm303_vm1, %v294_v7  ;;  %v286_v10 = vld [vmem:[%s1277_s8 + $0x38] sm:$0xff]  ;;  %v287_v11 = vld [vmem:[%s1277_s8 + $0x40] sm:$0xff]  ;;  %v288_v12 = vld [vmem:[%s1277_s8 + $0x48] sm:$0xff] }
  0x12   : > { %v289_v13 = vld [vmem:[%s1277_s8 + $0x50] sm:$0xff]  ;;  %v290_v14 = vld [vmem:[%s1277_s8 + $0x58] sm:$0xff]  ;;  %v291_v15 = vld [vmem:[%s1277_s8 + $0x60] sm:$0xff]  ;;  %1167 = vmatpush3.msra.mxu1 %v1315_v18  ;;  %1172 = vmatprep.mubr.msk.f32.mxu1 %vm1217_vm2, %v1216_v17 }
  0x13   : > { %v292_v16 = vld [vmem:[%s1277_s8 + $0x68] sm:$0xff]  ;;  %1168 = vmatprep.subr.mxu1 %v1216_v17 }
  0x14   : > { %1146 = vmatmul.mubr.msk.f32.gmra.mxu0 %vm303_vm1, %v282_v4  ;;  %1169 = vmatpush3.msra.mxu1 %v1322_v19 }
  0x15   : > { %1148 = vmatprep.mubr.msk.f32.mxu0 %vm303_vm1, %v283_v5  ;;  %1170 = vmatprep.subr.mxu1 %v1216_v17 }
  0x16   : > { %1171 = vmatpush3.msra.mxu1 %v1329_v20 }
  0x17   : > { %1175 = vmatprep.subr.mxu1 %v1216_v17 }
  0x18   : > { %1149 = vmatmul.mubr.msk.f32.gmra.mxu0 %vm303_vm1, %v284_v8 }
  0x19   : > { %1151 = vmatprep.mubr.msk.f32.mxu0 %vm303_vm1, %v285_v9 }
  0x1c   : > { %1152 = vmatmul.mubr.msk.f32.gmra.mxu0 %vm303_vm1, %v286_v10 }
  0x1d   : > { %1154 = vmatprep.mubr.msk.f32.mxu0 %vm303_vm1, %v287_v11 }
  0x20   : > { %1155 = vmatmul.mubr.msk.f32.gmra.mxu0 %vm303_vm1, %v288_v12 }
  0x21   : > { %1157 = vmatprep.mubr.msk.f32.mxu0 %vm303_vm1, %v289_v13 }
  0x24   : > { %1158 = vmatmul.mubr.msk.f32.gmra.mxu0 %vm303_vm1, %v290_v14 }
  0x25   : > { %1160 = vmatprep.mubr.msk.f32.mxu0 %vm303_vm1, %v291_v15 }
  0x28   : > { %1161 = vmatmul.mubr.msk.f32.gmra.mxu0 %vm303_vm1, %v292_v16 }
  0xd0   : > { %v1144_v21 = vpop.f32.mrf.mxu0 }
  0xd1   : > { %v1338_v24 = vadd.f32 %v1144_v21, %v1081_v22  ;;  %v1165_v61 = vpop.f32.mrf.mxu1 }
  0xd2   : > { %v422_v23 = vpop.f32.mrf.mxu0  ;;  %v1396_v15 = vadd.f32 %v1165_v61, %v1081_v22 }
  0xd3   : > { %v1340_v25 = vadd.f32 %v1081_v22, %v422_v23  ;;  %v509_v29 = vsel %vm507_vm3, %v1338_v24, 0.0  ;;  %v492_v6 = vpop.f32.mrf.mxu1 }
  0xd4   : > { %v1147_v26 = vpop.f32.mrf.mxu0  ;;  %v1392_v12 = vadd.f32 %v1081_v22, %v492_v6 }
  0xd5   : > { %v508_v27 = vsel %vm507_vm3, %v1340_v25, 0.0  ;;  %v1346_v30 = vadd.f32 %v1147_v26, %v1081_v22  ;;  %v538_v26 = vsel %vm537_vm4, %v1396_v15, 0.0 }
  0xd6   : > { %v432_v28 = vpop.f32.mrf.mxu0  ;;  %v510_v32 = vadd.f32 %v509_v29, %v508_v27  ;;  %v535_v21 = vsel %vm507_vm3, %v1392_v12, 0.0 }
  0xd7   : > { %v1348_v31 = vadd.f32 %v1081_v22, %v432_v28  ;;  %v513_v37 = vsel %vm507_vm3, %v1346_v30, 0.0 }
  0xd8   : > { %v1150_v33 = vpop.f32.mrf.mxu0 }
  0xd9   : > { %v511_v34 = vsel %vm507_vm3, %v1348_v31, 0.0  ;;  %v1354_v38 = vadd.f32 %v1150_v33, %v1081_v22 }
  0xda   : > { %v512_v35 = vadd.f32 %v511_v34, %v510_v32  ;;  %v442_v36 = vpop.f32.mrf.mxu0 }
  0xdb   : > { %v1356_v39 = vadd.f32 %v1081_v22, %v442_v36  ;;  %v517_v45 = vsel %vm507_vm3, %v1354_v38, 0.0 }
  0xdc   : > { %v514_v40 = vadd.f32 %v513_v37, %v512_v35  ;;  %v1153_v41 = vpop.f32.mrf.mxu0 }
  0xdd   : > { %v515_v42 = vsel %vm507_vm3, %v1356_v39, 0.0  ;;  %v1362_v46 = vadd.f32 %v1153_v41, %v1081_v22  ;;  %v699_v41 = vlaneseq }
  0xde   : > { %v516_v43 = vadd.f32 %v515_v42, %v514_v40  ;;  %v452_v44 = vpop.f32.mrf.mxu0 }
  0xdf   : > { %v1364_v47 = vadd.f32 %v1081_v22, %v452_v44  ;;  %v521_v53 = vsel %vm507_vm3, %v1362_v46, 0.0  ;;  %v1422_v42 = vshrl.u32 %v699_v41, 7 }
  0xe0   : > { %v518_v48 = vadd.f32 %v517_v45, %v516_v43  ;;  %v1156_v49 = vpop.f32.mrf.mxu0 }
  0xe1   : > { %v519_v50 = vsel %vm507_vm3, %v1364_v47, 0.0  ;;  %v1370_v54 = vadd.f32 %v1156_v49, %v1081_v22  ;;  %v701_v43 = vsub.s32 0, %v1422_v42 }
  0xe2   : > { %v520_v51 = vadd.f32 %v519_v50, %v518_v48  ;;  %v462_v52 = vpop.f32.mrf.mxu0 }
  0xe3   : > { %v1372_v55 = vadd.f32 %v1081_v22, %v462_v52  ;;  %v525_v62 = vsel %vm507_vm3, %v1370_v54, 0.0 }
  0xe4   : > { %v522_v56 = vadd.f32 %v521_v53, %v520_v51  ;;  %v1159_v57 = vpop.f32.mrf.mxu0 }
  0xe5   : > { %v523_v58 = vsel %vm507_vm3, %v1372_v55, 0.0  ;;  %v1378_v63 = vadd.f32 %v1159_v57, %v1081_v22 }
  0xe6   : > { %v524_v59 = vadd.f32 %v523_v58, %v522_v56  ;;  %v472_v60 = vpop.f32.mrf.mxu0 }
  0xe7   : > { %v1380_v0 = vadd.f32 %v1081_v22, %v472_v60  ;;  %v529_v7 = vsel %vm507_vm3, %v1378_v63, 0.0 }
  0xe8   : > { %v526_v1 = vadd.f32 %v525_v62, %v524_v59  ;;  %v1162_v2 = vpop.f32.mrf.mxu0 }
  0xe9   : > { %v527_v3 = vsel %vm507_vm3, %v1380_v0, 0.0  ;;  %v1386_v8 = vadd.f32 %v1162_v2, %v1081_v22 }
  0xea   : > { %v528_v4 = vadd.f32 %v527_v3, %v526_v1  ;;  %v482_v5 = vpop.f32.mrf.mxu0 }
  0xeb   : > { %v1388_v9 = vadd.f32 %v1081_v22, %v482_v5  ;;  %v533_v14 = vsel %vm507_vm3, %v1386_v8, 0.0  ;;  %v1405_v22 = vld [vmem:[%s1574_s4] sm:$0x3] }
  0xec   : > { %v530_v10 = vadd.f32 %v529_v7, %v528_v4 }
  0xed   : > { %v531_v11 = vsel %vm507_vm3, %v1388_v9, 0.0 }
  0xee   : > { %v532_v13 = vadd.f32 %v531_v11, %v530_v10 }
  0xf0   : > { %v534_v16 = vadd.f32 %v533_v14, %v532_v13 }
  0xf2   : > { %v536_v23 = vadd.f32 %v535_v21, %v534_v16 }
  0xf4   : > { %v539_v27 = vadd.f32 %v538_v26, %v536_v23 }
  0xf6   : > { %v540_v28 = vrot.slane %v539_v27, 4 }
  0xf8   : > { %v541_v29 = vadd.f32 %v540_v28, %v539_v27 }
  0xfa   : > { %v542_v32 = vrot.slane %v541_v29, 2 }
  0xfc   : > { %v543_v33 = vadd.f32 %v542_v32, %v541_v29 }
  0xfe   : > { %v544_v34 = vrot.slane %v543_v33, 1 }
 0x100   : > { %v545_v35 = vadd.f32 %v544_v34, %v543_v33 }
 0x102   : > { %1173 = vmatmul.mubr.msk.f32.vlgmr.msra.gmra.mxu1 %vm507_vm3, %v545_v35 }
 0x103   : > { %1176 = vmatpush3.msk.msra.mxu1 %vm625_vm5, %v1405_v22  ;;  %1177 = vmatprep.mubr.msk.f32.mxu1 %vm1217_vm2, %v1216_v17 }
 0x104   : > { %1180 = vmatprep.subr.mxu1 %v1216_v17 }
 0x1c2   : > { %v615_v36 = vpop.f32.mrf.mxu1 }
 0x1c3   : > { %v620_v37 = vmul.f32 0.00066666666, %v615_v36 }
 0x1c4   : > { %v1174_v40 = vpop.f32.mrf.mxu1 }
 0x1c5   : > { %1178 = vmatmul.mubr.msk.f32.vlgmr.msra.gmra.mxu1 %vm621_vm6, %v620_v37 }
 0x1c6   : > { %1181 = vmatpush3.msra.mxu1 %v1315_v18  ;;  %1186 = vmatprep.mubr.msk.f32.mxu1 %vm1217_vm2, %v1216_v17 }
 0x1c7   : > { %1182 = vmatprep.subr.mxu1 %v1216_v17 }
 0x1c8   : > { %1183 = vmatpush3.msra.mxu1 %v1322_v19 }
 0x1c9   : > { %1184 = vmatprep.subr.mxu1 %v1216_v17 }
 0x1ca   : > { %1185 = vmatpush3.msra.mxu1 %v1329_v20 }
 0x1cb   : > { %1189 = vmatprep.subr.mxu1 %v1216_v17 }
 0x285   : > { %v695_v44 = vpop.f32.mrf.mxu1 }
 0x286   : > { %v702_v18 = vrot.slane %v695_v44, %v701_v43 }
 0x287   : > { %v1179_v45 = vpop.f32.mrf.mxu1 }
 0x288   : > { %v1428_v48 = vsub.f32 %v1340_v25, %v702_v18  ;;  %v1431_v19 = vsub.f32 %v1338_v24, %v702_v18  ;;  %v1434_v20 = vsub.f32 %v1348_v31, %v702_v18  ;;  %v1437_v49 = vsub.f32 %v1346_v30, %v702_v18 }
 0x289   : > { %v1444_v52 = vsub.f32 %v1356_v39, %v702_v18  ;;  %v1449_v24 = vsub.f32 %v1354_v38, %v702_v18  ;;  %v1456_v57 = vsub.f32 %v1364_v47, %v702_v18  ;;  %v1462_v38 = vsub.f32 %v1362_v46, %v702_v18 }
 0x28a   : > { %v719_v50 = vmul.f32 %v1428_v48, %v1428_v48  ;;  %v720_v51 = vmul.f32 %v1431_v19, %v1431_v19  ;;  %v721_v25 = vmul.f32 %v1434_v20, %v1434_v20  ;;  %v722_v31 = vmul.f32 %v1437_v49, %v1437_v49 }
 0x28b   : > { %v723_v39 = vmul.f32 %v1444_v52, %v1444_v52  ;;  %v724_v60 = vmul.f32 %v1449_v24, %v1449_v24  ;;  %v1468_v1 = vsub.f32 %v1372_v55, %v702_v18  ;;  %v725_v47 = vmul.f32 %v1456_v57, %v1456_v57 }
 0x28c   : > { %v735_v30 = vsel %vm507_vm3, %v719_v50, 0.0  ;;  %v736_v53 = vsel %vm507_vm3, %v720_v51, 0.0  ;;  %v738_v58 = vsel %vm507_vm3, %v721_v25, 0.0  ;;  %v740_v61 = vsel %vm507_vm3, %v722_v31, 0.0 }
 0x28d   : > { %v737_v56 = vadd.f32 %v736_v53, %v735_v30  ;;  %v742_v2 = vsel %vm507_vm3, %v723_v39, 0.0  ;;  %v1474_v4 = vsub.f32 %v1370_v54, %v702_v18  ;;  %v726_v46 = vmul.f32 %v1462_v38, %v1462_v38 }
 0x28e   : > { %v744_v5 = vsel %vm507_vm3, %v724_v60, 0.0  ;;  %v1480_v7 = vsub.f32 %v1380_v0, %v702_v18  ;;  %v727_v55 = vmul.f32 %v1468_v1, %v1468_v1  ;;  %v746_v10 = vsel %vm507_vm3, %v725_v47, 0.0 }
 0x28f   : > { %v739_v59 = vadd.f32 %v738_v58, %v737_v56  ;;  %v714_v13 = vsub.f32 %v1378_v63, %v702_v18  ;;  %v728_v54 = vmul.f32 %v1474_v4, %v1474_v4  ;;  %v748_v14 = vsel %vm507_vm3, %v726_v46, 0.0 }
 0x290   : > { %v715_v21 = vsub.f32 %v1388_v9, %v702_v18  ;;  %v729_v0 = vmul.f32 %v1480_v7, %v1480_v7  ;;  %v750_v23 = vsel %vm507_vm3, %v727_v55, 0.0  ;;  %v716_v27 = vsub.f32 %v1386_v8, %v702_v18  ;;  %v1105_v55 = vld [vmem:[%s1575_s5] ss:$0 sm:$0xff] }
 0x291   : > { %v741_v62 = vadd.f32 %v740_v61, %v739_v59  ;;  %v730_v28 = vmul.f32 %v714_v13, %v714_v13  ;;  %v752_v29 = vsel %vm507_vm3, %v728_v54, 0.0  ;;  %v717_v32 = vsub.f32 %v1392_v12, %v702_v18 }
 0x292   : > { %v731_v33 = vmul.f32 %v715_v21, %v715_v21  ;;  %v754_v34 = vsel %vm507_vm3, %v729_v0, 0.0  ;;  %v718_v9 = vsub.f32 %v1396_v15, %v702_v18  ;;  %v732_v36 = vmul.f32 %v716_v27, %v716_v27 }
 0x293   : > { %v743_v3 = vadd.f32 %v742_v2, %v741_v62  ;;  %v756_v37 = vsel %vm507_vm3, %v730_v28, 0.0  ;;  %v733_v41 = vmul.f32 %v717_v32, %v717_v32 }
 0x294   : > { %v758_v44 = vsel %vm507_vm3, %v731_v33, 0.0  ;;  %v734_v45 = vmul.f32 %v718_v9, %v718_v9  ;;  %v760_v50 = vsel %vm507_vm3, %v732_v36, 0.0 }
 0x295   : > { %v745_v6 = vadd.f32 %v744_v5, %v743_v3  ;;  %v762_v12 = vsel %vm507_vm3, %v733_v41, 0.0 }
 0x296   : > { %v764_v31 = vsel %vm537_vm4, %v734_v45, 0.0 }
 0x297   : > { %v747_v11 = vadd.f32 %v746_v10, %v745_v6 }
 0x299   : > { %v749_v16 = vadd.f32 %v748_v14, %v747_v11 }
 0x29b   : > { %v751_v26 = vadd.f32 %v750_v23, %v749_v16 }
 0x29d   : > { %v753_v63 = vadd.f32 %v752_v29, %v751_v26 }
 0x29f   : > { %v755_v35 = vadd.f32 %v754_v34, %v753_v63 }
 0x2a1   : > { %v757_v40 = vadd.f32 %v756_v37, %v755_v35 }
 0x2a3   : > { %v759_v8 = vadd.f32 %v758_v44, %v757_v40 }
 0x2a5   : > { %v761_v51 = vadd.f32 %v760_v50, %v759_v8 }
 0x2a7   : > { %v763_v25 = vadd.f32 %v762_v12, %v761_v51 }
 0x2a9   : > { %v765_v30 = vadd.f32 %v764_v31, %v763_v25 }
 0x2ab   : > { %v766_v53 = vrot.slane %v765_v30, 4 }
 0x2ad   : > { %v767_v15 = vadd.f32 %v766_v53, %v765_v30 }
 0x2af   : > { %v768_v18 = vrot.slane %v767_v15, 2 }
 0x2b1   : > { %v769_v56 = vadd.f32 %v768_v18, %v767_v15 }
 0x2b3   : > { %v770_v39 = vrot.slane %v769_v56, 1 }
 0x2b5   : > { %v771_v58 = vadd.f32 %v770_v39, %v769_v56 }
 0x2b7   : > { %1187 = vmatmul.mubr.msk.f32.vlgmr.msra.gmra.mxu1 %vm507_vm3, %v771_v58 }
 0x2b8   : > { %1190 = vmatpush3.msk.msra.mxu1 %vm625_vm5, %v1405_v22  ;;  %1191 = vmatprep.mubr.msk.f32.mxu1 %vm1217_vm2, %v1216_v17 }
 0x377   : > { %v841_v59 = vpop.f32.mrf.mxu1 }
 0x378   : > { %v845_v60 = vmul.f32 0.00066666666, %v841_v59 }
 0x379   : > { %v1188_v61 = vpop.f32.mrf.mxu1 }
 0x37a   : > { %v846_v62 = vadd.f32 1e-05, %v845_v60 }
 0x37c   : > { %1206 = vrsqrt.f32 %v846_v62 }
 0x389   : > { %v1207_v47 = vpop.eup %1206 }
 0x38a   : > { %1192 = vmatmul.mubr.msk.f32.vlgmr.msra.gmra.mxu1 %vm621_vm6, %v1207_v47 }
 0x44a   : > { %v917_v2 = vpop.f32.mrf.mxu1 }
 0x44b   : > { %v924_v3 = vrot.slane %v917_v2, %v701_v43 }
 0x44c   : > { %v1193_v46 = vpop.f32.mrf.mxu1 }
 0x44d   : > { %v925_v5 = vmul.f32 %v924_v3, %v1428_v48  ;;  %v926_v22 = vmul.f32 %v924_v3, %v1431_v19  ;;  %v927_v6 = vmul.f32 %v924_v3, %v1434_v20  ;;  %v928_v17 = vmul.f32 %v924_v3, %v1437_v49 }
 0x44e   : > { %v929_v10 = vmul.f32 %v924_v3, %v1444_v52  ;;  %v930_v11 = vmul.f32 %v924_v3, %v1449_v24  ;;  %v931_v42 = vmul.f32 %v924_v3, %v1456_v57  ;;  %v932_v43 = vmul.f32 %v924_v3, %v1462_v38  ;;  %v1106_v24 = vld [vmem:[%s1576_s6] ss:$0 sm:$0xff] }
 0x44f   : > { %v933_v48 = vmul.f32 %v924_v3, %v1468_v1  ;;  %v934_v19 = vmul.f32 %v924_v3, %v1474_v4  ;;  %v935_v20 = vmul.f32 %v924_v3, %v1480_v7  ;;  %v936_v54 = vmul.f32 %v924_v3, %v714_v13 }
 0x450   : > { %v937_v49 = vmul.f32 %v924_v3, %v715_v21  ;;  %v938_v14 = vmul.f32 %v924_v3, %v716_v27  ;;  %v939_v16 = vmul.f32 %v924_v3, %v717_v32  ;;  %v940_v0 = vmul.f32 %v924_v3, %v718_v9 }
 0x451   : > { %v947_v23 = vmul.f32 %v1105_v55, %v925_v5  ;;  %v948_v26 = vmul.f32 %v1105_v55, %v926_v22  ;;  %v949_v52 = vmul.f32 %v1105_v55, %v927_v6  ;;  %v950_v28 = vmul.f32 %v1105_v55, %v928_v17 }
 0x452   : > { %v951_v57 = vmul.f32 %v1105_v55, %v929_v10  ;;  %v952_v38 = vmul.f32 %v1105_v55, %v930_v11  ;;  %v953_v1 = vmul.f32 %v1105_v55, %v931_v42  ;;  %v954_v29 = vmul.f32 %v1105_v55, %v932_v43 }
 0x453   : > { %v955_v4 = vmul.f32 %v1105_v55, %v933_v48  ;;  %v956_v63 = vmul.f32 %v1105_v55, %v934_v19  ;;  %v957_v7 = vmul.f32 %v1105_v55, %v935_v20  ;;  %v958_v13 = vmul.f32 %v1105_v55, %v936_v54 }
 0x454   : > { %v959_v21 = vmul.f32 %v1105_v55, %v937_v49  ;;  %v960_v27 = vmul.f32 %v1105_v55, %v938_v14  ;;  %v961_v32 = vmul.f32 %v1105_v55, %v939_v16  ;;  %v962_v33 = vmul.f32 %v1105_v55, %v940_v0 }
 0x455   : > { %v969_v34 = vadd.f32 %v1106_v24, %v947_v23  ;;  %v970_v35 = vadd.f32 %v1106_v24, %v948_v26  ;;  %v971_v9 = vadd.f32 %v1106_v24, %v949_v52  ;;  %v972_v36 = vadd.f32 %v1106_v24, %v950_v28 }
 0x456   : > { %v973_v37 = vadd.f32 %v1106_v24, %v951_v57  ;;  %v974_v40 = vadd.f32 %v1106_v24, %v952_v38  ;;  %v975_v41 = vadd.f32 %v1106_v24, %v953_v1  ;;  %v976_v44 = vadd.f32 %v1106_v24, %v954_v29 }
 0x457   : > { %v977_v8 = vadd.f32 %v1106_v24, %v955_v4  ;;  %v978_v45 = vadd.f32 %v1106_v24, %v956_v63  ;;  %v979_v50 = vadd.f32 %v1106_v24, %v957_v7  ;;  %v980_v51 = vadd.f32 %v1106_v24, %v958_v13 }
 0x458   : > { %v981_v12 = vadd.f32 %v1106_v24, %v959_v21  ;;  %v982_v25 = vadd.f32 %v1106_v24, %v960_v27  ;;  %v983_v31 = vadd.f32 %v1106_v24, %v961_v32  ;;  %v984_v30 = vadd.f32 %v1106_v24, %v962_v33 }
 0x459   : > { %v985_v53 = vmax.f32 %v969_v34, 0.0  ;;  %v986_v15 = vmax.f32 %v970_v35, 0.0  ;;  %v987_v18 = vmax.f32 %v971_v9, 0.0  ;;  %v988_v56 = vmax.f32 %v972_v36, 0.0 }
 0x45a   : > { %v989_v39 = vmax.f32 %v973_v37, 0.0  ;;  %v990_v58 = vmax.f32 %v974_v40, 0.0  ;;  %v991_v59 = vmax.f32 %v975_v41, 0.0  ;;  %v992_v60 = vmax.f32 %v976_v44, 0.0 }
 0x45b   : > { %v993_v61 = vmax.f32 %v977_v8, 0.0  ;;  %v994_v62 = vmax.f32 %v978_v45, 0.0  ;;  %v995_v47 = vmax.f32 %v979_v50, 0.0  ;;  %v996_v2 = vmax.f32 %v980_v51, 0.0  ;;  %1001 = vst.msk [vmem:[%s1533_s27] sm:$0xff] %vm507_vm3, %v985_v53  ;;  %1002 = vst.msk [vmem:[%s1533_s27 + $0x8] sm:$0xff] %vm507_vm3, %v986_v15 }
 0x45c   : > { %1003 = vst.msk [vmem:[%s1533_s27 + $0x10] sm:$0xff] %vm507_vm3, %v987_v18  ;;  %1004 = vst.msk [vmem:[%s1533_s27 + $0x18] sm:$0xff] %vm507_vm3, %v988_v56  ;;  %v997_v3 = vmax.f32 %v981_v12, 0.0  ;;  %v998_v46 = vmax.f32 %v982_v25, 0.0  ;;  %v999_v5 = vmax.f32 %v983_v31, 0.0  ;;  %v1000_v22 = vmax.f32 %v984_v30, 0.0 }
 0x45d   : > { %1005 = vst.msk [vmem:[%s1533_s27 + $0x20] sm:$0xff] %vm507_vm3, %v989_v39  ;;  %1006 = vst.msk [vmem:[%s1533_s27 + $0x28] sm:$0xff] %vm507_vm3, %v990_v58 }
 0x45e   : > { %1007 = vst.msk [vmem:[%s1533_s27 + $0x30] sm:$0xff] %vm507_vm3, %v991_v59  ;;  %1008 = vst.msk [vmem:[%s1533_s27 + $0x38] sm:$0xff] %vm507_vm3, %v992_v60 }
 0x45f   : > { %1009 = vst.msk [vmem:[%s1533_s27 + $0x40] sm:$0xff] %vm507_vm3, %v993_v61  ;;  %1010 = vst.msk [vmem:[%s1533_s27 + $0x48] sm:$0xff] %vm507_vm3, %v994_v62 }
 0x460   : > { %1011 = vst.msk [vmem:[%s1533_s27 + $0x50] sm:$0xff] %vm507_vm3, %v995_v47  ;;  %1012 = vst.msk [vmem:[%s1533_s27 + $0x58] sm:$0xff] %vm507_vm3, %v996_v2 }
 0x461   : > { %1013 = vst.msk [vmem:[%s1533_s27 + $0x60] sm:$0xff] %vm507_vm3, %v997_v3  ;;  %1014 = vst.msk [vmem:[%s1533_s27 + $0x68] sm:$0xff] %vm507_vm3, %v998_v46 }
 0x462   : > { %1015 = vst.msk [vmem:[%s1533_s27 + $0x70] sm:$0xff] %vm507_vm3, %v999_v5 }
 0x463   : > { %1016 = vst.msk [vmem:[%s1533_s27 + $0x78] sm:$0x1f] %vm537_vm4, %v1000_v22 }
 0x464 PF: > { %s17_s24 = sadd.s32 1, %s1214_s24  }
 0x465   : > { %p14_p4 = scmp.ge.s32.totalorder %s17_s24, 4  }
 0x467   :  { %16 = sbr.rel (!%p14_p4) target bundleno = 1 (0x1), region = 78 }

// kernel: a2s2k_forward.19
= control target key start
LH: loop header
LB: loop body
LE: loop exit
PB: predicated region body
PF: predicated region fallthrough
CT: control target
= control target key end

     0   :  { %s671_s21 = smov 0   ;;  %s775_s0 = inlined_call_operand.vmem [shape: f32[2,125,24], index: 0, kind: input, shape index: {}]   ;;  %s776_s1 = inlined_call_operand.vmem [shape: f32[2,125,24], index: 1, kind: input, shape index: {}]   ;;  %s777_s2 = inlined_call_operand.vmem [shape: f32[24,12], index: 2, kind: input, shape index: {}]   ;;  %s778_s3 = inlined_call_operand.vmem [shape: f32[1,12], index: 3, kind: input, shape index: {}]   ;;  %s779_s4 = inlined_call_operand.vmem [shape: f32[12,24], index: 4, kind: input, shape index: {}]   ;;  %s780_s5 = inlined_call_operand.vmem [shape: f32[1,24], index: 5, kind: input, shape index: {}]   ;;  %s781_s6 = inlined_call_operand.vmem [shape: f32[2,1,24], index: 6, kind: output, shape index: {}]  }
   0x1 LB: > { %s577_s22 = sadd.s32 4294967295, %s632_s21   ;;  %p581_p0 = scmp.ge.s32.totalorder %s632_s21, 1  ;;  %s632_s21 = sphi %s671_s21, %s16_s21  }
   0x2   : > { %p222_p1 = scmp.lt.s32.totalorder %s632_s21, 3 }
   0x4   : > { %p223_p2 = pnand %p581_p0, %p222_p1 }
   0x5   : > { %p255_p3 = scmp.lt.s32.totalorder (!%p223_p2), %s577_s22, 1 }
   0x6   : > { %226 = sbr.rel (%p223_p2) target bundleno = 457 (0x1c9), region = 44 }
   0xb   : > { %v359_v0 = vld [vmem:[%s777_s2 + $0x10] sm:$0xff]  ;;  %v634_v1 = vmov 0.0   ;;  %v358_v2 = vld [vmem:[%s777_s2 + $0x8] sm:$0xff]  ;;  %vm635_vm0 = vmmov 0   ;;  %s783_s22 = smov (!%p255_p3, %s577_s22), 1  ;;  %v357_v3 = vld [vmem:[%s777_s2] sm:$0xff] }
   0xc   : > { %600 = vmatprep.subr.mxu0 %v634_v1  ;;  %606 = vmatprep.mubr.msk.f32.mxu0 %vm635_vm0, %v634_v1  ;;  %s591_s29 = sshll.u32 %s783_s22, 7  ;;  %vm316_vm1 = vcmask 195584   ;;  %vm346_vm2 = vcmask 192512   ;;  %vm442_vm3 = vcmask 1043456   ;;  %vm438_vm4 = vcmask 97280   ;;  %s267_s24 = scalar_lea.vmem %s781_s6, %s783_s22 }
   0xd   : > { %601 = vmatpush3.msra.mxu0 %v359_v0  ;;  %609 = vmatprep.subr.mxu1 %v634_v1  ;;  %s700_s8 = scalar_lea.vmem %s775_s0, %s591_s29  ;;  %s705_s11 = scalar_lea.vmem %s776_s1, %s591_s29  ;;  %vm516_vm5 = vcmask 188416  }
   0xe   : > { %602 = vmatprep.subr.mxu0 %v634_v1  ;;  %613 = vmatprep.mubr.msk.f32.mxu1 %vm635_vm0, %v634_v1  ;;  %v268_v4 = vld [vmem:[%s700_s8] sm:$0xff]  ;;  %v269_v5 = vld [vmem:[%s700_s8 + $0x8] sm:$0xff]  ;;  %v270_v6 = vld [vmem:[%s700_s8 + $0x10] sm:$0xff] }
   0xf   : > { %603 = vmatpush3.msra.mxu0 %v358_v2  ;;  %v271_v7 = vld [vmem:[%s700_s8 + $0x18] sm:$0xff]  ;;  %v272_v8 = vld [vmem:[%s700_s8 + $0x20] sm:$0xff]  ;;  %v285_v10 = vld [vmem:[%s705_s11 + $0x8] sm:$0xff] }
  0x10   : > { %604 = vmatprep.subr.mxu0 %v634_v1  ;;  %v284_v9 = vld [vmem:[%s705_s11] sm:$0xff]  ;;  %v286_v11 = vld [vmem:[%s705_s11 + $0x10] sm:$0xff]  ;;  %v287_v12 = vld [vmem:[%s705_s11 + $0x18] sm:$0xff]  ;;  %v301_v15 = vadd.f32 %v285_v10, %v269_v5 }
  0x11   : > { %605 = vmatpush3.msra.mxu0 %v357_v3  ;;  %v288_v13 = vld [vmem:[%s705_s11 + $0x20] sm:$0xff]  ;;  %v300_v14 = vadd.f32 %v284_v9, %v268_v4  ;;  %v302_v16 = vadd.f32 %v286_v11, %v270_v6  ;;  %v303_v17 = vadd.f32 %v287_v12, %v271_v7  ;;  %v273_v18 = vld [vmem:[%s700_s8 + $0x28] sm:$0xff]  ;;  %v274_v23 = vld [vmem:[%s700_s8 + $0x30] sm:$0xff] }
  0x12   : > { %v289_v19 = vld [vmem:[%s705_s11 + $0x28] sm:$0xff]  ;;  %v304_v21 = vadd.f32 %v288_v13, %v272_v8  ;;  %v318_v22 = vsel %vm316_vm1, %v301_v15, 0.0  ;;  %v290_v24 = vld [vmem:[%s705_s11 + $0x30] sm:$0xff]  ;;  %v275_v29 = vld [vmem:[%s700_s8 + $0x38] sm:$0xff] }
  0x13   : > { %v317_v20 = vsel %vm316_vm1, %v300_v14, 0.0  ;;  %v305_v26 = vadd.f32 %v289_v19, %v273_v18  ;;  %v320_v27 = vsel %vm316_vm1, %v302_v16, 0.0  ;;  %v322_v28 = vsel %vm316_vm1, %v303_v17, 0.0  ;;  %v291_v30 = vld [vmem:[%s705_s11 + $0x38] sm:$0xff]  ;;  %v276_v34 = vld [vmem:[%s700_s8 + $0x40] sm:$0xff]  ;;  %v277_v39 = vld [vmem:[%s700_s8 + $0x48] sm:$0xff] }
  0x14   : > { %v319_v25 = vadd.f32 %v318_v22, %v317_v20  ;;  %v306_v32 = vadd.f32 %v290_v24, %v274_v23  ;;  %v324_v33 = vsel %vm316_vm1, %v304_v21, 0.0  ;;  %v292_v35 = vld [vmem:[%s705_s11 + $0x40] sm:$0xff]  ;;  %v307_v37 = vadd.f32 %v291_v30, %v275_v29  ;;  %v293_v40 = vld [vmem:[%s705_s11 + $0x48] sm:$0xff]  ;;  %v278_v44 = vld [vmem:[%s700_s8 + $0x50] sm:$0xff] }
  0x15   : > { %v326_v38 = vsel %vm316_vm1, %v305_v26, 0.0  ;;  %v308_v42 = vadd.f32 %v292_v35, %v276_v34  ;;  %v294_v45 = vld [vmem:[%s705_s11 + $0x50] sm:$0xff]  ;;  %v309_v47 = vadd.f32 %v293_v40, %v277_v39  ;;  %v279_v49 = vld [vmem:[%s700_s8 + $0x58] sm:$0xff]  ;;  %v280_v54 = vld [vmem:[%s700_s8 + $0x60] sm:$0xff] }
  0x16   : > { %v321_v31 = vadd.f32 %v320_v27, %v319_v25  ;;  %v328_v43 = vsel %vm316_vm1, %v306_v32, 0.0  ;;  %v330_v48 = vsel %vm316_vm1, %v307_v37, 0.0  ;;  %v295_v50 = vld [vmem:[%s705_s11 + $0x58] sm:$0xff]  ;;  %v310_v52 = vadd.f32 %v294_v45, %v278_v44  ;;  %v296_v55 = vld [vmem:[%s705_s11 + $0x60] sm:$0xff]  ;;  %v281_v59 = vld [vmem:[%s700_s8 + $0x68] sm:$0xff] }
  0x17   : > { %v332_v53 = vsel %vm316_vm1, %v308_v42, 0.0  ;;  %v311_v57 = vadd.f32 %v295_v50, %v279_v49  ;;  %v334_v58 = vsel %vm316_vm1, %v309_v47, 0.0  ;;  %v297_v60 = vld [vmem:[%s705_s11 + $0x68] sm:$0xff]  ;;  %v312_v62 = vadd.f32 %v296_v55, %v280_v54  ;;  %v282_v0 = vld [vmem:[%s700_s8 + $0x70] sm:$0xff]  ;;  %v283_v6 = vld [vmem:[%s700_s8 + $0x78] sm:$0x1f] }
  0x18   : > { %v323_v36 = vadd.f32 %v322_v28, %v321_v31  ;;  %v336_v63 = vsel %vm316_vm1, %v310_v52, 0.0  ;;  %v298_v2 = vld [vmem:[%s705_s11 + $0x70] sm:$0xff]  ;;  %v313_v4 = vadd.f32 %v297_v60, %v281_v59  ;;  %v299_v7 = vld [vmem:[%s705_s11 + $0x78] sm:$0x1f]  ;;  %v436_v27 = vld [vmem:[%s779_s4 + $0x8] sm:$0xf] }
  0x19   : > { %v338_v5 = vsel %vm316_vm1, %v311_v57, 0.0  ;;  %v314_v9 = vadd.f32 %v298_v2, %v282_v0  ;;  %v340_v10 = vsel %vm316_vm1, %v312_v62, 0.0  ;;  %v315_v12 = vadd.f32 %v299_v7, %v283_v6  ;;  %610 = vmatpush3.msk.msra.mxu1 %vm442_vm3, %v436_v27  ;;  %v435_v28 = vld [vmem:[%s779_s4] sm:$0xff] }
  0x1a   : > { %v325_v41 = vadd.f32 %v324_v33, %v323_v36  ;;  %v342_v13 = vsel %vm316_vm1, %v313_v4, 0.0  ;;  %611 = vmatprep.subr.mxu1 %v634_v1  ;;  %v360_v29 = vld [vmem:[%s778_s3] sm:$0x1] }
  0x1b   : > { %v344_v15 = vsel %vm316_vm1, %v314_v9, 0.0  ;;  %v347_v17 = vsel %vm346_vm2, %v315_v12, 0.0  ;;  %612 = vmatpush3.msra.mxu1 %v435_v28  ;;  %v437_v34 = vld [vmem:[%s780_s5] sm:$0x1] }
  0x1c   : > { %v327_v46 = vadd.f32 %v326_v38, %v325_v41 }
  0x1e   : > { %v329_v51 = vadd.f32 %v328_v43, %v327_v46 }
  0x20   : > { %v331_v56 = vadd.f32 %v330_v48, %v329_v51 }
  0x22   : > { %v333_v61 = vadd.f32 %v332_v53, %v331_v56 }
  0x24   : > { %v335_v3 = vadd.f32 %v334_v58, %v333_v61 }
  0x26   : > { %v337_v8 = vadd.f32 %v336_v63, %v335_v3 }
  0x28   : > { %v339_v11 = vadd.f32 %v338_v5, %v337_v8 }
  0x2a   : > { %v341_v14 = vadd.f32 %v340_v10, %v339_v11 }
  0x2c   : > { %v343_v16 = vadd.f32 %v342_v13, %v341_v14 }
  0x2e   : > { %v345_v18 = vadd.f32 %v344_v15, %v343_v16 }
  0x30   : > { %v348_v19 = vadd.f32 %v347_v17, %v345_v18 }
  0x32   : > { %v349_v20 = vrot.slane %v348_v19, 4 }
  0x34   : > { %v350_v21 = vadd.f32 %v349_v20, %v348_v19 }
  0x36   : > { %v351_v22 = vrot.slane %v350_v21, 2 }
  0x38   : > { %v352_v23 = vadd.f32 %v351_v22, %v350_v21 }
  0x3a   : > { %v353_v24 = vrot.slane %v352_v23, 1 }
  0x3c   : > { %v354_v25 = vadd.f32 %v353_v24, %v352_v23 }
  0x3e   : > { %v356_v26 = vmul.f32 0.008, %v354_v25 }
  0x40   : > { %607 = vmatmul.mubr.msk.f32.vlgmr.msra.gmra.mxu0 %vm316_vm1, %v356_v26 }
 0x100   : > { %v430_v30 = vpop.f32.mrf.mxu0 }
 0x101   : > { %v431_v31 = vadd.f32 %v430_v30, %v360_v29 }
 0x102   : > { %v608_v32 = vpop.f32.mrf.mxu0 }
 0x103   : > { %v434_v33 = vmax.f32 %v431_v31, 0.0 }
 0x105   : > { %614 = vmatmul.mubr.msk.f32.vlgmr.msra.gmra.mxu1 %vm438_vm4, %v434_v33 }
 0x1c5   : > { %v512_v1 = vpop.f32.mrf.mxu1 }
 0x1c6   : > { %v513_v35 = vadd.f32 %v512_v1, %v437_v34 }
 0x1c7   : > { %v615_v36 = vpop.f32.mrf.mxu1 }
 0x1c8   : > { %517 = vst.msk [vmem:[%s267_s24] sm:$0x1] %vm516_vm5, %v513_v35 }
 0x1c9 PF: > { %s16_s21 = sadd.s32 1, %s632_s21  }
 0x1ca   : > { %p13_p4 = scmp.ge.s32.totalorder %s16_s21, 4  }
 0x1cc   :  { %15 = sbr.rel (!%p13_p4) target bundleno = 1 (0x1), region = 77 }

// kernel: a2s2k_forward.20
= control target key start
LH: loop header
LB: loop body
LE: loop exit
PB: predicated region body
PF: predicated region fallthrough
CT: control target
= control target key end

     0   :  { %s1302_s24 = smov 0   ;;  %s1807_s0 = inlined_call_operand.vmem [shape: f32[2,125,168], index: 0, kind: input, shape index: {}]   ;;  %s1808_s1 = inlined_call_operand.vmem [shape: f32[168,24], index: 1, kind: input, shape index: {}]   ;;  %s1809_s2 = inlined_call_operand.vmem [shape: f32[1,24], index: 2, kind: input, shape index: {}]   ;;  %s1810_s3 = inlined_call_operand.vmem [shape: f32[24,2], index: 3, kind: input, shape index: {}]   ;;  %s1811_s4 = inlined_call_operand.vmem [shape: f32[2,24], index: 4, kind: input, shape index: {}]   ;;  %s1812_s5 = inlined_call_operand.vmem [shape: f32[1,24], index: 5, kind: input, shape index: {}]   ;;  %s1813_s6 = inlined_call_operand.vmem [shape: f32[1,24], index: 6, kind: input, shape index: {}]   ;;  %s1814_s7 = inlined_call_operand.vmem [shape: f32[2,125,24], index: 7, kind: output, shape index: {}]  }
   0x1 LB: > { %s1120_s25 = sadd.s32 4294967295, %s1258_s24   ;;  %p1124_p0 = scmp.ge.s32.totalorder %s1258_s24, 1  ;;  %s1258_s24 = sphi %s1302_s24, %s17_s24  }
   0x2   : > { %p237_p1 = scmp.lt.s32.totalorder %s1258_s24, 3 }
   0x4   : > { %p238_p2 = pnand %p1124_p0, %p237_p1 }
   0x5   : > { %p269_p3 = scmp.lt.s32.totalorder (!%p238_p2), %s1120_s25, 1 }
   0x6   : > { %241 = sbr.rel (%p238_p2) target bundleno = 1182 (0x49e), region = 48 }
   0xb   : > { %v326_v0 = vld [vmem:[%s1808_s1 + $0x78] sm:$0xff]  ;;  %v1260_v1 = vmov 0.0   ;;  %v325_v2 = vld [vmem:[%s1808_s1 + $0x70] sm:$0xff]  ;;  %s1816_s25 = smov (!%p269_p3, %s1120_s25), 1  ;;  %v324_v3 = vld [vmem:[%s1808_s1 + $0x68] sm:$0xff]  ;;  %vm339_vm0 = vcmask 326656  }
   0xc   : > { %388 = vmatprep.subr.mxu0 %v1260_v1  ;;  %1198 = vmatprep.subr.mxu1 %v1260_v1  ;;  %s1156_s9 = sshll.u32 %s1816_s25, 8  ;;  %v323_v4 = vld [vmem:[%s1808_s1 + $0x60] sm:$0xff]  ;;  %v322_v5 = vld [vmem:[%s1808_s1 + $0x58] sm:$0xff]  ;;  %v321_v7 = vld [vmem:[%s1808_s1 + $0x50] sm:$0xff]  ;;  %vm1261_vm1 = vmmov 0   ;;  %vm555_vm2 = vcmask 195584  }
   0xd   : > { %389 = vmatpush1.msra.mxu0 %v326_v0  ;;  %1219 = vmatpush1.msra.mxu1 %v326_v0  ;;  %s1334_s14 = scalar_lea.vmem %s1807_s0, %s1156_s9  ;;  %v320_v8 = vld [vmem:[%s1808_s1 + $0x48] sm:$0xff]  ;;  %v319_v9 = vld [vmem:[%s1808_s1 + $0x40] sm:$0xff]  ;;  %v318_v10 = vld [vmem:[%s1808_s1 + $0x38] sm:$0xff]  ;;  %vm585_vm3 = vcmask 192512   ;;  %vm673_vm4 = vcmask 1041408   ;;  %vm669_vm5 = vcmask 15360  }
   0xe   : > { %390 = vmatprep.subr.mxu0 %v1260_v1  ;;  %1199 = vmatprep.subr.mxu1 %v1260_v1  ;;  %v280_v6 = vld [vmem:[%s1334_s14 + $0x8] sm:$0xff]  ;;  %v317_v11 = vld [vmem:[%s1808_s1 + $0x30] sm:$0xff]  ;;  %v315_v13 = vld [vmem:[%s1808_s1 + $0x20] sm:$0xff]  ;;  %s1157_s22 = sshll.u32 %s1816_s25, 7 }
   0xf   : > { %391 = vmatpush1.msra.mxu0 %v325_v2  ;;  %1220 = vmatpush1.msra.mxu1 %v325_v2  ;;  %v316_v12 = vld [vmem:[%s1808_s1 + $0x28] sm:$0xff]  ;;  %v314_v14 = vld [vmem:[%s1808_s1 + $0x18] sm:$0xff]  ;;  %v313_v15 = vld [vmem:[%s1808_s1 + $0x10] sm:$0xff]  ;;  %s1770_s27 = scalar_lea.vmem %s1814_s7, %s1157_s22 }
  0x10   : > { %392 = vmatprep.subr.mxu0 %v1260_v1  ;;  %1200 = vmatprep.subr.mxu1 %v1260_v1  ;;  %v312_v16 = vld [vmem:[%s1808_s1 + $0x8] sm:$0xff]  ;;  %v311_v17 = vld [vmem:[%s1808_s1] sm:$0xff]  ;;  %v330_v19 = vld [vmem:[%s1808_s1 + $0x98] sm:$0xff] }
  0x11   : > { %393 = vmatpush1.msra.mxu0 %v324_v3  ;;  %1221 = vmatpush1.msra.mxu1 %v324_v3  ;;  %v331_v18 = vld [vmem:[%s1808_s1 + $0xa0] sm:$0xff]  ;;  %v329_v20 = vld [vmem:[%s1808_s1 + $0x90] sm:$0xff]  ;;  %v328_v21 = vld [vmem:[%s1808_s1 + $0x88] sm:$0xff] }
  0x12   : > { %394 = vmatprep.subr.mxu0 %v1260_v1  ;;  %1201 = vmatprep.subr.mxu1 %v1260_v1  ;;  %v327_v22 = vld [vmem:[%s1808_s1 + $0x80] sm:$0xff]  ;;  %v282_v24 = vld [vmem:[%s1334_s14 + $0x18] sm:$0xff]  ;;  %v301_v26 = vld [vmem:[%s1334_s14 + $0xb0] sm:$0xff] }
  0x13   : > { %395 = vmatpush1.msra.mxu0 %v323_v4  ;;  %1222 = vmatpush1.msra.mxu1 %v323_v4  ;;  %v279_v23 = vld [vmem:[%s1334_s14] sm:$0xff]  ;;  %v302_v25 = vld [vmem:[%s1334_s14 + $0xb8] sm:$0xff]  ;;  %v304_v27 = vld [vmem:[%s1334_s14 + $0xc8] sm:$0xff] }
  0x14   : > { %396 = vmatprep.subr.mxu0 %v1260_v1  ;;  %1202 = vmatprep.subr.mxu1 %v1260_v1  ;;  %v281_v28 = vld [vmem:[%s1334_s14 + $0x10] sm:$0xff]  ;;  %v284_v29 = vld [vmem:[%s1334_s14 + $0x28] sm:$0xff]  ;;  %v303_v30 = vld [vmem:[%s1334_s14 + $0xc0] sm:$0xff] }
  0x15   : > { %397 = vmatpush1.msra.mxu0 %v322_v5  ;;  %1223 = vmatpush1.msra.mxu1 %v322_v5  ;;  %v306_v31 = vld [vmem:[%s1334_s14 + $0xd8] sm:$0xff]  ;;  %v283_v32 = vld [vmem:[%s1334_s14 + $0x20] sm:$0xff]  ;;  %v305_v34 = vld [vmem:[%s1334_s14 + $0xd0] sm:$0xff] }
  0x16   : > { %398 = vmatprep.subr.mxu0 %v1260_v1  ;;  %1130 = vmatprep.mubr.msk.f32.mxu0 %vm339_vm0, %v280_v6  ;;  %v286_v33 = vld [vmem:[%s1334_s14 + $0x38] sm:$0xff]  ;;  %v308_v35 = vld [vmem:[%s1334_s14 + $0xe8] sm:$0xff]  ;;  %v285_v36 = vld [vmem:[%s1334_s14 + $0x30] sm:$0xff] }
  0x17   : > { %399 = vmatpush1.msra.mxu0 %v321_v7  ;;  %1203 = vmatprep.subr.mxu1 %v1260_v1  ;;  %v288_v37 = vld [vmem:[%s1334_s14 + $0x48] sm:$0xff]  ;;  %v307_v38 = vld [vmem:[%s1334_s14 + $0xe0] sm:$0xff]  ;;  %v310_v39 = vld [vmem:[%s1334_s14 + $0xf8] sm:$0x1f] }
  0x18   : > { %400 = vmatprep.subr.mxu0 %v1260_v1  ;;  %1224 = vmatpush1.msra.mxu1 %v321_v7  ;;  %v287_v40 = vld [vmem:[%s1334_s14 + $0x40] sm:$0xff]  ;;  %v290_v41 = vld [vmem:[%s1334_s14 + $0x58] sm:$0xff]  ;;  %v309_v42 = vld [vmem:[%s1334_s14 + $0xf0] sm:$0x1f] }
  0x19   : > { %401 = vmatpush1.msra.mxu0 %v320_v8  ;;  %1204 = vmatprep.subr.mxu1 %v1260_v1  ;;  %v289_v43 = vld [vmem:[%s1334_s14 + $0x50] sm:$0xff]  ;;  %v292_v44 = vld [vmem:[%s1334_s14 + $0x68] sm:$0xff]  ;;  %v291_v45 = vld [vmem:[%s1334_s14 + $0x60] sm:$0xff] }
  0x1a   : > { %402 = vmatprep.subr.mxu0 %v1260_v1  ;;  %1225 = vmatpush1.msra.mxu1 %v320_v8  ;;  %v294_v46 = vld [vmem:[%s1334_s14 + $0x78] sm:$0xff]  ;;  %v293_v47 = vld [vmem:[%s1334_s14 + $0x70] sm:$0xff]  ;;  %v296_v48 = vld [vmem:[%s1334_s14 + $0x88] sm:$0xff] }
  0x1b   : > { %403 = vmatpush1.msra.mxu0 %v319_v9  ;;  %1205 = vmatprep.subr.mxu1 %v1260_v1  ;;  %v295_v49 = vld [vmem:[%s1334_s14 + $0x80] sm:$0xff]  ;;  %v298_v50 = vld [vmem:[%s1334_s14 + $0x98] sm:$0xff]  ;;  %v297_v51 = vld [vmem:[%s1334_s14 + $0x90] sm:$0xff] }
  0x1c   : > { %404 = vmatprep.subr.mxu0 %v1260_v1  ;;  %1226 = vmatpush1.msra.mxu1 %v319_v9  ;;  %v300_v52 = vld [vmem:[%s1334_s14 + $0xa8] sm:$0xff]  ;;  %v299_v53 = vld [vmem:[%s1334_s14 + $0xa0] sm:$0xff]  ;;  %v1475_v54 = vld [vmem:[%s1810_s3 + $0x10] sm:$0xff] }
  0x1d   : > { %405 = vmatpush1.msra.mxu0 %v318_v10  ;;  %1206 = vmatprep.subr.mxu1 %v1260_v1  ;;  %v1482_v55 = vld [vmem:[%s1810_s3 + $0x8] sm:$0xff]  ;;  %v1489_v56 = vld [vmem:[%s1810_s3] sm:$0xff] }
  0x1e   : > { %406 = vmatprep.subr.mxu0 %v1260_v1  ;;  %1227 = vmatpush1.msra.mxu1 %v318_v10  ;;  %v1506_v9 = vld [vmem:[%s1809_s2] ss:$0 sm:$0xff] }
  0x1f   : > { %407 = vmatpush1.msra.mxu0 %v317_v11  ;;  %1207 = vmatprep.subr.mxu1 %v1260_v1 }
  0x20   : > { %408 = vmatprep.subr.mxu0 %v1260_v1  ;;  %1228 = vmatpush1.msra.mxu1 %v317_v11 }
  0x21   : > { %409 = vmatpush1.msra.mxu0 %v316_v12  ;;  %1208 = vmatprep.subr.mxu1 %v1260_v1 }
  0x22   : > { %410 = vmatprep.subr.mxu0 %v1260_v1  ;;  %1229 = vmatpush1.msra.mxu1 %v316_v12 }
  0x23   : > { %411 = vmatpush1.msra.mxu0 %v315_v13  ;;  %1209 = vmatprep.subr.mxu1 %v1260_v1 }
  0x24   : > { %412 = vmatprep.subr.mxu0 %v1260_v1  ;;  %1230 = vmatpush1.msra.mxu1 %v315_v13 }
  0x25   : > { %413 = vmatpush1.msra.mxu0 %v314_v14  ;;  %1210 = vmatprep.subr.mxu1 %v1260_v1 }
  0x26   : > { %414 = vmatprep.subr.mxu0 %v1260_v1  ;;  %1231 = vmatpush1.msra.mxu1 %v314_v14 }
  0x27   : > { %415 = vmatpush1.msra.mxu0 %v313_v15  ;;  %1211 = vmatprep.subr.mxu1 %v1260_v1 }
  0x28   : > { %416 = vmatprep.subr.mxu0 %v1260_v1  ;;  %1232 = vmatpush1.msra.mxu1 %v313_v15 }
  0x29   : > { %417 = vmatpush1.msra.mxu0 %v312_v16  ;;  %1212 = vmatprep.subr.mxu1 %v1260_v1 }
  0x2a   : > { %418 = vmatprep.subr.mxu0 %v1260_v1  ;;  %1233 = vmatpush1.msra.mxu1 %v312_v16 }
  0x2b   : > { %419 = vmatpush1.msra.mxu0 %v311_v17  ;;  %1213 = vmatprep.subr.mxu1 %v1260_v1 }
  0x2c   : > { %442 = vmatprep.subr.mxu0 %v1260_v1  ;;  %1234 = vmatpush1.msra.mxu1 %v311_v17 }
  0x2d   : > { %443 = vmatpush2.msra.mxu0 %v331_v18  ;;  %1214 = vmatprep.subr.mxu1 %v1260_v1 }
  0x2e   : > { %444 = vmatprep.subr.mxu0 %v1260_v1  ;;  %1235 = vmatpush2.msra.mxu1 %v331_v18 }
  0x2f   : > { %445 = vmatpush2.msra.mxu0 %v330_v19  ;;  %1215 = vmatprep.subr.mxu1 %v1260_v1 }
  0x30   : > { %446 = vmatprep.subr.mxu0 %v1260_v1  ;;  %1236 = vmatpush2.msra.mxu1 %v330_v19 }
  0x31   : > { %447 = vmatpush2.msra.mxu0 %v329_v20  ;;  %1216 = vmatprep.subr.mxu1 %v1260_v1 }
  0x32   : > { %448 = vmatprep.subr.mxu0 %v1260_v1  ;;  %1237 = vmatpush2.msra.mxu1 %v329_v20 }
  0x33   : > { %449 = vmatpush2.msra.mxu0 %v328_v21  ;;  %1217 = vmatprep.subr.mxu1 %v1260_v1 }
  0x34   : > { %450 = vmatprep.subr.mxu0 %v1260_v1  ;;  %1238 = vmatpush2.msra.mxu1 %v328_v21 }
  0x35   : > { %451 = vmatpush2.msra.mxu0 %v327_v22  ;;  %1218 = vmatprep.subr.mxu1 %v1260_v1 }
  0x36   : > { %453 = vmatmul.mubr.f32.vlgmr.msra.gmra.mxu0 %v279_v23  ;;  %1239 = vmatpush2.msra.mxu1 %v327_v22 }
  0x37   : > { %1131 = vmatprep.mubr.msk.f32.mxu0 %vm339_vm0, %v282_v24  ;;  %1141 = vmatprep.mubr.msk.f32.mxu1 %vm339_vm0, %v302_v25 }
  0x38   : > { %508 = vmatmul.mubr.f32.vlgmr.msra.gmra.mxu1 %v301_v26  ;;  %1170 = vmatprep.subr.mxu1 %v1260_v1 }
  0x39   : > { %1142 = vmatprep.mubr.msk.f32.mxu1 %vm339_vm0, %v304_v27  ;;  %1171 = vmatpush3.msra.mxu1 %v1475_v54 }
  0x3a   : > { %458 = vmatmul.mubr.f32.gmra.mxu0 %v281_v28  ;;  %1172 = vmatprep.subr.mxu1 %v1260_v1 }
  0x3b   : > { %1132 = vmatprep.mubr.msk.f32.mxu0 %vm339_vm0, %v284_v29  ;;  %1173 = vmatpush3.msra.mxu1 %v1482_v55 }
  0x3c   : > { %513 = vmatmul.mubr.f32.gmra.mxu1 %v303_v30  ;;  %1174 = vmatprep.subr.mxu1 %v1260_v1 }
  0x3d   : > { %1143 = vmatprep.mubr.msk.f32.mxu1 %vm339_vm0, %v306_v31  ;;  %1175 = vmatpush3.msra.mxu1 %v1489_v56 }
  0x3e   : > { %463 = vmatmul.mubr.f32.gmra.mxu0 %v283_v32  ;;  %1179 = vmatprep.subr.mxu1 %v1260_v1 }
  0x3f   : > { %1133 = vmatprep.mubr.msk.f32.mxu0 %vm339_vm0, %v286_v33 }
  0x40   : > { %518 = vmatmul.mubr.f32.gmra.mxu1 %v305_v34 }
  0x41   : > { %1144 = vmatprep.mubr.msk.f32.mxu1 %vm339_vm0, %v308_v35 }
  0x42   : > { %468 = vmatmul.mubr.f32.gmra.mxu0 %v285_v36 }
  0x43   : > { %1134 = vmatprep.mubr.msk.f32.mxu0 %vm339_vm0, %v288_v37 }
  0x44   : > { %523 = vmatmul.mubr.f32.gmra.mxu1 %v307_v38 }
  0x45   : > { %1145 = vmatprep.mubr.msk.f32.mxu1 %vm339_vm0, %v310_v39 }
  0x46   : > { %473 = vmatmul.mubr.f32.gmra.mxu0 %v287_v40 }
  0x47   : > { %1135 = vmatprep.mubr.msk.f32.mxu0 %vm339_vm0, %v290_v41 }
  0x48   : > { %528 = vmatmul.mubr.f32.gmra.mxu1 %v309_v42 }
  0x49   : > { %1176 = vmatprep.mubr.msk.f32.mxu1 %vm1261_vm1, %v1260_v1 }
  0x4a   : > { %478 = vmatmul.mubr.f32.gmra.mxu0 %v289_v43 }
  0x4b   : > { %1136 = vmatprep.mubr.msk.f32.mxu0 %vm339_vm0, %v292_v44 }
  0x4e   : > { %483 = vmatmul.mubr.f32.gmra.mxu0 %v291_v45 }
  0x4f   : > { %1137 = vmatprep.mubr.msk.f32.mxu0 %vm339_vm0, %v294_v46 }
  0x52   : > { %488 = vmatmul.mubr.f32.gmra.mxu0 %v293_v47 }
  0x53   : > { %1138 = vmatprep.mubr.msk.f32.mxu0 %vm339_vm0, %v296_v48 }
  0x56   : > { %493 = vmatmul.mubr.f32.gmra.mxu0 %v295_v49 }
  0x57   : > { %1139 = vmatprep.mubr.msk.f32.mxu0 %vm339_vm0, %v298_v50 }
  0x5a   : > { %498 = vmatmul.mubr.f32.gmra.mxu0 %v297_v51 }
  0x5b   : > { %1140 = vmatprep.mubr.msk.f32.mxu0 %vm339_vm0, %v300_v52 }
  0x5e   : > { %503 = vmatmul.mubr.f32.gmra.mxu0 %v299_v53 }
  0xf6   : > { %v454_v57 = vpop.f32.mrf.mxu0 }
  0xf7   : > { %v1512_v15 = vadd.f32 %v1506_v9, %v454_v57 }
  0xf8   : > { %v456_v58 = vpop.f32.mrf.mxu0  ;;  %v1495_v59 = vpop.f32.mrf.mxu1 }
  0xf9   : > { %v533_v22 = vmax.f32 %v1512_v15, 0.0 }
  0xfa   : > { %v459_v60 = vpop.f32.mrf.mxu0  ;;  %v511_v61 = vpop.f32.mrf.mxu1 }
  0xfb   : > { %v1509_v12 = vadd.f32 %v1506_v9, %v459_v60  ;;  %v556_v30 = vsel %vm555_vm2, %v533_v22, 0.0 }
  0xfc   : > { %v461_v62 = vpop.f32.mrf.mxu0  ;;  %v1497_v63 = vpop.f32.mrf.mxu1 }
  0xfd   : > { %v534_v19 = vmax.f32 %v1509_v12, 0.0 }
  0xfe   : > { %v464_v0 = vpop.f32.mrf.mxu0  ;;  %v516_v2 = vpop.f32.mrf.mxu1 }
  0xff   : > { %v1515_v16 = vadd.f32 %v1506_v9, %v464_v0  ;;  %v557_v26 = vsel %vm555_vm2, %v534_v19, 0.0  ;;  %v1576_v0 = vadd.f32 %v1506_v9, %v1495_v59 }
 0x100   : > { %v466_v3 = vpop.f32.mrf.mxu0  ;;  %v1499_v4 = vpop.f32.mrf.mxu1  ;;  %v558_v34 = vadd.f32 %v557_v26, %v556_v30 }
 0x101   : > { %v535_v23 = vmax.f32 %v1515_v16, 0.0  ;;  %v544_v59 = vmax.f32 %v1576_v0, 0.0 }
 0x102   : > { %v469_v5 = vpop.f32.mrf.mxu0  ;;  %v521_v6 = vpop.f32.mrf.mxu1 }
 0x103   : > { %v1519_v20 = vadd.f32 %v1506_v9, %v469_v5  ;;  %v559_v31 = vsel %vm555_vm2, %v535_v23, 0.0 }
 0x104   : > { %v471_v7 = vpop.f32.mrf.mxu0  ;;  %v1501_v8 = vpop.f32.mrf.mxu1  ;;  %v560_v39 = vadd.f32 %v559_v31, %v558_v34 }
 0x105   : > { %v536_v27 = vmax.f32 %v1519_v20, 0.0  ;;  %v1584_v7 = vadd.f32 %v1506_v9, %v1497_v63  ;;  %v1601_v26 = vadd.f32 %v1506_v9, %v1501_v8 }
 0x106   : > { %v474_v10 = vpop.f32.mrf.mxu0  ;;  %v526_v11 = vpop.f32.mrf.mxu1 }
 0x107   : > { %v1524_v24 = vadd.f32 %v1506_v9, %v474_v10  ;;  %v561_v36 = vsel %vm555_vm2, %v536_v27, 0.0 }
 0x108   : > { %v476_v13 = vpop.f32.mrf.mxu0  ;;  %v529_v14 = vpop.f32.mrf.mxu1  ;;  %v562_v43 = vadd.f32 %v561_v36, %v560_v39  ;;  %v547_v36 = vmax.f32 %v1601_v26, 0.0 }
 0x109   : > { %v537_v32 = vmax.f32 %v1524_v24, 0.0 }
 0x10a   : > { %v479_v17 = vpop.f32.mrf.mxu0  ;;  %v531_v18 = vpop.f32.mrf.mxu1 }
 0x10b   : > { %v1531_v28 = vadd.f32 %v1506_v9, %v479_v17  ;;  %v563_v41 = vsel %vm555_vm2, %v537_v32, 0.0  ;;  %v1593_v18 = vadd.f32 %v1506_v9, %v1499_v4  ;;  %v577_v4 = vsel %vm555_vm2, %v544_v59, 0.0 }
 0x10c   : > { %v481_v21 = vpop.f32.mrf.mxu0  ;;  %v564_v48 = vadd.f32 %v563_v41, %v562_v43 }
 0x10d   : > { %v538_v37 = vmax.f32 %v1531_v28, 0.0  ;;  %v546_v31 = vmax.f32 %v1593_v18, 0.0 }
 0x10e   : > { %v484_v25 = vpop.f32.mrf.mxu0 }
 0x10f   : > { %v1541_v33 = vadd.f32 %v1506_v9, %v484_v25  ;;  %v565_v45 = vsel %vm555_vm2, %v538_v37, 0.0  ;;  %v545_v25 = vmax.f32 %v1584_v7, 0.0 }
 0x110   : > { %v486_v29 = vpop.f32.mrf.mxu0  ;;  %v566_v52 = vadd.f32 %v565_v45, %v564_v48 }
 0x111   : > { %v539_v42 = vmax.f32 %v1541_v33, 0.0  ;;  %v1604_v29 = vadd.f32 %v1506_v9, %v529_v14 }
 0x112   : > { %v489_v35 = vpop.f32.mrf.mxu0 }
 0x113   : > { %v1548_v38 = vadd.f32 %v1506_v9, %v489_v35  ;;  %v567_v50 = vsel %vm555_vm2, %v539_v42, 0.0  ;;  %v579_v35 = vsel %vm555_vm2, %v545_v25, 0.0  ;;  %v548_v8 = vmax.f32 %v1604_v29, 0.0 }
 0x114   : > { %v491_v40 = vpop.f32.mrf.mxu0  ;;  %v568_v60 = vadd.f32 %v567_v50, %v566_v52 }
 0x115   : > { %v540_v46 = vmax.f32 %v1548_v38, 0.0  ;;  %v583_v40 = vsel %vm555_vm2, %v547_v36, 0.0  ;;  %v586_v41 = vsel %vm585_vm3, %v548_v8, 0.0 }
 0x116   : > { %v494_v44 = vpop.f32.mrf.mxu0 }
 0x117   : > { %v1559_v47 = vadd.f32 %v1506_v9, %v494_v44  ;;  %v569_v57 = vsel %vm555_vm2, %v540_v46, 0.0 }
 0x118   : > { %v496_v49 = vpop.f32.mrf.mxu0  ;;  %v570_v3 = vadd.f32 %v569_v57, %v568_v60  ;;  %v1627_v57 = vld [vmem:[%s1811_s4] sm:$0x3] }
 0x119   : > { %v541_v51 = vmax.f32 %v1559_v47, 0.0 }
 0x11a   : > { %v499_v53 = vpop.f32.mrf.mxu0 }
 0x11b   : > { %v1569_v58 = vadd.f32 %v1506_v9, %v499_v53  ;;  %v571_v62 = vsel %vm555_vm2, %v541_v51, 0.0 }
 0x11c   : > { %v501_v61 = vpop.f32.mrf.mxu0  ;;  %v572_v11 = vadd.f32 %v571_v62, %v570_v3  ;;  %v747_v3 = vlaneseq }
 0x11d   : > { %v542_v2 = vmax.f32 %v1569_v58, 0.0 }
 0x11e   : > { %v504_v5 = vpop.f32.mrf.mxu0 }
 0x11f   : > { %v573_v6 = vsel %vm555_vm2, %v542_v2, 0.0  ;;  %v1587_v10 = vadd.f32 %v1506_v9, %v504_v5  ;;  %v581_v9 = vsel %vm555_vm2, %v546_v31, 0.0  ;;  %v1644_v5 = vshrl.u32 %v747_v3, 7 }
 0x120   : > { %v506_v13 = vpop.f32.mrf.mxu0  ;;  %v574_v21 = vadd.f32 %v573_v6, %v572_v11 }
 0x121   : > { %v543_v17 = vmax.f32 %v1587_v10, 0.0  ;;  %v749_v6 = vsub.s32 0, %v1644_v5 }
 0x123   : > { %v575_v63 = vsel %vm555_vm2, %v543_v17, 0.0 }
 0x124   : > { %v576_v30 = vadd.f32 %v575_v63, %v574_v21 }
 0x126   : > { %v578_v34 = vadd.f32 %v577_v4, %v576_v30 }
 0x128   : > { %v580_v39 = vadd.f32 %v579_v35, %v578_v34 }
 0x12a   : > { %v582_v14 = vadd.f32 %v581_v9, %v580_v39 }
 0x12c   : > { %v584_v43 = vadd.f32 %v583_v40, %v582_v14 }
 0x12e   : > { %v587_v44 = vadd.f32 %v586_v41, %v584_v43 }
 0x130   : > { %v588_v45 = vrot.slane %v587_v44, 4 }
 0x132   : > { %v589_v48 = vadd.f32 %v588_v45, %v587_v44 }
 0x134   : > { %v590_v49 = vrot.slane %v589_v48, 2 }
 0x136   : > { %v591_v50 = vadd.f32 %v590_v49, %v589_v48 }
 0x138   : > { %v592_v52 = vrot.slane %v591_v50, 1 }
 0x13a   : > { %v593_v53 = vadd.f32 %v592_v52, %v591_v50 }
 0x13c   : > { %1177 = vmatmul.mubr.msk.f32.vlgmr.msra.gmra.mxu1 %vm555_vm2, %v593_v53 }
 0x13d   : > { %1180 = vmatpush3.msk.msra.mxu1 %vm673_vm4, %v1627_v57  ;;  %1181 = vmatprep.mubr.msk.f32.mxu1 %vm1261_vm1, %v1260_v1 }
 0x13e   : > { %1184 = vmatprep.subr.mxu1 %v1260_v1 }
 0x1fc   : > { %v663_v60 = vpop.f32.mrf.mxu1 }
 0x1fd   : > { %v668_v61 = vmul.f32 0.00066666666, %v663_v60 }
 0x1fe   : > { %v1178_v62 = vpop.f32.mrf.mxu1 }
 0x1ff   : > { %1182 = vmatmul.mubr.msk.f32.vlgmr.msra.gmra.mxu1 %vm669_vm5, %v668_v61 }
 0x200   : > { %1185 = vmatpush3.msra.mxu1 %v1475_v54  ;;  %1190 = vmatprep.mubr.msk.f32.mxu1 %vm1261_vm1, %v1260_v1 }
 0x201   : > { %1186 = vmatprep.subr.mxu1 %v1260_v1 }
 0x202   : > { %1187 = vmatpush3.msra.mxu1 %v1482_v55 }
 0x203   : > { %1188 = vmatprep.subr.mxu1 %v1260_v1 }
 0x204   : > { %1189 = vmatpush3.msra.mxu1 %v1489_v56 }
 0x205   : > { %1193 = vmatprep.subr.mxu1 %v1260_v1 }
 0x2bf   : > { %v743_v11 = vpop.f32.mrf.mxu1 }
 0x2c0   : > { %v750_v54 = vrot.slane %v743_v11, %v749_v6 }
 0x2c1   : > { %v1183_v13 = vpop.f32.mrf.mxu1 }
 0x2c2   : > { %v1651_v21 = vsub.f32 %v533_v22, %v750_v54  ;;  %v1655_v55 = vsub.f32 %v534_v19, %v750_v54  ;;  %v1659_v56 = vsub.f32 %v535_v23, %v750_v54  ;;  %v1663_v63 = vsub.f32 %v536_v27, %v750_v54 }
 0x2c3   : > { %v1671_v22 = vsub.f32 %v537_v32, %v750_v54  ;;  %v1677_v16 = vsub.f32 %v538_v37, %v750_v54  ;;  %v1685_v24 = vsub.f32 %v539_v42, %v750_v54  ;;  %v1692_v37 = vsub.f32 %v540_v46, %v750_v54 }
 0x2c4   : > { %v767_v30 = vmul.f32 %v1651_v21, %v1651_v21  ;;  %v768_v15 = vmul.f32 %v1655_v55, %v1655_v55  ;;  %v769_v12 = vmul.f32 %v1659_v56, %v1659_v56  ;;  %v770_v19 = vmul.f32 %v1663_v63, %v1663_v63 }
 0x2c5   : > { %v771_v32 = vmul.f32 %v1671_v22, %v1671_v22  ;;  %v772_v34 = vmul.f32 %v1677_v16, %v1677_v16  ;;  %v1699_v33 = vsub.f32 %v541_v51, %v750_v54  ;;  %v773_v42 = vmul.f32 %v1685_v24, %v1685_v24 }
 0x2c6   : > { %v783_v20 = vsel %vm555_vm2, %v767_v30, 0.0  ;;  %v784_v23 = vsel %vm555_vm2, %v768_v15, 0.0  ;;  %v786_v4 = vsel %vm555_vm2, %v769_v12, 0.0  ;;  %v788_v35 = vsel %vm555_vm2, %v770_v19, 0.0 }
 0x2c7   : > { %v785_v27 = vadd.f32 %v784_v23, %v783_v20  ;;  %v790_v9 = vsel %vm555_vm2, %v771_v32, 0.0  ;;  %v1706_v38 = vsub.f32 %v542_v2, %v750_v54  ;;  %v774_v46 = vmul.f32 %v1692_v37, %v1692_v37 }
 0x2c8   : > { %v792_v40 = vsel %vm555_vm2, %v772_v34, 0.0  ;;  %v1713_v47 = vsub.f32 %v543_v17, %v750_v54  ;;  %v775_v51 = vmul.f32 %v1699_v33, %v1699_v33  ;;  %v794_v43 = vsel %vm555_vm2, %v773_v42, 0.0 }
 0x2c9   : > { %v787_v28 = vadd.f32 %v786_v4, %v785_v27  ;;  %v762_v58 = vsub.f32 %v544_v59, %v750_v54  ;;  %v776_v2 = vmul.f32 %v1706_v38, %v1706_v38  ;;  %v796_v45 = vsel %vm555_vm2, %v774_v46, 0.0 }
 0x2ca   : > { %v763_v10 = vsub.f32 %v545_v25, %v750_v54  ;;  %v777_v17 = vmul.f32 %v1713_v47, %v1713_v47  ;;  %v798_v49 = vsel %vm555_vm2, %v775_v51, 0.0  ;;  %v764_v52 = vsub.f32 %v546_v31, %v750_v54  ;;  %v1152_v51 = vld [vmem:[%s1812_s5] ss:$0 sm:$0xff] }
 0x2cb   : > { %v789_v39 = vadd.f32 %v788_v35, %v787_v28  ;;  %v778_v0 = vmul.f32 %v762_v58, %v762_v58  ;;  %v800_v59 = vsel %vm555_vm2, %v776_v2, 0.0  ;;  %v765_v60 = vsub.f32 %v547_v36, %v750_v54 }
 0x2cc   : > { %v779_v61 = vmul.f32 %v763_v10, %v763_v10  ;;  %v802_v7 = vsel %vm555_vm2, %v777_v17, 0.0  ;;  %v766_v62 = vsub.f32 %v548_v8, %v750_v54  ;;  %v780_v3 = vmul.f32 %v764_v52, %v764_v52 }
 0x2cd   : > { %v791_v14 = vadd.f32 %v790_v9, %v789_v39  ;;  %v804_v11 = vsel %vm555_vm2, %v778_v0, 0.0  ;;  %v781_v18 = vmul.f32 %v765_v60, %v765_v60 }
 0x2ce   : > { %v806_v31 = vsel %vm555_vm2, %v779_v61, 0.0  ;;  %v782_v15 = vmul.f32 %v766_v62, %v766_v62  ;;  %v808_v12 = vsel %vm555_vm2, %v780_v3, 0.0 }
 0x2cf   : > { %v793_v41 = vadd.f32 %v792_v40, %v791_v14  ;;  %v810_v36 = vsel %vm555_vm2, %v781_v18, 0.0 }
 0x2d0   : > { %v812_v20 = vsel %vm585_vm3, %v782_v15, 0.0 }
 0x2d1   : > { %v795_v44 = vadd.f32 %v794_v43, %v793_v41 }
 0x2d3   : > { %v797_v48 = vadd.f32 %v796_v45, %v795_v44 }
 0x2d5   : > { %v799_v50 = vadd.f32 %v798_v49, %v797_v48 }
 0x2d7   : > { %v801_v53 = vadd.f32 %v800_v59, %v799_v50 }
 0x2d9   : > { %v803_v25 = vadd.f32 %v802_v7, %v801_v53 }
 0x2db   : > { %v805_v13 = vadd.f32 %v804_v11, %v803_v25 }
 0x2dd   : > { %v807_v30 = vadd.f32 %v806_v31, %v805_v13 }
 0x2df   : > { %v809_v26 = vadd.f32 %v808_v12, %v807_v30 }
 0x2e1   : > { %v811_v19 = vadd.f32 %v810_v36, %v809_v26 }
 0x2e3   : > { %v813_v23 = vadd.f32 %v812_v20, %v811_v19 }
 0x2e5   : > { %v814_v29 = vrot.slane %v813_v23, 4 }
 0x2e7   : > { %v815_v8 = vadd.f32 %v814_v29, %v813_v23 }
 0x2e9   : > { %v816_v54 = vrot.slane %v815_v8, 2 }
 0x2eb   : > { %v817_v27 = vadd.f32 %v816_v54, %v815_v8 }
 0x2ed   : > { %v818_v32 = vrot.slane %v817_v27, 1 }
 0x2ef   : > { %v819_v4 = vadd.f32 %v818_v32, %v817_v27 }
 0x2f1   : > { %1191 = vmatmul.mubr.msk.f32.vlgmr.msra.gmra.mxu1 %vm555_vm2, %v819_v4 }
 0x2f2   : > { %1194 = vmatpush3.msk.msra.mxu1 %vm673_vm4, %v1627_v57  ;;  %1195 = vmatprep.mubr.msk.f32.mxu1 %vm1261_vm1, %v1260_v1 }
 0x3b1   : > { %v889_v28 = vpop.f32.mrf.mxu1 }
 0x3b2   : > { %v893_v34 = vmul.f32 0.00066666666, %v889_v28 }
 0x3b3   : > { %v1192_v35 = vpop.f32.mrf.mxu1 }
 0x3b4   : > { %v894_v39 = vadd.f32 1e-05, %v893_v34 }
 0x3b6   : > { %1250 = vrsqrt.f32 %v894_v39 }
 0x3c3   : > { %v1251_v42 = vpop.eup %1250 }
 0x3c4   : > { %1196 = vmatmul.mubr.msk.f32.vlgmr.msra.gmra.mxu1 %vm669_vm5, %v1251_v42 }
 0x484   : > { %v965_v9 = vpop.f32.mrf.mxu1 }
 0x485   : > { %v972_v14 = vrot.slane %v965_v9, %v749_v6 }
 0x486   : > { %v1197_v46 = vpop.f32.mrf.mxu1 }
 0x487   : > { %v973_v40 = vmul.f32 %v972_v14, %v1651_v21  ;;  %v974_v57 = vmul.f32 %v972_v14, %v1655_v55  ;;  %v975_v41 = vmul.f32 %v972_v14, %v1659_v56  ;;  %v976_v1 = vmul.f32 %v972_v14, %v1663_v63 }
 0x488   : > { %v977_v43 = vmul.f32 %v972_v14, %v1671_v22  ;;  %v978_v44 = vmul.f32 %v972_v14, %v1677_v16  ;;  %v979_v5 = vmul.f32 %v972_v14, %v1685_v24  ;;  %v980_v6 = vmul.f32 %v972_v14, %v1692_v37  ;;  %v1153_v24 = vld [vmem:[%s1813_s6] ss:$0 sm:$0xff] }
 0x489   : > { %v981_v21 = vmul.f32 %v972_v14, %v1699_v33  ;;  %v982_v55 = vmul.f32 %v972_v14, %v1706_v38  ;;  %v983_v56 = vmul.f32 %v972_v14, %v1713_v47  ;;  %v984_v2 = vmul.f32 %v972_v14, %v762_v58 }
 0x48a   : > { %v985_v63 = vmul.f32 %v972_v14, %v763_v10  ;;  %v986_v45 = vmul.f32 %v972_v14, %v764_v52  ;;  %v987_v48 = vmul.f32 %v972_v14, %v765_v60  ;;  %v988_v17 = vmul.f32 %v972_v14, %v766_v62 }
 0x48b   : > { %v995_v49 = vmul.f32 %v1152_v51, %v973_v40  ;;  %v996_v50 = vmul.f32 %v1152_v51, %v974_v57  ;;  %v997_v22 = vmul.f32 %v1152_v51, %v975_v41  ;;  %v998_v16 = vmul.f32 %v1152_v51, %v976_v1 }
 0x48c   : > { %v999_v37 = vmul.f32 %v1152_v51, %v977_v43  ;;  %v1000_v33 = vmul.f32 %v1152_v51, %v978_v44  ;;  %v1001_v0 = vmul.f32 %v1152_v51, %v979_v5  ;;  %v1002_v38 = vmul.f32 %v1152_v51, %v980_v6 }
 0x48d   : > { %v1003_v59 = vmul.f32 %v1152_v51, %v981_v21  ;;  %v1004_v47 = vmul.f32 %v1152_v51, %v982_v55  ;;  %v1005_v58 = vmul.f32 %v1152_v51, %v983_v56  ;;  %v1006_v10 = vmul.f32 %v1152_v51, %v984_v2 }
 0x48e   : > { %v1007_v52 = vmul.f32 %v1152_v51, %v985_v63  ;;  %v1008_v53 = vmul.f32 %v1152_v51, %v986_v45  ;;  %v1009_v60 = vmul.f32 %v1152_v51, %v987_v48  ;;  %v1010_v61 = vmul.f32 %v1152_v51, %v988_v17 }
 0x48f   : > { %v1017_v7 = vadd.f32 %v1153_v24, %v995_v49  ;;  %v1018_v25 = vadd.f32 %v1153_v24, %v996_v50  ;;  %v1019_v62 = vadd.f32 %v1153_v24, %v997_v22  ;;  %v1020_v3 = vadd.f32 %v1153_v24, %v998_v16 }
 0x490   : > { %v1021_v11 = vadd.f32 %v1153_v24, %v999_v37  ;;  %v1022_v13 = vadd.f32 %v1153_v24, %v1000_v33  ;;  %v1023_v18 = vadd.f32 %v1153_v24, %v1001_v0  ;;  %v1024_v31 = vadd.f32 %v1153_v24, %v1002_v38 }
 0x491   : > { %v1025_v30 = vadd.f32 %v1153_v24, %v1003_v59  ;;  %v1026_v15 = vadd.f32 %v1153_v24, %v1004_v47  ;;  %v1027_v12 = vadd.f32 %v1153_v24, %v1005_v58  ;;  %v1028_v26 = vadd.f32 %v1153_v24, %v1006_v10 }
 0x492   : > { %v1029_v36 = vadd.f32 %v1153_v24, %v1007_v52  ;;  %v1030_v19 = vadd.f32 %v1153_v24, %v1008_v53  ;;  %v1031_v20 = vadd.f32 %v1153_v24, %v1009_v60  ;;  %v1032_v23 = vadd.f32 %v1153_v24, %v1010_v61 }
 0x493   : > { %v1033_v29 = vmax.f32 %v1017_v7, 0.0  ;;  %v1034_v8 = vmax.f32 %v1018_v25, 0.0  ;;  %v1035_v54 = vmax.f32 %v1019_v62, 0.0  ;;  %v1036_v27 = vmax.f32 %v1020_v3, 0.0 }
 0x494   : > { %v1037_v32 = vmax.f32 %v1021_v11, 0.0  ;;  %v1038_v4 = vmax.f32 %v1022_v13, 0.0  ;;  %v1039_v28 = vmax.f32 %v1023_v18, 0.0  ;;  %v1040_v34 = vmax.f32 %v1024_v31, 0.0 }
 0x495   : > { %v1041_v35 = vmax.f32 %v1025_v30, 0.0  ;;  %v1042_v39 = vmax.f32 %v1026_v15, 0.0  ;;  %v1043_v42 = vmax.f32 %v1027_v12, 0.0  ;;  %v1044_v9 = vmax.f32 %v1028_v26, 0.0  ;;  %1049 = vst.msk [vmem:[%s1770_s27] sm:$0xff] %vm555_vm2, %v1033_v29  ;;  %1050 = vst.msk [vmem:[%s1770_s27 + $0x8] sm:$0xff] %vm555_vm2, %v1034_v8 }
 0x496   : > { %1051 = vst.msk [vmem:[%s1770_s27 + $0x10] sm:$0xff] %vm555_vm2, %v1035_v54  ;;  %1052 = vst.msk [vmem:[%s1770_s27 + $0x18] sm:$0xff] %vm555_vm2, %v1036_v27  ;;  %v1045_v14 = vmax.f32 %v1029_v36, 0.0  ;;  %v1046_v46 = vmax.f32 %v1030_v19, 0.0  ;;  %v1047_v40 = vmax.f32 %v1031_v20, 0.0  ;;  %v1048_v57 = vmax.f32 %v1032_v23, 0.0 }
 0x497   : > { %1053 = vst.msk [vmem:[%s1770_s27 + $0x20] sm:$0xff] %vm555_vm2, %v1037_v32  ;;  %1054 = vst.msk [vmem:[%s1770_s27 + $0x28] sm:$0xff] %vm555_vm2, %v1038_v4 }
 0x498   : > { %1055 = vst.msk [vmem:[%s1770_s27 + $0x30] sm:$0xff] %vm555_vm2, %v1039_v28  ;;  %1056 = vst.msk [vmem:[%s1770_s27 + $0x38] sm:$0xff] %vm555_vm2, %v1040_v34 }
 0x499   : > { %1057 = vst.msk [vmem:[%s1770_s27 + $0x40] sm:$0xff] %vm555_vm2, %v1041_v35  ;;  %1058 = vst.msk [vmem:[%s1770_s27 + $0x48] sm:$0xff] %vm555_vm2, %v1042_v39 }
 0x49a   : > { %1059 = vst.msk [vmem:[%s1770_s27 + $0x50] sm:$0xff] %vm555_vm2, %v1043_v42  ;;  %1060 = vst.msk [vmem:[%s1770_s27 + $0x58] sm:$0xff] %vm555_vm2, %v1044_v9 }
 0x49b   : > { %1061 = vst.msk [vmem:[%s1770_s27 + $0x60] sm:$0xff] %vm555_vm2, %v1045_v14  ;;  %1062 = vst.msk [vmem:[%s1770_s27 + $0x68] sm:$0xff] %vm555_vm2, %v1046_v46 }
 0x49c   : > { %1063 = vst.msk [vmem:[%s1770_s27 + $0x70] sm:$0xff] %vm555_vm2, %v1047_v40 }
 0x49d   : > { %1064 = vst.msk [vmem:[%s1770_s27 + $0x78] sm:$0x1f] %vm585_vm3, %v1048_v57 }
 0x49e PF: > { %s17_s24 = sadd.s32 1, %s1258_s24  }
 0x49f   : > { %p14_p4 = scmp.ge.s32.totalorder %s17_s24, 4  }
 0x4a1   :  { %16 = sbr.rel (!%p14_p4) target bundleno = 1 (0x1), region = 78 }

// kernel: a2s2k_forward.22
= control target key start
LH: loop header
LB: loop body
LE: loop exit
PB: predicated region body
PF: predicated region fallthrough
CT: control target
= control target key end

     0   :  { %s925_s18 = smov 0   ;;  %s1204_s0 = inlined_call_operand.vmem [shape: f32[2,125,24], index: 0, kind: input, shape index: {}]   ;;  %s1205_s1 = inlined_call_operand.vmem [shape: f32[24,2], index: 1, kind: input, shape index: {}]   ;;  %s1206_s2 = inlined_call_operand.vmem [shape: f32[2,24], index: 2, kind: input, shape index: {}]   ;;  %s1207_s3 = inlined_call_operand.vmem [shape: f32[1,24], index: 3, kind: input, shape index: {}]   ;;  %s1208_s4 = inlined_call_operand.vmem [shape: f32[1,24], index: 4, kind: input, shape index: {}]   ;;  %s1209_s5 = inlined_call_operand.vmem [shape: f32[2,125,24], index: 5, kind: output, shape index: {}]  }
   0x1 LB: > { %s812_s19 = sadd.s32 4294967295, %s891_s18   ;;  %p816_p0 = scmp.ge.s32.totalorder %s891_s18, 1  ;;  %s891_s18 = sphi %s925_s18, %s15_s18  }
   0x2   : > { %p187_p1 = scmp.lt.s32.totalorder %s891_s18, 3 }
   0x4   : > { %p188_p2 = pnand %p816_p0, %p187_p1 }
   0x5   : > { %p215_p3 = scmp.lt.s32.totalorder (!%p188_p2), %s812_s19, 1 }
   0x6   : > { %191 = sbr.rel (%p188_p2) target bundleno = 924 (0x39c), region = 40 }
   0xb   : > { %v936_v0 = vld [vmem:[%s1205_s1 + $0x10] sm:$0xff]  ;;  %v893_v1 = vmov 0.0   ;;  %v942_v2 = vld [vmem:[%s1205_s1 + $0x8] sm:$0xff]  ;;  %vm894_vm0 = vmmov 0   ;;  %s1211_s19 = smov (!%p215_p3, %s812_s19), 1  ;;  %v954_v3 = vld [vmem:[%s1205_s1] sm:$0xff]  ;;  %v439_v61 = vlaneseq }
   0xc   : > { %845 = vmatprep.subr.mxu0 %v893_v1  ;;  %851 = vmatprep.mubr.msk.f32.mxu0 %vm894_vm0, %v893_v1  ;;  %s831_s26 = sshll.u32 %s1211_s19, 7  ;;  %vm247_vm1 = vcmask 195584   ;;  %vm277_vm2 = vcmask 192512   ;;  %v244_v57 = vld [vmem:[%s1206_s2] sm:$0x3]  ;;  %vm365_vm3 = vcmask 1041408  }
   0xd   : > { %846 = vmatpush3.msra.mxu0 %v936_v0  ;;  %854 = vmatprep.subr.mxu1 %v893_v1  ;;  %s966_s29 = scalar_lea.vmem %s1204_s0, %s831_s26  ;;  %vm361_vm4 = vcmask 15360   ;;  %v1065_v62 = vshrl.u32 %v439_v61, 7  ;;  %s1167_s13 = scalar_lea.vmem %s1209_s5, %s831_s26 }
   0xe   : > { %847 = vmatprep.subr.mxu0 %v893_v1  ;;  %856 = vmatprep.mubr.msk.f32.mxu1 %vm894_vm0, %v893_v1  ;;  %v970_v4 = vld [vmem:[%s966_s29] sm:$0xff]  ;;  %v973_v5 = vld [vmem:[%s966_s29 + $0x8] sm:$0xff]  ;;  %v976_v6 = vld [vmem:[%s966_s29 + $0x10] sm:$0xff] }
   0xf   : > { %848 = vmatpush3.msra.mxu0 %v942_v2  ;;  %v979_v7 = vld [vmem:[%s966_s29 + $0x18] sm:$0xff]  ;;  %v248_v8 = vsel %vm247_vm1, %v970_v4, 0.0  ;;  %v249_v9 = vsel %vm247_vm1, %v973_v5, 0.0  ;;  %v251_v10 = vsel %vm247_vm1, %v976_v6, 0.0  ;;  %v989_v11 = vld [vmem:[%s966_s29 + $0x20] sm:$0xff]  ;;  %v994_v14 = vld [vmem:[%s966_s29 + $0x28] sm:$0xff]  ;;  %855 = vmatpush3.msk.msra.mxu1 %vm365_vm3, %v244_v57 }
  0x10   : > { %849 = vmatprep.subr.mxu0 %v893_v1  ;;  %v250_v12 = vadd.f32 %v249_v9, %v248_v8  ;;  %v253_v13 = vsel %vm247_vm1, %v979_v7, 0.0  ;;  %v255_v16 = vsel %vm247_vm1, %v989_v11, 0.0  ;;  %v999_v17 = vld [vmem:[%s966_s29 + $0x30] sm:$0xff]  ;;  %v257_v19 = vsel %vm247_vm1, %v994_v14, 0.0  ;;  %v1004_v20 = vld [vmem:[%s966_s29 + $0x38] sm:$0xff]  ;;  %v1009_v23 = vld [vmem:[%s966_s29 + $0x40] sm:$0xff]  ;;  %859 = vmatprep.subr.mxu1 %v893_v1 }
  0x11   : > { %850 = vmatpush3.msra.mxu0 %v954_v3  ;;  %v259_v22 = vsel %vm247_vm1, %v999_v17, 0.0  ;;  %v261_v25 = vsel %vm247_vm1, %v1004_v20, 0.0  ;;  %v1014_v26 = vld [vmem:[%s966_s29 + $0x48] sm:$0xff]  ;;  %v263_v28 = vsel %vm247_vm1, %v1009_v23, 0.0  ;;  %v1019_v29 = vld [vmem:[%s966_s29 + $0x50] sm:$0xff]  ;;  %v1024_v32 = vld [vmem:[%s966_s29 + $0x58] sm:$0xff] }
  0x12   : > { %868 = vmatprep.subr.mxu0 %v893_v1  ;;  %v252_v15 = vadd.f32 %v251_v10, %v250_v12  ;;  %v265_v31 = vsel %vm247_vm1, %v1014_v26, 0.0  ;;  %v267_v34 = vsel %vm247_vm1, %v1019_v29, 0.0  ;;  %v1029_v35 = vld [vmem:[%s966_s29 + $0x60] sm:$0xff]  ;;  %v269_v37 = vsel %vm247_vm1, %v1024_v32, 0.0  ;;  %v1034_v38 = vld [vmem:[%s966_s29 + $0x68] sm:$0xff]  ;;  %v1039_v41 = vld [vmem:[%s966_s29 + $0x70] sm:$0xff] }
  0x13   : > { %v271_v40 = vsel %vm247_vm1, %v1029_v35, 0.0  ;;  %v273_v43 = vsel %vm247_vm1, %v1034_v38, 0.0  ;;  %v1044_v44 = vld [vmem:[%s966_s29 + $0x78] sm:$0x1f]  ;;  %v275_v46 = vsel %vm247_vm1, %v1039_v41, 0.0  ;;  %v441_v63 = vsub.s32 0, %v1065_v62 }
  0x14   : > { %v254_v18 = vadd.f32 %v253_v13, %v252_v15  ;;  %v278_v48 = vsel %vm277_vm2, %v1044_v44, 0.0 }
  0x16   : > { %v256_v21 = vadd.f32 %v255_v16, %v254_v18 }
  0x18   : > { %v258_v24 = vadd.f32 %v257_v19, %v256_v21 }
  0x1a   : > { %v260_v27 = vadd.f32 %v259_v22, %v258_v24 }
  0x1c   : > { %v262_v30 = vadd.f32 %v261_v25, %v260_v27 }
  0x1e   : > { %v264_v33 = vadd.f32 %v263_v28, %v262_v30 }
  0x20   : > { %v266_v36 = vadd.f32 %v265_v31, %v264_v33 }
  0x22   : > { %v268_v39 = vadd.f32 %v267_v34, %v266_v36 }
  0x24   : > { %v270_v42 = vadd.f32 %v269_v37, %v268_v39 }
  0x26   : > { %v272_v45 = vadd.f32 %v271_v40, %v270_v42 }
  0x28   : > { %v274_v47 = vadd.f32 %v273_v43, %v272_v45 }
  0x2a   : > { %v276_v49 = vadd.f32 %v275_v46, %v274_v47 }
  0x2c   : > { %v279_v50 = vadd.f32 %v278_v48, %v276_v49 }
  0x2e   : > { %v280_v51 = vrot.slane %v279_v50, 4 }
  0x30   : > { %v281_v52 = vadd.f32 %v280_v51, %v279_v50 }
  0x32   : > { %v282_v53 = vrot.slane %v281_v52, 2 }
  0x34   : > { %v283_v54 = vadd.f32 %v282_v53, %v281_v52 }
  0x36   : > { %v284_v55 = vrot.slane %v283_v54, 1 }
  0x38   : > { %v285_v56 = vadd.f32 %v284_v55, %v283_v54 }
  0x3a   : > { %852 = vmatmul.mubr.msk.f32.vlgmr.msra.gmra.mxu0 %vm247_vm1, %v285_v56 }
  0x3b   : > { %870 = vmatprep.mubr.msk.f32.mxu0 %vm894_vm0, %v893_v1  ;;  %869 = vmatpush3.msk.msra.mxu0 %vm365_vm3, %v244_v57 }
  0xfa   : > { %v355_v58 = vpop.f32.mrf.mxu0 }
  0xfb   : > { %v360_v59 = vmul.f32 0.00066666666, %v355_v58 }
  0xfc   : > { %v853_v60 = vpop.f32.mrf.mxu0 }
  0xfd   : > { %857 = vmatmul.mubr.msk.f32.vlgmr.msra.gmra.mxu1 %vm361_vm4, %v360_v59 }
  0xfe   : > { %860 = vmatpush3.msra.mxu1 %v936_v0  ;;  %865 = vmatprep.mubr.msk.f32.mxu1 %vm894_vm0, %v893_v1 }
  0xff   : > { %861 = vmatprep.subr.mxu1 %v893_v1 }
 0x100   : > { %862 = vmatpush3.msra.mxu1 %v942_v2 }
 0x101   : > { %863 = vmatprep.subr.mxu1 %v893_v1 }
 0x102   : > { %864 = vmatpush3.msra.mxu1 %v954_v3 }
 0x1bd   : > { %v435_v8 = vpop.f32.mrf.mxu1 }
 0x1be   : > { %v442_v0 = vrot.slane %v435_v8, %v441_v63 }
 0x1bf   : > { %v858_v9 = vpop.f32.mrf.mxu1 }
 0x1c0   : > { %v1071_v10 = vsub.f32 %v970_v4, %v442_v0  ;;  %v1074_v12 = vsub.f32 %v973_v5, %v442_v0  ;;  %v1077_v1 = vsub.f32 %v976_v6, %v442_v0  ;;  %v1080_v2 = vsub.f32 %v979_v7, %v442_v0 }
 0x1c1   : > { %v1087_v15 = vsub.f32 %v989_v11, %v442_v0  ;;  %v1092_v5 = vsub.f32 %v994_v14, %v442_v0  ;;  %v1099_v19 = vsub.f32 %v999_v17, %v442_v0  ;;  %v1105_v14 = vsub.f32 %v1004_v20, %v442_v0 }
 0x1c2   : > { %v459_v3 = vmul.f32 %v1071_v10, %v1071_v10  ;;  %v460_v13 = vmul.f32 %v1074_v12, %v1074_v12  ;;  %v461_v4 = vmul.f32 %v1077_v1, %v1077_v1  ;;  %v462_v6 = vmul.f32 %v1080_v2, %v1080_v2 }
 0x1c3   : > { %v463_v11 = vmul.f32 %v1087_v15, %v1087_v15  ;;  %v464_v24 = vmul.f32 %v1092_v5, %v1092_v5  ;;  %v1111_v28 = vsub.f32 %v1009_v23, %v442_v0  ;;  %v465_v17 = vmul.f32 %v1099_v19, %v1099_v19 }
 0x1c4   : > { %v475_v7 = vsel %vm247_vm1, %v459_v3, 0.0  ;;  %v476_v16 = vsel %vm247_vm1, %v460_v13, 0.0  ;;  %v478_v21 = vsel %vm247_vm1, %v461_v4, 0.0  ;;  %v480_v25 = vsel %vm247_vm1, %v462_v6, 0.0 }
 0x1c5   : > { %v477_v18 = vadd.f32 %v476_v16, %v475_v7  ;;  %v482_v30 = vsel %vm247_vm1, %v463_v11, 0.0  ;;  %v1117_v33 = vsub.f32 %v1014_v26, %v442_v0  ;;  %v466_v20 = vmul.f32 %v1105_v14, %v1105_v14 }
 0x1c6   : > { %v484_v34 = vsel %vm247_vm1, %v464_v24, 0.0  ;;  %v453_v37 = vsub.f32 %v1019_v29, %v442_v0  ;;  %v467_v23 = vmul.f32 %v1111_v28, %v1111_v28  ;;  %v486_v39 = vsel %vm247_vm1, %v465_v17, 0.0 }
 0x1c7   : > { %v479_v22 = vadd.f32 %v478_v21, %v477_v18  ;;  %v454_v42 = vsub.f32 %v1024_v32, %v442_v0  ;;  %v468_v26 = vmul.f32 %v1117_v33, %v1117_v33  ;;  %v488_v43 = vsel %vm247_vm1, %v466_v20, 0.0 }
 0x1c8   : > { %v455_v46 = vsub.f32 %v1029_v35, %v442_v0  ;;  %v469_v47 = vmul.f32 %v453_v37, %v453_v37  ;;  %v490_v48 = vsel %vm247_vm1, %v467_v23, 0.0  ;;  %v456_v49 = vsub.f32 %v1034_v38, %v442_v0  ;;  %v827_v23 = vld [vmem:[%s1207_s3] ss:$0 sm:$0xff] }
 0x1c9   : > { %v481_v27 = vadd.f32 %v480_v25, %v479_v22  ;;  %v470_v50 = vmul.f32 %v454_v42, %v454_v42  ;;  %v492_v51 = vsel %vm247_vm1, %v468_v26, 0.0  ;;  %v457_v32 = vsub.f32 %v1039_v41, %v442_v0 }
 0x1ca   : > { %v471_v53 = vmul.f32 %v455_v46, %v455_v46  ;;  %v494_v54 = vsel %vm247_vm1, %v469_v47, 0.0  ;;  %v458_v56 = vsub.f32 %v1044_v44, %v442_v0  ;;  %v472_v57 = vmul.f32 %v456_v49, %v456_v49 }
 0x1cb   : > { %v483_v31 = vadd.f32 %v482_v30, %v481_v27  ;;  %v496_v35 = vsel %vm247_vm1, %v470_v50, 0.0  ;;  %v473_v59 = vmul.f32 %v457_v32, %v457_v32 }
 0x1cc   : > { %v498_v60 = vsel %vm247_vm1, %v471_v53, 0.0  ;;  %v474_v61 = vmul.f32 %v458_v56, %v458_v56  ;;  %v500_v8 = vsel %vm247_vm1, %v472_v57, 0.0 }
 0x1cd   : > { %v485_v36 = vadd.f32 %v484_v34, %v483_v31  ;;  %v502_v41 = vsel %vm247_vm1, %v473_v59, 0.0 }
 0x1ce   : > { %v504_v13 = vsel %vm277_vm2, %v474_v61, 0.0 }
 0x1cf   : > { %v487_v40 = vadd.f32 %v486_v39, %v485_v36 }
 0x1d1   : > { %v489_v45 = vadd.f32 %v488_v43, %v487_v40 }
 0x1d3   : > { %v491_v29 = vadd.f32 %v490_v48, %v489_v45 }
 0x1d5   : > { %v493_v52 = vadd.f32 %v492_v51, %v491_v29 }
 0x1d7   : > { %v495_v55 = vadd.f32 %v494_v54, %v493_v52 }
 0x1d9   : > { %v497_v58 = vadd.f32 %v496_v35, %v495_v55 }
 0x1db   : > { %v499_v38 = vadd.f32 %v498_v60, %v497_v58 }
 0x1dd   : > { %v501_v9 = vadd.f32 %v500_v8, %v499_v38 }
 0x1df   : > { %v503_v3 = vadd.f32 %v502_v41, %v501_v9 }
 0x1e1   : > { %v505_v4 = vadd.f32 %v504_v13, %v503_v3 }
 0x1e3   : > { %v506_v6 = vrot.slane %v505_v4, 4 }
 0x1e5   : > { %v507_v44 = vadd.f32 %v506_v6, %v505_v4 }
 0x1e7   : > { %v508_v0 = vrot.slane %v507_v44, 2 }
 0x1e9   : > { %v509_v7 = vadd.f32 %v508_v0, %v507_v44 }
 0x1eb   : > { %v510_v16 = vrot.slane %v509_v7, 1 }
 0x1ed   : > { %v511_v18 = vadd.f32 %v510_v16, %v509_v7 }
 0x1ef   : > { %866 = vmatmul.mubr.msk.f32.vlgmr.msra.gmra.mxu1 %vm247_vm1, %v511_v18 }
 0x2af   : > { %v581_v11 = vpop.f32.mrf.mxu1 }
 0x2b0   : > { %v585_v21 = vmul.f32 0.00066666666, %v581_v11 }
 0x2b1   : > { %v867_v22 = vpop.f32.mrf.mxu1 }
 0x2b2   : > { %v586_v24 = vadd.f32 1e-05, %v585_v21 }
 0x2b4   : > { %883 = vrsqrt.f32 %v586_v24 }
 0x2c1   : > { %v884_v25 = vpop.eup %883 }
 0x2c2   : > { %871 = vmatmul.mubr.msk.f32.vlgmr.msra.gmra.mxu0 %vm361_vm4, %v884_v25 }
 0x382   : > { %v657_v27 = vpop.f32.mrf.mxu0 }
 0x383   : > { %v664_v17 = vrot.slane %v657_v27, %v441_v63 }
 0x384   : > { %v872_v30 = vpop.f32.mrf.mxu0 }
 0x385   : > { %v665_v31 = vmul.f32 %v664_v17, %v1071_v10  ;;  %v666_v20 = vmul.f32 %v664_v17, %v1074_v12  ;;  %v667_v34 = vmul.f32 %v664_v17, %v1077_v1  ;;  %v668_v36 = vmul.f32 %v664_v17, %v1080_v2 }
 0x386   : > { %v669_v39 = vmul.f32 %v664_v17, %v1087_v15  ;;  %v670_v40 = vmul.f32 %v664_v17, %v1092_v5  ;;  %v671_v62 = vmul.f32 %v664_v17, %v1099_v19  ;;  %v672_v63 = vmul.f32 %v664_v17, %v1105_v14  ;;  %v828_v5 = vld [vmem:[%s1208_s4] ss:$0 sm:$0xff] }
 0x387   : > { %v673_v10 = vmul.f32 %v664_v17, %v1111_v28  ;;  %v674_v12 = vmul.f32 %v664_v17, %v1117_v33  ;;  %v675_v26 = vmul.f32 %v664_v17, %v453_v37  ;;  %v676_v1 = vmul.f32 %v664_v17, %v454_v42 }
 0x388   : > { %v677_v43 = vmul.f32 %v664_v17, %v455_v46  ;;  %v678_v2 = vmul.f32 %v664_v17, %v456_v49  ;;  %v679_v45 = vmul.f32 %v664_v17, %v457_v32  ;;  %v680_v47 = vmul.f32 %v664_v17, %v458_v56 }
 0x389   : > { %v687_v48 = vmul.f32 %v827_v23, %v665_v31  ;;  %v688_v29 = vmul.f32 %v827_v23, %v666_v20  ;;  %v689_v50 = vmul.f32 %v827_v23, %v667_v34  ;;  %v690_v15 = vmul.f32 %v827_v23, %v668_v36 }
 0x38a   : > { %v691_v19 = vmul.f32 %v827_v23, %v669_v39  ;;  %v692_v14 = vmul.f32 %v827_v23, %v670_v40  ;;  %v693_v51 = vmul.f32 %v827_v23, %v671_v62  ;;  %v694_v28 = vmul.f32 %v827_v23, %v672_v63 }
 0x38b   : > { %v695_v52 = vmul.f32 %v827_v23, %v673_v10  ;;  %v696_v33 = vmul.f32 %v827_v23, %v674_v12  ;;  %v697_v37 = vmul.f32 %v827_v23, %v675_v26  ;;  %v698_v42 = vmul.f32 %v827_v23, %v676_v1 }
 0x38c   : > { %v699_v46 = vmul.f32 %v827_v23, %v677_v43  ;;  %v700_v49 = vmul.f32 %v827_v23, %v678_v2  ;;  %v701_v32 = vmul.f32 %v827_v23, %v679_v45  ;;  %v702_v53 = vmul.f32 %v827_v23, %v680_v47 }
 0x38d   : > { %v709_v54 = vadd.f32 %v828_v5, %v687_v48  ;;  %v710_v55 = vadd.f32 %v828_v5, %v688_v29  ;;  %v711_v56 = vadd.f32 %v828_v5, %v689_v50  ;;  %v712_v57 = vadd.f32 %v828_v5, %v690_v15 }
 0x38e   : > { %v713_v35 = vadd.f32 %v828_v5, %v691_v19  ;;  %v714_v58 = vadd.f32 %v828_v5, %v692_v14  ;;  %v715_v59 = vadd.f32 %v828_v5, %v693_v51  ;;  %v716_v60 = vadd.f32 %v828_v5, %v694_v28 }
 0x38f   : > { %v717_v38 = vadd.f32 %v828_v5, %v695_v52  ;;  %v718_v61 = vadd.f32 %v828_v5, %v696_v33  ;;  %v719_v8 = vadd.f32 %v828_v5, %v697_v37  ;;  %v720_v9 = vadd.f32 %v828_v5, %v698_v42 }
 0x390   : > { %v721_v41 = vadd.f32 %v828_v5, %v699_v46  ;;  %v722_v3 = vadd.f32 %v828_v5, %v700_v49  ;;  %v723_v13 = vadd.f32 %v828_v5, %v701_v32  ;;  %v724_v4 = vadd.f32 %v828_v5, %v702_v53 }
 0x391   : > { %v725_v6 = vmax.f32 %v709_v54, 0.0  ;;  %v726_v44 = vmax.f32 %v710_v55, 0.0  ;;  %v727_v0 = vmax.f32 %v711_v56, 0.0  ;;  %v728_v7 = vmax.f32 %v712_v57, 0.0 }
 0x392   : > { %v729_v16 = vmax.f32 %v713_v35, 0.0  ;;  %v730_v18 = vmax.f32 %v714_v58, 0.0  ;;  %v731_v11 = vmax.f32 %v715_v59, 0.0  ;;  %v732_v21 = vmax.f32 %v716_v60, 0.0 }
 0x393   : > { %v733_v22 = vmax.f32 %v717_v38, 0.0  ;;  %v734_v24 = vmax.f32 %v718_v61, 0.0  ;;  %v735_v25 = vmax.f32 %v719_v8, 0.0  ;;  %v736_v27 = vmax.f32 %v720_v9, 0.0  ;;  %741 = vst.msk [vmem:[%s1167_s13] sm:$0xff] %vm247_vm1, %v725_v6  ;;  %742 = vst.msk [vmem:[%s1167_s13 + $0x8] sm:$0xff] %vm247_vm1, %v726_v44 }
 0x394   : > { %743 = vst.msk [vmem:[%s1167_s13 + $0x10] sm:$0xff] %vm247_vm1, %v727_v0  ;;  %744 = vst.msk [vmem:[%s1167_s13 + $0x18] sm:$0xff] %vm247_vm1, %v728_v7  ;;  %v737_v17 = vmax.f32 %v721_v41, 0.0  ;;  %v738_v30 = vmax.f32 %v722_v3, 0.0  ;;  %v739_v31 = vmax.f32 %v723_v13, 0.0  ;;  %v740_v20 = vmax.f32 %v724_v4, 0.0 }
 0x395   : > { %745 = vst.msk [vmem:[%s1167_s13 + $0x20] sm:$0xff] %vm247_vm1, %v729_v16  ;;  %746 = vst.msk [vmem:[%s1167_s13 + $0x28] sm:$0xff] %vm247_vm1, %v730_v18 }
 0x396   : > { %747 = vst.msk [vmem:[%s1167_s13 + $0x30] sm:$0xff] %vm247_vm1, %v731_v11  ;;  %748 = vst.msk [vmem:[%s1167_s13 + $0x38] sm:$0xff] %vm247_vm1, %v732_v21 }
 0x397   : > { %749 = vst.msk [vmem:[%s1167_s13 + $0x40] sm:$0xff] %vm247_vm1, %v733_v22  ;;  %750 = vst.msk [vmem:[%s1167_s13 + $0x48] sm:$0xff] %vm247_vm1, %v734_v24 }
 0x398   : > { %751 = vst.msk [vmem:[%s1167_s13 + $0x50] sm:$0xff] %vm247_vm1, %v735_v25  ;;  %752 = vst.msk [vmem:[%s1167_s13 + $0x58] sm:$0xff] %vm247_vm1, %v736_v27 }
 0x399   : > { %753 = vst.msk [vmem:[%s1167_s13 + $0x60] sm:$0xff] %vm247_vm1, %v737_v17  ;;  %754 = vst.msk [vmem:[%s1167_s13 + $0x68] sm:$0xff] %vm247_vm1, %v738_v30 }
 0x39a   : > { %755 = vst.msk [vmem:[%s1167_s13 + $0x70] sm:$0xff] %vm247_vm1, %v739_v31 }
 0x39b   : > { %756 = vst.msk [vmem:[%s1167_s13 + $0x78] sm:$0x1f] %vm277_vm2, %v740_v20 }
 0x39c PF: > { %s15_s18 = sadd.s32 1, %s891_s18  }
 0x39d   : > { %p12_p4 = scmp.ge.s32.totalorder %s15_s18, 4  }
 0x39f   :  { %14 = sbr.rel (!%p12_p4) target bundleno = 1 (0x1), region = 70 }

// kernel: a2s2k_forward.21
= control target key start
LH: loop header
LB: loop body
LE: loop exit
PB: predicated region body
PF: predicated region fallthrough
CT: control target
= control target key end

     0   :  { %s1561_s30 = smov 0   ;;  %s2139_s0 = inlined_call_operand.vmem [shape: f32[2,125,168], index: 0, kind: input, shape index: {}]   ;;  %s2140_s1 = inlined_call_operand.vmem [shape: f32[168,24], index: 1, kind: input, shape index: {}]   ;;  %s2141_s2 = inlined_call_operand.vmem [shape: f32[1,24], index: 2, kind: input, shape index: {}]   ;;  %s2142_s3 = inlined_call_operand.vmem [shape: f32[24,2], index: 3, kind: input, shape index: {}]   ;;  %s2143_s4 = inlined_call_operand.vmem [shape: f32[2,24], index: 4, kind: input, shape index: {}]   ;;  %s2144_s5 = inlined_call_operand.vmem [shape: f32[1,24], index: 5, kind: input, shape index: {}]   ;;  %s2145_s6 = inlined_call_operand.vmem [shape: f32[1,24], index: 6, kind: input, shape index: {}]   ;;  %s2146_s7 = inlined_call_operand.vmem [shape: f32[24,24], index: 7, kind: input, shape index: {}]   ;;  %s2147_s8 = inlined_call_operand.vmem [shape: f32[2,125,24], index: 8, kind: input, shape index: {}]   ;;  %s2148_s9 = inlined_call_operand.vmem [shape: f32[2,125,24], index: 9, kind: output, shape index: {}]  }
   0x1 LB: > { %s1347_s10 = sadd.s32 4294967295, %s1507_s30   ;;  %p1351_p0 = scmp.ge.s32.totalorder %s1507_s30, 1  ;;  %s1507_s30 = sphi %s1561_s30, %s19_s30  }
   0x2   : > { %p297_p1 = scmp.lt.s32.totalorder %s1507_s30, 3 }
   0x4   : > { %p298_p2 = pnand %p1351_p0, %p297_p1 }
   0x5   : > { %p338_p3 = scmp.lt.s32.totalorder (!%p298_p2), %s1347_s10, 1 }
   0x6   : > { %301 = sbr.rel (%p298_p2) target bundleno = 1450 (0x5aa), region = 56 }
   0xb   : > { %v400_v0 = vld [vmem:[%s2140_s1 + $0x78] sm:$0xff]  ;;  %v1509_v1 = vmov 0.0   ;;  %v399_v2 = vld [vmem:[%s2140_s1 + $0x70] sm:$0xff]  ;;  %s2150_s10 = smov (!%p338_p3, %s1347_s10), 1  ;;  %v398_v3 = vld [vmem:[%s2140_s1 + $0x68] sm:$0xff]  ;;  %vm413_vm0 = vcmask 326656  }
   0xc   : > { %462 = vmatprep.subr.mxu0 %v1509_v1  ;;  %1443 = vmatprep.subr.mxu1 %v1509_v1  ;;  %s1387_s17 = sshll.u32 %s2150_s10, 8  ;;  %v397_v4 = vld [vmem:[%s2140_s1 + $0x60] sm:$0xff]  ;;  %v396_v5 = vld [vmem:[%s2140_s1 + $0x58] sm:$0xff]  ;;  %v395_v7 = vld [vmem:[%s2140_s1 + $0x50] sm:$0xff]  ;;  %vm1510_vm1 = vmmov 0   ;;  %vm613_vm2 = vcmask 195584  }
   0xd   : > { %463 = vmatpush1.msra.mxu0 %v400_v0  ;;  %1464 = vmatpush1.msra.mxu1 %v400_v0  ;;  %s1593_s22 = scalar_lea.vmem %s2139_s0, %s1387_s17  ;;  %v394_v8 = vld [vmem:[%s2140_s1 + $0x48] sm:$0xff]  ;;  %v393_v9 = vld [vmem:[%s2140_s1 + $0x40] sm:$0xff]  ;;  %v392_v10 = vld [vmem:[%s2140_s1 + $0x38] sm:$0xff]  ;;  %vm643_vm3 = vcmask 192512   ;;  %vm731_vm4 = vcmask 1041408   ;;  %vm727_vm5 = vcmask 15360  }
   0xe   : > { %464 = vmatprep.subr.mxu0 %v1509_v1  ;;  %1444 = vmatprep.subr.mxu1 %v1509_v1  ;;  %v354_v6 = vld [vmem:[%s1593_s22 + $0x8] sm:$0xff]  ;;  %v391_v11 = vld [vmem:[%s2140_s1 + $0x30] sm:$0xff]  ;;  %v389_v13 = vld [vmem:[%s2140_s1 + $0x20] sm:$0xff]  ;;  %s1388_s21 = sshll.u32 %s2150_s10, 7 }
   0xf   : > { %465 = vmatpush1.msra.mxu0 %v399_v2  ;;  %1465 = vmatpush1.msra.mxu1 %v399_v2  ;;  %v390_v12 = vld [vmem:[%s2140_s1 + $0x28] sm:$0xff]  ;;  %v388_v14 = vld [vmem:[%s2140_s1 + $0x18] sm:$0xff]  ;;  %v387_v15 = vld [vmem:[%s2140_s1 + $0x10] sm:$0xff]  ;;  %s2096_s26 = scalar_lea.vmem %s2148_s9, %s1388_s21 }
  0x10   : > { %466 = vmatprep.subr.mxu0 %v1509_v1  ;;  %1445 = vmatprep.subr.mxu1 %v1509_v1  ;;  %v386_v16 = vld [vmem:[%s2140_s1 + $0x8] sm:$0xff]  ;;  %v385_v17 = vld [vmem:[%s2140_s1] sm:$0xff]  ;;  %v404_v19 = vld [vmem:[%s2140_s1 + $0x98] sm:$0xff] }
  0x11   : > { %467 = vmatpush1.msra.mxu0 %v398_v3  ;;  %1466 = vmatpush1.msra.mxu1 %v398_v3  ;;  %v405_v18 = vld [vmem:[%s2140_s1 + $0xa0] sm:$0xff]  ;;  %v403_v20 = vld [vmem:[%s2140_s1 + $0x90] sm:$0xff]  ;;  %v402_v21 = vld [vmem:[%s2140_s1 + $0x88] sm:$0xff] }
  0x12   : > { %468 = vmatprep.subr.mxu0 %v1509_v1  ;;  %1446 = vmatprep.subr.mxu1 %v1509_v1  ;;  %v401_v22 = vld [vmem:[%s2140_s1 + $0x80] sm:$0xff]  ;;  %v356_v24 = vld [vmem:[%s1593_s22 + $0x18] sm:$0xff]  ;;  %v375_v26 = vld [vmem:[%s1593_s22 + $0xb0] sm:$0xff] }
  0x13   : > { %469 = vmatpush1.msra.mxu0 %v397_v4  ;;  %1467 = vmatpush1.msra.mxu1 %v397_v4  ;;  %v353_v23 = vld [vmem:[%s1593_s22] sm:$0xff]  ;;  %v376_v25 = vld [vmem:[%s1593_s22 + $0xb8] sm:$0xff]  ;;  %v378_v27 = vld [vmem:[%s1593_s22 + $0xc8] sm:$0xff] }
  0x14   : > { %470 = vmatprep.subr.mxu0 %v1509_v1  ;;  %1447 = vmatprep.subr.mxu1 %v1509_v1  ;;  %v355_v28 = vld [vmem:[%s1593_s22 + $0x10] sm:$0xff]  ;;  %v358_v29 = vld [vmem:[%s1593_s22 + $0x28] sm:$0xff]  ;;  %v377_v30 = vld [vmem:[%s1593_s22 + $0xc0] sm:$0xff] }
  0x15   : > { %471 = vmatpush1.msra.mxu0 %v396_v5  ;;  %1468 = vmatpush1.msra.mxu1 %v396_v5  ;;  %v380_v31 = vld [vmem:[%s1593_s22 + $0xd8] sm:$0xff]  ;;  %v357_v32 = vld [vmem:[%s1593_s22 + $0x20] sm:$0xff]  ;;  %v379_v34 = vld [vmem:[%s1593_s22 + $0xd0] sm:$0xff] }
  0x16   : > { %472 = vmatprep.subr.mxu0 %v1509_v1  ;;  %1359 = vmatprep.mubr.msk.f32.mxu0 %vm413_vm0, %v354_v6  ;;  %v360_v33 = vld [vmem:[%s1593_s22 + $0x38] sm:$0xff]  ;;  %v382_v35 = vld [vmem:[%s1593_s22 + $0xe8] sm:$0xff]  ;;  %v359_v36 = vld [vmem:[%s1593_s22 + $0x30] sm:$0xff] }
  0x17   : > { %473 = vmatpush1.msra.mxu0 %v395_v7  ;;  %1448 = vmatprep.subr.mxu1 %v1509_v1  ;;  %v362_v37 = vld [vmem:[%s1593_s22 + $0x48] sm:$0xff]  ;;  %v381_v38 = vld [vmem:[%s1593_s22 + $0xe0] sm:$0xff]  ;;  %v384_v39 = vld [vmem:[%s1593_s22 + $0xf8] sm:$0x1f] }
  0x18   : > { %474 = vmatprep.subr.mxu0 %v1509_v1  ;;  %1469 = vmatpush1.msra.mxu1 %v395_v7  ;;  %v361_v40 = vld [vmem:[%s1593_s22 + $0x40] sm:$0xff]  ;;  %v364_v41 = vld [vmem:[%s1593_s22 + $0x58] sm:$0xff]  ;;  %v383_v42 = vld [vmem:[%s1593_s22 + $0xf0] sm:$0x1f] }
  0x19   : > { %475 = vmatpush1.msra.mxu0 %v394_v8  ;;  %1449 = vmatprep.subr.mxu1 %v1509_v1  ;;  %v363_v43 = vld [vmem:[%s1593_s22 + $0x50] sm:$0xff]  ;;  %v366_v44 = vld [vmem:[%s1593_s22 + $0x68] sm:$0xff]  ;;  %v365_v45 = vld [vmem:[%s1593_s22 + $0x60] sm:$0xff] }
  0x1a   : > { %476 = vmatprep.subr.mxu0 %v1509_v1  ;;  %1470 = vmatpush1.msra.mxu1 %v394_v8  ;;  %v368_v46 = vld [vmem:[%s1593_s22 + $0x78] sm:$0xff]  ;;  %v367_v47 = vld [vmem:[%s1593_s22 + $0x70] sm:$0xff]  ;;  %v370_v48 = vld [vmem:[%s1593_s22 + $0x88] sm:$0xff] }
  0x1b   : > { %477 = vmatpush1.msra.mxu0 %v393_v9  ;;  %1450 = vmatprep.subr.mxu1 %v1509_v1  ;;  %v369_v49 = vld [vmem:[%s1593_s22 + $0x80] sm:$0xff]  ;;  %v372_v50 = vld [vmem:[%s1593_s22 + $0x98] sm:$0xff]  ;;  %v371_v51 = vld [vmem:[%s1593_s22 + $0x90] sm:$0xff] }
  0x1c   : > { %478 = vmatprep.subr.mxu0 %v1509_v1  ;;  %1471 = vmatpush1.msra.mxu1 %v393_v9  ;;  %v374_v52 = vld [vmem:[%s1593_s22 + $0xa8] sm:$0xff]  ;;  %v373_v53 = vld [vmem:[%s1593_s22 + $0xa0] sm:$0xff]  ;;  %v1734_v54 = vld [vmem:[%s2142_s3 + $0x10] sm:$0xff]  ;;  %s2070_s22 = scalar_lea.vmem %s2147_s8, %s1388_s21 }
  0x1d   : > { %479 = vmatpush1.msra.mxu0 %v392_v10  ;;  %1451 = vmatprep.subr.mxu1 %v1509_v1  ;;  %v1741_v55 = vld [vmem:[%s2142_s3 + $0x8] sm:$0xff]  ;;  %v1748_v56 = vld [vmem:[%s2142_s3] sm:$0xff] }
  0x1e   : > { %480 = vmatprep.subr.mxu0 %v1509_v1  ;;  %1472 = vmatpush1.msra.mxu1 %v392_v10 }
  0x1f   : > { %481 = vmatpush1.msra.mxu0 %v391_v11  ;;  %1452 = vmatprep.subr.mxu1 %v1509_v1 }
  0x20   : > { %482 = vmatprep.subr.mxu0 %v1509_v1  ;;  %1473 = vmatpush1.msra.mxu1 %v391_v11  ;;  %v1358_v11 = vld [vmem:[%s2141_s2] ss:$0 sm:$0xff] }
  0x21   : > { %483 = vmatpush1.msra.mxu0 %v390_v12  ;;  %1453 = vmatprep.subr.mxu1 %v1509_v1 }
  0x22   : > { %484 = vmatprep.subr.mxu0 %v1509_v1  ;;  %1474 = vmatpush1.msra.mxu1 %v390_v12 }
  0x23   : > { %485 = vmatpush1.msra.mxu0 %v389_v13  ;;  %1454 = vmatprep.subr.mxu1 %v1509_v1 }
  0x24   : > { %486 = vmatprep.subr.mxu0 %v1509_v1  ;;  %1475 = vmatpush1.msra.mxu1 %v389_v13 }
  0x25   : > { %487 = vmatpush1.msra.mxu0 %v388_v14  ;;  %1455 = vmatprep.subr.mxu1 %v1509_v1 }
  0x26   : > { %488 = vmatprep.subr.mxu0 %v1509_v1  ;;  %1476 = vmatpush1.msra.mxu1 %v388_v14 }
  0x27   : > { %489 = vmatpush1.msra.mxu0 %v387_v15  ;;  %1456 = vmatprep.subr.mxu1 %v1509_v1 }
  0x28   : > { %490 = vmatprep.subr.mxu0 %v1509_v1  ;;  %1477 = vmatpush1.msra.mxu1 %v387_v15 }
  0x29   : > { %491 = vmatpush1.msra.mxu0 %v386_v16  ;;  %1457 = vmatprep.subr.mxu1 %v1509_v1 }
  0x2a   : > { %492 = vmatprep.subr.mxu0 %v1509_v1  ;;  %1478 = vmatpush1.msra.mxu1 %v386_v16 }
  0x2b   : > { %493 = vmatpush1.msra.mxu0 %v385_v17  ;;  %1458 = vmatprep.subr.mxu1 %v1509_v1 }
  0x2c   : > { %516 = vmatprep.subr.mxu0 %v1509_v1  ;;  %1479 = vmatpush1.msra.mxu1 %v385_v17 }
  0x2d   : > { %517 = vmatpush2.msra.mxu0 %v405_v18  ;;  %1459 = vmatprep.subr.mxu1 %v1509_v1 }
  0x2e   : > { %518 = vmatprep.subr.mxu0 %v1509_v1  ;;  %1480 = vmatpush2.msra.mxu1 %v405_v18 }
  0x2f   : > { %519 = vmatpush2.msra.mxu0 %v404_v19  ;;  %1460 = vmatprep.subr.mxu1 %v1509_v1 }
  0x30   : > { %520 = vmatprep.subr.mxu0 %v1509_v1  ;;  %1481 = vmatpush2.msra.mxu1 %v404_v19 }
  0x31   : > { %521 = vmatpush2.msra.mxu0 %v403_v20  ;;  %1461 = vmatprep.subr.mxu1 %v1509_v1 }
  0x32   : > { %522 = vmatprep.subr.mxu0 %v1509_v1  ;;  %1482 = vmatpush2.msra.mxu1 %v403_v20 }
  0x33   : > { %523 = vmatpush2.msra.mxu0 %v402_v21  ;;  %1462 = vmatprep.subr.mxu1 %v1509_v1 }
  0x34   : > { %524 = vmatprep.subr.mxu0 %v1509_v1  ;;  %1483 = vmatpush2.msra.mxu1 %v402_v21 }
  0x35   : > { %525 = vmatpush2.msra.mxu0 %v401_v22  ;;  %1463 = vmatprep.subr.mxu1 %v1509_v1 }
  0x36   : > { %527 = vmatmul.mubr.f32.vlgmr.msra.gmra.mxu0 %v353_v23  ;;  %1484 = vmatpush2.msra.mxu1 %v401_v22 }
  0x37   : > { %1360 = vmatprep.mubr.msk.f32.mxu0 %vm413_vm0, %v356_v24  ;;  %1370 = vmatprep.mubr.msk.f32.mxu1 %vm413_vm0, %v376_v25 }
  0x38   : > { %582 = vmatmul.mubr.f32.vlgmr.msra.gmra.mxu1 %v375_v26  ;;  %1406 = vmatprep.subr.mxu1 %v1509_v1 }
  0x39   : > { %1371 = vmatprep.mubr.msk.f32.mxu1 %vm413_vm0, %v378_v27  ;;  %1407 = vmatpush3.msra.mxu1 %v1734_v54 }
  0x3a   : > { %532 = vmatmul.mubr.f32.gmra.mxu0 %v355_v28  ;;  %1408 = vmatprep.subr.mxu1 %v1509_v1 }
  0x3b   : > { %1361 = vmatprep.mubr.msk.f32.mxu0 %vm413_vm0, %v358_v29  ;;  %1409 = vmatpush3.msra.mxu1 %v1741_v55 }
  0x3c   : > { %587 = vmatmul.mubr.f32.gmra.mxu1 %v377_v30  ;;  %1410 = vmatprep.subr.mxu1 %v1509_v1 }
  0x3d   : > { %1372 = vmatprep.mubr.msk.f32.mxu1 %vm413_vm0, %v380_v31  ;;  %1411 = vmatpush3.msra.mxu1 %v1748_v56 }
  0x3e   : > { %537 = vmatmul.mubr.f32.gmra.mxu0 %v357_v32  ;;  %1415 = vmatprep.subr.mxu1 %v1509_v1 }
  0x3f   : > { %1362 = vmatprep.mubr.msk.f32.mxu0 %vm413_vm0, %v360_v33 }
  0x40   : > { %592 = vmatmul.mubr.f32.gmra.mxu1 %v379_v34 }
  0x41   : > { %1373 = vmatprep.mubr.msk.f32.mxu1 %vm413_vm0, %v382_v35 }
  0x42   : > { %542 = vmatmul.mubr.f32.gmra.mxu0 %v359_v36 }
  0x43   : > { %1363 = vmatprep.mubr.msk.f32.mxu0 %vm413_vm0, %v362_v37 }
  0x44   : > { %597 = vmatmul.mubr.f32.gmra.mxu1 %v381_v38 }
  0x45   : > { %1374 = vmatprep.mubr.msk.f32.mxu1 %vm413_vm0, %v384_v39 }
  0x46   : > { %547 = vmatmul.mubr.f32.gmra.mxu0 %v361_v40 }
  0x47   : > { %1364 = vmatprep.mubr.msk.f32.mxu0 %vm413_vm0, %v364_v41 }
  0x48   : > { %602 = vmatmul.mubr.f32.gmra.mxu1 %v383_v42 }
  0x49   : > { %1412 = vmatprep.mubr.msk.f32.mxu1 %vm1510_vm1, %v1509_v1 }
  0x4a   : > { %552 = vmatmul.mubr.f32.gmra.mxu0 %v363_v43 }
  0x4b   : > { %1365 = vmatprep.mubr.msk.f32.mxu0 %vm413_vm0, %v366_v44 }
  0x4e   : > { %557 = vmatmul.mubr.f32.gmra.mxu0 %v365_v45 }
  0x4f   : > { %1366 = vmatprep.mubr.msk.f32.mxu0 %vm413_vm0, %v368_v46 }
  0x52   : > { %562 = vmatmul.mubr.f32.gmra.mxu0 %v367_v47 }
  0x53   : > { %1367 = vmatprep.mubr.msk.f32.mxu0 %vm413_vm0, %v370_v48 }
  0x56   : > { %567 = vmatmul.mubr.f32.gmra.mxu0 %v369_v49 }
  0x57   : > { %1368 = vmatprep.mubr.msk.f32.mxu0 %vm413_vm0, %v372_v50 }
  0x5a   : > { %572 = vmatmul.mubr.f32.gmra.mxu0 %v371_v51 }
  0x5b   : > { %1369 = vmatprep.mubr.msk.f32.mxu0 %vm413_vm0, %v374_v52 }
  0x5e   : > { %577 = vmatmul.mubr.f32.gmra.mxu0 %v373_v53 }
  0xf6   : > { %v528_v57 = vpop.f32.mrf.mxu0 }
  0xf7   : > { %v1759_v17 = vadd.f32 %v1358_v11, %v528_v57 }
  0xf8   : > { %v530_v58 = vpop.f32.mrf.mxu0  ;;  %v583_v59 = vpop.f32.mrf.mxu1 }
  0xf9   : > { %v614_v23 = vsel %vm613_vm2, %v1759_v17, 0.0  ;;  %v1797_v57 = vadd.f32 %v1358_v11, %v583_v59 }
  0xfa   : > { %v533_v60 = vpop.f32.mrf.mxu0  ;;  %v585_v61 = vpop.f32.mrf.mxu1 }
  0xfb   : > { %v1757_v14 = vadd.f32 %v1358_v11, %v533_v60 }
  0xfc   : > { %v535_v62 = vpop.f32.mrf.mxu0  ;;  %v588_v63 = vpop.f32.mrf.mxu1 }
  0xfd   : > { %v615_v20 = vsel %vm613_vm2, %v1757_v14, 0.0  ;;  %v1801_v62 = vadd.f32 %v1358_v11, %v588_v63 }
  0xfe   : > { %v538_v0 = vpop.f32.mrf.mxu0  ;;  %v590_v2 = vpop.f32.mrf.mxu1  ;;  %v616_v26 = vadd.f32 %v615_v20, %v614_v23 }
  0xff   : > { %v1761_v18 = vadd.f32 %v1358_v11, %v538_v0  ;;  %v637_v59 = vsel %vm613_vm2, %v1801_v62, 0.0 }
 0x100   : > { %v540_v3 = vpop.f32.mrf.mxu0  ;;  %v593_v4 = vpop.f32.mrf.mxu1 }
 0x101   : > { %v617_v24 = vsel %vm613_vm2, %v1761_v18, 0.0  ;;  %v635_v3 = vsel %vm613_vm2, %v1797_v57, 0.0 }
 0x102   : > { %v543_v5 = vpop.f32.mrf.mxu0  ;;  %v595_v6 = vpop.f32.mrf.mxu1  ;;  %v618_v30 = vadd.f32 %v617_v24, %v616_v26  ;;  %v1824_v24 = vld [vmem:[%s2143_s4] sm:$0x3] }
 0x103   : > { %v1765_v21 = vadd.f32 %v1358_v11, %v543_v5  ;;  %v1807_v5 = vadd.f32 %v1358_v11, %v593_v4 }
 0x104   : > { %v545_v7 = vpop.f32.mrf.mxu0  ;;  %v598_v8 = vpop.f32.mrf.mxu1 }
 0x105   : > { %v619_v28 = vsel %vm613_vm2, %v1765_v21, 0.0  ;;  %v1811_v7 = vadd.f32 %v1358_v11, %v598_v8  ;;  %v639_v63 = vsel %vm613_vm2, %v1807_v5, 0.0 }
 0x106   : > { %v548_v9 = vpop.f32.mrf.mxu0  ;;  %v600_v10 = vpop.f32.mrf.mxu1  ;;  %v620_v34 = vadd.f32 %v619_v28, %v618_v30  ;;  %v805_v30 = vlaneseq }
 0x107   : > { %v1771_v25 = vadd.f32 %v1358_v11, %v548_v9 }
 0x108   : > { %v550_v12 = vpop.f32.mrf.mxu0  ;;  %v603_v13 = vpop.f32.mrf.mxu1 }
 0x109   : > { %v621_v32 = vsel %vm613_vm2, %v1771_v25, 0.0  ;;  %v1813_v9 = vadd.f32 %v1358_v11, %v603_v13 }
 0x10a   : > { %v553_v15 = vpop.f32.mrf.mxu0  ;;  %v605_v16 = vpop.f32.mrf.mxu1  ;;  %v622_v38 = vadd.f32 %v621_v32, %v620_v34 }
 0x10b   : > { %v1775_v29 = vadd.f32 %v1358_v11, %v553_v15  ;;  %v641_v15 = vsel %vm613_vm2, %v1811_v7, 0.0  ;;  %v644_v4 = vsel %vm643_vm3, %v1813_v9, 0.0 }
 0x10c   : > { %v555_v19 = vpop.f32.mrf.mxu0 }
 0x10d   : > { %v623_v36 = vsel %vm613_vm2, %v1775_v29, 0.0 }
 0x10e   : > { %v558_v22 = vpop.f32.mrf.mxu0  ;;  %v624_v42 = vadd.f32 %v623_v36, %v622_v38 }
 0x10f   : > { %v1779_v33 = vadd.f32 %v1358_v11, %v558_v22 }
 0x110   : > { %v560_v27 = vpop.f32.mrf.mxu0 }
 0x111   : > { %v625_v40 = vsel %vm613_vm2, %v1779_v33, 0.0 }
 0x112   : > { %v563_v31 = vpop.f32.mrf.mxu0  ;;  %v626_v45 = vadd.f32 %v625_v40, %v624_v42 }
 0x113   : > { %v1783_v37 = vadd.f32 %v1358_v11, %v563_v31  ;;  %v806_v31 = vshrl.u32 %v805_v30, 7 }
 0x114   : > { %v565_v35 = vpop.f32.mrf.mxu0 }
 0x115   : > { %v627_v44 = vsel %vm613_vm2, %v1783_v37, 0.0  ;;  %v1841_v32 = vsub.s32 0, %v806_v31 }
 0x116   : > { %v568_v39 = vpop.f32.mrf.mxu0  ;;  %v628_v49 = vadd.f32 %v627_v44, %v626_v45 }
 0x117   : > { %v1787_v41 = vadd.f32 %v1358_v11, %v568_v39 }
 0x118   : > { %v570_v43 = vpop.f32.mrf.mxu0 }
 0x119   : > { %v629_v47 = vsel %vm613_vm2, %v1787_v41, 0.0 }
 0x11a   : > { %v573_v46 = vpop.f32.mrf.mxu0  ;;  %v630_v52 = vadd.f32 %v629_v47, %v628_v49 }
 0x11b   : > { %v1793_v48 = vadd.f32 %v1358_v11, %v573_v46 }
 0x11c   : > { %v575_v50 = vpop.f32.mrf.mxu0 }
 0x11d   : > { %v631_v51 = vsel %vm613_vm2, %v1793_v48, 0.0 }
 0x11e   : > { %v578_v53 = vpop.f32.mrf.mxu0  ;;  %v632_v60 = vadd.f32 %v631_v51, %v630_v52 }
 0x11f   : > { %v1799_v58 = vadd.f32 %v1358_v11, %v578_v53 }
 0x120   : > { %v580_v61 = vpop.f32.mrf.mxu0 }
 0x121   : > { %v633_v0 = vsel %vm613_vm2, %v1799_v58, 0.0 }
 0x122   : > { %v634_v2 = vadd.f32 %v633_v0, %v632_v60 }
 0x124   : > { %v636_v6 = vadd.f32 %v635_v3, %v634_v2 }
 0x126   : > { %v638_v10 = vadd.f32 %v637_v59, %v636_v6 }
 0x128   : > { %v640_v12 = vadd.f32 %v639_v63, %v638_v10 }
 0x12a   : > { %v642_v16 = vadd.f32 %v641_v15, %v640_v12 }
 0x12c   : > { %v645_v19 = vadd.f32 %v644_v4, %v642_v16 }
 0x12e   : > { %v646_v20 = vrot.slane %v645_v19, 4 }
 0x130   : > { %v647_v22 = vadd.f32 %v646_v20, %v645_v19 }
 0x132   : > { %v648_v8 = vrot.slane %v647_v22, 2 }
 0x134   : > { %v649_v23 = vadd.f32 %v648_v8, %v647_v22 }
 0x136   : > { %v650_v11 = vrot.slane %v649_v23, 1 }
 0x138   : > { %v651_v13 = vadd.f32 %v650_v11, %v649_v23 }
 0x13a   : > { %1413 = vmatmul.mubr.msk.f32.vlgmr.msra.gmra.mxu1 %vm613_vm2, %v651_v13 }
 0x13b   : > { %1416 = vmatpush3.msk.msra.mxu1 %vm731_vm4, %v1824_v24  ;;  %1417 = vmatprep.mubr.msk.f32.mxu1 %vm1510_vm1, %v1509_v1 }
 0x13c   : > { %1420 = vmatprep.subr.mxu1 %v1509_v1 }
 0x1fa   : > { %v721_v26 = vpop.f32.mrf.mxu1 }
 0x1fb   : > { %v726_v27 = vmul.f32 0.00066666666, %v721_v26 }
 0x1fc   : > { %v1414_v28 = vpop.f32.mrf.mxu1 }
 0x1fd   : > { %1418 = vmatmul.mubr.msk.f32.vlgmr.msra.gmra.mxu1 %vm727_vm5, %v726_v27 }
 0x1fe   : > { %1421 = vmatpush3.msra.mxu1 %v1734_v54  ;;  %1426 = vmatprep.mubr.msk.f32.mxu1 %vm1510_vm1, %v1509_v1 }
 0x1ff   : > { %1422 = vmatprep.subr.mxu1 %v1509_v1 }
 0x200   : > { %1423 = vmatpush3.msra.mxu1 %v1741_v55 }
 0x201   : > { %1424 = vmatprep.subr.mxu1 %v1509_v1 }
 0x202   : > { %1425 = vmatpush3.msra.mxu1 %v1748_v56 }
 0x203   : > { %1429 = vmatprep.subr.mxu1 %v1509_v1 }
 0x2bd   : > { %v801_v34 = vpop.f32.mrf.mxu1 }
 0x2be   : > { %v808_v54 = vrot.slane %v801_v34, %v1841_v32 }
 0x2bf   : > { %v1419_v35 = vpop.f32.mrf.mxu1 }
 0x2c0   : > { %v1845_v36 = vsub.f32 %v1759_v17, %v808_v54  ;;  %v1848_v38 = vsub.f32 %v1757_v14, %v808_v54  ;;  %v1851_v55 = vsub.f32 %v1761_v18, %v808_v54  ;;  %v1854_v56 = vsub.f32 %v1765_v21, %v808_v54 }
 0x2c1   : > { %v1861_v42 = vsub.f32 %v1771_v25, %v808_v54  ;;  %v1866_v14 = vsub.f32 %v1775_v29, %v808_v54  ;;  %v1873_v45 = vsub.f32 %v1779_v33, %v808_v54  ;;  %v1879_v29 = vsub.f32 %v1783_v37, %v808_v54 }
 0x2c2   : > { %v825_v39 = vmul.f32 %v1845_v36, %v1845_v36  ;;  %v826_v40 = vmul.f32 %v1848_v38, %v1848_v38  ;;  %v827_v17 = vmul.f32 %v1851_v55, %v1851_v55  ;;  %v828_v18 = vmul.f32 %v1854_v56, %v1854_v56 }
 0x2c3   : > { %v829_v25 = vmul.f32 %v1861_v42, %v1861_v42  ;;  %v830_v49 = vmul.f32 %v1866_v14, %v1866_v14  ;;  %v1885_v52 = vsub.f32 %v1787_v41, %v808_v54  ;;  %v831_v33 = vmul.f32 %v1873_v45, %v1873_v45 }
 0x2c4   : > { %v841_v21 = vsel %vm613_vm2, %v825_v39, 0.0  ;;  %v842_v43 = vsel %vm613_vm2, %v826_v40, 0.0  ;;  %v844_v46 = vsel %vm613_vm2, %v827_v17, 0.0  ;;  %v846_v50 = vsel %vm613_vm2, %v828_v18, 0.0 }
 0x2c5   : > { %v843_v44 = vadd.f32 %v842_v43, %v841_v21  ;;  %v848_v53 = vsel %vm613_vm2, %v829_v25, 0.0  ;;  %v1891_v61 = vsub.f32 %v1793_v48, %v808_v54  ;;  %v832_v37 = vmul.f32 %v1879_v29, %v1879_v29 }
 0x2c6   : > { %v850_v0 = vsel %vm613_vm2, %v830_v49, 0.0  ;;  %v1897_v3 = vsub.f32 %v1799_v58, %v808_v54  ;;  %v833_v41 = vmul.f32 %v1885_v52, %v1885_v52  ;;  %v852_v6 = vsel %vm613_vm2, %v831_v33, 0.0  ;;  %v1131_v33 = vld [vmem:[%s2146_s7 + $0x8] sm:$0xff] }
 0x2c7   : > { %v845_v47 = vadd.f32 %v844_v46, %v843_v44  ;;  %v1903_v10 = vsub.f32 %v1797_v57, %v808_v54  ;;  %v834_v48 = vmul.f32 %v1891_v61, %v1891_v61  ;;  %v854_v63 = vsel %vm613_vm2, %v832_v37, 0.0 }
 0x2c8   : > { %v1909_v15 = vsub.f32 %v1801_v62, %v808_v54  ;;  %v835_v58 = vmul.f32 %v1897_v3, %v1897_v3  ;;  %v856_v4 = vsel %vm613_vm2, %v833_v41, 0.0  ;;  %v1915_v19 = vsub.f32 %v1807_v5, %v808_v54 }
 0x2c9   : > { %v847_v51 = vadd.f32 %v846_v50, %v845_v47  ;;  %v836_v57 = vmul.f32 %v1903_v10, %v1903_v10  ;;  %v858_v20 = vsel %vm613_vm2, %v834_v48, 0.0  ;;  %v1921_v8 = vsub.f32 %v1811_v7, %v808_v54 }
 0x2ca   : > { %v837_v62 = vmul.f32 %v1909_v15, %v1909_v15  ;;  %v860_v23 = vsel %vm613_vm2, %v835_v58, 0.0  ;;  %v1927_v13 = vsub.f32 %v1813_v9, %v808_v54  ;;  %v838_v5 = vmul.f32 %v1915_v19, %v1915_v19 }
 0x2cb   : > { %v849_v60 = vadd.f32 %v848_v53, %v847_v51  ;;  %v862_v26 = vsel %vm613_vm2, %v836_v57, 0.0  ;;  %v839_v28 = vmul.f32 %v1921_v8, %v1921_v8  ;;  %v1130_v53 = vld [vmem:[%s2146_s7] sm:$0xff] }
 0x2cc   : > { %v864_v7 = vsel %vm613_vm2, %v837_v62, 0.0  ;;  %v840_v31 = vmul.f32 %v1927_v13, %v1927_v13  ;;  %v866_v34 = vsel %vm613_vm2, %v838_v5, 0.0 }
 0x2cd   : > { %v851_v2 = vadd.f32 %v850_v0, %v849_v60  ;;  %v868_v9 = vsel %vm613_vm2, %v839_v28, 0.0 }
 0x2ce   : > { %v870_v39 = vsel %vm643_vm3, %v840_v31, 0.0 }
 0x2cf   : > { %v853_v59 = vadd.f32 %v852_v6, %v851_v2  ;;  %v1966_v6 = vld [vmem:[%s2144_s5] ss:$0 sm:$0xff] }
 0x2d1   : > { %v855_v12 = vadd.f32 %v854_v63, %v853_v59 }
 0x2d3   : > { %v857_v16 = vadd.f32 %v856_v4, %v855_v12  ;;  %v1975_v12 = vld [vmem:[%s2145_s6] ss:$0 sm:$0xff] }
 0x2d5   : > { %v859_v22 = vadd.f32 %v858_v20, %v857_v16 }
 0x2d7   : > { %v861_v11 = vadd.f32 %v860_v23, %v859_v22 }
 0x2d9   : > { %v863_v27 = vadd.f32 %v862_v26, %v861_v11 }
 0x2db   : > { %v865_v30 = vadd.f32 %v864_v7, %v863_v27 }
 0x2dd   : > { %v867_v35 = vadd.f32 %v866_v34, %v865_v30 }
 0x2df   : > { %v869_v54 = vadd.f32 %v868_v9, %v867_v35 }
 0x2e1   : > { %v871_v40 = vadd.f32 %v870_v39, %v869_v54 }
 0x2e3   : > { %v872_v17 = vrot.slane %v871_v40, 4 }
 0x2e5   : > { %v873_v18 = vadd.f32 %v872_v17, %v871_v40 }
 0x2e7   : > { %v874_v21 = vrot.slane %v873_v18, 2 }
 0x2e9   : > { %v875_v43 = vadd.f32 %v874_v21, %v873_v18 }
 0x2eb   : > { %v876_v44 = vrot.slane %v875_v43, 1 }
 0x2ed   : > { %v877_v25 = vadd.f32 %v876_v44, %v875_v43 }
 0x2ef   : > { %1427 = vmatmul.mubr.msk.f32.vlgmr.msra.gmra.mxu1 %vm613_vm2, %v877_v25 }
 0x2f0   : > { %1430 = vmatpush3.msk.msra.mxu1 %vm731_vm4, %v1824_v24  ;;  %1431 = vmatprep.mubr.msk.f32.mxu1 %vm1510_vm1, %v1509_v1  ;;  %v1132_v24 = vld [vmem:[%s2146_s7 + $0x10] sm:$0xff] }
 0x2f1   : > { %1434 = vmatprep.subr.mxu1 %v1509_v1 }
 0x3af   : > { %v947_v46 = vpop.f32.mrf.mxu1 }
 0x3b0   : > { %v951_v47 = vmul.f32 0.00066666666, %v947_v46 }
 0x3b1   : > { %v1428_v49 = vpop.f32.mrf.mxu1 }
 0x3b2   : > { %v952_v50 = vadd.f32 1e-05, %v951_v47 }
 0x3b4   : > { %1495 = vrsqrt.f32 %v952_v50 }
 0x3c1   : > { %v1496_v51 = vpop.eup %1495 }
 0x3c2   : > { %1432 = vmatmul.mubr.msk.f32.vlgmr.msra.gmra.mxu1 %vm727_vm5, %v1496_v51 }
 0x3c3   : > { %1440 = vmatprep.mubr.msk.f32.mxu1 %vm1510_vm1, %v1509_v1  ;;  %1435 = vmatpush3.msra.mxu1 %v1132_v24 }
 0x3c4   : > { %1436 = vmatprep.subr.mxu1 %v1509_v1 }
 0x3c5   : > { %1437 = vmatpush3.msra.mxu1 %v1131_v33 }
 0x3c6   : > { %1438 = vmatprep.subr.mxu1 %v1509_v1 }
 0x3c7   : > { %1439 = vmatpush3.msra.mxu1 %v1130_v53 }
 0x482   : > { %v1023_v60 = vpop.f32.mrf.mxu1 }
 0x483   : > { %v1030_v37 = vrot.slane %v1023_v60, %v1841_v32 }
 0x484   : > { %v1433_v0 = vpop.f32.mrf.mxu1 }
 0x485   : > { %v1031_v2 = vmul.f32 %v1030_v37, %v1845_v36  ;;  %v1032_v41 = vmul.f32 %v1030_v37, %v1848_v38  ;;  %v1033_v59 = vmul.f32 %v1030_v37, %v1851_v55  ;;  %v1034_v48 = vmul.f32 %v1030_v37, %v1854_v56 }
 0x486   : > { %v1035_v36 = vmul.f32 %v1030_v37, %v1861_v42  ;;  %v1036_v58 = vmul.f32 %v1030_v37, %v1866_v14  ;;  %v1037_v16 = vmul.f32 %v1030_v37, %v1873_v45  ;;  %v1038_v42 = vmul.f32 %v1030_v37, %v1879_v29 }
 0x487   : > { %v1053_v1 = vmul.f32 %v1966_v6, %v1031_v2  ;;  %v1054_v63 = vmul.f32 %v1966_v6, %v1032_v41  ;;  %v1055_v38 = vmul.f32 %v1966_v6, %v1033_v59  ;;  %v1056_v4 = vmul.f32 %v1966_v6, %v1034_v48 }
 0x488   : > { %v1057_v57 = vmul.f32 %v1966_v6, %v1035_v36  ;;  %v1058_v22 = vmul.f32 %v1966_v6, %v1036_v58  ;;  %v1039_v45 = vmul.f32 %v1030_v37, %v1885_v52  ;;  %v1059_v5 = vmul.f32 %v1966_v6, %v1037_v16 }
 0x489   : > { %v1982_v55 = vadd.f32 %v1975_v12, %v1053_v1  ;;  %v1985_v56 = vadd.f32 %v1975_v12, %v1054_v63  ;;  %v1990_v20 = vadd.f32 %v1975_v12, %v1055_v38  ;;  %v1995_v14 = vadd.f32 %v1975_v12, %v1056_v4 }
 0x48a   : > { %v2004_v26 = vadd.f32 %v1975_v12, %v1057_v57  ;;  %v1040_v28 = vmul.f32 %v1030_v37, %v1891_v61  ;;  %v1060_v7 = vmul.f32 %v1966_v6, %v1038_v42  ;;  %v2011_v30 = vadd.f32 %v1975_v12, %v1058_v22 }
 0x48b   : > { %v1091_v62 = vsel %vm613_vm2, %v1982_v55, 0.0  ;;  %v1092_v23 = vsel %vm613_vm2, %v1985_v56, 0.0  ;;  %v1094_v29 = vsel %vm613_vm2, %v1990_v20, 0.0  ;;  %v1096_v31 = vsel %vm613_vm2, %v1995_v14, 0.0 }
 0x48c   : > { %v1093_v11 = vadd.f32 %v1092_v23, %v1091_v62  ;;  %v1041_v34 = vmul.f32 %v1030_v37, %v1897_v3  ;;  %v1061_v35 = vmul.f32 %v1966_v6, %v1039_v45  ;;  %v2018_v9 = vadd.f32 %v1975_v12, %v1059_v5 }
 0x48d   : > { %v1098_v54 = vsel %vm613_vm2, %v2004_v26, 0.0  ;;  %v1042_v39 = vmul.f32 %v1030_v37, %v1903_v10  ;;  %v1062_v40 = vmul.f32 %v1966_v6, %v1040_v28  ;;  %v2025_v17 = vadd.f32 %v1975_v12, %v1060_v7 }
 0x48e   : > { %v1095_v27 = vadd.f32 %v1094_v29, %v1093_v11  ;;  %v1100_v18 = vsel %vm613_vm2, %v2011_v30, 0.0  ;;  %v1043_v21 = vmul.f32 %v1030_v37, %v1909_v15  ;;  %v1063_v43 = vmul.f32 %v1966_v6, %v1041_v34 }
 0x48f   : > { %v2032_v44 = vadd.f32 %v1975_v12, %v1061_v35  ;;  %v1102_v25 = vsel %vm613_vm2, %v2018_v9, 0.0  ;;  %v1044_v46 = vmul.f32 %v1030_v37, %v1915_v19  ;;  %v1064_v47 = vmul.f32 %v1966_v6, %v1042_v39 }
 0x490   : > { %v1097_v52 = vadd.f32 %v1096_v31, %v1095_v27  ;;  %v2039_v49 = vadd.f32 %v1975_v12, %v1062_v40  ;;  %v1104_v50 = vsel %vm613_vm2, %v2025_v17, 0.0  ;;  %v1045_v51 = vmul.f32 %v1030_v37, %v1921_v8  ;;  %v1232_v40 = vld [vmem:[%s2070_s22] sm:$0xff] }
 0x491   : > { %v1065_v24 = vmul.f32 %v1966_v6, %v1043_v21  ;;  %v1085_v33 = vadd.f32 %v1975_v12, %v1063_v43  ;;  %v1106_v53 = vsel %vm613_vm2, %v2032_v44, 0.0  ;;  %v1046_v19 = vmul.f32 %v1030_v37, %v1927_v13 }
 0x492   : > { %v1099_v61 = vadd.f32 %v1098_v54, %v1097_v52  ;;  %v1066_v0 = vmul.f32 %v1966_v6, %v1044_v46  ;;  %v1086_v2 = vadd.f32 %v1975_v12, %v1064_v47  ;;  %v1108_v41 = vsel %vm613_vm2, %v2039_v49, 0.0  ;;  %v1235_v46 = vld [vmem:[%s2070_s22 + $0x18] sm:$0xff] }
 0x493   : > { %v1067_v8 = vmul.f32 %v1966_v6, %v1045_v51  ;;  %v1087_v48 = vadd.f32 %v1975_v12, %v1065_v24  ;;  %v1110_v1 = vsel %vm613_vm2, %v1085_v33, 0.0  ;;  %v1068_v36 = vmul.f32 %v1966_v6, %v1046_v19 }
 0x494   : > { %v1101_v3 = vadd.f32 %v1100_v18, %v1099_v61  ;;  %v1088_v38 = vadd.f32 %v1975_v12, %v1066_v0  ;;  %v1112_v13 = vsel %vm613_vm2, %v1086_v2, 0.0 }
 0x495   : > { %v1089_v58 = vadd.f32 %v1975_v12, %v1067_v8  ;;  %v1114_v4 = vsel %vm613_vm2, %v1087_v48, 0.0  ;;  %v1090_v57 = vadd.f32 %v1975_v12, %v1068_v36 }
 0x496   : > { %v1103_v10 = vadd.f32 %v1102_v25, %v1101_v3  ;;  %v1116_v42 = vsel %vm613_vm2, %v1088_v38, 0.0  ;;  %v1233_v25 = vld [vmem:[%s2070_s22 + $0x8] sm:$0xff] }
 0x497   : > { %v1118_v62 = vsel %vm613_vm2, %v1089_v58, 0.0  ;;  %v1120_v6 = vsel %vm643_vm3, %v1090_v57, 0.0 }
 0x498   : > { %v1105_v15 = vadd.f32 %v1104_v50, %v1103_v10  ;;  %v1234_v10 = vld [vmem:[%s2070_s22 + $0x10] sm:$0xff] }
 0x49a   : > { %v1107_v60 = vadd.f32 %v1106_v53, %v1105_v15  ;;  %v1238_v15 = vld [vmem:[%s2070_s22 + $0x30] sm:$0xff]  ;;  %v1240_v53 = vld [vmem:[%s2070_s22 + $0x40] sm:$0xff] }
 0x49c   : > { %v1109_v59 = vadd.f32 %v1108_v41, %v1107_v60  ;;  %v1242_v41 = vld [vmem:[%s2070_s22 + $0x50] sm:$0xff] }
 0x49e   : > { %v1111_v63 = vadd.f32 %v1110_v1, %v1109_v59  ;;  %v1244_v59 = vld [vmem:[%s2070_s22 + $0x60] sm:$0xff] }
 0x4a0   : > { %v1113_v37 = vadd.f32 %v1112_v13, %v1111_v63 }
 0x4a2   : > { %v1115_v16 = vadd.f32 %v1114_v4, %v1113_v37 }
 0x4a4   : > { %v1117_v22 = vadd.f32 %v1116_v42, %v1115_v16 }
 0x4a6   : > { %v1119_v23 = vadd.f32 %v1118_v62, %v1117_v22 }
 0x4a8   : > { %v1121_v11 = vadd.f32 %v1120_v6, %v1119_v23 }
 0x4aa   : > { %v1122_v45 = vrot.slane %v1121_v11, 4 }
 0x4ac   : > { %v1123_v5 = vadd.f32 %v1122_v45, %v1121_v11 }
 0x4ae   : > { %v1124_v29 = vrot.slane %v1123_v5, 2 }
 0x4b0   : > { %v1125_v27 = vadd.f32 %v1124_v29, %v1123_v5 }
 0x4b2   : > { %v1126_v28 = vrot.slane %v1125_v27, 1 }
 0x4b4   : > { %v1127_v7 = vadd.f32 %v1126_v28, %v1125_v27 }
 0x4b6   : > { %v1129_v31 = vmul.f32 0.008, %v1127_v7 }
 0x4b8   : > { %1441 = vmatmul.mubr.msk.f32.vlgmr.msra.gmra.mxu1 %vm613_vm2, %v1129_v31 }
 0x578   : > { %v1202_v12 = vpop.f32.mrf.mxu1 }
 0x579   : > { %v1384_v52 = vmul.f32 -1.442695, %v1202_v12 }
 0x57a   : > { %v1442_v34 = vpop.f32.mrf.mxu1 }
 0x57b   : > { %1497 = vpow2.f32 %v1384_v52 }
 0x588   : > { %v1498_v35 = vpop.eup %1497 }
 0x589   : > { %v1209_v54 = vadd.f32 1.0, %v1498_v35 }
 0x58b   : > { %1499 = vrcp.f32 %v1209_v54 }
 0x598   : > { %v1500_v61 = vpop.eup %1499 }
 0x599   : > { %v1215_v39 = vrot.slane %v1500_v61, %v1841_v32 }
 0x59b   : > { %v1216_v18 = vmul.f32 %v1215_v39, %v1982_v55  ;;  %v1217_v3 = vmul.f32 %v1215_v39, %v1985_v56  ;;  %v1218_v21 = vmul.f32 %v1215_v39, %v1990_v20  ;;  %v1219_v43 = vmul.f32 %v1215_v39, %v1995_v14  ;;  %v1236_v56 = vld [vmem:[%s2070_s22 + $0x20] sm:$0xff]  ;;  %v1237_v20 = vld [vmem:[%s2070_s22 + $0x28] sm:$0xff] }
 0x59c   : > { %v1220_v47 = vmul.f32 %v1215_v39, %v2004_v26  ;;  %v1221_v50 = vmul.f32 %v1215_v39, %v2011_v30  ;;  %v1222_v32 = vmul.f32 %v1215_v39, %v2018_v9  ;;  %v1223_v55 = vmul.f32 %v1215_v39, %v2025_v17  ;;  %v1239_v30 = vld [vmem:[%s2070_s22 + $0x38] sm:$0xff]  ;;  %v1241_v9 = vld [vmem:[%s2070_s22 + $0x48] sm:$0xff] }
 0x59d   : > { %v1224_v14 = vmul.f32 %v1215_v39, %v2032_v44  ;;  %v1225_v51 = vmul.f32 %v1215_v39, %v2039_v49  ;;  %v1226_v26 = vmul.f32 %v1215_v39, %v1085_v33  ;;  %v1227_v24 = vmul.f32 %v1215_v39, %v1086_v2  ;;  %v1243_v44 = vld [vmem:[%s2070_s22 + $0x58] sm:$0xff]  ;;  %v1245_v49 = vld [vmem:[%s2070_s22 + $0x68] sm:$0xff]  ;;  %v1246_v33 = vld [vmem:[%s2070_s22 + $0x70] sm:$0xff] }
 0x59e   : > { %v1228_v17 = vmul.f32 %v1215_v39, %v1087_v48  ;;  %v1229_v60 = vmul.f32 %v1215_v39, %v1088_v38  ;;  %v1230_v19 = vmul.f32 %v1215_v39, %v1089_v58  ;;  %v1231_v0 = vmul.f32 %v1215_v39, %v1090_v57  ;;  %v1247_v2 = vld [vmem:[%s2070_s22 + $0x78] sm:$0x1f] }
 0x59f   : > { %v1248_v8 = vadd.f32 %v1232_v40, %v1216_v18  ;;  %v1249_v1 = vadd.f32 %v1233_v25, %v1217_v3  ;;  %v1250_v63 = vadd.f32 %v1234_v10, %v1218_v21  ;;  %v1251_v36 = vadd.f32 %v1235_v46, %v1219_v43 }
 0x5a0   : > { %v1252_v13 = vadd.f32 %v1236_v56, %v1220_v47  ;;  %v1253_v48 = vadd.f32 %v1237_v20, %v1221_v50  ;;  %v1254_v38 = vadd.f32 %v1238_v15, %v1222_v32  ;;  %v1255_v37 = vadd.f32 %v1239_v30, %v1223_v55 }
 0x5a1   : > { %v1256_v58 = vadd.f32 %v1240_v53, %v1224_v14  ;;  %v1257_v4 = vadd.f32 %v1241_v9, %v1225_v51  ;;  %v1258_v16 = vadd.f32 %v1242_v41, %v1226_v26  ;;  %v1259_v57 = vadd.f32 %v1243_v44, %v1227_v24  ;;  %1264 = vst.msk [vmem:[%s2096_s26] sm:$0xff] %vm613_vm2, %v1248_v8 }
 0x5a2   : > { %1265 = vst.msk [vmem:[%s2096_s26 + $0x8] sm:$0xff] %vm613_vm2, %v1249_v1  ;;  %1266 = vst.msk [vmem:[%s2096_s26 + $0x10] sm:$0xff] %vm613_vm2, %v1250_v63  ;;  %v1260_v42 = vadd.f32 %v1244_v59, %v1228_v17  ;;  %v1261_v22 = vadd.f32 %v1245_v49, %v1229_v60  ;;  %v1262_v62 = vadd.f32 %v1246_v33, %v1230_v19 }
 0x5a3   : > { %1267 = vst.msk [vmem:[%s2096_s26 + $0x18] sm:$0xff] %vm613_vm2, %v1251_v36  ;;  %v1263_v23 = vadd.f32 %v1247_v2, %v1231_v0  ;;  %1268 = vst.msk [vmem:[%s2096_s26 + $0x20] sm:$0xff] %vm613_vm2, %v1252_v13 }
 0x5a4   : > { %1269 = vst.msk [vmem:[%s2096_s26 + $0x28] sm:$0xff] %vm613_vm2, %v1253_v48  ;;  %1270 = vst.msk [vmem:[%s2096_s26 + $0x30] sm:$0xff] %vm613_vm2, %v1254_v38 }
 0x5a5   : > { %1271 = vst.msk [vmem:[%s2096_s26 + $0x38] sm:$0xff] %vm613_vm2, %v1255_v37  ;;  %1272 = vst.msk [vmem:[%s2096_s26 + $0x40] sm:$0xff] %vm613_vm2, %v1256_v58 }
 0x5a6   : > { %1273 = vst.msk [vmem:[%s2096_s26 + $0x48] sm:$0xff] %vm613_vm2, %v1257_v4  ;;  %1274 = vst.msk [vmem:[%s2096_s26 + $0x50] sm:$0xff] %vm613_vm2, %v1258_v16 }
 0x5a7   : > { %1275 = vst.msk [vmem:[%s2096_s26 + $0x58] sm:$0xff] %vm613_vm2, %v1259_v57  ;;  %1276 = vst.msk [vmem:[%s2096_s26 + $0x60] sm:$0xff] %vm613_vm2, %v1260_v42 }
 0x5a8   : > { %1277 = vst.msk [vmem:[%s2096_s26 + $0x68] sm:$0xff] %vm613_vm2, %v1261_v22  ;;  %1278 = vst.msk [vmem:[%s2096_s26 + $0x70] sm:$0xff] %vm613_vm2, %v1262_v62 }
 0x5a9   : > { %1279 = vst.msk [vmem:[%s2096_s26 + $0x78] sm:$0x1f] %vm643_vm3, %v1263_v23 }
 0x5aa PF: > { %s19_s30 = sadd.s32 1, %s1507_s30  }
 0x5ab   : > { %p16_p4 = scmp.ge.s32.totalorder %s19_s30, 4  }
 0x5ad   :  { %18 = sbr.rel (!%p16_p4) target bundleno = 1 (0x1), region = 89 }

// kernel: a2s2k_forward.24
= control target key start
LH: loop header
LB: loop body
LE: loop exit
PB: predicated region body
PF: predicated region fallthrough
CT: control target
= control target key end

     0   :  { %s1029_s30 = smov 0   ;;  %s1337_s0 = inlined_call_operand.vmem [shape: f32[2,125,168], index: 0, kind: input, shape index: {}]   ;;  %s1338_s1 = inlined_call_operand.vmem [shape: f32[168,24], index: 1, kind: input, shape index: {}]   ;;  %s1339_s2 = inlined_call_operand.vmem [shape: f32[1,24], index: 2, kind: input, shape index: {}]   ;;  %s1340_s3 = inlined_call_operand.vmem [shape: f32[24,2], index: 3, kind: input, shape index: {}]   ;;  %s1341_s4 = inlined_call_operand.vmem [shape: f32[2,24], index: 4, kind: input, shape index: {}]   ;;  %s1342_s5 = inlined_call_operand.vmem [shape: f32[1,24], index: 5, kind: input, shape index: {}]   ;;  %s1343_s6 = inlined_call_operand.vmem [shape: f32[1,24], index: 6, kind: input, shape index: {}]   ;;  %s1344_s7 = inlined_call_operand.vmem [shape: f32[24,24], index: 7, kind: input, shape index: {}]   ;;  %s1345_s8 = inlined_call_operand.vmem [shape: f32[2,125,24], index: 8, kind: input, shape index: {}]   ;;  %s1346_s9 = inlined_call_operand.vmem [shape: f32[2,125,24], index: 9, kind: output, shape index: {}]  }
   0x1 LB: > { %s865_s3 = sadd.s32 4294967295, %s975_s30   ;;  %p869_p0 = scmp.ge.s32.totalorder %s975_s30, 1  ;;  %s975_s30 = sphi %s1029_s30, %s19_s30  }
   0x2   : > { %p297_p1 = scmp.lt.s32.totalorder %s975_s30, 3 }
   0x4   : > { %p298_p2 = pnand %p869_p0, %p297_p1 }
   0x5   : > { %p338_p3 = scmp.lt.s32.totalorder (!%p298_p2), %s865_s3, 1 }
   0x6   : > { %301 = sbr.rel (%p298_p2) target bundleno = 554 (0x22a), region = 56 }
   0xb   : > { %v400_v0 = vld [vmem:[%s1338_s1 + $0x78] sm:$0xff]  ;;  %v977_v1 = vmov 0.0   ;;  %v399_v2 = vld [vmem:[%s1338_s1 + $0x70] sm:$0xff]  ;;  %v398_v3 = vld [vmem:[%s1338_s1 + $0x68] sm:$0xff]  ;;  %s1348_s3 = smov (!%p338_p3, %s865_s3), 1  ;;  %vm413_vm0 = vcmask 326656  }
   0xc   : > { %462 = vmatprep.subr.mxu0 %v977_v1  ;;  %913 = vmatprep.subr.mxu1 %v977_v1  ;;  %v397_v4 = vld [vmem:[%s1338_s1 + $0x60] sm:$0xff]  ;;  %v396_v5 = vld [vmem:[%s1338_s1 + $0x58] sm:$0xff]  ;;  %v395_v6 = vld [vmem:[%s1338_s1 + $0x50] sm:$0xff]  ;;  %s897_s23 = sshll.u32 %s1348_s3, 8  ;;  %vm978_vm1 = vmmov 0   ;;  %vm607_vm2 = vcmask 195584  }
   0xd   : > { %463 = vmatpush1.msra.mxu0 %v400_v0  ;;  %934 = vmatpush1.msra.mxu1 %v400_v0  ;;  %v394_v7 = vld [vmem:[%s1338_s1 + $0x48] sm:$0xff]  ;;  %v393_v8 = vld [vmem:[%s1338_s1 + $0x40] sm:$0xff]  ;;  %v392_v9 = vld [vmem:[%s1338_s1 + $0x38] sm:$0xff]  ;;  %s1095_s4 = scalar_lea.vmem %s1337_s0, %s897_s23  ;;  %vm637_vm3 = vcmask 192512   ;;  %s898_s15 = sshll.u32 %s1348_s3, 7 }
   0xe   : > { %464 = vmatprep.subr.mxu0 %v977_v1  ;;  %914 = vmatprep.subr.mxu1 %v977_v1  ;;  %v391_v10 = vld [vmem:[%s1338_s1 + $0x30] sm:$0xff]  ;;  %v390_v11 = vld [vmem:[%s1338_s1 + $0x28] sm:$0xff]  ;;  %v389_v13 = vld [vmem:[%s1338_s1 + $0x20] sm:$0xff]  ;;  %s1269_s18 = scalar_lea.vmem %s1345_s8, %s898_s15  ;;  %s1294_s20 = scalar_lea.vmem %s1346_s9, %s898_s15 }
   0xf   : > { %465 = vmatpush1.msra.mxu0 %v399_v2  ;;  %935 = vmatpush1.msra.mxu1 %v399_v2  ;;  %v354_v12 = vld [vmem:[%s1095_s4 + $0x8] sm:$0xff]  ;;  %v388_v14 = vld [vmem:[%s1338_s1 + $0x18] sm:$0xff]  ;;  %v387_v15 = vld [vmem:[%s1338_s1 + $0x10] sm:$0xff] }
  0x10   : > { %466 = vmatprep.subr.mxu0 %v977_v1  ;;  %915 = vmatprep.subr.mxu1 %v977_v1  ;;  %v386_v16 = vld [vmem:[%s1338_s1 + $0x8] sm:$0xff]  ;;  %v385_v17 = vld [vmem:[%s1338_s1] sm:$0xff]  ;;  %v404_v19 = vld [vmem:[%s1338_s1 + $0x98] sm:$0xff] }
  0x11   : > { %467 = vmatpush1.msra.mxu0 %v398_v3  ;;  %936 = vmatpush1.msra.mxu1 %v398_v3  ;;  %v405_v18 = vld [vmem:[%s1338_s1 + $0xa0] sm:$0xff]  ;;  %v403_v20 = vld [vmem:[%s1338_s1 + $0x90] sm:$0xff]  ;;  %v402_v21 = vld [vmem:[%s1338_s1 + $0x88] sm:$0xff] }
  0x12   : > { %468 = vmatprep.subr.mxu0 %v977_v1  ;;  %916 = vmatprep.subr.mxu1 %v977_v1  ;;  %v401_v22 = vld [vmem:[%s1338_s1 + $0x80] sm:$0xff]  ;;  %v356_v24 = vld [vmem:[%s1095_s4 + $0x18] sm:$0xff]  ;;  %v371_v26 = vld [vmem:[%s1095_s4 + $0x90] sm:$0xff] }
  0x13   : > { %469 = vmatpush1.msra.mxu0 %v397_v4  ;;  %937 = vmatpush1.msra.mxu1 %v397_v4  ;;  %v353_v23 = vld [vmem:[%s1095_s4] sm:$0xff]  ;;  %v372_v25 = vld [vmem:[%s1095_s4 + $0x98] sm:$0xff]  ;;  %v374_v27 = vld [vmem:[%s1095_s4 + $0xa8] sm:$0xff] }
  0x14   : > { %470 = vmatprep.subr.mxu0 %v977_v1  ;;  %917 = vmatprep.subr.mxu1 %v977_v1  ;;  %v355_v28 = vld [vmem:[%s1095_s4 + $0x10] sm:$0xff]  ;;  %v358_v29 = vld [vmem:[%s1095_s4 + $0x28] sm:$0xff]  ;;  %v373_v30 = vld [vmem:[%s1095_s4 + $0xa0] sm:$0xff] }
  0x15   : > { %471 = vmatpush1.msra.mxu0 %v396_v5  ;;  %938 = vmatpush1.msra.mxu1 %v396_v5  ;;  %v376_v31 = vld [vmem:[%s1095_s4 + $0xb8] sm:$0xff]  ;;  %v357_v32 = vld [vmem:[%s1095_s4 + $0x20] sm:$0xff]  ;;  %v375_v34 = vld [vmem:[%s1095_s4 + $0xb0] sm:$0xff] }
  0x16   : > { %472 = vmatprep.subr.mxu0 %v977_v1  ;;  %918 = vmatprep.subr.mxu1 %v977_v1  ;;  %v360_v33 = vld [vmem:[%s1095_s4 + $0x38] sm:$0xff]  ;;  %v378_v35 = vld [vmem:[%s1095_s4 + $0xc8] sm:$0xff]  ;;  %v359_v36 = vld [vmem:[%s1095_s4 + $0x30] sm:$0xff] }
  0x17   : > { %473 = vmatpush1.msra.mxu0 %v395_v6  ;;  %939 = vmatpush1.msra.mxu1 %v395_v6  ;;  %v362_v37 = vld [vmem:[%s1095_s4 + $0x48] sm:$0xff]  ;;  %v377_v38 = vld [vmem:[%s1095_s4 + $0xc0] sm:$0xff]  ;;  %v380_v39 = vld [vmem:[%s1095_s4 + $0xd8] sm:$0xff] }
  0x18   : > { %474 = vmatprep.subr.mxu0 %v977_v1  ;;  %919 = vmatprep.subr.mxu1 %v977_v1  ;;  %v361_v40 = vld [vmem:[%s1095_s4 + $0x40] sm:$0xff]  ;;  %v364_v41 = vld [vmem:[%s1095_s4 + $0x58] sm:$0xff]  ;;  %v379_v42 = vld [vmem:[%s1095_s4 + $0xd0] sm:$0xff] }
  0x19   : > { %475 = vmatpush1.msra.mxu0 %v394_v7  ;;  %940 = vmatpush1.msra.mxu1 %v394_v7  ;;  %v382_v43 = vld [vmem:[%s1095_s4 + $0xe8] sm:$0xff]  ;;  %v363_v44 = vld [vmem:[%s1095_s4 + $0x50] sm:$0xff]  ;;  %v381_v46 = vld [vmem:[%s1095_s4 + $0xe0] sm:$0xff] }
  0x1a   : > { %476 = vmatprep.subr.mxu0 %v977_v1  ;;  %920 = vmatprep.subr.mxu1 %v977_v1  ;;  %v366_v45 = vld [vmem:[%s1095_s4 + $0x68] sm:$0xff]  ;;  %v384_v47 = vld [vmem:[%s1095_s4 + $0xf8] sm:$0x1f]  ;;  %v365_v48 = vld [vmem:[%s1095_s4 + $0x60] sm:$0xff] }
  0x1b   : > { %477 = vmatpush1.msra.mxu0 %v393_v8  ;;  %941 = vmatpush1.msra.mxu1 %v393_v8  ;;  %v368_v49 = vld [vmem:[%s1095_s4 + $0x78] sm:$0xff]  ;;  %v383_v50 = vld [vmem:[%s1095_s4 + $0xf0] sm:$0x1f]  ;;  %v370_v52 = vld [vmem:[%s1095_s4 + $0x88] sm:$0xff] }
  0x1c   : > { %478 = vmatprep.subr.mxu0 %v977_v1  ;;  %921 = vmatprep.subr.mxu1 %v977_v1  ;;  %v367_v51 = vld [vmem:[%s1095_s4 + $0x70] sm:$0xff]  ;;  %v369_v53 = vld [vmem:[%s1095_s4 + $0x80] sm:$0xff]  ;;  %v649_v55 = vld [vmem:[%s1344_s7 + $0x8] sm:$0xff] }
  0x1d   : > { %479 = vmatpush1.msra.mxu0 %v392_v9  ;;  %942 = vmatpush1.msra.mxu1 %v392_v9  ;;  %v650_v54 = vld [vmem:[%s1344_s7 + $0x10] sm:$0xff]  ;;  %v648_v56 = vld [vmem:[%s1344_s7] sm:$0xff] }
  0x1e   : > { %480 = vmatprep.subr.mxu0 %v977_v1  ;;  %922 = vmatprep.subr.mxu1 %v977_v1  ;;  %v876_v7 = vld [vmem:[%s1339_s2] ss:$0 sm:$0xff] }
  0x1f   : > { %481 = vmatpush1.msra.mxu0 %v391_v10  ;;  %943 = vmatpush1.msra.mxu1 %v391_v10 }
  0x20   : > { %482 = vmatprep.subr.mxu0 %v977_v1  ;;  %923 = vmatprep.subr.mxu1 %v977_v1 }
  0x21   : > { %483 = vmatpush1.msra.mxu0 %v390_v11  ;;  %944 = vmatpush1.msra.mxu1 %v390_v11 }
  0x22   : > { %484 = vmatprep.subr.mxu0 %v977_v1  ;;  %877 = vmatprep.mubr.msk.f32.mxu0 %vm413_vm0, %v354_v12 }
  0x23   : > { %485 = vmatpush1.msra.mxu0 %v389_v13  ;;  %924 = vmatprep.subr.mxu1 %v977_v1 }
  0x24   : > { %486 = vmatprep.subr.mxu0 %v977_v1  ;;  %945 = vmatpush1.msra.mxu1 %v389_v13 }
  0x25   : > { %487 = vmatpush1.msra.mxu0 %v388_v14  ;;  %925 = vmatprep.subr.mxu1 %v977_v1 }
  0x26   : > { %488 = vmatprep.subr.mxu0 %v977_v1  ;;  %946 = vmatpush1.msra.mxu1 %v388_v14 }
  0x27   : > { %489 = vmatpush1.msra.mxu0 %v387_v15  ;;  %926 = vmatprep.subr.mxu1 %v977_v1 }
  0x28   : > { %490 = vmatprep.subr.mxu0 %v977_v1  ;;  %947 = vmatpush1.msra.mxu1 %v387_v15 }
  0x29   : > { %491 = vmatpush1.msra.mxu0 %v386_v16  ;;  %927 = vmatprep.subr.mxu1 %v977_v1 }
  0x2a   : > { %492 = vmatprep.subr.mxu0 %v977_v1  ;;  %948 = vmatpush1.msra.mxu1 %v386_v16 }
  0x2b   : > { %493 = vmatpush1.msra.mxu0 %v385_v17  ;;  %928 = vmatprep.subr.mxu1 %v977_v1 }
  0x2c   : > { %516 = vmatprep.subr.mxu0 %v977_v1  ;;  %949 = vmatpush1.msra.mxu1 %v385_v17 }
  0x2d   : > { %517 = vmatpush2.msra.mxu0 %v405_v18  ;;  %929 = vmatprep.subr.mxu1 %v977_v1 }
  0x2e   : > { %518 = vmatprep.subr.mxu0 %v977_v1  ;;  %950 = vmatpush2.msra.mxu1 %v405_v18 }
  0x2f   : > { %519 = vmatpush2.msra.mxu0 %v404_v19  ;;  %930 = vmatprep.subr.mxu1 %v977_v1 }
  0x30   : > { %520 = vmatprep.subr.mxu0 %v977_v1  ;;  %951 = vmatpush2.msra.mxu1 %v404_v19 }
  0x31   : > { %521 = vmatpush2.msra.mxu0 %v403_v20  ;;  %931 = vmatprep.subr.mxu1 %v977_v1 }
  0x32   : > { %522 = vmatprep.subr.mxu0 %v977_v1  ;;  %952 = vmatpush2.msra.mxu1 %v403_v20 }
  0x33   : > { %523 = vmatpush2.msra.mxu0 %v402_v21  ;;  %932 = vmatprep.subr.mxu1 %v977_v1 }
  0x34   : > { %524 = vmatprep.subr.mxu0 %v977_v1  ;;  %953 = vmatpush2.msra.mxu1 %v402_v21 }
  0x35   : > { %525 = vmatpush2.msra.mxu0 %v401_v22  ;;  %933 = vmatprep.subr.mxu1 %v977_v1 }
  0x36   : > { %527 = vmatmul.mubr.f32.vlgmr.msra.gmra.mxu0 %v353_v23  ;;  %954 = vmatpush2.msra.mxu1 %v401_v22 }
  0x37   : > { %878 = vmatprep.mubr.msk.f32.mxu0 %vm413_vm0, %v356_v24  ;;  %886 = vmatprep.mubr.msk.f32.mxu1 %vm413_vm0, %v372_v25 }
  0x38   : > { %572 = vmatmul.mubr.f32.vlgmr.msra.gmra.mxu1 %v371_v26  ;;  %904 = vmatprep.subr.mxu1 %v977_v1 }
  0x39   : > { %887 = vmatprep.mubr.msk.f32.mxu1 %vm413_vm0, %v374_v27  ;;  %905 = vmatpush3.msra.mxu1 %v650_v54 }
  0x3a   : > { %532 = vmatmul.mubr.f32.gmra.mxu0 %v355_v28  ;;  %906 = vmatprep.subr.mxu1 %v977_v1 }
  0x3b   : > { %879 = vmatprep.mubr.msk.f32.mxu0 %vm413_vm0, %v358_v29  ;;  %907 = vmatpush3.msra.mxu1 %v649_v55 }
  0x3c   : > { %577 = vmatmul.mubr.f32.gmra.mxu1 %v373_v30  ;;  %908 = vmatprep.subr.mxu1 %v977_v1 }
  0x3d   : > { %888 = vmatprep.mubr.msk.f32.mxu1 %vm413_vm0, %v376_v31  ;;  %909 = vmatpush3.msra.mxu1 %v648_v56 }
  0x3e   : > { %537 = vmatmul.mubr.f32.gmra.mxu0 %v357_v32 }
  0x3f   : > { %880 = vmatprep.mubr.msk.f32.mxu0 %vm413_vm0, %v360_v33 }
  0x40   : > { %582 = vmatmul.mubr.f32.gmra.mxu1 %v375_v34 }
  0x41   : > { %889 = vmatprep.mubr.msk.f32.mxu1 %vm413_vm0, %v378_v35 }
  0x42   : > { %542 = vmatmul.mubr.f32.gmra.mxu0 %v359_v36 }
  0x43   : > { %881 = vmatprep.mubr.msk.f32.mxu0 %vm413_vm0, %v362_v37 }
  0x44   : > { %587 = vmatmul.mubr.f32.gmra.mxu1 %v377_v38 }
  0x45   : > { %890 = vmatprep.mubr.msk.f32.mxu1 %vm413_vm0, %v380_v39 }
  0x46   : > { %547 = vmatmul.mubr.f32.gmra.mxu0 %v361_v40 }
  0x47   : > { %882 = vmatprep.mubr.msk.f32.mxu0 %vm413_vm0, %v364_v41 }
  0x48   : > { %592 = vmatmul.mubr.f32.gmra.mxu1 %v379_v42 }
  0x49   : > { %891 = vmatprep.mubr.msk.f32.mxu1 %vm413_vm0, %v382_v43 }
  0x4a   : > { %552 = vmatmul.mubr.f32.gmra.mxu0 %v363_v44 }
  0x4b   : > { %883 = vmatprep.mubr.msk.f32.mxu0 %vm413_vm0, %v366_v45 }
  0x4c   : > { %597 = vmatmul.mubr.f32.gmra.mxu1 %v381_v46 }
  0x4d   : > { %892 = vmatprep.mubr.msk.f32.mxu1 %vm413_vm0, %v384_v47 }
  0x4e   : > { %557 = vmatmul.mubr.f32.gmra.mxu0 %v365_v48 }
  0x4f   : > { %884 = vmatprep.mubr.msk.f32.mxu0 %vm413_vm0, %v368_v49 }
  0x50   : > { %602 = vmatmul.mubr.f32.gmra.mxu1 %v383_v50 }
  0x51   : > { %910 = vmatprep.mubr.msk.f32.mxu1 %vm978_vm1, %v977_v1 }
  0x52   : > { %562 = vmatmul.mubr.f32.gmra.mxu0 %v367_v51 }
  0x53   : > { %885 = vmatprep.mubr.msk.f32.mxu0 %vm413_vm0, %v370_v52 }
  0x56   : > { %567 = vmatmul.mubr.f32.gmra.mxu0 %v369_v53 }
  0xf6   : > { %v528_v57 = vpop.f32.mrf.mxu0 }
  0xf7   : > { %v1220_v12 = vadd.f32 %v876_v7, %v528_v57 }
  0xf8   : > { %v530_v58 = vpop.f32.mrf.mxu0  ;;  %v573_v59 = vpop.f32.mrf.mxu1 }
  0xf9   : > { %v608_v20 = vsel %vm607_vm2, %v1220_v12, 0.0  ;;  %v1250_v47 = vadd.f32 %v876_v7, %v573_v59 }
  0xfa   : > { %v533_v60 = vpop.f32.mrf.mxu0  ;;  %v575_v61 = vpop.f32.mrf.mxu1 }
  0xfb   : > { %v1218_v1 = vadd.f32 %v876_v7, %v533_v60  ;;  %v625_v54 = vsel %vm607_vm2, %v1250_v47, 0.0 }
  0xfc   : > { %v535_v62 = vpop.f32.mrf.mxu0  ;;  %v578_v63 = vpop.f32.mrf.mxu1 }
  0xfd   : > { %v609_v16 = vsel %vm607_vm2, %v1218_v1, 0.0  ;;  %v579_v51 = vadd.f32 %v876_v7, %v578_v63 }
  0xfe   : > { %v538_v0 = vpop.f32.mrf.mxu0  ;;  %v580_v2 = vpop.f32.mrf.mxu1  ;;  %v610_v23 = vadd.f32 %v609_v16, %v608_v20 }
  0xff   : > { %v1222_v13 = vadd.f32 %v876_v7, %v538_v0  ;;  %v627_v57 = vsel %vm607_vm2, %v579_v51, 0.0 }
 0x100   : > { %v540_v3 = vpop.f32.mrf.mxu0  ;;  %v583_v4 = vpop.f32.mrf.mxu1 }
 0x101   : > { %v611_v21 = vsel %vm607_vm2, %v1222_v13, 0.0  ;;  %v584_v55 = vadd.f32 %v876_v7, %v583_v4 }
 0x102   : > { %v543_v5 = vpop.f32.mrf.mxu0  ;;  %v585_v6 = vpop.f32.mrf.mxu1  ;;  %v612_v28 = vadd.f32 %v611_v21, %v610_v23 }
 0x103   : > { %v1226_v17 = vadd.f32 %v876_v7, %v543_v5  ;;  %v629_v59 = vsel %vm607_vm2, %v584_v55, 0.0 }
 0x104   : > { %v545_v8 = vpop.f32.mrf.mxu0  ;;  %v588_v9 = vpop.f32.mrf.mxu1 }
 0x105   : > { %v613_v26 = vsel %vm607_vm2, %v1226_v17, 0.0  ;;  %v589_v58 = vadd.f32 %v876_v7, %v588_v9 }
 0x106   : > { %v548_v10 = vpop.f32.mrf.mxu0  ;;  %v590_v11 = vpop.f32.mrf.mxu1  ;;  %v614_v33 = vadd.f32 %v613_v26, %v612_v28  ;;  %v730_v26 = vlaneseq }
 0x107   : > { %v1232_v22 = vadd.f32 %v876_v7, %v548_v10  ;;  %v631_v0 = vsel %vm607_vm2, %v589_v58, 0.0 }
 0x108   : > { %v550_v14 = vpop.f32.mrf.mxu0  ;;  %v593_v15 = vpop.f32.mrf.mxu1  ;;  %v731_v28 = vshrl.u32 %v730_v26, 7 }
 0x109   : > { %v615_v31 = vsel %vm607_vm2, %v1232_v22, 0.0  ;;  %v594_v61 = vadd.f32 %v876_v7, %v593_v15 }
 0x10a   : > { %v553_v18 = vpop.f32.mrf.mxu0  ;;  %v595_v19 = vpop.f32.mrf.mxu1  ;;  %v616_v37 = vadd.f32 %v615_v31, %v614_v33  ;;  %v750_v33 = vld [vmem:[%s1269_s18] sm:$0xff] }
 0x10b   : > { %v1236_v27 = vadd.f32 %v876_v7, %v553_v18  ;;  %v633_v5 = vsel %vm607_vm2, %v594_v61, 0.0 }
 0x10c   : > { %v555_v24 = vpop.f32.mrf.mxu0  ;;  %v598_v25 = vpop.f32.mrf.mxu1 }
 0x10d   : > { %v617_v36 = vsel %vm607_vm2, %v1236_v27, 0.0  ;;  %v599_v63 = vadd.f32 %v876_v7, %v598_v25 }
 0x10e   : > { %v558_v29 = vpop.f32.mrf.mxu0  ;;  %v600_v30 = vpop.f32.mrf.mxu1  ;;  %v618_v42 = vadd.f32 %v617_v36, %v616_v37 }
 0x10f   : > { %v1240_v32 = vadd.f32 %v876_v7, %v558_v29  ;;  %v635_v4 = vsel %vm607_vm2, %v599_v63, 0.0  ;;  %v732_v29 = vsub.s32 0, %v731_v28 }
 0x110   : > { %v560_v34 = vpop.f32.mrf.mxu0  ;;  %v603_v35 = vpop.f32.mrf.mxu1 }
 0x111   : > { %v619_v40 = vsel %vm607_vm2, %v1240_v32, 0.0  ;;  %v604_v2 = vadd.f32 %v876_v7, %v603_v35 }
 0x112   : > { %v563_v38 = vpop.f32.mrf.mxu0  ;;  %v605_v39 = vpop.f32.mrf.mxu1  ;;  %v620_v45 = vadd.f32 %v619_v40, %v618_v42  ;;  %v753_v40 = vld [vmem:[%s1269_s18 + $0x18] sm:$0xff] }
 0x113   : > { %v1246_v41 = vadd.f32 %v876_v7, %v563_v38  ;;  %v638_v8 = vsel %vm637_vm3, %v604_v2, 0.0  ;;  %v751_v38 = vld [vmem:[%s1269_s18 + $0x8] sm:$0xff]  ;;  %v752_v39 = vld [vmem:[%s1269_s18 + $0x10] sm:$0xff] }
 0x114   : > { %v565_v43 = vpop.f32.mrf.mxu0 }
 0x115   : > { %v621_v44 = vsel %vm607_vm2, %v1246_v41, 0.0 }
 0x116   : > { %v568_v46 = vpop.f32.mrf.mxu0  ;;  %v622_v49 = vadd.f32 %v621_v44, %v620_v45  ;;  %v756_v45 = vld [vmem:[%s1269_s18 + $0x30] sm:$0xff] }
 0x117   : > { %v1252_v48 = vadd.f32 %v876_v7, %v568_v46 }
 0x118   : > { %v570_v50 = vpop.f32.mrf.mxu0 }
 0x119   : > { %v623_v52 = vsel %vm607_vm2, %v1252_v48, 0.0  ;;  %v758_v50 = vld [vmem:[%s1269_s18 + $0x40] sm:$0xff] }
 0x11a   : > { %v624_v53 = vadd.f32 %v623_v52, %v622_v49 }
 0x11c   : > { %v626_v56 = vadd.f32 %v625_v54, %v624_v53 }
 0x11e   : > { %v628_v60 = vadd.f32 %v627_v57, %v626_v56  ;;  %v760_v56 = vld [vmem:[%s1269_s18 + $0x50] sm:$0xff]  ;;  %v762_v57 = vld [vmem:[%s1269_s18 + $0x60] sm:$0xff] }
 0x120   : > { %v630_v62 = vadd.f32 %v629_v59, %v628_v60 }
 0x122   : > { %v632_v3 = vadd.f32 %v631_v0, %v630_v62 }
 0x124   : > { %v634_v6 = vadd.f32 %v633_v5, %v632_v3 }
 0x126   : > { %v636_v10 = vadd.f32 %v635_v4, %v634_v6 }
 0x128   : > { %v639_v9 = vadd.f32 %v638_v8, %v636_v10 }
 0x12a   : > { %v640_v11 = vrot.slane %v639_v9, 4 }
 0x12c   : > { %v641_v14 = vadd.f32 %v640_v11, %v639_v9 }
 0x12e   : > { %v642_v15 = vrot.slane %v641_v14, 2 }
 0x130   : > { %v643_v16 = vadd.f32 %v642_v15, %v641_v14 }
 0x132   : > { %v644_v18 = vrot.slane %v643_v16, 1 }
 0x134   : > { %v645_v19 = vadd.f32 %v644_v18, %v643_v16 }
 0x136   : > { %v647_v20 = vmul.f32 0.008, %v645_v19 }
 0x138   : > { %911 = vmatmul.mubr.msk.f32.vlgmr.msra.gmra.mxu1 %vm607_vm2, %v647_v20 }
 0x1f8   : > { %v720_v7 = vpop.f32.mrf.mxu1 }
 0x1f9   : > { %v894_v21 = vmul.f32 -1.442695, %v720_v7 }
 0x1fa   : > { %v912_v23 = vpop.f32.mrf.mxu1 }
 0x1fb   : > { %965 = vpow2.f32 %v894_v21 }
 0x208   : > { %v966_v24 = vpop.eup %965 }
 0x209   : > { %v727_v25 = vadd.f32 1.0, %v966_v24 }
 0x20b   : > { %967 = vrcp.f32 %v727_v25 }
 0x218   : > { %v968_v30 = vpop.eup %967 }
 0x219   : > { %v733_v31 = vrot.slane %v968_v30, %v732_v29 }
 0x21b   : > { %v734_v34 = vmul.f32 %v733_v31, %v1220_v12  ;;  %v735_v35 = vmul.f32 %v733_v31, %v1218_v1  ;;  %v736_v36 = vmul.f32 %v733_v31, %v1222_v13  ;;  %v737_v37 = vmul.f32 %v733_v31, %v1226_v17  ;;  %v754_v1 = vld [vmem:[%s1269_s18 + $0x20] sm:$0xff]  ;;  %v755_v13 = vld [vmem:[%s1269_s18 + $0x28] sm:$0xff] }
 0x21c   : > { %v738_v42 = vmul.f32 %v733_v31, %v1232_v22  ;;  %v739_v43 = vmul.f32 %v733_v31, %v1236_v27  ;;  %v740_v44 = vmul.f32 %v733_v31, %v1240_v32  ;;  %v741_v12 = vmul.f32 %v733_v31, %v1246_v41  ;;  %v757_v27 = vld [vmem:[%s1269_s18 + $0x38] sm:$0xff]  ;;  %v759_v32 = vld [vmem:[%s1269_s18 + $0x48] sm:$0xff] }
 0x21d   : > { %v742_v17 = vmul.f32 %v733_v31, %v1252_v48  ;;  %v743_v46 = vmul.f32 %v733_v31, %v1250_v47  ;;  %v744_v22 = vmul.f32 %v733_v31, %v579_v51  ;;  %v745_v49 = vmul.f32 %v733_v31, %v584_v55  ;;  %v761_v48 = vld [vmem:[%s1269_s18 + $0x58] sm:$0xff]  ;;  %v763_v47 = vld [vmem:[%s1269_s18 + $0x68] sm:$0xff]  ;;  %v764_v51 = vld [vmem:[%s1269_s18 + $0x70] sm:$0xff] }
 0x21e   : > { %v746_v41 = vmul.f32 %v733_v31, %v589_v58  ;;  %v747_v52 = vmul.f32 %v733_v31, %v594_v61  ;;  %v748_v53 = vmul.f32 %v733_v31, %v599_v63  ;;  %v749_v54 = vmul.f32 %v733_v31, %v604_v2  ;;  %v765_v55 = vld [vmem:[%s1269_s18 + $0x78] sm:$0x1f] }
 0x21f   : > { %v766_v60 = vadd.f32 %v750_v33, %v734_v34  ;;  %v767_v59 = vadd.f32 %v751_v38, %v735_v35  ;;  %v768_v62 = vadd.f32 %v752_v39, %v736_v36  ;;  %v769_v0 = vadd.f32 %v753_v40, %v737_v37 }
 0x220   : > { %v770_v3 = vadd.f32 %v754_v1, %v738_v42  ;;  %v771_v58 = vadd.f32 %v755_v13, %v739_v43  ;;  %v772_v61 = vadd.f32 %v756_v45, %v740_v44  ;;  %v773_v63 = vadd.f32 %v757_v27, %v741_v12 }
 0x221   : > { %v774_v2 = vadd.f32 %v758_v50, %v742_v17  ;;  %v775_v5 = vadd.f32 %v759_v32, %v743_v46  ;;  %v776_v6 = vadd.f32 %v760_v56, %v744_v22  ;;  %v777_v4 = vadd.f32 %v761_v48, %v745_v49  ;;  %782 = vst.msk [vmem:[%s1294_s20] sm:$0xff] %vm607_vm2, %v766_v60 }
 0x222   : > { %783 = vst.msk [vmem:[%s1294_s20 + $0x8] sm:$0xff] %vm607_vm2, %v767_v59  ;;  %784 = vst.msk [vmem:[%s1294_s20 + $0x10] sm:$0xff] %vm607_vm2, %v768_v62  ;;  %v778_v8 = vadd.f32 %v762_v57, %v746_v41  ;;  %v779_v10 = vadd.f32 %v763_v47, %v747_v52  ;;  %v780_v9 = vadd.f32 %v764_v51, %v748_v53 }
 0x223   : > { %785 = vst.msk [vmem:[%s1294_s20 + $0x18] sm:$0xff] %vm607_vm2, %v769_v0  ;;  %v781_v11 = vadd.f32 %v765_v55, %v749_v54  ;;  %786 = vst.msk [vmem:[%s1294_s20 + $0x20] sm:$0xff] %vm607_vm2, %v770_v3 }
 0x224   : > { %787 = vst.msk [vmem:[%s1294_s20 + $0x28] sm:$0xff] %vm607_vm2, %v771_v58  ;;  %788 = vst.msk [vmem:[%s1294_s20 + $0x30] sm:$0xff] %vm607_vm2, %v772_v61 }
 0x225   : > { %789 = vst.msk [vmem:[%s1294_s20 + $0x38] sm:$0xff] %vm607_vm2, %v773_v63  ;;  %790 = vst.msk [vmem:[%s1294_s20 + $0x40] sm:$0xff] %vm607_vm2, %v774_v2 }
 0x226   : > { %791 = vst.msk [vmem:[%s1294_s20 + $0x48] sm:$0xff] %vm607_vm2, %v775_v5  ;;  %792 = vst.msk [vmem:[%s1294_s20 + $0x50] sm:$0xff] %vm607_vm2, %v776_v6 }
 0x227   : > { %793 = vst.msk [vmem:[%s1294_s20 + $0x58] sm:$0xff] %vm607_vm2, %v777_v4  ;;  %794 = vst.msk [vmem:[%s1294_s20 + $0x60] sm:$0xff] %vm607_vm2, %v778_v8 }
 0x228   : > { %795 = vst.msk [vmem:[%s1294_s20 + $0x68] sm:$0xff] %vm607_vm2, %v779_v10  ;;  %796 = vst.msk [vmem:[%s1294_s20 + $0x70] sm:$0xff] %vm607_vm2, %v780_v9 }
 0x229   : > { %797 = vst.msk [vmem:[%s1294_s20 + $0x78] sm:$0x1f] %vm637_vm3, %v781_v11 }
 0x22a PF: > { %s19_s30 = sadd.s32 1, %s975_s30  }
 0x22b   : > { %p16_p4 = scmp.ge.s32.totalorder %s19_s30, 4  }
 0x22d   :  { %18 = sbr.rel (!%p16_p4) target bundleno = 1 (0x1), region = 89 }

// kernel: a2s2k_forward.25
= control target key start
LH: loop header
LB: loop body
LE: loop exit
PB: predicated region body
PF: predicated region fallthrough
CT: control target
= control target key end

     0   :  { %s1101_s24 = smov 0   ;;  %s1286_s0 = inlined_call_operand.vmem [shape: f32[2,25,120], index: 0, kind: input, shape index: {}]   ;;  %s1287_s1 = inlined_call_operand.vmem [shape: f32[120,128], index: 1, kind: input, shape index: {}]   ;;  %s1288_s2 = inlined_call_operand.vmem [shape: f32[1,128], index: 2, kind: input, shape index: {}]   ;;  %s1289_s3 = inlined_call_operand.vmem [shape: f32[128,2], index: 3, kind: input, shape index: {}]   ;;  %s1290_s4 = inlined_call_operand.vmem [shape: f32[2,128], index: 4, kind: input, shape index: {}]   ;;  %s1291_s5 = inlined_call_operand.vmem [shape: f32[1,128], index: 5, kind: input, shape index: {}]   ;;  %s1292_s6 = inlined_call_operand.vmem [shape: f32[1,128], index: 6, kind: input, shape index: {}]   ;;  %s1293_s7 = inlined_call_operand.vmem [shape: f32[2,25,128], index: 7, kind: output, shape index: {}]  }
   0x1 LB: > { %s842_s25 = sadd.s32 4294967295, %s1057_s24   ;;  %p846_p0 = scmp.ge.s32.totalorder %s1057_s24, 1  ;;  %s1057_s24 = sphi %s1101_s24, %s17_s24  }
   0x2   : > { %p237_p1 = scmp.lt.s32.totalorder %s1057_s24, 3 }
   0x4   : > { %p238_p2 = pnand %p846_p0, %p237_p1 }
   0x5   : > { %p269_p3 = scmp.lt.s32.totalorder (!%p238_p2), %s842_s25, 1 }
   0x6   : > { %241 = sbr.rel (%p238_p2) target bundleno = 1087 (0x43f), region = 48 }
   0xb   : > { %v297_v0 = vld [vmem:[%s1287_s1 + $0x70] sm:$0xff]  ;;  %v296_v1 = vld [vmem:[%s1287_s1 + $0x68] sm:$0xff]  ;;  %v1059_v2 = vmov 0.0   ;;  %v295_v3 = vld [vmem:[%s1287_s1 + $0x60] sm:$0xff]  ;;  %s1295_s25 = smov (!%p269_p3, %s842_s25), 1  ;;  %vm305_vm0 = vcmask 982016   ;;  %v583_v59 = vlaneseq }
   0xc   : > { %923 = vmatprep.subr.mxu0 %v297_v0  ;;  %959 = vmatprep.subr.mxu1 %v1059_v2  ;;  %v294_v4 = vld [vmem:[%s1287_s1 + $0x58] sm:$0xff]  ;;  %s864_s11 = sshll.u32 %s1295_s25, 5  ;;  %v293_v6 = vld [vmem:[%s1287_s1 + $0x50] sm:$0xff]  ;;  %v292_v9 = vld [vmem:[%s1287_s1 + $0x48] sm:$0xff]  ;;  %vm1060_vm1 = vmmov 0   ;;  %vm424_vm2 = vcmask 1040384  }
   0xd   : > { %924 = vmatpush3.msra.mxu0 %v297_v0  ;;  %s1130_s14 = scalar_lea.vmem %s1286_s0, %s864_s11  ;;  %v418_v5 = vld [vmem:[%s1289_s3 + $0x78] sm:$0xff]  ;;  %v417_v8 = vld [vmem:[%s1289_s3 + $0x70] sm:$0xff]  ;;  %v416_v10 = vld [vmem:[%s1289_s3 + $0x68] sm:$0xff]  ;;  %991 = vmatprep.mubr.msk.f32.mxu1 %vm1060_vm1, %v1059_v2  ;;  %vm509_vm3 = vcmask 1041408   ;;  %vm505_vm4 = vcmask 15360   ;;  %v584_v60 = vshrl.u32 %v583_v59, 7  ;;  %s278_s20 = scalar_lea.vmem %s1293_s7, %s864_s11 }
   0xe   : > { %925 = vmatprep.subr.mxu0 %v296_v1  ;;  %v279_v7 = vld [vmem:[%s1130_s14] sm:$0xff]  ;;  %960 = vmatpush3.msra.mxu1 %v418_v5  ;;  %v290_v12 = vld [vmem:[%s1287_s1 + $0x38] sm:$0xff]  ;;  %v289_v13 = vld [vmem:[%s1287_s1 + $0x30] sm:$0xff] }
   0xf   : > { %926 = vmatpush3.msra.mxu0 %v296_v1  ;;  %953 = vmatprep.mubr.msk.f32.mxu0 %vm305_vm0, %v279_v7  ;;  %v291_v11 = vld [vmem:[%s1287_s1 + $0x40] sm:$0xff]  ;;  %v288_v14 = vld [vmem:[%s1287_s1 + $0x28] sm:$0xff]  ;;  %v286_v16 = vld [vmem:[%s1287_s1 + $0x18] sm:$0xff]  ;;  %v585_v61 = vsub.s32 0, %v584_v60 }
  0x10   : > { %927 = vmatprep.subr.mxu0 %v295_v3  ;;  %961 = vmatprep.subr.mxu1 %v1059_v2  ;;  %v287_v15 = vld [vmem:[%s1287_s1 + $0x20] sm:$0xff]  ;;  %v285_v17 = vld [vmem:[%s1287_s1 + $0x10] sm:$0xff]  ;;  %v284_v18 = vld [vmem:[%s1287_s1 + $0x8] sm:$0xff] }
  0x11   : > { %928 = vmatpush3.msra.mxu0 %v295_v3  ;;  %962 = vmatpush3.msra.mxu1 %v417_v8  ;;  %v283_v19 = vld [vmem:[%s1287_s1] sm:$0xff]  ;;  %v280_v20 = vld [vmem:[%s1130_s14 + $0x8] sm:$0xff]  ;;  %v281_v21 = vld [vmem:[%s1130_s14 + $0x10] sm:$0xff] }
  0x12   : > { %929 = vmatprep.subr.mxu0 %v294_v4  ;;  %963 = vmatprep.subr.mxu1 %v1059_v2  ;;  %v282_v22 = vld [vmem:[%s1130_s14 + $0x18] sm:$0x1]  ;;  %v415_v23 = vld [vmem:[%s1289_s3 + $0x60] sm:$0xff]  ;;  %v413_v25 = vld [vmem:[%s1289_s3 + $0x50] sm:$0xff] }
  0x13   : > { %930 = vmatpush3.msra.mxu0 %v294_v4  ;;  %964 = vmatpush3.msra.mxu1 %v416_v10  ;;  %v414_v24 = vld [vmem:[%s1289_s3 + $0x58] sm:$0xff]  ;;  %v412_v26 = vld [vmem:[%s1289_s3 + $0x48] sm:$0xff]  ;;  %v411_v27 = vld [vmem:[%s1289_s3 + $0x40] sm:$0xff] }
  0x14   : > { %931 = vmatprep.subr.mxu0 %v293_v6  ;;  %965 = vmatprep.subr.mxu1 %v1059_v2  ;;  %v410_v28 = vld [vmem:[%s1289_s3 + $0x38] sm:$0xff]  ;;  %v409_v29 = vld [vmem:[%s1289_s3 + $0x30] sm:$0xff]  ;;  %v408_v30 = vld [vmem:[%s1289_s3 + $0x28] sm:$0xff] }
  0x15   : > { %932 = vmatpush3.msra.mxu0 %v293_v6  ;;  %966 = vmatpush3.msra.mxu1 %v415_v23  ;;  %v407_v31 = vld [vmem:[%s1289_s3 + $0x20] sm:$0xff]  ;;  %v406_v32 = vld [vmem:[%s1289_s3 + $0x18] sm:$0xff]  ;;  %v405_v33 = vld [vmem:[%s1289_s3 + $0x10] sm:$0xff] }
  0x16   : > { %933 = vmatprep.subr.mxu0 %v292_v9  ;;  %967 = vmatprep.subr.mxu1 %v1059_v2  ;;  %v404_v34 = vld [vmem:[%s1289_s3 + $0x8] sm:$0xff]  ;;  %v403_v35 = vld [vmem:[%s1289_s3] sm:$0xff] }
  0x17   : > { %934 = vmatpush3.msra.mxu0 %v292_v9  ;;  %968 = vmatpush3.msra.mxu1 %v414_v24  ;;  %v851_v37 = vld [vmem:[%s1288_s2] ss:$0 sm:$0xff] }
  0x18   : > { %935 = vmatprep.subr.mxu0 %v291_v11  ;;  %969 = vmatprep.subr.mxu1 %v1059_v2  ;;  %v419_v55 = vld [vmem:[%s1290_s4] sm:$0x3] }
  0x19   : > { %936 = vmatpush3.msra.mxu0 %v291_v11  ;;  %970 = vmatpush3.msra.mxu1 %v413_v25 }
  0x1a   : > { %937 = vmatprep.subr.mxu0 %v290_v12  ;;  %971 = vmatprep.subr.mxu1 %v1059_v2 }
  0x1b   : > { %938 = vmatpush3.msra.mxu0 %v290_v12  ;;  %972 = vmatpush3.msra.mxu1 %v412_v26 }
  0x1c   : > { %939 = vmatprep.subr.mxu0 %v289_v13  ;;  %973 = vmatprep.subr.mxu1 %v1059_v2 }
  0x1d   : > { %940 = vmatpush3.msra.mxu0 %v289_v13  ;;  %974 = vmatpush3.msra.mxu1 %v411_v27 }
  0x1e   : > { %941 = vmatprep.subr.mxu0 %v288_v14  ;;  %975 = vmatprep.subr.mxu1 %v1059_v2 }
  0x1f   : > { %942 = vmatpush3.msra.mxu0 %v288_v14  ;;  %976 = vmatpush3.msra.mxu1 %v410_v28 }
  0x20   : > { %943 = vmatprep.subr.mxu0 %v287_v15  ;;  %977 = vmatprep.subr.mxu1 %v1059_v2 }
  0x21   : > { %944 = vmatpush3.msra.mxu0 %v287_v15  ;;  %978 = vmatpush3.msra.mxu1 %v409_v29 }
  0x22   : > { %945 = vmatprep.subr.mxu0 %v286_v16  ;;  %979 = vmatprep.subr.mxu1 %v1059_v2 }
  0x23   : > { %946 = vmatpush3.msra.mxu0 %v286_v16  ;;  %980 = vmatpush3.msra.mxu1 %v408_v30 }
  0x24   : > { %947 = vmatprep.subr.mxu0 %v285_v17  ;;  %981 = vmatprep.subr.mxu1 %v1059_v2 }
  0x25   : > { %948 = vmatpush3.msra.mxu0 %v285_v17  ;;  %982 = vmatpush3.msra.mxu1 %v407_v31 }
  0x26   : > { %949 = vmatprep.subr.mxu0 %v284_v18  ;;  %983 = vmatprep.subr.mxu1 %v1059_v2 }
  0x27   : > { %950 = vmatpush3.msra.mxu0 %v284_v18  ;;  %984 = vmatpush3.msra.mxu1 %v406_v32 }
  0x28   : > { %951 = vmatprep.subr.mxu0 %v283_v19  ;;  %985 = vmatprep.subr.mxu1 %v1059_v2 }
  0x29   : > { %952 = vmatpush3.msra.mxu0 %v283_v19  ;;  %986 = vmatpush3.msra.mxu1 %v405_v33 }
  0x2a   : > { %954 = vmatmul.mubr.msk.f32.vlgmr.msra.gmra.mxu0 %vm305_vm0, %v280_v20  ;;  %999 = vmatprep.subr.mxu0 %v1059_v2 }
  0x2b   : > { %956 = vmatprep.mubr.msk.f32.mxu0 %vm305_vm0, %v281_v21  ;;  %1000 = vmatpush3.msra.mxu0 %v418_v5 }
  0x2c   : > { %1001 = vmatprep.subr.mxu0 %v1059_v2  ;;  %987 = vmatprep.subr.mxu1 %v1059_v2 }
  0x2d   : > { %1002 = vmatpush3.msra.mxu0 %v417_v8  ;;  %988 = vmatpush3.msra.mxu1 %v404_v34 }
  0x2e   : > { %957 = vmatmul.mubr.msk.f32.gmra.mxu0 %vm305_vm0, %v282_v22  ;;  %1003 = vmatprep.subr.mxu0 %v1059_v2 }
  0x2f   : > { %1004 = vmatpush3.msra.mxu0 %v416_v10  ;;  %989 = vmatprep.subr.mxu1 %v1059_v2 }
  0x30   : > { %1005 = vmatprep.subr.mxu0 %v1059_v2  ;;  %990 = vmatpush3.msra.mxu1 %v403_v35 }
  0x31   : > { %1006 = vmatpush3.msra.mxu0 %v415_v23  ;;  %994 = vmatprep.subr.mxu1 %v1059_v2 }
  0x32   : > { %1007 = vmatprep.subr.mxu0 %v1059_v2  ;;  %1031 = vmatprep.mubr.msk.f32.mxu0 %vm1060_vm1, %v1059_v2 }
  0x33   : > { %1008 = vmatpush3.msra.mxu0 %v414_v24 }
  0x34   : > { %1009 = vmatprep.subr.mxu0 %v1059_v2 }
  0x35   : > { %1010 = vmatpush3.msra.mxu0 %v413_v25 }
  0x36   : > { %1011 = vmatprep.subr.mxu0 %v1059_v2 }
  0x37   : > { %1012 = vmatpush3.msra.mxu0 %v412_v26  ;;  %v860_v26 = vld [vmem:[%s1291_s5] ss:$0 sm:$0xff] }
  0x38   : > { %1013 = vmatprep.subr.mxu0 %v1059_v2 }
  0x39   : > { %1014 = vmatpush3.msra.mxu0 %v411_v27 }
  0x3a   : > { %1015 = vmatprep.subr.mxu0 %v1059_v2 }
  0x3b   : > { %1016 = vmatpush3.msra.mxu0 %v410_v28 }
  0x3c   : > { %1017 = vmatprep.subr.mxu0 %v1059_v2 }
  0x3d   : > { %1018 = vmatpush3.msra.mxu0 %v409_v29 }
  0x3e   : > { %1019 = vmatprep.subr.mxu0 %v1059_v2 }
  0x3f   : > { %1020 = vmatpush3.msra.mxu0 %v408_v30 }
  0x40   : > { %1021 = vmatprep.subr.mxu0 %v1059_v2 }
  0x41   : > { %1022 = vmatpush3.msra.mxu0 %v407_v31 }
  0x42   : > { %1023 = vmatprep.subr.mxu0 %v1059_v2 }
  0x43   : > { %1024 = vmatpush3.msra.mxu0 %v406_v32  ;;  %v861_v32 = vld [vmem:[%s1292_s6] ss:$0 sm:$0xff] }
  0x44   : > { %1025 = vmatprep.subr.mxu0 %v1059_v2 }
  0x45   : > { %1026 = vmatpush3.msra.mxu0 %v405_v33 }
  0x46   : > { %1027 = vmatprep.subr.mxu0 %v1059_v2 }
  0x47   : > { %1028 = vmatpush3.msra.mxu0 %v404_v34 }
  0x48   : > { %1029 = vmatprep.subr.mxu0 %v1059_v2 }
  0x49   : > { %1030 = vmatpush3.msra.mxu0 %v403_v35 }
  0xea   : > { %v955_v36 = vpop.f32.mrf.mxu0 }
  0xeb   : > { %v390_v41 = vadd.f32 %v955_v36, %v851_v37 }
  0xec   : > { %v384_v38 = vpop.f32.mrf.mxu0 }
  0xed   : > { %v385_v39 = vadd.f32 %v851_v37, %v384_v38 }
  0xee   : > { %v958_v40 = vpop.f32.mrf.mxu0 }
  0xef   : > { %v400_v42 = vadd.f32 %v958_v40, %v851_v37  ;;  %v422_v44 = vadd.f32 %v390_v41, %v385_v39 }
  0xf0   : > { %v394_v43 = vpop.f32.mrf.mxu0 }
  0xf1   : > { %v395_v45 = vadd.f32 %v851_v37, %v394_v43  ;;  %v425_v47 = vsel %vm424_vm2, %v400_v42, 0.0 }
  0xf3   : > { %v423_v46 = vadd.f32 %v422_v44, %v395_v45 }
  0xf5   : > { %v426_v48 = vadd.f32 %v425_v47, %v423_v46 }
  0xf7   : > { %v427_v49 = vrot.slane %v426_v48, 4 }
  0xf9   : > { %v428_v50 = vadd.f32 %v427_v49, %v426_v48 }
  0xfb   : > { %v429_v51 = vrot.slane %v428_v50, 2 }
  0xfd   : > { %v430_v52 = vadd.f32 %v429_v51, %v428_v50 }
  0xff   : > { %v431_v53 = vrot.slane %v430_v52, 1 }
 0x101   : > { %v432_v54 = vadd.f32 %v431_v53, %v430_v52 }
 0x103   : > { %992 = vmatmul.mubr.f32.vlgmr.msra.gmra.mxu1 %v432_v54 }
 0x104   : > { %995 = vmatpush3.msk.msra.mxu1 %vm509_vm3, %v419_v55  ;;  %996 = vmatprep.mubr.msk.f32.mxu1 %vm1060_vm1, %v1059_v2 }
 0x105   : > { %1034 = vmatprep.subr.mxu1 %v1059_v2 }
 0x1c3   : > { %v499_v56 = vpop.f32.mrf.mxu1 }
 0x1c4   : > { %v504_v57 = vmul.f32 0.000625, %v499_v56 }
 0x1c5   : > { %v993_v58 = vpop.f32.mrf.mxu1 }
 0x1c6   : > { %997 = vmatmul.mubr.msk.f32.vlgmr.msra.gmra.mxu1 %vm505_vm4, %v504_v57 }
 0x1c7   : > { %1035 = vmatpush3.msk.msra.mxu1 %vm509_vm3, %v419_v55  ;;  %1036 = vmatprep.mubr.msk.f32.mxu1 %vm1060_vm1, %v1059_v2 }
 0x286   : > { %v579_v62 = vpop.f32.mrf.mxu1 }
 0x287   : > { %v586_v63 = vrot.slane %v579_v62, %v585_v61 }
 0x288   : > { %v998_v0 = vpop.f32.mrf.mxu1 }
 0x289   : > { %v587_v1 = vsub.f32 %v385_v39, %v586_v63  ;;  %v588_v3 = vsub.f32 %v390_v41, %v586_v63  ;;  %v589_v4 = vsub.f32 %v395_v45, %v586_v63  ;;  %v590_v5 = vsub.f32 %v400_v42, %v586_v63 }
 0x28b   : > { %v591_v6 = vmul.f32 %v587_v1, %v587_v1  ;;  %v592_v7 = vmul.f32 %v588_v3, %v588_v3  ;;  %v594_v8 = vmul.f32 %v590_v5, %v590_v5  ;;  %v593_v9 = vmul.f32 %v589_v4, %v589_v4 }
 0x28d   : > { %v595_v10 = vadd.f32 %v592_v7, %v591_v6  ;;  %v597_v12 = vsel %vm424_vm2, %v594_v8, 0.0 }
 0x28f   : > { %v596_v11 = vadd.f32 %v595_v10, %v593_v9 }
 0x291   : > { %v598_v13 = vadd.f32 %v597_v12, %v596_v11 }
 0x293   : > { %v599_v2 = vrot.slane %v598_v13, 4 }
 0x295   : > { %v600_v14 = vadd.f32 %v599_v2, %v598_v13 }
 0x297   : > { %v601_v15 = vrot.slane %v600_v14, 2 }
 0x299   : > { %v602_v16 = vadd.f32 %v601_v15, %v600_v14 }
 0x29b   : > { %v603_v17 = vrot.slane %v602_v16, 1 }
 0x29d   : > { %v604_v18 = vadd.f32 %v603_v17, %v602_v16 }
 0x29f   : > { %1032 = vmatmul.mubr.f32.vlgmr.msra.gmra.mxu0 %v604_v18 }
 0x35f   : > { %v671_v19 = vpop.f32.mrf.mxu0 }
 0x360   : > { %v675_v20 = vmul.f32 0.000625, %v671_v19 }
 0x361   : > { %v1033_v21 = vpop.f32.mrf.mxu0 }
 0x362   : > { %v676_v22 = vadd.f32 1e-05, %v675_v20 }
 0x364   : > { %1049 = vrsqrt.f32 %v676_v22 }
 0x371   : > { %v1050_v23 = vpop.eup %1049 }
 0x372   : > { %1037 = vmatmul.mubr.msk.f32.vlgmr.msra.gmra.mxu1 %vm505_vm4, %v1050_v23 }
 0x432   : > { %v747_v24 = vpop.f32.mrf.mxu1 }
 0x433   : > { %v754_v25 = vrot.slane %v747_v24, %v585_v61 }
 0x434   : > { %v1038_v27 = vpop.f32.mrf.mxu1 }
 0x435   : > { %v755_v28 = vmul.f32 %v754_v25, %v587_v1  ;;  %v756_v29 = vmul.f32 %v754_v25, %v588_v3  ;;  %v757_v30 = vmul.f32 %v754_v25, %v589_v4  ;;  %v758_v31 = vmul.f32 %v754_v25, %v590_v5 }
 0x437   : > { %v765_v33 = vmul.f32 %v860_v26, %v755_v28  ;;  %v766_v34 = vmul.f32 %v860_v26, %v756_v29  ;;  %v767_v35 = vmul.f32 %v860_v26, %v757_v30  ;;  %v768_v36 = vmul.f32 %v860_v26, %v758_v31 }
 0x439   : > { %v775_v37 = vadd.f32 %v861_v32, %v765_v33  ;;  %v776_v38 = vadd.f32 %v861_v32, %v766_v34  ;;  %v777_v39 = vadd.f32 %v861_v32, %v767_v35  ;;  %v778_v40 = vadd.f32 %v861_v32, %v768_v36 }
 0x43b   : > { %v779_v41 = vmax.f32 %v775_v37, 0.0  ;;  %v780_v42 = vmax.f32 %v776_v38, 0.0  ;;  %v781_v43 = vmax.f32 %v777_v39, 0.0  ;;  %v782_v44 = vmax.f32 %v778_v40, 0.0 }
 0x43d   : > { %783 = vst [vmem:[%s278_s20] sm:$0xff] %v779_v41  ;;  %784 = vst [vmem:[%s278_s20 + $0x8] sm:$0xff] %v780_v42 }
 0x43e   : > { %785 = vst [vmem:[%s278_s20 + $0x10] sm:$0xff] %v781_v43  ;;  %786 = vst [vmem:[%s278_s20 + $0x18] sm:$0x1] %v782_v44 }
 0x43f PF: > { %s17_s24 = sadd.s32 1, %s1057_s24  }
 0x440   : > { %p14_p4 = scmp.ge.s32.totalorder %s17_s24, 4  }
 0x442   :  { %16 = sbr.rel (!%p14_p4) target bundleno = 1 (0x1), region = 78 }

// kernel: a2s2k_forward.26
= control target key start
LH: loop header
LB: loop body
LE: loop exit
PB: predicated region body
PF: predicated region fallthrough
CT: control target
= control target key end

     0   :  { %s1687_s24 = smov 0   ;;  %s2255_s0 = inlined_call_operand.vmem [shape: f32[2,25,1152], index: 0, kind: input, shape index: {}]   ;;  %s2256_s1 = inlined_call_operand.vmem [shape: f32[1152,24], index: 1, kind: input, shape index: {}]   ;;  %s2257_s2 = inlined_call_operand.vmem [shape: f32[1,24], index: 2, kind: input, shape index: {}]   ;;  %s2258_s3 = inlined_call_operand.vmem [shape: f32[24,2], index: 3, kind: input, shape index: {}]   ;;  %s2259_s4 = inlined_call_operand.vmem [shape: f32[2,24], index: 4, kind: input, shape index: {}]   ;;  %s2260_s5 = inlined_call_operand.vmem [shape: f32[1,24], index: 5, kind: input, shape index: {}]   ;;  %s2261_s6 = inlined_call_operand.vmem [shape: f32[1,24], index: 6, kind: input, shape index: {}]   ;;  %s2262_s7 = inlined_call_operand.vmem [shape: f32[2,25,24], index: 7, kind: output, shape index: {}]  }
   0x1 LB: > { %s1330_s25 = sadd.s32 4294967295, %s1643_s24   ;;  %p1334_p0 = scmp.ge.s32.totalorder %s1643_s24, 1  ;;  %s1643_s24 = sphi %s1687_s24, %s17_s24  }
   0x2   : > { %p237_p1 = scmp.lt.s32.totalorder %s1643_s24, 3 }
   0x4   : > { %p238_p2 = pnand %p1334_p0, %p237_p1 }
   0x5   : > { %p1790_p3 = scmp.lt.s32.totalorder (!%p238_p2), %s1330_s25, 1 }
   0x6   : > { %241 = sbr.rel (%p238_p2) target bundleno = 1166 (0x48e), region = 48 }
   0xb   : > { %v346_v0 = vld [vmem:[%s2256_s1 + $0xf8] sm:$0xff]  ;;  %v345_v2 = vld [vmem:[%s2256_s1 + $0xf0] sm:$0xff]  ;;  %v344_v6 = vld [vmem:[%s2256_s1 + $0xe8] sm:$0xff]  ;;  %s2265_s25 = smov (!%p1790_p3, %s1330_s25), 1  ;;  %vm1646_vm0 = vmmov 0   ;;  %vm897_vm1 = vcmask 195584  }
   0xc   : > { %v330_v1 = vld [vmem:[%s2256_s1 + $0x78] sm:$0xff]  ;;  %1350 = vmatprep.subr.mxu0 %v346_v0  ;;  %v329_v4 = vld [vmem:[%s2256_s1 + $0x70] sm:$0xff]  ;;  %v328_v8 = vld [vmem:[%s2256_s1 + $0x68] sm:$0xff]  ;;  %s1624_s14 = smul.u32 288, %s2265_s25  ;;  %vm903_vm2 = vcmask 188416   ;;  %vm991_vm3 = vcmask 1041408  }
   0xd   : > { %v378_v3 = vld [vmem:[%s2256_s1 + $0x1f8] sm:$0xff]  ;;  %1351 = vmatpush3.msra.mxu0 %v330_v1  ;;  %v377_v7 = vld [vmem:[%s2256_s1 + $0x1f0] sm:$0xff]  ;;  %v376_v10 = vld [vmem:[%s2256_s1 + $0x1e8] sm:$0xff]  ;;  %vm987_vm4 = vcmask 15360   ;;  %s1349_s27 = sshll.u32 %s2265_s25, 5 }
   0xe   : > { %v362_v5 = vld [vmem:[%s2256_s1 + $0x178] sm:$0xff]  ;;  %1394 = vmatprep.subr.mxu1 %v378_v3  ;;  %1352 = vmatprep.subr.mxu0 %v345_v2  ;;  %v361_v9 = vld [vmem:[%s2256_s1 + $0x170] sm:$0xff]  ;;  %v343_v11 = vld [vmem:[%s2256_s1 + $0xe0] sm:$0xff]  ;;  %s1876_s12 = scalar_lea.vmem %s2255_s0, %s1624_s14  ;;  %s278_s29 = scalar_lea.vmem %s2262_s7, %s1349_s27 }
   0xf   : > { %1395 = vmatpush3.msra.mxu1 %v362_v5  ;;  %1353 = vmatpush3.msra.mxu0 %v329_v4  ;;  %v360_v12 = vld [vmem:[%s2256_s1 + $0x168] sm:$0xff]  ;;  %v327_v13 = vld [vmem:[%s2256_s1 + $0x60] sm:$0xff]  ;;  %v342_v15 = vld [vmem:[%s2256_s1 + $0xd8] sm:$0xff] }
  0x10   : > { %1396 = vmatprep.subr.mxu1 %v377_v7  ;;  %1354 = vmatprep.subr.mxu0 %v344_v6  ;;  %v375_v14 = vld [vmem:[%s2256_s1 + $0x1e0] sm:$0xff]  ;;  %v326_v17 = vld [vmem:[%s2256_s1 + $0x58] sm:$0xff]  ;;  %v341_v19 = vld [vmem:[%s2256_s1 + $0xd0] sm:$0xff] }
  0x11   : > { %1397 = vmatpush3.msra.mxu1 %v361_v9  ;;  %1355 = vmatpush3.msra.mxu0 %v328_v8  ;;  %v359_v16 = vld [vmem:[%s2256_s1 + $0x160] sm:$0xff]  ;;  %v374_v18 = vld [vmem:[%s2256_s1 + $0x1d8] sm:$0xff]  ;;  %v325_v21 = vld [vmem:[%s2256_s1 + $0x50] sm:$0xff] }
  0x12   : > { %1398 = vmatprep.subr.mxu1 %v376_v10  ;;  %1356 = vmatprep.subr.mxu0 %v343_v11  ;;  %v358_v20 = vld [vmem:[%s2256_s1 + $0x158] sm:$0xff]  ;;  %v373_v22 = vld [vmem:[%s2256_s1 + $0x1d0] sm:$0xff]  ;;  %v340_v23 = vld [vmem:[%s2256_s1 + $0xc8] sm:$0xff] }
  0x13   : > { %1399 = vmatpush3.msra.mxu1 %v360_v12  ;;  %1357 = vmatpush3.msra.mxu0 %v327_v13  ;;  %v357_v24 = vld [vmem:[%s2256_s1 + $0x150] sm:$0xff]  ;;  %v324_v25 = vld [vmem:[%s2256_s1 + $0x48] sm:$0xff]  ;;  %v339_v27 = vld [vmem:[%s2256_s1 + $0xc0] sm:$0xff] }
  0x14   : > { %1400 = vmatprep.subr.mxu1 %v375_v14  ;;  %1358 = vmatprep.subr.mxu0 %v342_v15  ;;  %v372_v26 = vld [vmem:[%s2256_s1 + $0x1c8] sm:$0xff]  ;;  %v323_v29 = vld [vmem:[%s2256_s1 + $0x40] sm:$0xff]  ;;  %v338_v31 = vld [vmem:[%s2256_s1 + $0xb8] sm:$0xff] }
  0x15   : > { %1401 = vmatpush3.msra.mxu1 %v359_v16  ;;  %1359 = vmatpush3.msra.mxu0 %v326_v17  ;;  %v356_v28 = vld [vmem:[%s2256_s1 + $0x148] sm:$0xff]  ;;  %v371_v30 = vld [vmem:[%s2256_s1 + $0x1c0] sm:$0xff]  ;;  %v322_v33 = vld [vmem:[%s2256_s1 + $0x38] sm:$0xff] }
  0x16   : > { %1402 = vmatprep.subr.mxu1 %v374_v18  ;;  %1360 = vmatprep.subr.mxu0 %v341_v19  ;;  %v355_v32 = vld [vmem:[%s2256_s1 + $0x140] sm:$0xff]  ;;  %v370_v34 = vld [vmem:[%s2256_s1 + $0x1b8] sm:$0xff]  ;;  %v337_v35 = vld [vmem:[%s2256_s1 + $0xb0] sm:$0xff] }
  0x17   : > { %1403 = vmatpush3.msra.mxu1 %v358_v20  ;;  %1361 = vmatpush3.msra.mxu0 %v325_v21  ;;  %v354_v36 = vld [vmem:[%s2256_s1 + $0x138] sm:$0xff]  ;;  %v321_v37 = vld [vmem:[%s2256_s1 + $0x30] sm:$0xff]  ;;  %v336_v39 = vld [vmem:[%s2256_s1 + $0xa8] sm:$0xff] }
  0x18   : > { %1404 = vmatprep.subr.mxu1 %v373_v22  ;;  %1362 = vmatprep.subr.mxu0 %v340_v23  ;;  %v369_v38 = vld [vmem:[%s2256_s1 + $0x1b0] sm:$0xff]  ;;  %v320_v41 = vld [vmem:[%s2256_s1 + $0x28] sm:$0xff]  ;;  %v335_v43 = vld [vmem:[%s2256_s1 + $0xa0] sm:$0xff] }
  0x19   : > { %1405 = vmatpush3.msra.mxu1 %v357_v24  ;;  %1363 = vmatpush3.msra.mxu0 %v324_v25  ;;  %v353_v40 = vld [vmem:[%s2256_s1 + $0x130] sm:$0xff]  ;;  %v368_v42 = vld [vmem:[%s2256_s1 + $0x1a8] sm:$0xff]  ;;  %v319_v45 = vld [vmem:[%s2256_s1 + $0x20] sm:$0xff] }
  0x1a   : > { %1406 = vmatprep.subr.mxu1 %v372_v26  ;;  %1364 = vmatprep.subr.mxu0 %v339_v27  ;;  %v352_v44 = vld [vmem:[%s2256_s1 + $0x128] sm:$0xff]  ;;  %v367_v46 = vld [vmem:[%s2256_s1 + $0x1a0] sm:$0xff]  ;;  %v334_v47 = vld [vmem:[%s2256_s1 + $0x98] sm:$0xff] }
  0x1b   : > { %1407 = vmatpush3.msra.mxu1 %v356_v28  ;;  %1365 = vmatpush3.msra.mxu0 %v323_v29  ;;  %v351_v48 = vld [vmem:[%s2256_s1 + $0x120] sm:$0xff]  ;;  %v318_v49 = vld [vmem:[%s2256_s1 + $0x18] sm:$0xff]  ;;  %v333_v51 = vld [vmem:[%s2256_s1 + $0x90] sm:$0xff] }
  0x1c   : > { %1408 = vmatprep.subr.mxu1 %v371_v30  ;;  %1366 = vmatprep.subr.mxu0 %v338_v31  ;;  %v366_v50 = vld [vmem:[%s2256_s1 + $0x198] sm:$0xff]  ;;  %v317_v53 = vld [vmem:[%s2256_s1 + $0x10] sm:$0xff]  ;;  %v332_v55 = vld [vmem:[%s2256_s1 + $0x88] sm:$0xff] }
  0x1d   : > { %1409 = vmatpush3.msra.mxu1 %v355_v32  ;;  %1367 = vmatpush3.msra.mxu0 %v322_v33  ;;  %v350_v52 = vld [vmem:[%s2256_s1 + $0x118] sm:$0xff]  ;;  %v365_v54 = vld [vmem:[%s2256_s1 + $0x190] sm:$0xff]  ;;  %v316_v57 = vld [vmem:[%s2256_s1 + $0x8] sm:$0xff] }
  0x1e   : > { %1410 = vmatprep.subr.mxu1 %v370_v34  ;;  %1368 = vmatprep.subr.mxu0 %v337_v35  ;;  %v349_v56 = vld [vmem:[%s2256_s1 + $0x110] sm:$0xff]  ;;  %v364_v58 = vld [vmem:[%s2256_s1 + $0x188] sm:$0xff]  ;;  %v331_v59 = vld [vmem:[%s2256_s1 + $0x80] sm:$0xff] }
  0x1f   : > { %1411 = vmatpush3.msra.mxu1 %v354_v36  ;;  %1369 = vmatpush3.msra.mxu0 %v321_v37  ;;  %v280_v60 = vld [vmem:[%s1876_s12 + $0x8] sm:$0xff]  ;;  %v315_v61 = vld [vmem:[%s2256_s1] sm:$0xff]  ;;  %v410_v1 = vld [vmem:[%s2256_s1 + $0x2f8] sm:$0xff] }
  0x20   : > { %1412 = vmatprep.subr.mxu1 %v369_v38  ;;  %1370 = vmatprep.subr.mxu0 %v336_v39  ;;  %v348_v62 = vld [vmem:[%s2256_s1 + $0x108] sm:$0xff]  ;;  %v279_v63 = vld [vmem:[%s1876_s12] sm:$0xff]  ;;  %v282_v3 = vld [vmem:[%s1876_s12 + $0x18] sm:$0xff] }
  0x21   : > { %1413 = vmatpush3.msra.mxu1 %v353_v40  ;;  %1371 = vmatpush3.msra.mxu0 %v320_v41  ;;  %v363_v0 = vld [vmem:[%s2256_s1 + $0x180] sm:$0xff]  ;;  %v394_v4 = vld [vmem:[%s2256_s1 + $0x278] sm:$0xff]  ;;  %v281_v5 = vld [vmem:[%s1876_s12 + $0x10] sm:$0xff] }
  0x22   : > { %1414 = vmatprep.subr.mxu1 %v368_v42  ;;  %1372 = vmatprep.subr.mxu0 %v335_v43  ;;  %v347_v2 = vld [vmem:[%s2256_s1 + $0x100] sm:$0xff]  ;;  %v409_v6 = vld [vmem:[%s2256_s1 + $0x2f0] sm:$0xff]  ;;  %v442_v7 = vld [vmem:[%s2256_s1 + $0x3f8] sm:$0xff] }
  0x23   : > { %1415 = vmatpush3.msra.mxu1 %v352_v44  ;;  %1373 = vmatpush3.msra.mxu0 %v319_v45  ;;  %v393_v8 = vld [vmem:[%s2256_s1 + $0x270] sm:$0xff]  ;;  %v426_v9 = vld [vmem:[%s2256_s1 + $0x378] sm:$0xff]  ;;  %v408_v10 = vld [vmem:[%s2256_s1 + $0x2e8] sm:$0xff] }
  0x24   : > { %1416 = vmatprep.subr.mxu1 %v367_v46  ;;  %1374 = vmatprep.subr.mxu0 %v334_v47  ;;  %v441_v11 = vld [vmem:[%s2256_s1 + $0x3f0] sm:$0xff]  ;;  %v392_v12 = vld [vmem:[%s2256_s1 + $0x268] sm:$0xff]  ;;  %v407_v14 = vld [vmem:[%s2256_s1 + $0x2e0] sm:$0xff] }
  0x25   : > { %1417 = vmatpush3.msra.mxu1 %v351_v48  ;;  %1375 = vmatpush3.msra.mxu0 %v318_v49  ;;  %v425_v13 = vld [vmem:[%s2256_s1 + $0x370] sm:$0xff]  ;;  %v440_v15 = vld [vmem:[%s2256_s1 + $0x3e8] sm:$0xff]  ;;  %v391_v16 = vld [vmem:[%s2256_s1 + $0x260] sm:$0xff] }
  0x26   : > { %1418 = vmatprep.subr.mxu1 %v366_v50  ;;  %1376 = vmatprep.subr.mxu0 %v333_v51  ;;  %v424_v17 = vld [vmem:[%s2256_s1 + $0x368] sm:$0xff]  ;;  %v406_v18 = vld [vmem:[%s2256_s1 + $0x2d8] sm:$0xff]  ;;  %v439_v19 = vld [vmem:[%s2256_s1 + $0x3e0] sm:$0xff] }
  0x27   : > { %1419 = vmatpush3.msra.mxu1 %v350_v52  ;;  %1377 = vmatpush3.msra.mxu0 %v317_v53  ;;  %v390_v20 = vld [vmem:[%s2256_s1 + $0x258] sm:$0xff]  ;;  %v423_v21 = vld [vmem:[%s2256_s1 + $0x360] sm:$0xff]  ;;  %v405_v22 = vld [vmem:[%s2256_s1 + $0x2d0] sm:$0xff] }
  0x28   : > { %1420 = vmatprep.subr.mxu1 %v365_v54  ;;  %1378 = vmatprep.subr.mxu0 %v332_v55  ;;  %v438_v23 = vld [vmem:[%s2256_s1 + $0x3d8] sm:$0xff]  ;;  %v389_v24 = vld [vmem:[%s2256_s1 + $0x250] sm:$0xff]  ;;  %v404_v26 = vld [vmem:[%s2256_s1 + $0x2c8] sm:$0xff] }
  0x29   : > { %1421 = vmatpush3.msra.mxu1 %v349_v56  ;;  %1379 = vmatpush3.msra.mxu0 %v316_v57  ;;  %v422_v25 = vld [vmem:[%s2256_s1 + $0x358] sm:$0xff]  ;;  %v437_v27 = vld [vmem:[%s2256_s1 + $0x3d0] sm:$0xff]  ;;  %v388_v28 = vld [vmem:[%s2256_s1 + $0x248] sm:$0xff] }
  0x2a   : > { %1422 = vmatprep.subr.mxu1 %v364_v58  ;;  %1380 = vmatprep.subr.mxu0 %v331_v59  ;;  %v421_v29 = vld [vmem:[%s2256_s1 + $0x350] sm:$0xff]  ;;  %v403_v30 = vld [vmem:[%s2256_s1 + $0x2c0] sm:$0xff]  ;;  %v436_v31 = vld [vmem:[%s2256_s1 + $0x3c8] sm:$0xff] }
  0x2b   : > { %530 = vmatprep.mubr.f32.mxu0 %v280_v60  ;;  %1381 = vmatpush3.msra.mxu0 %v315_v61  ;;  %v387_v32 = vld [vmem:[%s2256_s1 + $0x240] sm:$0xff]  ;;  %v420_v33 = vld [vmem:[%s2256_s1 + $0x348] sm:$0xff]  ;;  %v402_v34 = vld [vmem:[%s2256_s1 + $0x2b8] sm:$0xff] }
  0x2c   : > { %1423 = vmatpush3.msra.mxu1 %v348_v62  ;;  %531 = vmatmul.mubr.f32.vlgmr.msra.gmra.mxu0 %v279_v63  ;;  %v435_v35 = vld [vmem:[%s2256_s1 + $0x3c0] sm:$0xff]  ;;  %v386_v36 = vld [vmem:[%s2256_s1 + $0x238] sm:$0xff]  ;;  %v289_v38 = vld [vmem:[%s1876_s12 + $0x50] sm:$0xff] }
  0x2d   : > { %1424 = vmatprep.subr.mxu1 %v363_v0  ;;  %1438 = vmatprep.subr.mxu0 %v410_v1  ;;  %v419_v37 = vld [vmem:[%s2256_s1 + $0x340] sm:$0xff]  ;;  %v401_v39 = vld [vmem:[%s2256_s1 + $0x2b0] sm:$0xff]  ;;  %v434_v40 = vld [vmem:[%s2256_s1 + $0x3b8] sm:$0xff] }
  0x2e   : > { %1425 = vmatpush3.msra.mxu1 %v347_v2  ;;  %615 = vmatprep.mubr.f32.mxu1 %v282_v3  ;;  %v288_v41 = vld [vmem:[%s1876_s12 + $0x48] sm:$0xff]  ;;  %v418_v42 = vld [vmem:[%s2256_s1 + $0x338] sm:$0xff]  ;;  %v385_v43 = vld [vmem:[%s2256_s1 + $0x230] sm:$0xff] }
  0x2f   : > { %1439 = vmatpush3.msra.mxu0 %v394_v4  ;;  %616 = vmatmul.mubr.f32.vlgmr.msra.gmra.mxu1 %v281_v5  ;;  %v291_v44 = vld [vmem:[%s1876_s12 + $0x60] sm:$0xff]  ;;  %v400_v45 = vld [vmem:[%s2256_s1 + $0x2a8] sm:$0xff]  ;;  %v433_v46 = vld [vmem:[%s2256_s1 + $0x3b0] sm:$0xff] }
  0x30   : > { %1440 = vmatprep.subr.mxu0 %v409_v6  ;;  %1482 = vmatprep.subr.mxu1 %v442_v7  ;;  %v290_v47 = vld [vmem:[%s1876_s12 + $0x58] sm:$0xff]  ;;  %v384_v48 = vld [vmem:[%s2256_s1 + $0x228] sm:$0xff]  ;;  %v417_v49 = vld [vmem:[%s2256_s1 + $0x330] sm:$0xff] }
  0x31   : > { %1441 = vmatpush3.msra.mxu0 %v393_v8  ;;  %1483 = vmatpush3.msra.mxu1 %v426_v9  ;;  %v298_v50 = vld [vmem:[%s1876_s12 + $0x98] sm:$0xff]  ;;  %v399_v51 = vld [vmem:[%s2256_s1 + $0x2a0] sm:$0xff]  ;;  %v432_v52 = vld [vmem:[%s2256_s1 + $0x3a8] sm:$0xff] }
  0x32   : > { %1442 = vmatprep.subr.mxu0 %v408_v10  ;;  %1484 = vmatprep.subr.mxu1 %v441_v11  ;;  %v297_v53 = vld [vmem:[%s1876_s12 + $0x90] sm:$0xff]  ;;  %v416_v54 = vld [vmem:[%s2256_s1 + $0x328] sm:$0xff]  ;;  %v383_v55 = vld [vmem:[%s2256_s1 + $0x220] sm:$0xff] }
  0x33   : > { %1443 = vmatpush3.msra.mxu0 %v392_v12  ;;  %1485 = vmatpush3.msra.mxu1 %v425_v13  ;;  %v300_v56 = vld [vmem:[%s1876_s12 + $0xa8] sm:$0xff]  ;;  %v398_v57 = vld [vmem:[%s2256_s1 + $0x298] sm:$0xff]  ;;  %v431_v58 = vld [vmem:[%s2256_s1 + $0x3a0] sm:$0xff] }
  0x34   : > { %1444 = vmatprep.subr.mxu0 %v407_v14  ;;  %1486 = vmatprep.subr.mxu1 %v440_v15  ;;  %v299_v59 = vld [vmem:[%s1876_s12 + $0xa0] sm:$0xff]  ;;  %v382_v60 = vld [vmem:[%s2256_s1 + $0x218] sm:$0xff]  ;;  %v397_v63 = vld [vmem:[%s2256_s1 + $0x290] sm:$0xff] }
  0x35   : > { %1445 = vmatpush3.msra.mxu0 %v391_v16  ;;  %1487 = vmatpush3.msra.mxu1 %v424_v17  ;;  %v415_v61 = vld [vmem:[%s2256_s1 + $0x320] sm:$0xff]  ;;  %v430_v0 = vld [vmem:[%s2256_s1 + $0x398] sm:$0xff]  ;;  %v381_v3 = vld [vmem:[%s2256_s1 + $0x210] sm:$0xff] }
  0x36   : > { %1446 = vmatprep.subr.mxu0 %v406_v18  ;;  %1488 = vmatprep.subr.mxu1 %v439_v19  ;;  %v307_v62 = vld [vmem:[%s1876_s12 + $0xe0] sm:$0x1]  ;;  %v306_v1 = vld [vmem:[%s1876_s12 + $0xd8] sm:$0x1]  ;;  %v309_v4 = vld [vmem:[%s1876_s12 + $0xf0] sm:$0x1] }
  0x37   : > { %1447 = vmatpush3.msra.mxu0 %v390_v20  ;;  %1489 = vmatpush3.msra.mxu1 %v423_v21  ;;  %v414_v2 = vld [vmem:[%s2256_s1 + $0x318] sm:$0xff]  ;;  %v396_v5 = vld [vmem:[%s2256_s1 + $0x288] sm:$0xff]  ;;  %v429_v6 = vld [vmem:[%s2256_s1 + $0x390] sm:$0xff] }
  0x38   : > { %1448 = vmatprep.subr.mxu0 %v405_v22  ;;  %1490 = vmatprep.subr.mxu1 %v438_v23  ;;  %v308_v7 = vld [vmem:[%s1876_s12 + $0xe8] sm:$0x1]  ;;  %v413_v9 = vld [vmem:[%s2256_s1 + $0x310] sm:$0xff]  ;;  %v395_v10 = vld [vmem:[%s2256_s1 + $0x280] sm:$0xff] }
  0x39   : > { %1449 = vmatpush3.msra.mxu0 %v389_v24  ;;  %1491 = vmatpush3.msra.mxu1 %v422_v25  ;;  %v380_v8 = vld [vmem:[%s2256_s1 + $0x208] sm:$0xff]  ;;  %v379_v12 = vld [vmem:[%s2256_s1 + $0x200] sm:$0xff]  ;;  %v458_v17 = vld [vmem:[%s2256_s1 + $0x478] sm:$0xff] }
  0x3a   : > { %1450 = vmatprep.subr.mxu0 %v404_v26  ;;  %1492 = vmatprep.subr.mxu1 %v437_v27  ;;  %v428_v11 = vld [vmem:[%s2256_s1 + $0x388] sm:$0xff]  ;;  %v283_v15 = vld [vmem:[%s1876_s12 + $0x20] sm:$0xff]  ;;  %v286_v19 = vld [vmem:[%s1876_s12 + $0x38] sm:$0xff] }
  0x3b   : > { %1451 = vmatpush3.msra.mxu0 %v388_v28  ;;  %1493 = vmatpush3.msra.mxu1 %v421_v29  ;;  %v284_v13 = vld [vmem:[%s1876_s12 + $0x28] sm:$0xff]  ;;  %v427_v16 = vld [vmem:[%s2256_s1 + $0x380] sm:$0xff]  ;;  %v285_v20 = vld [vmem:[%s1876_s12 + $0x30] sm:$0xff] }
  0x3c   : > { %1452 = vmatprep.subr.mxu0 %v403_v30  ;;  %1494 = vmatprep.subr.mxu1 %v436_v31  ;;  %v412_v14 = vld [vmem:[%s2256_s1 + $0x308] sm:$0xff]  ;;  %v411_v18 = vld [vmem:[%s2256_s1 + $0x300] sm:$0xff]  ;;  %v457_v21 = vld [vmem:[%s2256_s1 + $0x470] sm:$0xff] }
  0x3d   : > { %1453 = vmatpush3.msra.mxu0 %v387_v32  ;;  %1495 = vmatpush3.msra.mxu1 %v420_v33  ;;  %v293_v22 = vld [vmem:[%s1876_s12 + $0x70] sm:$0xff]  ;;  %v292_v23 = vld [vmem:[%s1876_s12 + $0x68] sm:$0xff]  ;;  %v295_v25 = vld [vmem:[%s1876_s12 + $0x80] sm:$0xff] }
  0x3e   : > { %1454 = vmatprep.subr.mxu0 %v402_v34  ;;  %1496 = vmatprep.subr.mxu1 %v435_v35  ;;  %v456_v24 = vld [vmem:[%s2256_s1 + $0x468] sm:$0xff]  ;;  %v294_v26 = vld [vmem:[%s1876_s12 + $0x78] sm:$0xff]  ;;  %v455_v27 = vld [vmem:[%s2256_s1 + $0x460] sm:$0xff] }
  0x3f   : > { %1455 = vmatpush3.msra.mxu0 %v386_v36  ;;  %1497 = vmatpush3.msra.mxu1 %v419_v37  ;;  %v302_v28 = vld [vmem:[%s1876_s12 + $0xb8] sm:$0xff]  ;;  %v301_v29 = vld [vmem:[%s1876_s12 + $0xb0] sm:$0xff]  ;;  %v304_v31 = vld [vmem:[%s1876_s12 + $0xc8] sm:$0xff] }
  0x40   : > { %535 = vmatprep.mubr.f32.mxu0 %v289_v38  ;;  %1456 = vmatprep.subr.mxu0 %v401_v39  ;;  %v454_v30 = vld [vmem:[%s2256_s1 + $0x458] sm:$0xff]  ;;  %v303_v32 = vld [vmem:[%s1876_s12 + $0xc0] sm:$0xff]  ;;  %v453_v33 = vld [vmem:[%s2256_s1 + $0x450] sm:$0xff] }
  0x41   : > { %1498 = vmatprep.subr.mxu1 %v434_v40  ;;  %536 = vmatmul.mubr.f32.gmra.mxu0 %v288_v41  ;;  %v311_v34 = vld [vmem:[%s1876_s12 + $0x100] sm:$0x1]  ;;  %v310_v35 = vld [vmem:[%s1876_s12 + $0xf8] sm:$0x1]  ;;  %v452_v36 = vld [vmem:[%s2256_s1 + $0x448] sm:$0xff] }
  0x42   : > { %1499 = vmatpush3.msra.mxu1 %v418_v42  ;;  %1457 = vmatpush3.msra.mxu0 %v385_v43  ;;  %v313_v37 = vld [vmem:[%s1876_s12 + $0x110] sm:$0x1]  ;;  %v312_v38 = vld [vmem:[%s1876_s12 + $0x108] sm:$0x1]  ;;  %v451_v39 = vld [vmem:[%s2256_s1 + $0x440] sm:$0xff] }
  0x43   : > { %620 = vmatprep.mubr.f32.mxu1 %v291_v44  ;;  %1458 = vmatprep.subr.mxu0 %v400_v45  ;;  %v287_v40 = vld [vmem:[%s1876_s12 + $0x40] sm:$0xff]  ;;  %v450_v41 = vld [vmem:[%s2256_s1 + $0x438] sm:$0xff]  ;;  %v449_v42 = vld [vmem:[%s2256_s1 + $0x430] sm:$0xff] }
  0x44   : > { %1500 = vmatprep.subr.mxu1 %v433_v46  ;;  %621 = vmatmul.mubr.f32.gmra.mxu1 %v290_v47  ;;  %v448_v43 = vld [vmem:[%s2256_s1 + $0x428] sm:$0xff]  ;;  %v447_v44 = vld [vmem:[%s2256_s1 + $0x420] sm:$0xff]  ;;  %v446_v45 = vld [vmem:[%s2256_s1 + $0x418] sm:$0xff] }
  0x45   : > { %1459 = vmatpush3.msra.mxu0 %v384_v48  ;;  %1501 = vmatpush3.msra.mxu1 %v417_v49  ;;  %v445_v46 = vld [vmem:[%s2256_s1 + $0x410] sm:$0xff]  ;;  %v444_v47 = vld [vmem:[%s2256_s1 + $0x408] sm:$0xff]  ;;  %v443_v48 = vld [vmem:[%s2256_s1 + $0x400] sm:$0xff] }
  0x46   : > { %540 = vmatprep.mubr.f32.mxu0 %v298_v50  ;;  %1460 = vmatprep.subr.mxu0 %v399_v51  ;;  %v296_v49 = vld [vmem:[%s1876_s12 + $0x88] sm:$0xff]  ;;  %v305_v50 = vld [vmem:[%s1876_s12 + $0xd0] sm:$0xff]  ;;  %v314_v51 = vld [vmem:[%s1876_s12 + $0x118] sm:$0x1] }
  0x47   : > { %1502 = vmatprep.subr.mxu1 %v432_v52  ;;  %541 = vmatmul.mubr.f32.gmra.mxu0 %v297_v53  ;;  %v1645_v52 = vmov 0.0   ;;  %v2185_v53 = vld [vmem:[%s2258_s3 + $0x10] sm:$0xff] }
  0x48   : > { %1503 = vmatpush3.msra.mxu1 %v416_v54  ;;  %1461 = vmatpush3.msra.mxu0 %v383_v55  ;;  %v2192_v54 = vld [vmem:[%s2258_s3 + $0x8] sm:$0xff]  ;;  %v2199_v55 = vld [vmem:[%s2258_s3] sm:$0xff] }
  0x49   : > { %625 = vmatprep.mubr.f32.mxu1 %v300_v56  ;;  %1462 = vmatprep.subr.mxu0 %v398_v57 }
  0x4a   : > { %1504 = vmatprep.subr.mxu1 %v431_v58  ;;  %626 = vmatmul.mubr.f32.gmra.mxu1 %v299_v59 }
  0x4b   : > { %1463 = vmatpush3.msra.mxu0 %v382_v60  ;;  %1505 = vmatpush3.msra.mxu1 %v415_v61 }
  0x4c   : > { %545 = vmatprep.mubr.f32.mxu0 %v307_v62  ;;  %1464 = vmatprep.subr.mxu0 %v397_v63 }
  0x4d   : > { %1506 = vmatprep.subr.mxu1 %v430_v0  ;;  %546 = vmatmul.mubr.f32.gmra.mxu0 %v306_v1 }
  0x4e   : > { %1507 = vmatpush3.msra.mxu1 %v414_v2  ;;  %1465 = vmatpush3.msra.mxu0 %v381_v3 }
  0x4f   : > { %630 = vmatprep.mubr.f32.mxu1 %v309_v4  ;;  %1466 = vmatprep.subr.mxu0 %v396_v5 }
  0x50   : > { %1508 = vmatprep.subr.mxu1 %v429_v6  ;;  %631 = vmatmul.mubr.f32.gmra.mxu1 %v308_v7 }
  0x51   : > { %1467 = vmatpush3.msra.mxu0 %v380_v8  ;;  %1509 = vmatpush3.msra.mxu1 %v413_v9 }
  0x52   : > { %1468 = vmatprep.subr.mxu0 %v395_v10  ;;  %1510 = vmatprep.subr.mxu1 %v428_v11 }
  0x53   : > { %1469 = vmatpush3.msra.mxu0 %v379_v12  ;;  %700 = vmatprep.mubr.f32.mxu0 %v284_v13 }
  0x54   : > { %1511 = vmatpush3.msra.mxu1 %v412_v14  ;;  %701 = vmatmul.mubr.f32.vlgmr.msra.gmra.mxu0 %v283_v15 }
  0x55   : > { %1512 = vmatprep.subr.mxu1 %v427_v16  ;;  %1558 = vmatprep.subr.mxu0 %v458_v17 }
  0x56   : > { %1513 = vmatpush3.msra.mxu1 %v411_v18  ;;  %785 = vmatprep.mubr.f32.mxu1 %v286_v19 }
  0x57   : > { %1559 = vmatpush3.msra.mxu0 %v458_v17  ;;  %786 = vmatmul.mubr.f32.vlgmr.msra.gmra.mxu1 %v285_v20 }
  0x58   : > { %1560 = vmatprep.subr.mxu0 %v457_v21  ;;  %705 = vmatprep.mubr.f32.mxu0 %v293_v22 }
  0x59   : > { %1561 = vmatpush3.msra.mxu0 %v457_v21  ;;  %790 = vmatprep.mubr.f32.mxu1 %v295_v25  ;;  %v1338_v21 = vld [vmem:[%s2257_s2] ss:$0 sm:$0xff] }
  0x5a   : > { %706 = vmatmul.mubr.f32.gmra.mxu0 %v292_v23  ;;  %1562 = vmatprep.subr.mxu0 %v456_v24 }
  0x5b   : > { %1563 = vmatpush3.msra.mxu0 %v456_v24  ;;  %791 = vmatmul.mubr.f32.gmra.mxu1 %v294_v26 }
  0x5c   : > { %1564 = vmatprep.subr.mxu0 %v455_v27  ;;  %710 = vmatprep.mubr.f32.mxu0 %v302_v28 }
  0x5d   : > { %1565 = vmatpush3.msra.mxu0 %v455_v27  ;;  %795 = vmatprep.mubr.f32.mxu1 %v304_v31 }
  0x5e   : > { %711 = vmatmul.mubr.f32.gmra.mxu0 %v301_v29  ;;  %1566 = vmatprep.subr.mxu0 %v454_v30 }
  0x5f   : > { %1567 = vmatpush3.msra.mxu0 %v454_v30  ;;  %796 = vmatmul.mubr.f32.gmra.mxu1 %v303_v32 }
  0x60   : > { %1568 = vmatprep.subr.mxu0 %v453_v33  ;;  %715 = vmatprep.mubr.f32.mxu0 %v311_v34 }
  0x61   : > { %1569 = vmatpush3.msra.mxu0 %v453_v33  ;;  %800 = vmatprep.mubr.f32.mxu1 %v313_v37 }
  0x62   : > { %716 = vmatmul.mubr.f32.gmra.mxu0 %v310_v35  ;;  %1570 = vmatprep.subr.mxu0 %v452_v36 }
  0x63   : > { %1571 = vmatpush3.msra.mxu0 %v452_v36  ;;  %801 = vmatmul.mubr.f32.gmra.mxu1 %v312_v38 }
  0x64   : > { %1572 = vmatprep.subr.mxu0 %v451_v39  ;;  %1590 = vmatprep.mubr.f32.mxu0 %v287_v40 }
  0x65   : > { %1573 = vmatpush3.msra.mxu0 %v451_v39  ;;  %1596 = vmatprep.subr.mxu1 %v1645_v52 }
  0x66   : > { %1574 = vmatprep.subr.mxu0 %v450_v41  ;;  %1597 = vmatpush3.msra.mxu1 %v2185_v53 }
  0x67   : > { %1575 = vmatpush3.msra.mxu0 %v450_v41  ;;  %1598 = vmatprep.subr.mxu1 %v1645_v52 }
  0x68   : > { %1576 = vmatprep.subr.mxu0 %v449_v42  ;;  %1599 = vmatpush3.msra.mxu1 %v2192_v54 }
  0x69   : > { %1577 = vmatpush3.msra.mxu0 %v449_v42  ;;  %1600 = vmatprep.subr.mxu1 %v1645_v52 }
  0x6a   : > { %1578 = vmatprep.subr.mxu0 %v448_v43  ;;  %1601 = vmatpush3.msra.mxu1 %v2199_v55 }
  0x6b   : > { %1579 = vmatpush3.msra.mxu0 %v448_v43  ;;  %1602 = vmatprep.mubr.msk.f32.mxu1 %vm1646_vm0, %v1645_v52 }
  0x6c   : > { %1580 = vmatprep.subr.mxu0 %v447_v44  ;;  %1605 = vmatprep.subr.mxu1 %v1645_v52 }
  0x6d   : > { %1581 = vmatpush3.msra.mxu0 %v447_v44 }
  0x6e   : > { %1582 = vmatprep.subr.mxu0 %v446_v45 }
  0x6f   : > { %1583 = vmatpush3.msra.mxu0 %v446_v45 }
  0x70   : > { %1584 = vmatprep.subr.mxu0 %v445_v46 }
  0x71   : > { %1585 = vmatpush3.msra.mxu0 %v445_v46 }
  0x72   : > { %1586 = vmatprep.subr.mxu0 %v444_v47 }
  0x73   : > { %1587 = vmatpush3.msra.mxu0 %v444_v47 }
  0x74   : > { %1588 = vmatprep.subr.mxu0 %v443_v48 }
  0x75   : > { %1589 = vmatpush3.msra.mxu0 %v443_v48 }
  0x76   : > { %1591 = vmatmul.mubr.f32.vlgmr.msra.gmra.mxu0 %v296_v49 }
  0x77   : > { %1593 = vmatprep.mubr.f32.mxu0 %v305_v50 }
  0x7a   : > { %1594 = vmatmul.mubr.f32.gmra.mxu0 %v314_v51 }
  0xec   : > { %v1382_v56 = vpop.f32.mrf.mxu0 }
  0xee   : > { %v1383_v58 = vpop.f32.mrf.mxu0 }
  0xef   : > { %v1426_v57 = vpop.f32.mrf.mxu1  ;;  %v1384_v17 = vadd.f32 %v1383_v58, %v1382_v56 }
  0xf1   : > { %v1427_v60 = vpop.f32.mrf.mxu1  ;;  %v533_v22 = vadd.f32 %v1384_v17, %v1338_v21 }
  0xf2   : > { %v1428_v23 = vadd.f32 %v1427_v60, %v1426_v57 }
  0xf4   : > { %v618_v32 = vadd.f32 %v1428_v23, %v533_v22  ;;  %v1065_v22 = vlaneseq }
  0xf6   : > { %v1066_v23 = vshrl.u32 %v1065_v22, 7 }
 0x101   : > { %v1385_v59 = vpop.f32.mrf.mxu0 }
 0x103   : > { %v1386_v61 = vpop.f32.mrf.mxu0 }
 0x104   : > { %v1429_v62 = vpop.f32.mrf.mxu1  ;;  %v1387_v18 = vadd.f32 %v1386_v61, %v1385_v59 }
 0x106   : > { %v1430_v63 = vpop.f32.mrf.mxu1  ;;  %v538_v24 = vadd.f32 %v1387_v18, %v1338_v21  ;;  %v894_v18 = vld [vmem:[%s2259_s4] sm:$0x3] }
 0x107   : > { %v1388_v0 = vpop.f32.mrf.mxu0  ;;  %v1431_v25 = vadd.f32 %v1430_v63, %v1429_v62 }
 0x109   : > { %v1389_v1 = vpop.f32.mrf.mxu0  ;;  %v623_v33 = vadd.f32 %v1431_v25, %v538_v24  ;;  %v1067_v24 = vsub.s32 0, %v1066_v23 }
 0x10a   : > { %v1432_v2 = vpop.f32.mrf.mxu1  ;;  %v1390_v28 = vadd.f32 %v1389_v1, %v1388_v0 }
 0x10c   : > { %v1433_v3 = vpop.f32.mrf.mxu1  ;;  %v543_v36 = vadd.f32 %v1390_v28, %v1338_v21 }
 0x10d   : > { %v1391_v4 = vpop.f32.mrf.mxu0  ;;  %v1434_v37 = vadd.f32 %v1433_v3, %v1432_v2 }
 0x10f   : > { %v1392_v5 = vpop.f32.mrf.mxu0  ;;  %v628_v47 = vadd.f32 %v1434_v37, %v543_v36 }
 0x110   : > { %v1435_v6 = vpop.f32.mrf.mxu1  ;;  %v1393_v29 = vadd.f32 %v1392_v5, %v1391_v4 }
 0x112   : > { %v1436_v7 = vpop.f32.mrf.mxu1  ;;  %v548_v38 = vadd.f32 %v1393_v29, %v1338_v21 }
 0x113   : > { %v1437_v39 = vadd.f32 %v1436_v7, %v1435_v6 }
 0x114   : > { %v1470_v8 = vpop.f32.mrf.mxu0 }
 0x115   : > { %v633_v48 = vadd.f32 %v1437_v39, %v548_v38 }
 0x116   : > { %v1471_v9 = vpop.f32.mrf.mxu0 }
 0x117   : > { %v1514_v10 = vpop.f32.mrf.mxu1  ;;  %v1472_v30 = vadd.f32 %v1471_v9, %v1470_v8 }
 0x119   : > { %v1515_v12 = vpop.f32.mrf.mxu1  ;;  %v703_v40 = vadd.f32 %v1472_v30, %v618_v32 }
 0x11a   : > { %v1473_v11 = vpop.f32.mrf.mxu0  ;;  %v1516_v41 = vadd.f32 %v1515_v12, %v1514_v10 }
 0x11b   : > { %v1517_v14 = vpop.f32.mrf.mxu1 }
 0x11c   : > { %v1474_v13 = vpop.f32.mrf.mxu0  ;;  %v788_v51 = vadd.f32 %v1516_v41, %v703_v40 }
 0x11d   : > { %v1518_v16 = vpop.f32.mrf.mxu1  ;;  %v1475_v31 = vadd.f32 %v1474_v13, %v1473_v11 }
 0x11e   : > { %v1476_v15 = vpop.f32.mrf.mxu0  ;;  %v1519_v43 = vadd.f32 %v1518_v16, %v1517_v14 }
 0x11f   : > { %v1520_v20 = vpop.f32.mrf.mxu1  ;;  %v708_v42 = vadd.f32 %v1475_v31, %v623_v33 }
 0x120   : > { %v1477_v19 = vpop.f32.mrf.mxu0 }
 0x121   : > { %v1521_v27 = vpop.f32.mrf.mxu1  ;;  %v1478_v44 = vadd.f32 %v1477_v19, %v1476_v15  ;;  %v793_v49 = vadd.f32 %v1519_v43, %v708_v42 }
 0x122   : > { %v1479_v26 = vpop.f32.mrf.mxu0  ;;  %v1522_v57 = vadd.f32 %v1521_v27, %v1520_v20 }
 0x123   : > { %v1523_v35 = vpop.f32.mrf.mxu1  ;;  %v713_v56 = vadd.f32 %v1478_v44, %v628_v47 }
 0x124   : > { %v1480_v34 = vpop.f32.mrf.mxu0 }
 0x125   : > { %v1481_v45 = vadd.f32 %v1480_v34, %v1479_v26  ;;  %v1524_v46 = vpop.f32.mrf.mxu1  ;;  %v798_v2 = vadd.f32 %v1522_v57, %v713_v56  ;;  %v1345_v57 = vld [vmem:[%s2260_s5] ss:$0 sm:$0xff] }
 0x126   : > { %v1525_v59 = vadd.f32 %v1524_v46, %v1523_v35 }
 0x127   : > { %v718_v58 = vadd.f32 %v1481_v45, %v633_v48 }
 0x129   : > { %v803_v1 = vadd.f32 %v1525_v59, %v718_v58 }
 0x136   : > { %v1592_v50 = vpop.f32.mrf.mxu0 }
 0x137   : > { %v878_v61 = vadd.f32 %v1592_v50, %v793_v49 }
 0x138   : > { %v872_v60 = vpop.f32.mrf.mxu0 }
 0x139   : > { %v873_v62 = vadd.f32 %v872_v60, %v788_v51  ;;  %v899_v4 = vsel %vm897_vm1, %v878_v61, 0.0 }
 0x13a   : > { %v1595_v63 = vpop.f32.mrf.mxu0 }
 0x13b   : > { %v898_v0 = vsel %vm897_vm1, %v873_v62, 0.0  ;;  %v888_v5 = vadd.f32 %v1595_v63, %v803_v1 }
 0x13c   : > { %v882_v3 = vpop.f32.mrf.mxu0  ;;  %v900_v7 = vadd.f32 %v899_v4, %v898_v0 }
 0x13d   : > { %v883_v6 = vadd.f32 %v882_v3, %v798_v2  ;;  %v904_v10 = vsel %vm903_vm2, %v888_v5, 0.0 }
 0x13f   : > { %v901_v8 = vsel %vm897_vm1, %v883_v6, 0.0 }
 0x140   : > { %v902_v9 = vadd.f32 %v901_v8, %v900_v7 }
 0x142   : > { %v905_v11 = vadd.f32 %v904_v10, %v902_v9 }
 0x144   : > { %v906_v12 = vrot.slane %v905_v11, 4 }
 0x146   : > { %v907_v13 = vadd.f32 %v906_v12, %v905_v11 }
 0x148   : > { %v908_v14 = vrot.slane %v907_v13, 2 }
 0x14a   : > { %v909_v15 = vadd.f32 %v908_v14, %v907_v13 }
 0x14c   : > { %v910_v16 = vrot.slane %v909_v15, 1 }
 0x14e   : > { %v911_v17 = vadd.f32 %v910_v16, %v909_v15 }
 0x150   : > { %1603 = vmatmul.mubr.msk.f32.vlgmr.msra.gmra.mxu1 %vm897_vm1, %v911_v17 }
 0x151   : > { %1606 = vmatpush3.msk.msra.mxu1 %vm991_vm3, %v894_v18  ;;  %1607 = vmatprep.mubr.msk.f32.mxu1 %vm1646_vm0, %v1645_v52 }
 0x152   : > { %1610 = vmatprep.subr.mxu1 %v1645_v52 }
 0x210   : > { %v981_v19 = vpop.f32.mrf.mxu1 }
 0x211   : > { %v986_v20 = vmul.f32 0.0033333334, %v981_v19 }
 0x212   : > { %v1604_v21 = vpop.f32.mrf.mxu1 }
 0x213   : > { %1608 = vmatmul.mubr.msk.f32.vlgmr.msra.gmra.mxu1 %vm987_vm4, %v986_v20 }
 0x214   : > { %1611 = vmatpush3.msra.mxu1 %v2185_v53  ;;  %1616 = vmatprep.mubr.msk.f32.mxu1 %vm1646_vm0, %v1645_v52 }
 0x215   : > { %1612 = vmatprep.subr.mxu1 %v1645_v52 }
 0x216   : > { %1613 = vmatpush3.msra.mxu1 %v2192_v54 }
 0x217   : > { %1614 = vmatprep.subr.mxu1 %v1645_v52 }
 0x218   : > { %1615 = vmatpush3.msra.mxu1 %v2199_v55 }
 0x219   : > { %1619 = vmatprep.subr.mxu1 %v1645_v52 }
 0x2d3   : > { %v1061_v25 = vpop.f32.mrf.mxu1 }
 0x2d4   : > { %v1068_v26 = vrot.slane %v1061_v25, %v1067_v24 }
 0x2d5   : > { %v1609_v27 = vpop.f32.mrf.mxu1 }
 0x2d6   : > { %v1069_v53 = vsub.f32 %v873_v62, %v1068_v26  ;;  %v1070_v28 = vsub.f32 %v878_v61, %v1068_v26  ;;  %v1071_v29 = vsub.f32 %v883_v6, %v1068_v26  ;;  %v1072_v30 = vsub.f32 %v888_v5, %v1068_v26  ;;  %v1346_v62 = vld [vmem:[%s2261_s6] ss:$0 sm:$0xff] }
 0x2d8   : > { %v1073_v31 = vmul.f32 %v1069_v53, %v1069_v53  ;;  %v1074_v32 = vmul.f32 %v1070_v28, %v1070_v28  ;;  %v1075_v33 = vmul.f32 %v1071_v29, %v1071_v29  ;;  %v1076_v54 = vmul.f32 %v1072_v30, %v1072_v30 }
 0x2da   : > { %v1077_v34 = vsel %vm897_vm1, %v1073_v31, 0.0  ;;  %v1078_v55 = vsel %vm897_vm1, %v1074_v32, 0.0  ;;  %v1080_v36 = vsel %vm897_vm1, %v1075_v33, 0.0  ;;  %v1082_v38 = vsel %vm903_vm2, %v1076_v54, 0.0 }
 0x2db   : > { %v1079_v35 = vadd.f32 %v1078_v55, %v1077_v34 }
 0x2dd   : > { %v1081_v37 = vadd.f32 %v1080_v36, %v1079_v35 }
 0x2df   : > { %v1083_v39 = vadd.f32 %v1082_v38, %v1081_v37 }
 0x2e1   : > { %v1084_v40 = vrot.slane %v1083_v39, 4 }
 0x2e3   : > { %v1085_v41 = vadd.f32 %v1084_v40, %v1083_v39 }
 0x2e5   : > { %v1086_v42 = vrot.slane %v1085_v41, 2 }
 0x2e7   : > { %v1087_v43 = vadd.f32 %v1086_v42, %v1085_v41 }
 0x2e9   : > { %v1088_v44 = vrot.slane %v1087_v43, 1 }
 0x2eb   : > { %v1089_v45 = vadd.f32 %v1088_v44, %v1087_v43 }
 0x2ed   : > { %1617 = vmatmul.mubr.msk.f32.vlgmr.msra.gmra.mxu1 %vm897_vm1, %v1089_v45 }
 0x2ee   : > { %1620 = vmatpush3.msk.msra.mxu1 %vm991_vm3, %v894_v18  ;;  %1621 = vmatprep.mubr.msk.f32.mxu1 %vm1646_vm0, %v1645_v52 }
 0x3ad   : > { %v1159_v46 = vpop.f32.mrf.mxu1 }
 0x3ae   : > { %v1163_v47 = vmul.f32 0.0033333334, %v1159_v46 }
 0x3af   : > { %v1618_v48 = vpop.f32.mrf.mxu1 }
 0x3b0   : > { %v1164_v49 = vadd.f32 1e-05, %v1163_v47 }
 0x3b2   : > { %1635 = vrsqrt.f32 %v1164_v49 }
 0x3bf   : > { %v1636_v50 = vpop.eup %1635 }
 0x3c0   : > { %1622 = vmatmul.mubr.msk.f32.vlgmr.msra.gmra.mxu1 %vm987_vm4, %v1636_v50 }
 0x480   : > { %v1235_v51 = vpop.f32.mrf.mxu1 }
 0x481   : > { %v1242_v56 = vrot.slane %v1235_v51, %v1067_v24 }
 0x482   : > { %v1623_v58 = vpop.f32.mrf.mxu1 }
 0x483   : > { %v1243_v59 = vmul.f32 %v1242_v56, %v1069_v53  ;;  %v1244_v60 = vmul.f32 %v1242_v56, %v1070_v28  ;;  %v1245_v61 = vmul.f32 %v1242_v56, %v1071_v29  ;;  %v1246_v52 = vmul.f32 %v1242_v56, %v1072_v30 }
 0x485   : > { %v1253_v63 = vmul.f32 %v1345_v57, %v1243_v59  ;;  %v1254_v0 = vmul.f32 %v1345_v57, %v1244_v60  ;;  %v1255_v1 = vmul.f32 %v1345_v57, %v1245_v61  ;;  %v1256_v2 = vmul.f32 %v1345_v57, %v1246_v52 }
 0x487   : > { %v1263_v3 = vadd.f32 %v1346_v62, %v1253_v63  ;;  %v1264_v4 = vadd.f32 %v1346_v62, %v1254_v0  ;;  %v1265_v5 = vadd.f32 %v1346_v62, %v1255_v1  ;;  %v1266_v6 = vadd.f32 %v1346_v62, %v1256_v2 }
 0x489   : > { %v1267_v7 = vmax.f32 %v1263_v3, 0.0  ;;  %v1268_v8 = vmax.f32 %v1264_v4, 0.0  ;;  %v1269_v9 = vmax.f32 %v1265_v5, 0.0  ;;  %v1270_v10 = vmax.f32 %v1266_v6, 0.0 }
 0x48b   : > { %1271 = vst.msk [vmem:[%s278_s29] sm:$0xff] %vm897_vm1, %v1267_v7  ;;  %1272 = vst.msk [vmem:[%s278_s29 + $0x8] sm:$0xff] %vm897_vm1, %v1268_v8 }
 0x48c   : > { %1273 = vst.msk [vmem:[%s278_s29 + $0x10] sm:$0xff] %vm897_vm1, %v1269_v9 }
 0x48d   : > { %1274 = vst.msk [vmem:[%s278_s29 + $0x18] sm:$0x1] %vm903_vm2, %v1270_v10 }
 0x48e PF: > { %s17_s24 = sadd.s32 1, %s1643_s24  }
 0x48f   : > { %p14_p4 = scmp.ge.s32.totalorder %s17_s24, 4  }
 0x491   :  { %16 = sbr.rel (!%p14_p4) target bundleno = 1 (0x1), region = 78 }

// kernel: a2s2k_forward.27
= control target key start
LH: loop header
LB: loop body
LE: loop exit
PB: predicated region body
PF: predicated region fallthrough
CT: control target
= control target key end

     0   :  { %s781_s18 = smov 0   ;;  %s843_s0 = inlined_call_operand.vmem [shape: f32[2,25,24], index: 0, kind: input, shape index: {}]   ;;  %s844_s1 = inlined_call_operand.vmem [shape: f32[24,2], index: 1, kind: input, shape index: {}]   ;;  %s845_s2 = inlined_call_operand.vmem [shape: f32[2,24], index: 2, kind: input, shape index: {}]   ;;  %s846_s3 = inlined_call_operand.vmem [shape: f32[1,24], index: 3, kind: input, shape index: {}]   ;;  %s847_s4 = inlined_call_operand.vmem [shape: f32[1,24], index: 4, kind: input, shape index: {}]   ;;  %s848_s5 = inlined_call_operand.vmem [shape: f32[2,25,24], index: 5, kind: output, shape index: {}]  }
   0x1 LB: > { %s668_s19 = sadd.s32 4294967295, %s747_s18   ;;  %p672_p0 = scmp.ge.s32.totalorder %s747_s18, 1  ;;  %s747_s18 = sphi %s781_s18, %s15_s18  }
   0x2   : > { %p187_p1 = scmp.lt.s32.totalorder %s747_s18, 3 }
   0x4   : > { %p188_p2 = pnand %p672_p0, %p187_p1 }
   0x5   : > { %p215_p3 = scmp.lt.s32.totalorder (!%p188_p2), %s668_s19, 1 }
   0x6   : > { %191 = sbr.rel (%p188_p2) target bundleno = 864 (0x360), region = 40 }
   0xb   : > { %v231_v0 = vld [vmem:[%s844_s1 + $0x10] sm:$0xff]  ;;  %v749_v1 = vmov 0.0   ;;  %v230_v2 = vld [vmem:[%s844_s1 + $0x8] sm:$0xff]  ;;  %vm750_vm0 = vmmov 0   ;;  %s850_s19 = smov (!%p215_p3, %s668_s19), 1  ;;  %v229_v3 = vld [vmem:[%s844_s1] sm:$0xff]  ;;  %v403_v25 = vlaneseq }
   0xc   : > { %701 = vmatprep.subr.mxu0 %v749_v1  ;;  %707 = vmatprep.mubr.msk.f32.mxu0 %vm750_vm0, %v749_v1  ;;  %s687_s26 = sshll.u32 %s850_s19, 5  ;;  %vm235_vm1 = vcmask 195584   ;;  %vm241_vm2 = vcmask 188416   ;;  %v232_v21 = vld [vmem:[%s845_s2] sm:$0x3]  ;;  %vm329_vm3 = vcmask 1041408  }
   0xd   : > { %702 = vmatpush3.msra.mxu0 %v231_v0  ;;  %710 = vmatprep.subr.mxu1 %v749_v1  ;;  %s219_s29 = scalar_lea.vmem %s843_s0, %s687_s26  ;;  %vm325_vm4 = vcmask 15360   ;;  %v404_v26 = vshrl.u32 %v403_v25, 7  ;;  %v683_v59 = vld [vmem:[%s846_s3] ss:$0 sm:$0xff]  ;;  %s224_s13 = scalar_lea.vmem %s848_s5, %s687_s26 }
   0xe   : > { %703 = vmatprep.subr.mxu0 %v749_v1  ;;  %712 = vmatprep.mubr.msk.f32.mxu1 %vm750_vm0, %v749_v1  ;;  %v225_v4 = vld [vmem:[%s219_s29] sm:$0xff]  ;;  %v226_v5 = vld [vmem:[%s219_s29 + $0x8] sm:$0xff]  ;;  %v227_v6 = vld [vmem:[%s219_s29 + $0x10] sm:$0xff] }
   0xf   : > { %704 = vmatpush3.msra.mxu0 %v230_v2  ;;  %v228_v7 = vld [vmem:[%s219_s29 + $0x18] sm:$0x1]  ;;  %v236_v8 = vsel %vm235_vm1, %v225_v4, 0.0  ;;  %v237_v9 = vsel %vm235_vm1, %v226_v5, 0.0  ;;  %v239_v10 = vsel %vm235_vm1, %v227_v6, 0.0  ;;  %711 = vmatpush3.msk.msra.mxu1 %vm329_vm3, %v232_v21  ;;  %v405_v27 = vsub.s32 0, %v404_v26 }
  0x10   : > { %705 = vmatprep.subr.mxu0 %v749_v1  ;;  %v238_v11 = vadd.f32 %v237_v9, %v236_v8  ;;  %v242_v12 = vsel %vm241_vm2, %v228_v7, 0.0  ;;  %715 = vmatprep.subr.mxu1 %v749_v1 }
  0x11   : > { %706 = vmatpush3.msra.mxu0 %v229_v3 }
  0x12   : > { %724 = vmatprep.subr.mxu0 %v749_v1  ;;  %v240_v13 = vadd.f32 %v239_v10, %v238_v11 }
  0x14   : > { %v243_v14 = vadd.f32 %v242_v12, %v240_v13 }
  0x16   : > { %v244_v15 = vrot.slane %v243_v14, 4 }
  0x18   : > { %v245_v16 = vadd.f32 %v244_v15, %v243_v14 }
  0x1a   : > { %v246_v17 = vrot.slane %v245_v16, 2 }
  0x1c   : > { %v247_v18 = vadd.f32 %v246_v17, %v245_v16 }
  0x1e   : > { %v248_v19 = vrot.slane %v247_v18, 1 }
  0x20   : > { %v249_v20 = vadd.f32 %v248_v19, %v247_v18 }
  0x22   : > { %708 = vmatmul.mubr.msk.f32.vlgmr.msra.gmra.mxu0 %vm235_vm1, %v249_v20 }
  0x23   : > { %726 = vmatprep.mubr.msk.f32.mxu0 %vm750_vm0, %v749_v1  ;;  %725 = vmatpush3.msk.msra.mxu0 %vm329_vm3, %v232_v21 }
  0xe2   : > { %v319_v22 = vpop.f32.mrf.mxu0 }
  0xe3   : > { %v324_v23 = vmul.f32 0.0033333334, %v319_v22 }
  0xe4   : > { %v709_v24 = vpop.f32.mrf.mxu0 }
  0xe5   : > { %713 = vmatmul.mubr.msk.f32.vlgmr.msra.gmra.mxu1 %vm325_vm4, %v324_v23 }
  0xe6   : > { %716 = vmatpush3.msra.mxu1 %v231_v0  ;;  %721 = vmatprep.mubr.msk.f32.mxu1 %vm750_vm0, %v749_v1 }
  0xe7   : > { %717 = vmatprep.subr.mxu1 %v749_v1 }
  0xe8   : > { %718 = vmatpush3.msra.mxu1 %v230_v2 }
  0xe9   : > { %719 = vmatprep.subr.mxu1 %v749_v1  ;;  %v684_v1 = vld [vmem:[%s847_s4] ss:$0 sm:$0xff] }
  0xea   : > { %720 = vmatpush3.msra.mxu1 %v229_v3 }
 0x1a5   : > { %v399_v28 = vpop.f32.mrf.mxu1 }
 0x1a6   : > { %v406_v29 = vrot.slane %v399_v28, %v405_v27 }
 0x1a7   : > { %v714_v30 = vpop.f32.mrf.mxu1 }
 0x1a8   : > { %v407_v31 = vsub.f32 %v225_v4, %v406_v29  ;;  %v408_v32 = vsub.f32 %v226_v5, %v406_v29  ;;  %v409_v33 = vsub.f32 %v227_v6, %v406_v29  ;;  %v410_v34 = vsub.f32 %v228_v7, %v406_v29 }
 0x1aa   : > { %v411_v35 = vmul.f32 %v407_v31, %v407_v31  ;;  %v412_v36 = vmul.f32 %v408_v32, %v408_v32  ;;  %v413_v37 = vmul.f32 %v409_v33, %v409_v33  ;;  %v414_v38 = vmul.f32 %v410_v34, %v410_v34 }
 0x1ac   : > { %v415_v39 = vsel %vm235_vm1, %v411_v35, 0.0  ;;  %v416_v40 = vsel %vm235_vm1, %v412_v36, 0.0  ;;  %v418_v42 = vsel %vm235_vm1, %v413_v37, 0.0  ;;  %v420_v44 = vsel %vm241_vm2, %v414_v38, 0.0 }
 0x1ad   : > { %v417_v41 = vadd.f32 %v416_v40, %v415_v39 }
 0x1af   : > { %v419_v43 = vadd.f32 %v418_v42, %v417_v41 }
 0x1b1   : > { %v421_v45 = vadd.f32 %v420_v44, %v419_v43 }
 0x1b3   : > { %v422_v46 = vrot.slane %v421_v45, 4 }
 0x1b5   : > { %v423_v47 = vadd.f32 %v422_v46, %v421_v45 }
 0x1b7   : > { %v424_v48 = vrot.slane %v423_v47, 2 }
 0x1b9   : > { %v425_v49 = vadd.f32 %v424_v48, %v423_v47 }
 0x1bb   : > { %v426_v50 = vrot.slane %v425_v49, 1 }
 0x1bd   : > { %v427_v51 = vadd.f32 %v426_v50, %v425_v49 }
 0x1bf   : > { %722 = vmatmul.mubr.msk.f32.vlgmr.msra.gmra.mxu1 %vm235_vm1, %v427_v51 }
 0x27f   : > { %v497_v52 = vpop.f32.mrf.mxu1 }
 0x280   : > { %v501_v53 = vmul.f32 0.0033333334, %v497_v52 }
 0x281   : > { %v723_v54 = vpop.f32.mrf.mxu1 }
 0x282   : > { %v502_v55 = vadd.f32 1e-05, %v501_v53 }
 0x284   : > { %739 = vrsqrt.f32 %v502_v55 }
 0x291   : > { %v740_v56 = vpop.eup %739 }
 0x292   : > { %727 = vmatmul.mubr.msk.f32.vlgmr.msra.gmra.mxu0 %vm325_vm4, %v740_v56 }
 0x352   : > { %v573_v57 = vpop.f32.mrf.mxu0 }
 0x353   : > { %v580_v58 = vrot.slane %v573_v57, %v405_v27 }
 0x354   : > { %v728_v60 = vpop.f32.mrf.mxu0 }
 0x355   : > { %v581_v61 = vmul.f32 %v580_v58, %v407_v31  ;;  %v582_v62 = vmul.f32 %v580_v58, %v408_v32  ;;  %v583_v63 = vmul.f32 %v580_v58, %v409_v33  ;;  %v584_v0 = vmul.f32 %v580_v58, %v410_v34 }
 0x357   : > { %v591_v2 = vmul.f32 %v683_v59, %v581_v61  ;;  %v592_v3 = vmul.f32 %v683_v59, %v582_v62  ;;  %v593_v4 = vmul.f32 %v683_v59, %v583_v63  ;;  %v594_v5 = vmul.f32 %v683_v59, %v584_v0 }
 0x359   : > { %v601_v6 = vadd.f32 %v684_v1, %v591_v2  ;;  %v602_v7 = vadd.f32 %v684_v1, %v592_v3  ;;  %v603_v8 = vadd.f32 %v684_v1, %v593_v4  ;;  %v604_v9 = vadd.f32 %v684_v1, %v594_v5 }
 0x35b   : > { %v605_v10 = vmax.f32 %v601_v6, 0.0  ;;  %v606_v11 = vmax.f32 %v602_v7, 0.0  ;;  %v607_v12 = vmax.f32 %v603_v8, 0.0  ;;  %v608_v13 = vmax.f32 %v604_v9, 0.0 }
 0x35d   : > { %609 = vst.msk [vmem:[%s224_s13] sm:$0xff] %vm235_vm1, %v605_v10  ;;  %610 = vst.msk [vmem:[%s224_s13 + $0x8] sm:$0xff] %vm235_vm1, %v606_v11 }
 0x35e   : > { %611 = vst.msk [vmem:[%s224_s13 + $0x10] sm:$0xff] %vm235_vm1, %v607_v12 }
 0x35f   : > { %612 = vst.msk [vmem:[%s224_s13 + $0x18] sm:$0x1] %vm241_vm2, %v608_v13 }
 0x360 PF: > { %s15_s18 = sadd.s32 1, %s747_s18  }
 0x361   : > { %p12_p4 = scmp.ge.s32.totalorder %s15_s18, 4  }
 0x363   :  { %14 = sbr.rel (!%p12_p4) target bundleno = 1 (0x1), region = 70 }

// kernel: a2s2k_forward.28
= control target key start
LH: loop header
LB: loop body
LE: loop exit
PB: predicated region body
PF: predicated region fallthrough
CT: control target
= control target key end

     0   :  { %s990_s24 = smov 0   ;;  %s1188_s0 = inlined_call_operand.vmem [shape: f32[2,25,216], index: 0, kind: input, shape index: {}]   ;;  %s1189_s1 = inlined_call_operand.vmem [shape: f32[216,24], index: 1, kind: input, shape index: {}]   ;;  %s1190_s2 = inlined_call_operand.vmem [shape: f32[1,24], index: 2, kind: input, shape index: {}]   ;;  %s1191_s3 = inlined_call_operand.vmem [shape: f32[24,2], index: 3, kind: input, shape index: {}]   ;;  %s1192_s4 = inlined_call_operand.vmem [shape: f32[2,24], index: 4, kind: input, shape index: {}]   ;;  %s1193_s5 = inlined_call_operand.vmem [shape: f32[1,24], index: 5, kind: input, shape index: {}]   ;;  %s1194_s6 = inlined_call_operand.vmem [shape: f32[1,24], index: 6, kind: input, shape index: {}]   ;;  %s1195_s7 = inlined_call_operand.vmem [shape: f32[2,25,24], index: 7, kind: output, shape index: {}]  }
   0x1 LB: > { %s862_s25 = sadd.s32 4294967295, %s946_s24   ;;  %p866_p0 = scmp.ge.s32.totalorder %s946_s24, 1  ;;  %s946_s24 = sphi %s990_s24, %s17_s24  }
   0x2   : > { %p237_p1 = scmp.lt.s32.totalorder %s946_s24, 3 }
   0x4   : > { %p238_p2 = pnand %p866_p0, %p237_p1 }
   0x5   : > { %p269_p3 = scmp.lt.s32.totalorder (!%p238_p2), %s862_s25, 1 }
   0x6   : > { %241 = sbr.rel (%p238_p2) target bundleno = 1120 (0x460), region = 48 }
   0xb   : > { %v302_v0 = vld [vmem:[%s1189_s1 + $0x78] sm:$0xff]  ;;  %v948_v1 = vmov 0.0   ;;  %v301_v2 = vld [vmem:[%s1189_s1 + $0x70] sm:$0xff]  ;;  %s1197_s25 = smov (!%p269_p3, %s862_s25), 1  ;;  %v300_v3 = vld [vmem:[%s1189_s1 + $0x68] sm:$0xff]  ;;  %vm321_vm0 = vcmask 719872  }
   0xc   : > { %334 = vmatprep.subr.mxu0 %v948_v1  ;;  %900 = vmatprep.subr.mxu1 %v948_v1  ;;  %s886_s9 = sshll.u32 %s1197_s25, 6  ;;  %v299_v4 = vld [vmem:[%s1189_s1 + $0x60] sm:$0xff]  ;;  %v298_v5 = vld [vmem:[%s1189_s1 + $0x58] sm:$0xff]  ;;  %v297_v6 = vld [vmem:[%s1189_s1 + $0x50] sm:$0xff]  ;;  %vm949_vm1 = vmmov 0   ;;  %vm429_vm2 = vcmask 195584  }
   0xd   : > { %335 = vmatpush1.msra.mxu0 %v302_v0  ;;  %s1020_s14 = scalar_lea.vmem %s1188_s0, %s886_s9  ;;  %v296_v8 = vld [vmem:[%s1189_s1 + $0x48] sm:$0xff]  ;;  %v295_v9 = vld [vmem:[%s1189_s1 + $0x40] sm:$0xff]  ;;  %v294_v10 = vld [vmem:[%s1189_s1 + $0x38] sm:$0xff]  ;;  %906 = vmatprep.mubr.msk.f32.mxu1 %vm949_vm1, %v948_v1  ;;  %vm435_vm3 = vcmask 188416   ;;  %vm523_vm4 = vcmask 1041408   ;;  %vm519_vm5 = vcmask 15360  }
   0xe   : > { %336 = vmatprep.subr.mxu0 %v948_v1  ;;  %v280_v7 = vld [vmem:[%s1020_s14 + $0x8] sm:$0xff]  ;;  %v293_v11 = vld [vmem:[%s1189_s1 + $0x30] sm:$0xff]  ;;  %v291_v13 = vld [vmem:[%s1189_s1 + $0x20] sm:$0xff]  ;;  %s887_s13 = sshll.u32 %s1197_s25, 5 }
   0xf   : > { %337 = vmatpush1.msra.mxu0 %v301_v2  ;;  %872 = vmatprep.mubr.msk.f32.mxu0 %vm321_vm0, %v280_v7  ;;  %v292_v12 = vld [vmem:[%s1189_s1 + $0x28] sm:$0xff]  ;;  %v290_v14 = vld [vmem:[%s1189_s1 + $0x18] sm:$0xff]  ;;  %v289_v15 = vld [vmem:[%s1189_s1 + $0x10] sm:$0xff]  ;;  %s278_s17 = scalar_lea.vmem %s1195_s7, %s887_s13 }
  0x10   : > { %338 = vmatprep.subr.mxu0 %v948_v1  ;;  %v288_v16 = vld [vmem:[%s1189_s1 + $0x8] sm:$0xff]  ;;  %v287_v17 = vld [vmem:[%s1189_s1] sm:$0xff]  ;;  %v313_v18 = vld [vmem:[%s1189_s1 + $0xd0] sm:$0xff] }
  0x11   : > { %339 = vmatpush1.msra.mxu0 %v300_v3  ;;  %v312_v19 = vld [vmem:[%s1189_s1 + $0xc8] sm:$0xff]  ;;  %v311_v20 = vld [vmem:[%s1189_s1 + $0xc0] sm:$0xff]  ;;  %v310_v21 = vld [vmem:[%s1189_s1 + $0xb8] sm:$0xff] }
  0x12   : > { %340 = vmatprep.subr.mxu0 %v948_v1  ;;  %v309_v22 = vld [vmem:[%s1189_s1 + $0xb0] sm:$0xff]  ;;  %v308_v23 = vld [vmem:[%s1189_s1 + $0xa8] sm:$0xff]  ;;  %v307_v24 = vld [vmem:[%s1189_s1 + $0xa0] sm:$0xff] }
  0x13   : > { %341 = vmatpush1.msra.mxu0 %v299_v4  ;;  %v306_v25 = vld [vmem:[%s1189_s1 + $0x98] sm:$0xff]  ;;  %v305_v26 = vld [vmem:[%s1189_s1 + $0x90] sm:$0xff]  ;;  %v304_v27 = vld [vmem:[%s1189_s1 + $0x88] sm:$0xff] }
  0x14   : > { %342 = vmatprep.subr.mxu0 %v948_v1  ;;  %v303_v28 = vld [vmem:[%s1189_s1 + $0x80] sm:$0xff]  ;;  %v282_v30 = vld [vmem:[%s1020_s14 + $0x18] sm:$0xff]  ;;  %v281_v31 = vld [vmem:[%s1020_s14 + $0x10] sm:$0xff] }
  0x15   : > { %343 = vmatpush1.msra.mxu0 %v298_v5  ;;  %v279_v29 = vld [vmem:[%s1020_s14] sm:$0xff]  ;;  %v284_v32 = vld [vmem:[%s1020_s14 + $0x28] sm:$0xff]  ;;  %v286_v34 = vld [vmem:[%s1020_s14 + $0x38] sm:$0x1] }
  0x16   : > { %344 = vmatprep.subr.mxu0 %v948_v1  ;;  %v283_v33 = vld [vmem:[%s1020_s14 + $0x20] sm:$0xff]  ;;  %v285_v35 = vld [vmem:[%s1020_s14 + $0x30] sm:$0x1]  ;;  %v424_v37 = vld [vmem:[%s1191_s3 + $0x8] sm:$0xff] }
  0x17   : > { %345 = vmatpush1.msra.mxu0 %v297_v6  ;;  %v425_v36 = vld [vmem:[%s1191_s3 + $0x10] sm:$0xff]  ;;  %v423_v38 = vld [vmem:[%s1191_s3] sm:$0xff] }
  0x18   : > { %346 = vmatprep.subr.mxu0 %v948_v1  ;;  %901 = vmatpush3.msra.mxu1 %v425_v36  ;;  %v871_v40 = vld [vmem:[%s1190_s2] ss:$0 sm:$0xff] }
  0x19   : > { %347 = vmatpush1.msra.mxu0 %v296_v8  ;;  %902 = vmatprep.subr.mxu1 %v948_v1  ;;  %v426_v6 = vld [vmem:[%s1192_s4] sm:$0x3] }
  0x1a   : > { %348 = vmatprep.subr.mxu0 %v948_v1  ;;  %903 = vmatpush3.msra.mxu1 %v424_v37 }
  0x1b   : > { %349 = vmatpush1.msra.mxu0 %v295_v9  ;;  %904 = vmatprep.subr.mxu1 %v948_v1 }
  0x1c   : > { %350 = vmatprep.subr.mxu0 %v948_v1  ;;  %905 = vmatpush3.msra.mxu1 %v423_v38 }
  0x1d   : > { %351 = vmatpush1.msra.mxu0 %v294_v10  ;;  %909 = vmatprep.subr.mxu1 %v948_v1  ;;  %v597_v10 = vlaneseq }
  0x1e   : > { %352 = vmatprep.subr.mxu0 %v948_v1 }
  0x1f   : > { %353 = vmatpush1.msra.mxu0 %v293_v11  ;;  %v598_v11 = vshrl.u32 %v597_v10, 7 }
  0x20   : > { %354 = vmatprep.subr.mxu0 %v948_v1 }
  0x21   : > { %355 = vmatpush1.msra.mxu0 %v292_v12  ;;  %v599_v12 = vsub.s32 0, %v598_v11 }
  0x22   : > { %356 = vmatprep.subr.mxu0 %v948_v1 }
  0x23   : > { %357 = vmatpush1.msra.mxu0 %v291_v13 }
  0x24   : > { %358 = vmatprep.subr.mxu0 %v948_v1 }
  0x25   : > { %359 = vmatpush1.msra.mxu0 %v290_v14 }
  0x26   : > { %360 = vmatprep.subr.mxu0 %v948_v1 }
  0x27   : > { %361 = vmatpush1.msra.mxu0 %v289_v15 }
  0x28   : > { %362 = vmatprep.subr.mxu0 %v948_v1 }
  0x29   : > { %363 = vmatpush1.msra.mxu0 %v288_v16 }
  0x2a   : > { %364 = vmatprep.subr.mxu0 %v948_v1 }
  0x2b   : > { %365 = vmatpush1.msra.mxu0 %v287_v17 }
  0x2c   : > { %376 = vmatprep.subr.mxu0 %v948_v1 }
  0x2d   : > { %377 = vmatpush2.msra.mxu0 %v313_v18 }
  0x2e   : > { %378 = vmatprep.subr.mxu0 %v948_v1 }
  0x2f   : > { %379 = vmatpush2.msra.mxu0 %v312_v19 }
  0x30   : > { %380 = vmatprep.subr.mxu0 %v948_v1 }
  0x31   : > { %381 = vmatpush2.msra.mxu0 %v311_v20 }
  0x32   : > { %382 = vmatprep.subr.mxu0 %v948_v1 }
  0x33   : > { %383 = vmatpush2.msra.mxu0 %v310_v21 }
  0x34   : > { %384 = vmatprep.subr.mxu0 %v948_v1 }
  0x35   : > { %385 = vmatpush2.msra.mxu0 %v309_v22 }
  0x36   : > { %386 = vmatprep.subr.mxu0 %v948_v1 }
  0x37   : > { %387 = vmatpush2.msra.mxu0 %v308_v23 }
  0x38   : > { %388 = vmatprep.subr.mxu0 %v948_v1 }
  0x39   : > { %389 = vmatpush2.msra.mxu0 %v307_v24 }
  0x3a   : > { %390 = vmatprep.subr.mxu0 %v948_v1 }
  0x3b   : > { %391 = vmatpush2.msra.mxu0 %v306_v25 }
  0x3c   : > { %392 = vmatprep.subr.mxu0 %v948_v1 }
  0x3d   : > { %393 = vmatpush2.msra.mxu0 %v305_v26 }
  0x3e   : > { %394 = vmatprep.subr.mxu0 %v948_v1 }
  0x3f   : > { %395 = vmatpush2.msra.mxu0 %v304_v27 }
  0x40   : > { %396 = vmatprep.subr.mxu0 %v948_v1 }
  0x41   : > { %397 = vmatpush2.msra.mxu0 %v303_v28 }
  0x42   : > { %399 = vmatmul.mubr.f32.vlgmr.msra.gmra.mxu0 %v279_v29 }
  0x43   : > { %873 = vmatprep.mubr.msk.f32.mxu0 %vm321_vm0, %v282_v30 }
  0x46   : > { %404 = vmatmul.mubr.f32.gmra.mxu0 %v281_v31 }
  0x47   : > { %874 = vmatprep.mubr.msk.f32.mxu0 %vm321_vm0, %v284_v32 }
  0x4a   : > { %409 = vmatmul.mubr.f32.gmra.mxu0 %v283_v33 }
  0x4b   : > { %875 = vmatprep.mubr.msk.f32.mxu0 %vm321_vm0, %v286_v34 }
  0x4e   : > { %414 = vmatmul.mubr.f32.gmra.mxu0 %v285_v35 }
 0x102   : > { %v400_v39 = vpop.f32.mrf.mxu0 }
 0x103   : > { %v401_v43 = vadd.f32 %v871_v40, %v400_v39 }
 0x104   : > { %v402_v41 = vpop.f32.mrf.mxu0 }
 0x105   : > { %v419_v48 = vmax.f32 %v401_v43, 0.0 }
 0x106   : > { %v405_v42 = vpop.f32.mrf.mxu0 }
 0x107   : > { %v406_v44 = vadd.f32 %v871_v40, %v405_v42  ;;  %v430_v54 = vsel %vm429_vm2, %v419_v48, 0.0 }
 0x108   : > { %v407_v45 = vpop.f32.mrf.mxu0 }
 0x109   : > { %v420_v46 = vmax.f32 %v406_v44, 0.0  ;;  %v882_v44 = vld [vmem:[%s1193_s5] ss:$0 sm:$0xff] }
 0x10a   : > { %v410_v47 = vpop.f32.mrf.mxu0 }
 0x10b   : > { %v411_v49 = vadd.f32 %v871_v40, %v410_v47  ;;  %v431_v51 = vsel %vm429_vm2, %v420_v46, 0.0 }
 0x10c   : > { %v412_v50 = vpop.f32.mrf.mxu0  ;;  %v432_v57 = vadd.f32 %v431_v51, %v430_v54 }
 0x10d   : > { %v421_v52 = vmax.f32 %v411_v49, 0.0  ;;  %v883_v49 = vld [vmem:[%s1194_s6] ss:$0 sm:$0xff] }
 0x10e   : > { %v415_v53 = vpop.f32.mrf.mxu0 }
 0x10f   : > { %v433_v55 = vsel %vm429_vm2, %v421_v52, 0.0  ;;  %v416_v56 = vadd.f32 %v871_v40, %v415_v53 }
 0x110   : > { %v417_v58 = vpop.f32.mrf.mxu0  ;;  %v434_v60 = vadd.f32 %v433_v55, %v432_v57 }
 0x111   : > { %v422_v59 = vmax.f32 %v416_v56, 0.0 }
 0x113   : > { %v436_v61 = vsel %vm435_vm3, %v422_v59, 0.0 }
 0x114   : > { %v437_v62 = vadd.f32 %v436_v61, %v434_v60 }
 0x116   : > { %v438_v63 = vrot.slane %v437_v62, 4 }
 0x118   : > { %v439_v0 = vadd.f32 %v438_v63, %v437_v62 }
 0x11a   : > { %v440_v2 = vrot.slane %v439_v0, 2 }
 0x11c   : > { %v441_v3 = vadd.f32 %v440_v2, %v439_v0 }
 0x11e   : > { %v442_v4 = vrot.slane %v441_v3, 1 }
 0x120   : > { %v443_v5 = vadd.f32 %v442_v4, %v441_v3 }
 0x122   : > { %907 = vmatmul.mubr.msk.f32.vlgmr.msra.gmra.mxu1 %vm429_vm2, %v443_v5 }
 0x123   : > { %910 = vmatpush3.msk.msra.mxu1 %vm523_vm4, %v426_v6  ;;  %911 = vmatprep.mubr.msk.f32.mxu1 %vm949_vm1, %v948_v1 }
 0x124   : > { %914 = vmatprep.subr.mxu1 %v948_v1 }
 0x1e2   : > { %v513_v7 = vpop.f32.mrf.mxu1 }
 0x1e3   : > { %v518_v8 = vmul.f32 0.0033333334, %v513_v7 }
 0x1e4   : > { %v908_v9 = vpop.f32.mrf.mxu1 }
 0x1e5   : > { %912 = vmatmul.mubr.msk.f32.vlgmr.msra.gmra.mxu1 %vm519_vm5, %v518_v8 }
 0x1e6   : > { %915 = vmatpush3.msra.mxu1 %v425_v36  ;;  %920 = vmatprep.mubr.msk.f32.mxu1 %vm949_vm1, %v948_v1 }
 0x1e7   : > { %916 = vmatprep.subr.mxu1 %v948_v1 }
 0x1e8   : > { %917 = vmatpush3.msra.mxu1 %v424_v37 }
 0x1e9   : > { %918 = vmatprep.subr.mxu1 %v948_v1 }
 0x1ea   : > { %919 = vmatpush3.msra.mxu1 %v423_v38 }
 0x1eb   : > { %923 = vmatprep.subr.mxu1 %v948_v1 }
 0x2a5   : > { %v593_v13 = vpop.f32.mrf.mxu1 }
 0x2a6   : > { %v600_v14 = vrot.slane %v593_v13, %v599_v12 }
 0x2a7   : > { %v913_v15 = vpop.f32.mrf.mxu1 }
 0x2a8   : > { %v601_v16 = vsub.f32 %v419_v48, %v600_v14  ;;  %v602_v17 = vsub.f32 %v420_v46, %v600_v14  ;;  %v603_v18 = vsub.f32 %v421_v52, %v600_v14  ;;  %v604_v19 = vsub.f32 %v422_v59, %v600_v14 }
 0x2aa   : > { %v605_v20 = vmul.f32 %v601_v16, %v601_v16  ;;  %v606_v21 = vmul.f32 %v602_v17, %v602_v17  ;;  %v607_v22 = vmul.f32 %v603_v18, %v603_v18  ;;  %v608_v23 = vmul.f32 %v604_v19, %v604_v19 }
 0x2ac   : > { %v609_v24 = vsel %vm429_vm2, %v605_v20, 0.0  ;;  %v610_v25 = vsel %vm429_vm2, %v606_v21, 0.0  ;;  %v612_v27 = vsel %vm429_vm2, %v607_v22, 0.0  ;;  %v614_v29 = vsel %vm435_vm3, %v608_v23, 0.0 }
 0x2ad   : > { %v611_v26 = vadd.f32 %v610_v25, %v609_v24 }
 0x2af   : > { %v613_v28 = vadd.f32 %v612_v27, %v611_v26 }
 0x2b1   : > { %v615_v30 = vadd.f32 %v614_v29, %v613_v28 }
 0x2b3   : > { %v616_v31 = vrot.slane %v615_v30, 4 }
 0x2b5   : > { %v617_v32 = vadd.f32 %v616_v31, %v615_v30 }
 0x2b7   : > { %v618_v33 = vrot.slane %v617_v32, 2 }
 0x2b9   : > { %v619_v34 = vadd.f32 %v618_v33, %v617_v32 }
 0x2bb   : > { %v620_v35 = vrot.slane %v619_v34, 1 }
 0x2bd   : > { %v621_v36 = vadd.f32 %v620_v35, %v619_v34 }
 0x2bf   : > { %921 = vmatmul.mubr.msk.f32.vlgmr.msra.gmra.mxu1 %vm429_vm2, %v621_v36 }
 0x2c0   : > { %924 = vmatpush3.msk.msra.mxu1 %vm523_vm4, %v426_v6  ;;  %925 = vmatprep.mubr.msk.f32.mxu1 %vm949_vm1, %v948_v1 }
 0x37f   : > { %v691_v37 = vpop.f32.mrf.mxu1 }
 0x380   : > { %v695_v38 = vmul.f32 0.0033333334, %v691_v37 }
 0x381   : > { %v922_v39 = vpop.f32.mrf.mxu1 }
 0x382   : > { %v696_v40 = vadd.f32 1e-05, %v695_v38 }
 0x384   : > { %938 = vrsqrt.f32 %v696_v40 }
 0x391   : > { %v939_v41 = vpop.eup %938 }
 0x392   : > { %926 = vmatmul.mubr.msk.f32.vlgmr.msra.gmra.mxu1 %vm519_vm5, %v939_v41 }
 0x452   : > { %v767_v42 = vpop.f32.mrf.mxu1 }
 0x453   : > { %v774_v43 = vrot.slane %v767_v42, %v599_v12 }
 0x454   : > { %v927_v45 = vpop.f32.mrf.mxu1 }
 0x455   : > { %v775_v46 = vmul.f32 %v774_v43, %v601_v16  ;;  %v776_v47 = vmul.f32 %v774_v43, %v602_v17  ;;  %v777_v48 = vmul.f32 %v774_v43, %v603_v18  ;;  %v778_v1 = vmul.f32 %v774_v43, %v604_v19 }
 0x457   : > { %v785_v50 = vmul.f32 %v882_v44, %v775_v46  ;;  %v786_v51 = vmul.f32 %v882_v44, %v776_v47  ;;  %v787_v52 = vmul.f32 %v882_v44, %v777_v48  ;;  %v788_v53 = vmul.f32 %v882_v44, %v778_v1 }
 0x459   : > { %v795_v54 = vadd.f32 %v883_v49, %v785_v50  ;;  %v796_v55 = vadd.f32 %v883_v49, %v786_v51  ;;  %v797_v56 = vadd.f32 %v883_v49, %v787_v52  ;;  %v798_v57 = vadd.f32 %v883_v49, %v788_v53 }
 0x45b   : > { %v799_v58 = vmax.f32 %v795_v54, 0.0  ;;  %v800_v59 = vmax.f32 %v796_v55, 0.0  ;;  %v801_v60 = vmax.f32 %v797_v56, 0.0  ;;  %v802_v61 = vmax.f32 %v798_v57, 0.0 }
 0x45d   : > { %803 = vst.msk [vmem:[%s278_s17] sm:$0xff] %vm429_vm2, %v799_v58  ;;  %804 = vst.msk [vmem:[%s278_s17 + $0x8] sm:$0xff] %vm429_vm2, %v800_v59 }
 0x45e   : > { %805 = vst.msk [vmem:[%s278_s17 + $0x10] sm:$0xff] %vm429_vm2, %v801_v60 }
 0x45f   : > { %806 = vst.msk [vmem:[%s278_s17 + $0x18] sm:$0x1] %vm435_vm3, %v802_v61 }
 0x460 PF: > { %s17_s24 = sadd.s32 1, %s946_s24  }
 0x461   : > { %p14_p4 = scmp.ge.s32.totalorder %s17_s24, 4  }
 0x463   :  { %16 = sbr.rel (!%p14_p4) target bundleno = 1 (0x1), region = 78 }

// kernel: a2s2k_forward.29
= control target key start
LH: loop header
LB: loop body
LE: loop exit
PB: predicated region body
PF: predicated region fallthrough
CT: control target
= control target key end

     0   :  { %s843_s30 = smov 0   ;;  %s1045_s0 = inlined_call_operand.vmem [shape: f32[2,25,216], index: 0, kind: input, shape index: {}]   ;;  %s1046_s1 = inlined_call_operand.vmem [shape: f32[216,24], index: 1, kind: input, shape index: {}]   ;;  %s1047_s2 = inlined_call_operand.vmem [shape: f32[1,24], index: 2, kind: input, shape index: {}]   ;;  %s1048_s3 = inlined_call_operand.vmem [shape: f32[24,2], index: 3, kind: input, shape index: {}]   ;;  %s1049_s4 = inlined_call_operand.vmem [shape: f32[2,24], index: 4, kind: input, shape index: {}]   ;;  %s1050_s5 = inlined_call_operand.vmem [shape: f32[1,24], index: 5, kind: input, shape index: {}]   ;;  %s1051_s6 = inlined_call_operand.vmem [shape: f32[1,24], index: 6, kind: input, shape index: {}]   ;;  %s1052_s7 = inlined_call_operand.vmem [shape: f32[24,24], index: 7, kind: input, shape index: {}]   ;;  %s1053_s8 = inlined_call_operand.vmem [shape: f32[2,25,24], index: 8, kind: input, shape index: {}]   ;;  %s1054_s9 = inlined_call_operand.vmem [shape: f32[2,25,24], index: 9, kind: output, shape index: {}]  }
   0x1 LB: > { %s679_s3 = sadd.s32 4294967295, %s789_s30   ;;  %p683_p0 = scmp.ge.s32.totalorder %s789_s30, 1  ;;  %s789_s30 = sphi %s843_s30, %s19_s30  }
   0x2   : > { %p297_p1 = scmp.lt.s32.totalorder %s789_s30, 3 }
   0x4   : > { %p298_p2 = pnand %p683_p0, %p297_p1 }
   0x5   : > { %p338_p3 = scmp.lt.s32.totalorder (!%p298_p2), %s679_s3, 1 }
   0x6   : > { %301 = sbr.rel (%p298_p2) target bundleno = 522 (0x20a), region = 56 }
   0xb   : > { %v376_v0 = vld [vmem:[%s1046_s1 + $0x78] sm:$0xff]  ;;  %v791_v1 = vmov 0.0   ;;  %v375_v2 = vld [vmem:[%s1046_s1 + $0x70] sm:$0xff]  ;;  %v374_v3 = vld [vmem:[%s1046_s1 + $0x68] sm:$0xff]  ;;  %s1056_s3 = smov (!%p338_p3, %s679_s3), 1  ;;  %vm395_vm0 = vcmask 719872  }
   0xc   : > { %408 = vmatprep.subr.mxu0 %v791_v1  ;;  %715 = vmatprep.subr.mxu1 %v791_v1  ;;  %v373_v4 = vld [vmem:[%s1046_s1 + $0x60] sm:$0xff]  ;;  %v372_v5 = vld [vmem:[%s1046_s1 + $0x58] sm:$0xff]  ;;  %v371_v6 = vld [vmem:[%s1046_s1 + $0x50] sm:$0xff]  ;;  %s699_s24 = sshll.u32 %s1056_s3, 6  ;;  %vm792_vm1 = vmmov 0   ;;  %vm493_vm2 = vcmask 195584  }
   0xd   : > { %409 = vmatpush1.msra.mxu0 %v376_v0  ;;  %742 = vmatpush1.msra.mxu1 %v376_v0  ;;  %v370_v7 = vld [vmem:[%s1046_s1 + $0x48] sm:$0xff]  ;;  %v369_v8 = vld [vmem:[%s1046_s1 + $0x40] sm:$0xff]  ;;  %v368_v9 = vld [vmem:[%s1046_s1 + $0x38] sm:$0xff]  ;;  %s969_s5 = scalar_lea.vmem %s1045_s0, %s699_s24  ;;  %vm499_vm3 = vcmask 188416   ;;  %s700_s27 = sshll.u32 %s1056_s3, 5 }
   0xe   : > { %410 = vmatprep.subr.mxu0 %v791_v1  ;;  %716 = vmatprep.subr.mxu1 %v791_v1  ;;  %v367_v10 = vld [vmem:[%s1046_s1 + $0x30] sm:$0xff]  ;;  %v366_v11 = vld [vmem:[%s1046_s1 + $0x28] sm:$0xff]  ;;  %v365_v12 = vld [vmem:[%s1046_s1 + $0x20] sm:$0xff]  ;;  %s347_s4 = scalar_lea.vmem %s1053_s8, %s700_s27  ;;  %s352_s10 = scalar_lea.vmem %s1054_s9, %s700_s27 }
   0xf   : > { %411 = vmatpush1.msra.mxu0 %v375_v2  ;;  %743 = vmatpush1.msra.mxu1 %v375_v2  ;;  %v364_v13 = vld [vmem:[%s1046_s1 + $0x18] sm:$0xff]  ;;  %v363_v14 = vld [vmem:[%s1046_s1 + $0x10] sm:$0xff]  ;;  %v362_v15 = vld [vmem:[%s1046_s1 + $0x8] sm:$0xff] }
  0x10   : > { %412 = vmatprep.subr.mxu0 %v791_v1  ;;  %717 = vmatprep.subr.mxu1 %v791_v1  ;;  %v361_v16 = vld [vmem:[%s1046_s1] sm:$0xff]  ;;  %v387_v17 = vld [vmem:[%s1046_s1 + $0xd0] sm:$0xff]  ;;  %v386_v18 = vld [vmem:[%s1046_s1 + $0xc8] sm:$0xff] }
  0x11   : > { %413 = vmatpush1.msra.mxu0 %v374_v3  ;;  %744 = vmatpush1.msra.mxu1 %v374_v3  ;;  %v385_v19 = vld [vmem:[%s1046_s1 + $0xc0] sm:$0xff]  ;;  %v384_v20 = vld [vmem:[%s1046_s1 + $0xb8] sm:$0xff]  ;;  %v383_v21 = vld [vmem:[%s1046_s1 + $0xb0] sm:$0xff] }
  0x12   : > { %414 = vmatprep.subr.mxu0 %v791_v1  ;;  %718 = vmatprep.subr.mxu1 %v791_v1  ;;  %v382_v22 = vld [vmem:[%s1046_s1 + $0xa8] sm:$0xff]  ;;  %v381_v23 = vld [vmem:[%s1046_s1 + $0xa0] sm:$0xff]  ;;  %v380_v25 = vld [vmem:[%s1046_s1 + $0x98] sm:$0xff] }
  0x13   : > { %415 = vmatpush1.msra.mxu0 %v373_v4  ;;  %745 = vmatpush1.msra.mxu1 %v373_v4  ;;  %v354_v24 = vld [vmem:[%s969_s5 + $0x8] sm:$0xff]  ;;  %v379_v26 = vld [vmem:[%s1046_s1 + $0x90] sm:$0xff]  ;;  %v377_v28 = vld [vmem:[%s1046_s1 + $0x80] sm:$0xff] }
  0x14   : > { %416 = vmatprep.subr.mxu0 %v791_v1  ;;  %719 = vmatprep.subr.mxu1 %v791_v1  ;;  %v378_v27 = vld [vmem:[%s1046_s1 + $0x88] sm:$0xff]  ;;  %v353_v29 = vld [vmem:[%s969_s5] sm:$0xff]  ;;  %v356_v30 = vld [vmem:[%s969_s5 + $0x18] sm:$0xff] }
  0x15   : > { %417 = vmatpush1.msra.mxu0 %v372_v5  ;;  %746 = vmatpush1.msra.mxu1 %v372_v5  ;;  %v360_v31 = vld [vmem:[%s969_s5 + $0x38] sm:$0x1]  ;;  %v359_v32 = vld [vmem:[%s969_s5 + $0x30] sm:$0x1]  ;;  %v358_v34 = vld [vmem:[%s969_s5 + $0x28] sm:$0xff] }
  0x16   : > { %418 = vmatprep.subr.mxu0 %v791_v1  ;;  %720 = vmatprep.subr.mxu1 %v791_v1  ;;  %v355_v33 = vld [vmem:[%s969_s5 + $0x10] sm:$0xff]  ;;  %v357_v35 = vld [vmem:[%s969_s5 + $0x20] sm:$0xff]  ;;  %v511_v37 = vld [vmem:[%s1052_s7 + $0x8] sm:$0xff] }
  0x17   : > { %419 = vmatpush1.msra.mxu0 %v371_v6  ;;  %747 = vmatpush1.msra.mxu1 %v371_v6  ;;  %v512_v36 = vld [vmem:[%s1052_s7 + $0x10] sm:$0xff]  ;;  %v510_v38 = vld [vmem:[%s1052_s7] sm:$0xff] }
  0x18   : > { %420 = vmatprep.subr.mxu0 %v791_v1  ;;  %721 = vmatprep.subr.mxu1 %v791_v1  ;;  %v690_v40 = vld [vmem:[%s1047_s2] ss:$0 sm:$0xff] }
  0x19   : > { %421 = vmatpush1.msra.mxu0 %v370_v7  ;;  %748 = vmatpush1.msra.mxu1 %v370_v7  ;;  %v592_v7 = vlaneseq }
  0x1a   : > { %422 = vmatprep.subr.mxu0 %v791_v1  ;;  %722 = vmatprep.subr.mxu1 %v791_v1 }
  0x1b   : > { %423 = vmatpush1.msra.mxu0 %v369_v8  ;;  %749 = vmatpush1.msra.mxu1 %v369_v8  ;;  %v593_v8 = vshrl.u32 %v592_v7, 7 }
  0x1c   : > { %424 = vmatprep.subr.mxu0 %v791_v1  ;;  %723 = vmatprep.subr.mxu1 %v791_v1 }
  0x1d   : > { %425 = vmatpush1.msra.mxu0 %v368_v9  ;;  %750 = vmatpush1.msra.mxu1 %v368_v9  ;;  %v594_v9 = vsub.s32 0, %v593_v8 }
  0x1e   : > { %426 = vmatprep.subr.mxu0 %v791_v1  ;;  %724 = vmatprep.subr.mxu1 %v791_v1 }
  0x1f   : > { %427 = vmatpush1.msra.mxu0 %v367_v10  ;;  %751 = vmatpush1.msra.mxu1 %v367_v10 }
  0x20   : > { %428 = vmatprep.subr.mxu0 %v791_v1  ;;  %725 = vmatprep.subr.mxu1 %v791_v1 }
  0x21   : > { %429 = vmatpush1.msra.mxu0 %v366_v11  ;;  %752 = vmatpush1.msra.mxu1 %v366_v11  ;;  %v600_v11 = vld [vmem:[%s347_s4] sm:$0xff] }
  0x22   : > { %430 = vmatprep.subr.mxu0 %v791_v1  ;;  %726 = vmatprep.subr.mxu1 %v791_v1 }
  0x23   : > { %431 = vmatpush1.msra.mxu0 %v365_v12  ;;  %753 = vmatpush1.msra.mxu1 %v365_v12 }
  0x24   : > { %432 = vmatprep.subr.mxu0 %v791_v1  ;;  %727 = vmatprep.subr.mxu1 %v791_v1 }
  0x25   : > { %433 = vmatpush1.msra.mxu0 %v364_v13  ;;  %754 = vmatpush1.msra.mxu1 %v364_v13  ;;  %v601_v13 = vld [vmem:[%s347_s4 + $0x8] sm:$0xff] }
  0x26   : > { %434 = vmatprep.subr.mxu0 %v791_v1  ;;  %728 = vmatprep.subr.mxu1 %v791_v1 }
  0x27   : > { %435 = vmatpush1.msra.mxu0 %v363_v14  ;;  %755 = vmatpush1.msra.mxu1 %v363_v14  ;;  %v602_v14 = vld [vmem:[%s347_s4 + $0x10] sm:$0xff] }
  0x28   : > { %436 = vmatprep.subr.mxu0 %v791_v1  ;;  %729 = vmatprep.subr.mxu1 %v791_v1 }
  0x29   : > { %437 = vmatpush1.msra.mxu0 %v362_v15  ;;  %756 = vmatpush1.msra.mxu1 %v362_v15  ;;  %v603_v15 = vld [vmem:[%s347_s4 + $0x18] sm:$0x1] }
  0x2a   : > { %438 = vmatprep.subr.mxu0 %v791_v1  ;;  %730 = vmatprep.subr.mxu1 %v791_v1 }
  0x2b   : > { %439 = vmatpush1.msra.mxu0 %v361_v16  ;;  %757 = vmatpush1.msra.mxu1 %v361_v16 }
  0x2c   : > { %450 = vmatprep.subr.mxu0 %v791_v1  ;;  %731 = vmatprep.subr.mxu1 %v791_v1 }
  0x2d   : > { %451 = vmatpush2.msra.mxu0 %v387_v17  ;;  %758 = vmatpush2.msra.mxu1 %v387_v17 }
  0x2e   : > { %452 = vmatprep.subr.mxu0 %v791_v1  ;;  %732 = vmatprep.subr.mxu1 %v791_v1 }
  0x2f   : > { %453 = vmatpush2.msra.mxu0 %v386_v18  ;;  %759 = vmatpush2.msra.mxu1 %v386_v18 }
  0x30   : > { %454 = vmatprep.subr.mxu0 %v791_v1  ;;  %733 = vmatprep.subr.mxu1 %v791_v1 }
  0x31   : > { %455 = vmatpush2.msra.mxu0 %v385_v19  ;;  %760 = vmatpush2.msra.mxu1 %v385_v19 }
  0x32   : > { %456 = vmatprep.subr.mxu0 %v791_v1  ;;  %734 = vmatprep.subr.mxu1 %v791_v1 }
  0x33   : > { %457 = vmatpush2.msra.mxu0 %v384_v20  ;;  %761 = vmatpush2.msra.mxu1 %v384_v20 }
  0x34   : > { %458 = vmatprep.subr.mxu0 %v791_v1  ;;  %735 = vmatprep.subr.mxu1 %v791_v1 }
  0x35   : > { %459 = vmatpush2.msra.mxu0 %v383_v21  ;;  %762 = vmatpush2.msra.mxu1 %v383_v21 }
  0x36   : > { %460 = vmatprep.subr.mxu0 %v791_v1  ;;  %736 = vmatprep.subr.mxu1 %v791_v1 }
  0x37   : > { %461 = vmatpush2.msra.mxu0 %v382_v22  ;;  %763 = vmatpush2.msra.mxu1 %v382_v22 }
  0x38   : > { %462 = vmatprep.subr.mxu0 %v791_v1  ;;  %737 = vmatprep.subr.mxu1 %v791_v1 }
  0x39   : > { %463 = vmatpush2.msra.mxu0 %v381_v23  ;;  %764 = vmatpush2.msra.mxu1 %v381_v23 }
  0x3a   : > { %464 = vmatprep.subr.mxu0 %v791_v1  ;;  %691 = vmatprep.mubr.msk.f32.mxu0 %vm395_vm0, %v354_v24 }
  0x3b   : > { %465 = vmatpush2.msra.mxu0 %v380_v25  ;;  %738 = vmatprep.subr.mxu1 %v791_v1 }
  0x3c   : > { %466 = vmatprep.subr.mxu0 %v791_v1  ;;  %765 = vmatpush2.msra.mxu1 %v380_v25 }
  0x3d   : > { %467 = vmatpush2.msra.mxu0 %v379_v26  ;;  %739 = vmatprep.subr.mxu1 %v791_v1 }
  0x3e   : > { %468 = vmatprep.subr.mxu0 %v791_v1  ;;  %766 = vmatpush2.msra.mxu1 %v379_v26 }
  0x3f   : > { %469 = vmatpush2.msra.mxu0 %v378_v27  ;;  %740 = vmatprep.subr.mxu1 %v791_v1 }
  0x40   : > { %470 = vmatprep.subr.mxu0 %v791_v1  ;;  %767 = vmatpush2.msra.mxu1 %v378_v27 }
  0x41   : > { %471 = vmatpush2.msra.mxu0 %v377_v28  ;;  %741 = vmatprep.subr.mxu1 %v791_v1 }
  0x42   : > { %473 = vmatmul.mubr.f32.vlgmr.msra.gmra.mxu0 %v353_v29  ;;  %768 = vmatpush2.msra.mxu1 %v377_v28 }
  0x43   : > { %692 = vmatprep.mubr.msk.f32.mxu0 %vm395_vm0, %v356_v30  ;;  %694 = vmatprep.mubr.msk.f32.mxu1 %vm395_vm0, %v360_v31 }
  0x44   : > { %488 = vmatmul.mubr.f32.vlgmr.msra.gmra.mxu1 %v359_v32  ;;  %706 = vmatprep.subr.mxu1 %v791_v1 }
  0x45   : > { %707 = vmatpush3.msra.mxu1 %v512_v36  ;;  %712 = vmatprep.mubr.msk.f32.mxu1 %vm792_vm1, %v791_v1 }
  0x46   : > { %478 = vmatmul.mubr.f32.gmra.mxu0 %v355_v33  ;;  %708 = vmatprep.subr.mxu1 %v791_v1 }
  0x47   : > { %693 = vmatprep.mubr.msk.f32.mxu0 %vm395_vm0, %v358_v34  ;;  %709 = vmatpush3.msra.mxu1 %v511_v37 }
  0x48   : > { %710 = vmatprep.subr.mxu1 %v791_v1 }
  0x49   : > { %711 = vmatpush3.msra.mxu1 %v510_v38 }
  0x4a   : > { %483 = vmatmul.mubr.f32.gmra.mxu0 %v357_v35 }
 0x102   : > { %v474_v39 = vpop.f32.mrf.mxu0 }
 0x103   : > { %v475_v45 = vadd.f32 %v690_v40, %v474_v39 }
 0x104   : > { %v476_v41 = vpop.f32.mrf.mxu0  ;;  %v489_v42 = vpop.f32.mrf.mxu1 }
 0x105   : > { %v490_v49 = vadd.f32 %v690_v40, %v489_v42  ;;  %v494_v51 = vsel %vm493_vm2, %v475_v45, 0.0 }
 0x106   : > { %v479_v43 = vpop.f32.mrf.mxu0  ;;  %v491_v44 = vpop.f32.mrf.mxu1 }
 0x107   : > { %v480_v46 = vadd.f32 %v690_v40, %v479_v43  ;;  %v500_v56 = vsel %vm499_vm3, %v490_v49, 0.0 }
 0x108   : > { %v481_v47 = vpop.f32.mrf.mxu0 }
 0x109   : > { %v495_v48 = vsel %vm493_vm2, %v480_v46, 0.0 }
 0x10a   : > { %v484_v50 = vpop.f32.mrf.mxu0  ;;  %v496_v53 = vadd.f32 %v495_v48, %v494_v51 }
 0x10b   : > { %v485_v52 = vadd.f32 %v690_v40, %v484_v50 }
 0x10c   : > { %v486_v54 = vpop.f32.mrf.mxu0 }
 0x10d   : > { %v497_v55 = vsel %vm493_vm2, %v485_v52, 0.0 }
 0x10e   : > { %v498_v57 = vadd.f32 %v497_v55, %v496_v53 }
 0x110   : > { %v501_v58 = vadd.f32 %v500_v56, %v498_v57 }
 0x112   : > { %v502_v59 = vrot.slane %v501_v58, 4 }
 0x114   : > { %v503_v60 = vadd.f32 %v502_v59, %v501_v58 }
 0x116   : > { %v504_v61 = vrot.slane %v503_v60, 2 }
 0x118   : > { %v505_v62 = vadd.f32 %v504_v61, %v503_v60 }
 0x11a   : > { %v506_v63 = vrot.slane %v505_v62, 1 }
 0x11c   : > { %v507_v0 = vadd.f32 %v506_v63, %v505_v62 }
 0x11e   : > { %v509_v1 = vmul.f32 0.04, %v507_v0 }
 0x120   : > { %713 = vmatmul.mubr.msk.f32.vlgmr.msra.gmra.mxu1 %vm493_vm2, %v509_v1 }
 0x1e0   : > { %v582_v2 = vpop.f32.mrf.mxu1 }
 0x1e1   : > { %v696_v3 = vmul.f32 -1.442695, %v582_v2 }
 0x1e2   : > { %v714_v4 = vpop.f32.mrf.mxu1 }
 0x1e3   : > { %779 = vpow2.f32 %v696_v3 }
 0x1f0   : > { %v780_v5 = vpop.eup %779 }
 0x1f1   : > { %v589_v6 = vadd.f32 1.0, %v780_v5 }
 0x1f3   : > { %781 = vrcp.f32 %v589_v6 }
 0x200   : > { %v782_v10 = vpop.eup %781 }
 0x201   : > { %v595_v12 = vrot.slane %v782_v10, %v594_v9 }
 0x203   : > { %v596_v16 = vmul.f32 %v595_v12, %v475_v45  ;;  %v597_v17 = vmul.f32 %v595_v12, %v480_v46  ;;  %v598_v18 = vmul.f32 %v595_v12, %v485_v52  ;;  %v599_v19 = vmul.f32 %v595_v12, %v490_v49 }
 0x205   : > { %v604_v20 = vadd.f32 %v600_v11, %v596_v16  ;;  %v605_v21 = vadd.f32 %v601_v13, %v597_v17  ;;  %v606_v22 = vadd.f32 %v602_v14, %v598_v18  ;;  %v607_v23 = vadd.f32 %v603_v15, %v599_v19 }
 0x207   : > { %608 = vst.msk [vmem:[%s352_s10] sm:$0xff] %vm493_vm2, %v604_v20  ;;  %609 = vst.msk [vmem:[%s352_s10 + $0x8] sm:$0xff] %vm493_vm2, %v605_v21 }
 0x208   : > { %610 = vst.msk [vmem:[%s352_s10 + $0x10] sm:$0xff] %vm493_vm2, %v606_v22 }
 0x209   : > { %611 = vst.msk [vmem:[%s352_s10 + $0x18] sm:$0x1] %vm499_vm3, %v607_v23 }
 0x20a PF: > { %s19_s30 = sadd.s32 1, %s789_s30  }
 0x20b   : > { %p16_p4 = scmp.ge.s32.totalorder %s19_s30, 4  }
 0x20d   :  { %18 = sbr.rel (!%p16_p4) target bundleno = 1 (0x1), region = 89 }

// kernel: a2s2k_forward.32
= control target key start
LH: loop header
LB: loop body
LE: loop exit
PB: predicated region body
PF: predicated region fallthrough
CT: control target
= control target key end

     0   :  { %s1217_s30 = smov 0   ;;  %s1446_s0 = inlined_call_operand.vmem [shape: f32[2,25,216], index: 0, kind: input, shape index: {}]   ;;  %s1447_s1 = inlined_call_operand.vmem [shape: f32[216,24], index: 1, kind: input, shape index: {}]   ;;  %s1448_s2 = inlined_call_operand.vmem [shape: f32[1,24], index: 2, kind: input, shape index: {}]   ;;  %s1449_s3 = inlined_call_operand.vmem [shape: f32[24,2], index: 3, kind: input, shape index: {}]   ;;  %s1450_s4 = inlined_call_operand.vmem [shape: f32[2,24], index: 4, kind: input, shape index: {}]   ;;  %s1451_s5 = inlined_call_operand.vmem [shape: f32[1,24], index: 5, kind: input, shape index: {}]   ;;  %s1452_s6 = inlined_call_operand.vmem [shape: f32[1,24], index: 6, kind: input, shape index: {}]   ;;  %s1453_s7 = inlined_call_operand.vmem [shape: f32[24,24], index: 7, kind: input, shape index: {}]   ;;  %s1454_s8 = inlined_call_operand.vmem [shape: f32[2,25,24], index: 8, kind: input, shape index: {}]   ;;  %s1455_s9 = inlined_call_operand.vmem [shape: f32[2,25,24], index: 9, kind: output, shape index: {}]  }
   0x1 LB: > { %s1057_s10 = sadd.s32 4294967295, %s1163_s30   ;;  %p1061_p0 = scmp.ge.s32.totalorder %s1163_s30, 1  ;;  %s1163_s30 = sphi %s1217_s30, %s19_s30  }
   0x2   : > { %p297_p1 = scmp.lt.s32.totalorder %s1163_s30, 3 }
   0x4   : > { %p298_p2 = pnand %p1061_p0, %p297_p1 }
   0x5   : > { %p338_p3 = scmp.lt.s32.totalorder (!%p298_p2), %s1057_s10, 1 }
   0x6   : > { %301 = sbr.rel (%p298_p2) target bundleno = 1370 (0x55a), region = 56 }
   0xb   : > { %v376_v0 = vld [vmem:[%s1447_s1 + $0x78] sm:$0xff]  ;;  %v1165_v1 = vmov 0.0   ;;  %v375_v2 = vld [vmem:[%s1447_s1 + $0x70] sm:$0xff]  ;;  %s1457_s10 = smov (!%p338_p3, %s1057_s10), 1  ;;  %v374_v3 = vld [vmem:[%s1447_s1 + $0x68] sm:$0xff]  ;;  %vm395_vm0 = vcmask 719872  }
   0xc   : > { %408 = vmatprep.subr.mxu0 %v1165_v1  ;;  %1104 = vmatprep.subr.mxu1 %v1165_v1  ;;  %s1085_s17 = sshll.u32 %s1457_s10, 6  ;;  %v373_v4 = vld [vmem:[%s1447_s1 + $0x60] sm:$0xff]  ;;  %v372_v5 = vld [vmem:[%s1447_s1 + $0x58] sm:$0xff]  ;;  %v371_v6 = vld [vmem:[%s1447_s1 + $0x50] sm:$0xff]  ;;  %vm1166_vm1 = vmmov 0   ;;  %vm493_vm2 = vcmask 195584  }
   0xd   : > { %409 = vmatpush1.msra.mxu0 %v376_v0  ;;  %s1247_s22 = scalar_lea.vmem %s1446_s0, %s1085_s17  ;;  %v370_v8 = vld [vmem:[%s1447_s1 + $0x48] sm:$0xff]  ;;  %v369_v9 = vld [vmem:[%s1447_s1 + $0x40] sm:$0xff]  ;;  %v368_v10 = vld [vmem:[%s1447_s1 + $0x38] sm:$0xff]  ;;  %1110 = vmatprep.mubr.msk.f32.mxu1 %vm1166_vm1, %v1165_v1  ;;  %vm499_vm3 = vcmask 188416   ;;  %s1086_s28 = sshll.u32 %s1457_s10, 5  ;;  %vm706_vm4 = vcmask 1041408  }
   0xe   : > { %410 = vmatprep.subr.mxu0 %v1165_v1  ;;  %v354_v7 = vld [vmem:[%s1247_s22 + $0x8] sm:$0xff]  ;;  %v367_v11 = vld [vmem:[%s1447_s1 + $0x30] sm:$0xff]  ;;  %v365_v13 = vld [vmem:[%s1447_s1 + $0x20] sm:$0xff]  ;;  %s347_s12 = scalar_lea.vmem %s1454_s8, %s1086_s28  ;;  %vm702_vm5 = vcmask 15360   ;;  %s352_s20 = scalar_lea.vmem %s1455_s9, %s1086_s28 }
   0xf   : > { %411 = vmatpush1.msra.mxu0 %v375_v2  ;;  %1069 = vmatprep.mubr.msk.f32.mxu0 %vm395_vm0, %v354_v7  ;;  %v366_v12 = vld [vmem:[%s1447_s1 + $0x28] sm:$0xff]  ;;  %v364_v14 = vld [vmem:[%s1447_s1 + $0x18] sm:$0xff]  ;;  %v363_v15 = vld [vmem:[%s1447_s1 + $0x10] sm:$0xff] }
  0x10   : > { %412 = vmatprep.subr.mxu0 %v1165_v1  ;;  %v362_v16 = vld [vmem:[%s1447_s1 + $0x8] sm:$0xff]  ;;  %v361_v17 = vld [vmem:[%s1447_s1] sm:$0xff]  ;;  %v387_v18 = vld [vmem:[%s1447_s1 + $0xd0] sm:$0xff] }
  0x11   : > { %413 = vmatpush1.msra.mxu0 %v374_v3  ;;  %v386_v19 = vld [vmem:[%s1447_s1 + $0xc8] sm:$0xff]  ;;  %v385_v20 = vld [vmem:[%s1447_s1 + $0xc0] sm:$0xff]  ;;  %v384_v21 = vld [vmem:[%s1447_s1 + $0xb8] sm:$0xff] }
  0x12   : > { %414 = vmatprep.subr.mxu0 %v1165_v1  ;;  %v383_v22 = vld [vmem:[%s1447_s1 + $0xb0] sm:$0xff]  ;;  %v382_v23 = vld [vmem:[%s1447_s1 + $0xa8] sm:$0xff]  ;;  %v381_v24 = vld [vmem:[%s1447_s1 + $0xa0] sm:$0xff] }
  0x13   : > { %415 = vmatpush1.msra.mxu0 %v373_v4  ;;  %v380_v25 = vld [vmem:[%s1447_s1 + $0x98] sm:$0xff]  ;;  %v379_v26 = vld [vmem:[%s1447_s1 + $0x90] sm:$0xff]  ;;  %v378_v27 = vld [vmem:[%s1447_s1 + $0x88] sm:$0xff] }
  0x14   : > { %416 = vmatprep.subr.mxu0 %v1165_v1  ;;  %v377_v28 = vld [vmem:[%s1447_s1 + $0x80] sm:$0xff]  ;;  %v356_v30 = vld [vmem:[%s1247_s22 + $0x18] sm:$0xff]  ;;  %v355_v31 = vld [vmem:[%s1247_s22 + $0x10] sm:$0xff] }
  0x15   : > { %417 = vmatpush1.msra.mxu0 %v372_v5  ;;  %v353_v29 = vld [vmem:[%s1247_s22] sm:$0xff]  ;;  %v358_v32 = vld [vmem:[%s1247_s22 + $0x28] sm:$0xff]  ;;  %v360_v34 = vld [vmem:[%s1247_s22 + $0x38] sm:$0x1] }
  0x16   : > { %418 = vmatprep.subr.mxu0 %v1165_v1  ;;  %v357_v33 = vld [vmem:[%s1247_s22 + $0x20] sm:$0xff]  ;;  %v359_v35 = vld [vmem:[%s1247_s22 + $0x30] sm:$0x1]  ;;  %v511_v37 = vld [vmem:[%s1453_s7 + $0x8] sm:$0xff] }
  0x17   : > { %419 = vmatpush1.msra.mxu0 %v371_v6  ;;  %v512_v36 = vld [vmem:[%s1453_s7 + $0x10] sm:$0xff]  ;;  %v510_v38 = vld [vmem:[%s1453_s7] sm:$0xff]  ;;  %v609_v4 = vld [vmem:[%s1449_s3 + $0x8] sm:$0xff] }
  0x18   : > { %420 = vmatprep.subr.mxu0 %v1165_v1  ;;  %1105 = vmatpush3.msra.mxu1 %v512_v36  ;;  %v1068_v41 = vld [vmem:[%s1448_s2] ss:$0 sm:$0xff]  ;;  %v610_v3 = vld [vmem:[%s1449_s3 + $0x10] sm:$0xff] }
  0x19   : > { %421 = vmatpush1.msra.mxu0 %v370_v8  ;;  %1106 = vmatprep.subr.mxu1 %v1165_v1  ;;  %v608_v5 = vld [vmem:[%s1449_s3] sm:$0xff] }
  0x1a   : > { %422 = vmatprep.subr.mxu0 %v1165_v1  ;;  %1107 = vmatpush3.msra.mxu1 %v511_v37 }
  0x1b   : > { %423 = vmatpush1.msra.mxu0 %v369_v9  ;;  %1108 = vmatprep.subr.mxu1 %v1165_v1 }
  0x1c   : > { %424 = vmatprep.subr.mxu0 %v1165_v1  ;;  %1109 = vmatpush3.msra.mxu1 %v510_v38 }
  0x1d   : > { %425 = vmatpush1.msra.mxu0 %v368_v10  ;;  %1113 = vmatprep.subr.mxu1 %v1165_v1 }
  0x1e   : > { %426 = vmatprep.subr.mxu0 %v1165_v1 }
  0x1f   : > { %427 = vmatpush1.msra.mxu0 %v367_v11  ;;  %v592_v11 = vlaneseq }
  0x20   : > { %428 = vmatprep.subr.mxu0 %v1165_v1 }
  0x21   : > { %429 = vmatpush1.msra.mxu0 %v366_v12  ;;  %v593_v12 = vshrl.u32 %v592_v11, 7 }
  0x22   : > { %430 = vmatprep.subr.mxu0 %v1165_v1 }
  0x23   : > { %431 = vmatpush1.msra.mxu0 %v365_v13  ;;  %v1391_v13 = vsub.s32 0, %v593_v12 }
  0x24   : > { %432 = vmatprep.subr.mxu0 %v1165_v1 }
  0x25   : > { %433 = vmatpush1.msra.mxu0 %v364_v14 }
  0x26   : > { %434 = vmatprep.subr.mxu0 %v1165_v1 }
  0x27   : > { %435 = vmatpush1.msra.mxu0 %v363_v15 }
  0x28   : > { %436 = vmatprep.subr.mxu0 %v1165_v1 }
  0x29   : > { %437 = vmatpush1.msra.mxu0 %v362_v16  ;;  %v600_v16 = vld [vmem:[%s347_s12] sm:$0xff] }
  0x2a   : > { %438 = vmatprep.subr.mxu0 %v1165_v1 }
  0x2b   : > { %439 = vmatpush1.msra.mxu0 %v361_v17  ;;  %v601_v17 = vld [vmem:[%s347_s12 + $0x8] sm:$0xff] }
  0x2c   : > { %450 = vmatprep.subr.mxu0 %v1165_v1 }
  0x2d   : > { %451 = vmatpush2.msra.mxu0 %v387_v18  ;;  %v602_v18 = vld [vmem:[%s347_s12 + $0x10] sm:$0xff] }
  0x2e   : > { %452 = vmatprep.subr.mxu0 %v1165_v1 }
  0x2f   : > { %453 = vmatpush2.msra.mxu0 %v386_v19 }
  0x30   : > { %454 = vmatprep.subr.mxu0 %v1165_v1 }
  0x31   : > { %455 = vmatpush2.msra.mxu0 %v385_v20 }
  0x32   : > { %456 = vmatprep.subr.mxu0 %v1165_v1 }
  0x33   : > { %457 = vmatpush2.msra.mxu0 %v384_v21 }
  0x34   : > { %458 = vmatprep.subr.mxu0 %v1165_v1 }
  0x35   : > { %459 = vmatpush2.msra.mxu0 %v383_v22 }
  0x36   : > { %460 = vmatprep.subr.mxu0 %v1165_v1 }
  0x37   : > { %461 = vmatpush2.msra.mxu0 %v382_v23  ;;  %v603_v23 = vld [vmem:[%s347_s12 + $0x18] sm:$0x1] }
  0x38   : > { %462 = vmatprep.subr.mxu0 %v1165_v1 }
  0x39   : > { %463 = vmatpush2.msra.mxu0 %v381_v24 }
  0x3a   : > { %464 = vmatprep.subr.mxu0 %v1165_v1 }
  0x3b   : > { %465 = vmatpush2.msra.mxu0 %v380_v25 }
  0x3c   : > { %466 = vmatprep.subr.mxu0 %v1165_v1 }
  0x3d   : > { %467 = vmatpush2.msra.mxu0 %v379_v26 }
  0x3e   : > { %468 = vmatprep.subr.mxu0 %v1165_v1 }
  0x3f   : > { %469 = vmatpush2.msra.mxu0 %v378_v27 }
  0x40   : > { %470 = vmatprep.subr.mxu0 %v1165_v1 }
  0x41   : > { %471 = vmatpush2.msra.mxu0 %v377_v28 }
  0x42   : > { %473 = vmatmul.mubr.f32.vlgmr.msra.gmra.mxu0 %v353_v29 }
  0x43   : > { %1070 = vmatprep.mubr.msk.f32.mxu0 %vm395_vm0, %v356_v30 }
  0x46   : > { %478 = vmatmul.mubr.f32.gmra.mxu0 %v355_v31 }
  0x47   : > { %1071 = vmatprep.mubr.msk.f32.mxu0 %vm395_vm0, %v358_v32 }
  0x4a   : > { %483 = vmatmul.mubr.f32.gmra.mxu0 %v357_v33 }
  0x4b   : > { %1072 = vmatprep.mubr.msk.f32.mxu0 %vm395_vm0, %v360_v34 }
  0x4e   : > { %488 = vmatmul.mubr.f32.gmra.mxu0 %v359_v35 }
 0x102   : > { %v474_v39 = vpop.f32.mrf.mxu0 }
 0x103   : > { %v475_v45 = vadd.f32 %v1068_v41, %v474_v39 }
 0x104   : > { %v476_v40 = vpop.f32.mrf.mxu0 }
 0x105   : > { %v494_v50 = vsel %vm493_vm2, %v475_v45, 0.0 }
 0x106   : > { %v479_v42 = vpop.f32.mrf.mxu0 }
 0x107   : > { %v480_v43 = vadd.f32 %v1068_v41, %v479_v42 }
 0x108   : > { %v481_v44 = vpop.f32.mrf.mxu0 }
 0x109   : > { %v495_v47 = vsel %vm493_vm2, %v480_v43, 0.0 }
 0x10a   : > { %v484_v46 = vpop.f32.mrf.mxu0  ;;  %v496_v52 = vadd.f32 %v495_v47, %v494_v50 }
 0x10b   : > { %v485_v48 = vadd.f32 %v1068_v41, %v484_v46 }
 0x10c   : > { %v486_v49 = vpop.f32.mrf.mxu0 }
 0x10d   : > { %v497_v51 = vsel %vm493_vm2, %v485_v48, 0.0 }
 0x10e   : > { %v489_v53 = vpop.f32.mrf.mxu0  ;;  %v498_v55 = vadd.f32 %v497_v51, %v496_v52 }
 0x10f   : > { %v490_v54 = vadd.f32 %v1068_v41, %v489_v53  ;;  %v611_v41 = vld [vmem:[%s1450_s4] sm:$0x3] }
 0x110   : > { %v491_v56 = vpop.f32.mrf.mxu0 }
 0x111   : > { %v500_v57 = vsel %vm499_vm3, %v490_v54, 0.0 }
 0x112   : > { %v501_v58 = vadd.f32 %v500_v57, %v498_v55 }
 0x114   : > { %v502_v59 = vrot.slane %v501_v58, 4 }
 0x116   : > { %v503_v60 = vadd.f32 %v502_v59, %v501_v58 }
 0x118   : > { %v504_v61 = vrot.slane %v503_v60, 2 }
 0x11a   : > { %v505_v62 = vadd.f32 %v504_v61, %v503_v60 }
 0x11c   : > { %v506_v63 = vrot.slane %v505_v62, 1 }
 0x11e   : > { %v507_v0 = vadd.f32 %v506_v63, %v505_v62 }
 0x120   : > { %v509_v2 = vmul.f32 0.04, %v507_v0 }
 0x122   : > { %1111 = vmatmul.mubr.msk.f32.vlgmr.msra.gmra.mxu1 %vm493_vm2, %v509_v2 }
 0x123   : > { %1119 = vmatprep.mubr.msk.f32.mxu1 %vm1166_vm1, %v1165_v1  ;;  %1114 = vmatpush3.msra.mxu1 %v610_v3 }
 0x124   : > { %1115 = vmatprep.subr.mxu1 %v1165_v1 }
 0x125   : > { %1116 = vmatpush3.msra.mxu1 %v609_v4 }
 0x126   : > { %1117 = vmatprep.subr.mxu1 %v1165_v1 }
 0x127   : > { %1118 = vmatpush3.msra.mxu1 %v608_v5 }
 0x128   : > { %1122 = vmatprep.subr.mxu1 %v1165_v1 }
 0x1e2   : > { %v582_v6 = vpop.f32.mrf.mxu1 }
 0x1e3   : > { %v1074_v7 = vmul.f32 -1.442695, %v582_v6 }
 0x1e4   : > { %v1112_v8 = vpop.f32.mrf.mxu1 }
 0x1e5   : > { %1151 = vpow2.f32 %v1074_v7 }
 0x1f2   : > { %v1152_v9 = vpop.eup %1151 }
 0x1f3   : > { %v589_v10 = vadd.f32 1.0, %v1152_v9 }
 0x1f5   : > { %1153 = vrcp.f32 %v589_v10 }
 0x202   : > { %v1154_v14 = vpop.eup %1153 }
 0x203   : > { %v595_v15 = vrot.slane %v1154_v14, %v1391_v13  ;;  %v1081_v14 = vld [vmem:[%s1451_s5] ss:$0 sm:$0xff] }
 0x205   : > { %v596_v19 = vmul.f32 %v595_v15, %v475_v45  ;;  %v597_v20 = vmul.f32 %v595_v15, %v480_v43  ;;  %v598_v21 = vmul.f32 %v595_v15, %v485_v48  ;;  %v599_v22 = vmul.f32 %v595_v15, %v490_v54 }
 0x207   : > { %v604_v24 = vadd.f32 %v600_v16, %v596_v19  ;;  %v605_v25 = vadd.f32 %v601_v17, %v597_v20  ;;  %v606_v26 = vadd.f32 %v602_v18, %v598_v21  ;;  %v607_v27 = vadd.f32 %v603_v23, %v599_v22  ;;  %v1082_v19 = vld [vmem:[%s1452_s6] ss:$0 sm:$0xff] }
 0x209   : > { %v614_v28 = vsel %vm493_vm2, %v604_v24, 0.0  ;;  %v615_v29 = vsel %vm493_vm2, %v605_v25, 0.0  ;;  %v617_v31 = vsel %vm493_vm2, %v606_v26, 0.0  ;;  %v619_v33 = vsel %vm499_vm3, %v607_v27, 0.0 }
 0x20a   : > { %v616_v30 = vadd.f32 %v615_v29, %v614_v28 }
 0x20c   : > { %v618_v32 = vadd.f32 %v617_v31, %v616_v30 }
 0x20e   : > { %v620_v34 = vadd.f32 %v619_v33, %v618_v32 }
 0x210   : > { %v621_v35 = vrot.slane %v620_v34, 4 }
 0x212   : > { %v622_v36 = vadd.f32 %v621_v35, %v620_v34 }
 0x214   : > { %v623_v37 = vrot.slane %v622_v36, 2 }
 0x216   : > { %v624_v38 = vadd.f32 %v623_v37, %v622_v36 }
 0x218   : > { %v625_v39 = vrot.slane %v624_v38, 1 }
 0x21a   : > { %v626_v40 = vadd.f32 %v625_v39, %v624_v38 }
 0x21c   : > { %1120 = vmatmul.mubr.msk.f32.vlgmr.msra.gmra.mxu1 %vm493_vm2, %v626_v40 }
 0x21d   : > { %1123 = vmatpush3.msk.msra.mxu1 %vm706_vm4, %v611_v41  ;;  %1124 = vmatprep.mubr.msk.f32.mxu1 %vm1166_vm1, %v1165_v1 }
 0x21e   : > { %1127 = vmatprep.subr.mxu1 %v1165_v1 }
 0x2dc   : > { %v696_v42 = vpop.f32.mrf.mxu1 }
 0x2dd   : > { %v701_v43 = vmul.f32 0.0033333334, %v696_v42 }
 0x2de   : > { %v1121_v44 = vpop.f32.mrf.mxu1 }
 0x2df   : > { %1125 = vmatmul.mubr.msk.f32.vlgmr.msra.gmra.mxu1 %vm702_vm5, %v701_v43 }
 0x2e0   : > { %1128 = vmatpush3.msra.mxu1 %v610_v3  ;;  %1133 = vmatprep.mubr.msk.f32.mxu1 %vm1166_vm1, %v1165_v1 }
 0x2e1   : > { %1129 = vmatprep.subr.mxu1 %v1165_v1 }
 0x2e2   : > { %1130 = vmatpush3.msra.mxu1 %v609_v4 }
 0x2e3   : > { %1131 = vmatprep.subr.mxu1 %v1165_v1 }
 0x2e4   : > { %1132 = vmatpush3.msra.mxu1 %v608_v5 }
 0x2e5   : > { %1136 = vmatprep.subr.mxu1 %v1165_v1 }
 0x39f   : > { %v776_v45 = vpop.f32.mrf.mxu1 }
 0x3a0   : > { %v783_v46 = vrot.slane %v776_v45, %v1391_v13 }
 0x3a1   : > { %v1126_v47 = vpop.f32.mrf.mxu1 }
 0x3a2   : > { %v784_v48 = vsub.f32 %v604_v24, %v783_v46  ;;  %v785_v49 = vsub.f32 %v605_v25, %v783_v46  ;;  %v786_v50 = vsub.f32 %v606_v26, %v783_v46  ;;  %v787_v51 = vsub.f32 %v607_v27, %v783_v46 }
 0x3a4   : > { %v788_v52 = vmul.f32 %v784_v48, %v784_v48  ;;  %v789_v53 = vmul.f32 %v785_v49, %v785_v49  ;;  %v790_v54 = vmul.f32 %v786_v50, %v786_v50  ;;  %v791_v55 = vmul.f32 %v787_v51, %v787_v51 }
 0x3a6   : > { %v792_v56 = vsel %vm493_vm2, %v788_v52, 0.0  ;;  %v793_v57 = vsel %vm493_vm2, %v789_v53, 0.0  ;;  %v795_v59 = vsel %vm493_vm2, %v790_v54, 0.0  ;;  %v797_v61 = vsel %vm499_vm3, %v791_v55, 0.0 }
 0x3a7   : > { %v794_v58 = vadd.f32 %v793_v57, %v792_v56 }
 0x3a9   : > { %v796_v60 = vadd.f32 %v795_v59, %v794_v58 }
 0x3ab   : > { %v798_v62 = vadd.f32 %v797_v61, %v796_v60 }
 0x3ad   : > { %v799_v63 = vrot.slane %v798_v62, 4 }
 0x3af   : > { %v800_v0 = vadd.f32 %v799_v63, %v798_v62 }
 0x3b1   : > { %v801_v2 = vrot.slane %v800_v0, 2 }
 0x3b3   : > { %v802_v3 = vadd.f32 %v801_v2, %v800_v0 }
 0x3b5   : > { %v803_v4 = vrot.slane %v802_v3, 1 }
 0x3b7   : > { %v804_v5 = vadd.f32 %v803_v4, %v802_v3 }
 0x3b9   : > { %1134 = vmatmul.mubr.msk.f32.vlgmr.msra.gmra.mxu1 %vm493_vm2, %v804_v5 }
 0x3ba   : > { %1137 = vmatpush3.msk.msra.mxu1 %vm706_vm4, %v611_v41  ;;  %1138 = vmatprep.mubr.msk.f32.mxu1 %vm1166_vm1, %v1165_v1 }
 0x479   : > { %v874_v6 = vpop.f32.mrf.mxu1 }
 0x47a   : > { %v878_v7 = vmul.f32 0.0033333334, %v874_v6 }
 0x47b   : > { %v1135_v8 = vpop.f32.mrf.mxu1 }
 0x47c   : > { %v879_v9 = vadd.f32 1e-05, %v878_v7 }
 0x47e   : > { %1155 = vrsqrt.f32 %v879_v9 }
 0x48b   : > { %v1156_v10 = vpop.eup %1155 }
 0x48c   : > { %1139 = vmatmul.mubr.msk.f32.vlgmr.msra.gmra.mxu1 %vm702_vm5, %v1156_v10 }
 0x54c   : > { %v950_v11 = vpop.f32.mrf.mxu1 }
 0x54d   : > { %v957_v12 = vrot.slane %v950_v11, %v1391_v13 }
 0x54e   : > { %v1140_v15 = vpop.f32.mrf.mxu1 }
 0x54f   : > { %v958_v16 = vmul.f32 %v957_v12, %v784_v48  ;;  %v959_v17 = vmul.f32 %v957_v12, %v785_v49  ;;  %v960_v1 = vmul.f32 %v957_v12, %v786_v50  ;;  %v961_v18 = vmul.f32 %v957_v12, %v787_v51 }
 0x551   : > { %v968_v20 = vmul.f32 %v1081_v14, %v958_v16  ;;  %v969_v21 = vmul.f32 %v1081_v14, %v959_v17  ;;  %v970_v22 = vmul.f32 %v1081_v14, %v960_v1  ;;  %v971_v23 = vmul.f32 %v1081_v14, %v961_v18 }
 0x553   : > { %v978_v24 = vadd.f32 %v1082_v19, %v968_v20  ;;  %v979_v13 = vadd.f32 %v1082_v19, %v969_v21  ;;  %v980_v25 = vadd.f32 %v1082_v19, %v970_v22  ;;  %v981_v26 = vadd.f32 %v1082_v19, %v971_v23 }
 0x555   : > { %v982_v27 = vmax.f32 %v978_v24, 0.0  ;;  %v983_v28 = vmax.f32 %v979_v13, 0.0  ;;  %v984_v29 = vmax.f32 %v980_v25, 0.0  ;;  %v985_v30 = vmax.f32 %v981_v26, 0.0 }
 0x557   : > { %986 = vst.msk [vmem:[%s352_s20] sm:$0xff] %vm493_vm2, %v982_v27  ;;  %987 = vst.msk [vmem:[%s352_s20 + $0x8] sm:$0xff] %vm493_vm2, %v983_v28 }
 0x558   : > { %988 = vst.msk [vmem:[%s352_s20 + $0x10] sm:$0xff] %vm493_vm2, %v984_v29 }
 0x559   : > { %989 = vst.msk [vmem:[%s352_s20 + $0x18] sm:$0x1] %vm499_vm3, %v985_v30 }
 0x55a PF: > { %s19_s30 = sadd.s32 1, %s1163_s30  }
 0x55b   : > { %p16_p4 = scmp.ge.s32.totalorder %s19_s30, 4  }
 0x55d   :  { %18 = sbr.rel (!%p16_p4) target bundleno = 1 (0x1), region = 89 }

// kernel: a2s2k_forward.33
= control target key start
LH: loop header
LB: loop body
LE: loop exit
PB: predicated region body
PF: predicated region fallthrough
CT: control target
= control target key end

     0   :  { %s551_s24 = smov 0   ;;  %s580_s0 = inlined_call_operand.vmem [shape: f32[2,25,24], index: 0, kind: input, shape index: {}]   ;;  %s581_s1 = inlined_call_operand.vmem [shape: f32[24,4], index: 1, kind: input, shape index: {}]   ;;  %s582_s2 = inlined_call_operand.vmem [shape: f32[1,4], index: 2, kind: input, shape index: {}]   ;;  %s583_s3 = inlined_call_operand.vmem [shape: f32[4,1], index: 3, kind: input, shape index: {}]   ;;  %s584_s4 = inlined_call_operand.vmem [shape: f32[1,4], index: 4, kind: input, shape index: {}]   ;;  %s585_s5 = inlined_call_operand.vmem [shape: f32[1,4], index: 5, kind: input, shape index: {}]   ;;  %s586_s6 = inlined_call_operand.vmem [shape: f32[1,4], index: 6, kind: input, shape index: {}]   ;;  %s587_s7 = inlined_call_operand.vmem [shape: f32[2,25,4], index: 7, kind: output, shape index: {}]  }
   0x1 LB: > { %s452_s3 = sadd.s32 4294967295, %s509_s24   ;;  %p456_p0 = scmp.ge.s32.totalorder %s509_s24, 1  ;;  %s509_s24 = sphi %s551_s24, %s17_s24  }
   0x2   : > { %p237_p1 = scmp.lt.s32.totalorder %s509_s24, 3 }
   0x4   : > { %p238_p2 = pnand %p456_p0, %p237_p1 }
   0x5   : > { %p269_p3 = scmp.lt.s32.totalorder (!%p238_p2), %s452_s3, 1 }
   0x6   : > { %241 = sbr.rel (%p238_p2) target bundleno = 217 (0xd9), region = 48 }
   0xb   : > { %v285_v0 = vld [vmem:[%s581_s1 + $0x10] sm:$0xff]  ;;  %v284_v1 = vld [vmem:[%s581_s1 + $0x8] sm:$0xff]  ;;  %v283_v2 = vld [vmem:[%s581_s1] sm:$0xff]  ;;  %s589_s3 = smov (!%p269_p3, %s452_s3), 1  ;;  %vm293_vm0 = vcmask 195584   ;;  %vm391_vm1 = vcmask 31744  }
   0xc   : > { %477 = vmatprep.subr.mxu0 %v285_v0  ;;  %489 = vmatprep.subr.mxu1 %v285_v0  ;;  %s468_s28 = sshll.u32 %s589_s3, 5  ;;  %v461_v7 = vld [vmem:[%s582_s2] ss:$0 sm:$0xff]  ;;  %vm395_vm2 = vcmask 24576  }
   0xd   : > { %478 = vmatpush3.msra.mxu0 %v285_v0  ;;  %492 = vmatpush3.msra.mxu1 %v285_v0  ;;  %s273_s8 = scalar_lea.vmem %s580_s0, %s468_s28  ;;  %s278_s13 = scalar_lea.vmem %s587_s7, %s468_s28 }
   0xe   : > { %479 = vmatprep.subr.mxu0 %v284_v1  ;;  %490 = vmatprep.subr.mxu1 %v284_v1  ;;  %v279_v3 = vld [vmem:[%s273_s8] sm:$0xff]  ;;  %v281_v4 = vld [vmem:[%s273_s8 + $0x10] sm:$0xff]  ;;  %v280_v5 = vld [vmem:[%s273_s8 + $0x8] sm:$0xff] }
   0xf   : > { %480 = vmatpush3.msra.mxu0 %v284_v1  ;;  %493 = vmatpush3.msra.mxu1 %v284_v1  ;;  %v282_v6 = vld [vmem:[%s273_s8 + $0x18] sm:$0x1] }
  0x10   : > { %481 = vmatprep.subr.mxu0 %v283_v2  ;;  %491 = vmatprep.subr.mxu1 %v283_v2 }
  0x11   : > { %482 = vmatpush3.msra.mxu0 %v283_v2  ;;  %494 = vmatpush3.msra.mxu1 %v283_v2 }
  0x12   : > { %483 = vmatprep.mubr.msk.f32.mxu0 %vm293_vm0, %v279_v3  ;;  %486 = vmatprep.mubr.msk.f32.mxu1 %vm293_vm0, %v281_v4 }
  0x13   : > { %484 = vmatmul.mubr.msk.f32.vlgmr.msra.gmra.mxu0 %vm293_vm0, %v280_v5  ;;  %487 = vmatmul.mubr.msk.f32.vlgmr.msra.gmra.mxu1 %vm293_vm0, %v282_v6 }
  0xd3   : > { %v485_v8 = vpop.f32.mrf.mxu0  ;;  %v488_v9 = vpop.f32.mrf.mxu1 }
  0xd4   : > { %v378_v10 = vadd.f32 %v485_v8, %v461_v7  ;;  %v388_v11 = vadd.f32 %v488_v9, %v461_v7 }
  0xd5   : > { %v372_v12 = vpop.f32.mrf.mxu0  ;;  %v382_v13 = vpop.f32.mrf.mxu1 }
  0xd6   : > { %393 = vst.msk [vmem:[%s278_s13 + $0x8] sm:$0xff] %vm391_vm1, %v378_v10  ;;  %v373_v14 = vadd.f32 %v461_v7, %v372_v12  ;;  %v383_v15 = vadd.f32 %v461_v7, %v382_v13 }
  0xd7   : > { %396 = vst.msk [vmem:[%s278_s13 + $0x18] sm:$0x1] %vm395_vm2, %v388_v11 }
  0xd8   : > { %392 = vst.msk [vmem:[%s278_s13] sm:$0xff] %vm391_vm1, %v373_v14  ;;  %394 = vst.msk [vmem:[%s278_s13 + $0x10] sm:$0xff] %vm391_vm1, %v383_v15 }
  0xd9 PF: > { %s17_s24 = sadd.s32 1, %s509_s24  }
  0xda   : > { %p14_p4 = scmp.ge.s32.totalorder %s17_s24, 4  }
  0xdc   :  { %16 = sbr.rel (!%p14_p4) target bundleno = 1 (0x1), region = 78 }

</bundles_post_ra>
